<compile_context>
chip_gen: v5e
topology: v5e:2x2
jax: 0.10.0
libtpu: 0.0.40
codegen_flags: <defaults>
</compile_context>

<pallas_src>
import jax
import jax.numpy as jnp
from jax.experimental import pallas as pl
from jax.experimental.pallas import tpu as pltpu


# ----------------------------------------------------------------------------------
# Fused kernel: one grid step == one batch element (all frames + its audio clip).
#   xv_ref : (1, f, h, w, v_cin)       channels-last video, unpadded
#   xa_ref : (1, a_cin, l)             audio, unpadded
#   ws_ref : (v_cout, 9*v_cin)         im2col-flattened spatial weights (bf16)
#   bs_ref : (v_cout, 1)               spatial bias (f32)
#   wt_ref : (v_cout, 3*v_cout)        im2col-flattened temporal weights (bf16)
#   bt_ref : (v_cout, 1)               temporal bias (f32)
#   wa_ref : (a_cout, 3*a_cin)         im2col-flattened audio weights (bf16)
#   ba_ref : (a_cout, 1)               audio bias (f32)
#   ov_ref : (1, f, v_cout, h*w)       video output (lane-dense last dim)
#   oa_ref : (1, a_cout, l)            audio output
#   ysp_ref: (f, v_cout, h*w)  VMEM    spatial-conv intermediate (bf16), never hits HBM
# ----------------------------------------------------------------------------------
def _initial_block_kernel(xv_ref, xa_ref, ws_ref, bs_ref, wt_ref, bt_ref,
                          wa_ref, ba_ref, ov_ref, oa_ref, ysp_ref):
    cdt = jnp.bfloat16                                   # MXU operand dtype
    f, h, w, cin = xv_ref.shape[1], xv_ref.shape[2], xv_ref.shape[3], xv_ref.shape[4]
    hw = h * w
    cout = ov_ref.shape[2]

    # ---- spatial 3x3 conv (per frame): in-kernel zero pad + im2col -> one matmul ----
    x = xv_ref[0].astype(cdt)                            # (f, h, w, cin)
    zr = jnp.zeros((f, 1, w, cin), cdt)
    xp = jnp.concatenate([zr, x, zr], axis=1)            # (f, h+2, w,   cin)
    zc = jnp.zeros((f, h + 2, 1, cin), cdt)
    xp = jnp.concatenate([zc, xp, zc], axis=2)           # (f, h+2, w+2, cin)

    ws = ws_ref[...]                                     # (cout, 9*cin) bf16
    bs = bs_ref[...]                                     # (cout, 1)     f32
    for fi in range(f):
        slab = jnp.concatenate(
            [xp[fi, dy:dy + h, dx:dx + w, :]
             for dy in range(3) for dx in range(3)],
            axis=-1).reshape(hw, 9 * cin)                # (hw, 9*cin) bf16
        # out[o, t] = sum_k ws[o, k] * slab[t, k]   (contract last dims)
        acc = jax.lax.dot_general(ws, slab, (((1,), (1,)), ((), ())),
                                  preferred_element_type=jnp.float32) + bs
        ysp_ref[fi] = acc.astype(cdt)                    # (cout, hw) lane-dense store

    # ---- temporal 3-tap conv (per frame): zero frames handled statically ----
    wt = wt_ref[...]                                     # (cout, 3*cout) bf16
    bt = bt_ref[...]                                     # (cout, 1)      f32
    zf = jnp.zeros((cout, hw), cdt)
    for fi in range(f):
        parts = [ysp_ref[fi + dt] if 0 <= fi + dt < f else zf for dt in (-1, 0, 1)]
        slab_t = jnp.concatenate(parts, axis=0)          # (3*cout, hw) (aligned concat)
        out_t = jnp.dot(wt, slab_t, preferred_element_type=jnp.float32) + bt
        ov_ref[0, fi] = out_t.astype(ov_ref.dtype)       # (cout, hw) lane-dense store

    # ---- audio 3-tap conv: whole clip for this batch, one matmul ----
    xa = xa_ref[0].astype(cdt)                           # (a_cin, l)
    a_cin, la = xa.shape
    zl = jnp.zeros((a_cin, 1), cdt)
    xap = jnp.concatenate([zl, xa, zl], axis=1)          # (a_cin, l+2)
    slab_a = jnp.concatenate([xap[:, dt:dt + la] for dt in range(3)], axis=0)  # (3*a_cin, l)
    out_a = jnp.dot(wa_ref[...], slab_a, preferred_element_type=jnp.float32) + ba_ref[...]
    oa_ref[0] = out_a.astype(oa_ref.dtype)               # (a_cout, l)


# ----------------------------------------------------------------------------------
# Wrapper: layout/weight prep + one pallas_call.
# ----------------------------------------------------------------------------------
def initial_block_forward(video, audio, params):
    """video: (b, f, c, h, w), audio: (b, c, l) -> (b, f, vout, h, w), (b, aout, l)."""
    b, f, v_cin, h, w = video.shape
    _, a_cin, l = audio.shape
    v_cout = params["v_spatial_w"].shape[0]
    a_cout = params["a_w"].shape[0]
    hw = h * w

    # channels-last video (one transpose of the small-cin input; the large-cout output is
    # produced directly in (b, f, cout, h*w) layout by the kernel -> no output transpose).
    x_cl = jnp.transpose(video, (0, 1, 3, 4, 2))                                 # (b,f,h,w,cin)

    # im2col-flattened bf16 weights (tap-major), f32 biases shaped for (Cout, tokens) adds
    ws = jnp.transpose(params["v_spatial_w"], (0, 2, 3, 1)).reshape(
        v_cout, 9 * v_cin).astype(jnp.bfloat16)
    bs = params["v_spatial_b"].reshape(v_cout, 1).astype(jnp.float32)
    wt = jnp.transpose(params["v_temporal_w"], (0, 2, 1)).reshape(
        v_cout, 3 * v_cout).astype(jnp.bfloat16)
    bt = params["v_temporal_b"].reshape(v_cout, 1).astype(jnp.float32)
    wa = jnp.transpose(params["a_w"], (0, 2, 1)).reshape(
        a_cout, 3 * a_cin).astype(jnp.bfloat16)
    ba = params["a_b"].reshape(a_cout, 1).astype(jnp.float32)

    # rough per-step VMEM need (lane/sublane padded, double-buffered blocks)
    def _pad(x, m):
        return -(-x // m) * m
    est = (2 * f * h * _pad(w, 8) * _pad(v_cin, 128) * 4        # video input block x2
           + 2 * f * _pad(v_cout, 8) * _pad(hw, 128) * 4        # video output block x2
           + f * _pad(v_cout, 8) * _pad(hw, 128) * 2            # spatial scratch (bf16)
           + 4 * _pad(a_cin + a_cout, 8) * _pad(l, 128) * 4     # audio blocks
           + 8 * _pad(v_cout + a_cout, 8) * 128 * 4)            # weights/biases
    vmem_limit = int(min(64 * 2 ** 20, max(32 * 2 ** 20, 2 * est)))

    vid_out, aud_out = pl.pallas_call(
        _initial_block_kernel,
        out_shape=(jax.ShapeDtypeStruct((b, f, v_cout, hw), video.dtype),
                   jax.ShapeDtypeStruct((b, a_cout, l), audio.dtype)),
        grid=(b,),
        in_specs=[
            pl.BlockSpec((1, f, h, w, v_cin), lambda i: (i, 0, 0, 0, 0)),
            pl.BlockSpec((1, a_cin, l), lambda i: (i, 0, 0)),
            pl.BlockSpec((v_cout, 9 * v_cin), lambda i: (0, 0)),   # weights stay resident
            pl.BlockSpec((v_cout, 1), lambda i: (0, 0)),
            pl.BlockSpec((v_cout, 3 * v_cout), lambda i: (0, 0)),
            pl.BlockSpec((v_cout, 1), lambda i: (0, 0)),
            pl.BlockSpec((a_cout, 3 * a_cin), lambda i: (0, 0)),
            pl.BlockSpec((a_cout, 1), lambda i: (0, 0)),
        ],
        out_specs=(
            pl.BlockSpec((1, f, v_cout, hw), lambda i: (i, 0, 0, 0)),
            pl.BlockSpec((1, a_cout, l), lambda i: (i, 0, 0)),
        ),
        scratch_shapes=[pltpu.VMEM((f, v_cout, hw), jnp.bfloat16)],
        compiler_params=pltpu.CompilerParams(
            dimension_semantics=("parallel",),
            vmem_limit_bytes=vmem_limit,
        ),
    )(x_cl, audio, ws, bs, wt, bt, wa, ba)

    return vid_out.reshape(b, f, v_cout, h, w), aud_out


# ----------------------------------------------------------------------------------
# Pure-JAX reference (lax.conv) for verification
# ----------------------------------------------------------------------------------
def reference_forward(video, audio, params):
    b, f, c, h, w = video.shape
    hp = jax.lax.Precision.HIGHEST
    x = video.reshape(b * f, c, h, w)
    y = jax.lax.conv_general_dilated(
        x, params["v_spatial_w"], (1, 1), "SAME",
        dimension_numbers=("NCHW", "OIHW", "NCHW"), precision=hp)
    y = y + params["v_spatial_b"][None, :, None, None]
    cout = y.shape[1]
    # '(b f) c h w -> (b h w) c f'
    yt = y.reshape(b, f, cout, h, w).transpose(0, 3, 4, 2, 1).reshape(b * h * w, cout, f)
    yt = jax.lax.conv_general_dilated(
        yt, params["v_temporal_w"], (1,), "SAME",
        dimension_numbers=("NCH", "OIH", "NCH"), precision=hp)
    yt = yt + params["v_temporal_b"][None, :, None]
    # '(b h w) c f -> b f c h w'
    video_out = yt.reshape(b, h, w, cout, f).transpose(0, 4, 3, 1, 2)
    a = jax.lax.conv_general_dilated(
        audio, params["a_w"], (1,), "SAME",
        dimension_numbers=("NCH", "OIH", "NCH"), precision=hp)
    a = a + params["a_b"][None, :, None]
    return video_out, a


# ----------------------------------------------------------------------------------
if __name__ == "__main__":
    b, f, h, w = 2, 4, 16, 16
    v_cin, v_cout = 8, 32
    a_cin, a_cout = 8, 32
    l = 64

    key = jax.random.PRNGKey(0)
    ks = jax.random.split(key, 8)
    video = jax.random.normal(ks[0], (b, f, v_cin, h, w), jnp.float32)
    audio = jax.random.normal(ks[1], (b, a_cin, l), jnp.float32)

    params = {
        "v_spatial_w": 0.1 * jax.random.normal(ks[2], (v_cout, v_cin, 3, 3), jnp.float32),
        "v_spatial_b": 0.1 * jax.random.normal(ks[3], (v_cout,), jnp.float32),
        "v_temporal_w": 0.1 * jax.random.normal(ks[4], (v_cout, v_cout, 3), jnp.float32),
        "v_temporal_b": 0.1 * jax.random.normal(ks[5], (v_cout,), jnp.float32),
        "a_w": 0.1 * jax.random.normal(ks[6], (a_cout, a_cin, 3), jnp.float32),
        "a_b": 0.1 * jax.random.normal(ks[7], (a_cout,), jnp.float32),
    }

    fwd = jax.jit(initial_block_forward)
    video_out, audio_out = jax.block_until_ready(fwd(video, audio, params))

    assert video_out.shape == (b, f, v_cout, h, w)
    assert audio_out.shape == (b, a_cout, l)

    ref_v, ref_a = reference_forward(video, audio, params)
    # tolerance covers bf16 MXU-operand rounding vs. the f32 XLA conv reference
    assert jnp.allclose(video_out, ref_v, atol=2e-2, rtol=2e-2)
    assert jnp.allclose(audio_out, ref_a, atol=2e-2, rtol=2e-2)

    print("KERNEL_OK")
</pallas_src>

<mosaic_0001>
module attributes {stable_mosaic.version = 11 : i64} {
  func.func @_initial_block_kernel(%arg0: i32, %arg1: memref<1x4x16x16x8xf32, #tpu.memory_space<vmem>>, %arg2: memref<1x8x64xf32, #tpu.memory_space<vmem>>, %arg3: memref<32x72xbf16, #tpu.memory_space<vmem>>, %arg4: memref<32x1xf32, #tpu.memory_space<vmem>>, %arg5: memref<32x96xbf16, #tpu.memory_space<vmem>>, %arg6: memref<32x1xf32, #tpu.memory_space<vmem>>, %arg7: memref<32x24xbf16, #tpu.memory_space<vmem>>, %arg8: memref<32x1xf32, #tpu.memory_space<vmem>>, %arg9: memref<1x4x32x256xf32, #tpu.memory_space<vmem>>, %arg10: memref<1x32x64xf32, #tpu.memory_space<vmem>>, %arg11: memref<4x32x256xbf16, #tpu.memory_space<vmem>>) attributes {dimension_semantics = [#tpu.dimension_semantics<parallel>], iteration_bounds = array<i64: 2>, scalar_prefetch = 0 : i64, scratch_operands = 1 : i64, tpu.core_type = #tpu.core_type<tc>, window_params = [{transform_indices = @transform_0, window_bounds = array<i64: 1, 4, 16, 16, 8>}, {transform_indices = @transform_1, window_bounds = array<i64: 1, 8, 64>}, {pipeline_mode = #tpu.pipeline_mode<synchronous>, transform_indices = @transform_2, window_bounds = array<i64: 32, 72>}, {pipeline_mode = #tpu.pipeline_mode<synchronous>, transform_indices = @transform_3, window_bounds = array<i64: 32, 1>}, {pipeline_mode = #tpu.pipeline_mode<synchronous>, transform_indices = @transform_4, window_bounds = array<i64: 32, 96>}, {pipeline_mode = #tpu.pipeline_mode<synchronous>, transform_indices = @transform_5, window_bounds = array<i64: 32, 1>}, {pipeline_mode = #tpu.pipeline_mode<synchronous>, transform_indices = @transform_6, window_bounds = array<i64: 32, 24>}, {pipeline_mode = #tpu.pipeline_mode<synchronous>, transform_indices = @transform_7, window_bounds = array<i64: 32, 1>}, {transform_indices = @transform_8, window_bounds = array<i64: 1, 4, 32, 256>}, {transform_indices = @transform_9, window_bounds = array<i64: 1, 32, 64>}]} {
    %c0 = arith.constant 0 : index
    %c0_0 = arith.constant 0 : index
    %c0_1 = arith.constant 0 : index
    %c0_2 = arith.constant 0 : index
    %c0_3 = arith.constant 0 : index
    %0 = vector.load %arg1[%c0, %c0_0, %c0_1, %c0_2, %c0_3] : memref<1x4x16x16x8xf32, #tpu.memory_space<vmem>>, vector<1x4x16x16x8xf32>
    %1 = vector.shape_cast %0 : vector<1x4x16x16x8xf32> to vector<4x16x16x8xf32>
    %2 = arith.truncf %1 : vector<4x16x16x8xf32> to vector<4x16x16x8xbf16>
    %cst = arith.constant 0.000000e+00 : bf16
    %3 = vector.broadcast %cst : bf16 to vector<4x1x16x8xbf16>
    %4 = tpu.concatenate %3, %2, %3 in 1 : vector<4x1x16x8xbf16>, vector<4x16x16x8xbf16>, vector<4x1x16x8xbf16> -> vector<4x18x16x8xbf16>
    %cst_4 = arith.constant 0.000000e+00 : bf16
    %5 = vector.broadcast %cst_4 : bf16 to vector<4x18x1x8xbf16>
    %6 = tpu.concatenate %5, %4, %5 in 2 : vector<4x18x1x8xbf16>, vector<4x18x16x8xbf16>, vector<4x18x1x8xbf16> -> vector<4x18x18x8xbf16>
    %c0_5 = arith.constant 0 : index
    %c0_6 = arith.constant 0 : index
    %7 = vector.load %arg3[%c0_5, %c0_6] : memref<32x72xbf16, #tpu.memory_space<vmem>>, vector<32x72xbf16>
    %c0_7 = arith.constant 0 : index
    %c0_8 = arith.constant 0 : index
    %8 = vector.load %arg4[%c0_7, %c0_8] : memref<32x1xf32, #tpu.memory_space<vmem>>, vector<32x1xf32>
    %9 = vector.extract_strided_slice %6 {offsets = [0, 0, 0, 0], sizes = [1, 16, 16, 8], strides = [1, 1, 1, 1]} : vector<4x18x18x8xbf16> to vector<1x16x16x8xbf16>
    %10 = vector.shape_cast %9 : vector<1x16x16x8xbf16> to vector<16x16x8xbf16>
    %11 = vector.extract_strided_slice %6 {offsets = [0, 0, 1, 0], sizes = [1, 16, 16, 8], strides = [1, 1, 1, 1]} : vector<4x18x18x8xbf16> to vector<1x16x16x8xbf16>
    %12 = vector.shape_cast %11 : vector<1x16x16x8xbf16> to vector<16x16x8xbf16>
    %13 = vector.extract_strided_slice %6 {offsets = [0, 0, 2, 0], sizes = [1, 16, 16, 8], strides = [1, 1, 1, 1]} : vector<4x18x18x8xbf16> to vector<1x16x16x8xbf16>
    %14 = vector.shape_cast %13 : vector<1x16x16x8xbf16> to vector<16x16x8xbf16>
    %15 = vector.extract_strided_slice %6 {offsets = [0, 1, 0, 0], sizes = [1, 16, 16, 8], strides = [1, 1, 1, 1]} : vector<4x18x18x8xbf16> to vector<1x16x16x8xbf16>
    %16 = vector.shape_cast %15 : vector<1x16x16x8xbf16> to vector<16x16x8xbf16>
    %17 = vector.extract_strided_slice %6 {offsets = [0, 1, 1, 0], sizes = [1, 16, 16, 8], strides = [1, 1, 1, 1]} : vector<4x18x18x8xbf16> to vector<1x16x16x8xbf16>
    %18 = vector.shape_cast %17 : vector<1x16x16x8xbf16> to vector<16x16x8xbf16>
    %19 = vector.extract_strided_slice %6 {offsets = [0, 1, 2, 0], sizes = [1, 16, 16, 8], strides = [1, 1, 1, 1]} : vector<4x18x18x8xbf16> to vector<1x16x16x8xbf16>
    %20 = vector.shape_cast %19 : vector<1x16x16x8xbf16> to vector<16x16x8xbf16>
    %21 = vector.extract_strided_slice %6 {offsets = [0, 2, 0, 0], sizes = [1, 16, 16, 8], strides = [1, 1, 1, 1]} : vector<4x18x18x8xbf16> to vector<1x16x16x8xbf16>
    %22 = vector.shape_cast %21 : vector<1x16x16x8xbf16> to vector<16x16x8xbf16>
    %23 = vector.extract_strided_slice %6 {offsets = [0, 2, 1, 0], sizes = [1, 16, 16, 8], strides = [1, 1, 1, 1]} : vector<4x18x18x8xbf16> to vector<1x16x16x8xbf16>
    %24 = vector.shape_cast %23 : vector<1x16x16x8xbf16> to vector<16x16x8xbf16>
    %25 = vector.extract_strided_slice %6 {offsets = [0, 2, 2, 0], sizes = [1, 16, 16, 8], strides = [1, 1, 1, 1]} : vector<4x18x18x8xbf16> to vector<1x16x16x8xbf16>
    %26 = vector.shape_cast %25 : vector<1x16x16x8xbf16> to vector<16x16x8xbf16>
    %27 = tpu.concatenate %10, %12, %14, %16, %18, %20, %22, %24, %26 in 2 : vector<16x16x8xbf16>, vector<16x16x8xbf16>, vector<16x16x8xbf16>, vector<16x16x8xbf16>, vector<16x16x8xbf16>, vector<16x16x8xbf16>, vector<16x16x8xbf16>, vector<16x16x8xbf16>, vector<16x16x8xbf16> -> vector<16x16x72xbf16>
    %28 = vector.shape_cast %27 : vector<16x16x72xbf16> to vector<256x72xbf16>
    %cst_9 = arith.constant dense<0.000000e+00> : vector<32x256xf32>
    %29 = tpu.matmul %7, %28, %cst_9 {dimension_numbers = #tpu.dot_dimension_numbers<[1], [1], [0], [0], [0, 0, 1, 0], [], []>} : vector<32x72xbf16>, vector<256x72xbf16>, vector<32x256xf32> -> vector<32x256xf32>
    %30 = vector.broadcast %8 : vector<32x1xf32> to vector<32x256xf32>
    %31 = arith.addf %29, %30 : vector<32x256xf32>
    %32 = arith.truncf %31 : vector<32x256xf32> to vector<32x256xbf16>
    %c0_10 = arith.constant 0 : index
    %c0_11 = arith.constant 0 : index
    %c0_12 = arith.constant 0 : index
    %33 = vector.load %arg11[%c0_10, %c0_11, %c0_12] : memref<4x32x256xbf16, #tpu.memory_space<vmem>>, vector<1x32x256xbf16>
    %34 = vector.shape_cast %33 : vector<1x32x256xbf16> to vector<32x256xbf16>
    %35 = vector.shape_cast %32 : vector<32x256xbf16> to vector<1x32x256xbf16>
    tpu.vector_store %arg11[%c0_10, %c0_11, %c0_12], %35 {strides = array<i32>} : memref<4x32x256xbf16, #tpu.memory_space<vmem>>, vector<1x32x256xbf16>,
    %36 = vector.extract_strided_slice %6 {offsets = [1, 0, 0, 0], sizes = [1, 16, 16, 8], strides = [1, 1, 1, 1]} : vector<4x18x18x8xbf16> to vector<1x16x16x8xbf16>
    %37 = vector.shape_cast %36 : vector<1x16x16x8xbf16> to vector<16x16x8xbf16>
    %38 = vector.extract_strided_slice %6 {offsets = [1, 0, 1, 0], sizes = [1, 16, 16, 8], strides = [1, 1, 1, 1]} : vector<4x18x18x8xbf16> to vector<1x16x16x8xbf16>
    %39 = vector.shape_cast %38 : vector<1x16x16x8xbf16> to vector<16x16x8xbf16>
    %40 = vector.extract_strided_slice %6 {offsets = [1, 0, 2, 0], sizes = [1, 16, 16, 8], strides = [1, 1, 1, 1]} : vector<4x18x18x8xbf16> to vector<1x16x16x8xbf16>
    %41 = vector.shape_cast %40 : vector<1x16x16x8xbf16> to vector<16x16x8xbf16>
    %42 = vector.extract_strided_slice %6 {offsets = [1, 1, 0, 0], sizes = [1, 16, 16, 8], strides = [1, 1, 1, 1]} : vector<4x18x18x8xbf16> to vector<1x16x16x8xbf16>
    %43 = vector.shape_cast %42 : vector<1x16x16x8xbf16> to vector<16x16x8xbf16>
    %44 = vector.extract_strided_slice %6 {offsets = [1, 1, 1, 0], sizes = [1, 16, 16, 8], strides = [1, 1, 1, 1]} : vector<4x18x18x8xbf16> to vector<1x16x16x8xbf16>
    %45 = vector.shape_cast %44 : vector<1x16x16x8xbf16> to vector<16x16x8xbf16>
    %46 = vector.extract_strided_slice %6 {offsets = [1, 1, 2, 0], sizes = [1, 16, 16, 8], strides = [1, 1, 1, 1]} : vector<4x18x18x8xbf16> to vector<1x16x16x8xbf16>
    %47 = vector.shape_cast %46 : vector<1x16x16x8xbf16> to vector<16x16x8xbf16>
    %48 = vector.extract_strided_slice %6 {offsets = [1, 2, 0, 0], sizes = [1, 16, 16, 8], strides = [1, 1, 1, 1]} : vector<4x18x18x8xbf16> to vector<1x16x16x8xbf16>
    %49 = vector.shape_cast %48 : vector<1x16x16x8xbf16> to vector<16x16x8xbf16>
    %50 = vector.extract_strided_slice %6 {offsets = [1, 2, 1, 0], sizes = [1, 16, 16, 8], strides = [1, 1, 1, 1]} : vector<4x18x18x8xbf16> to vector<1x16x16x8xbf16>
    %51 = vector.shape_cast %50 : vector<1x16x16x8xbf16> to vector<16x16x8xbf16>
    %52 = vector.extract_strided_slice %6 {offsets = [1, 2, 2, 0], sizes = [1, 16, 16, 8], strides = [1, 1, 1, 1]} : vector<4x18x18x8xbf16> to vector<1x16x16x8xbf16>
    %53 = vector.shape_cast %52 : vector<1x16x16x8xbf16> to vector<16x16x8xbf16>
    %54 = tpu.concatenate %37, %39, %41, %43, %45, %47, %49, %51, %53 in 2 : vector<16x16x8xbf16>, vector<16x16x8xbf16>, vector<16x16x8xbf16>, vector<16x16x8xbf16>, vector<16x16x8xbf16>, vector<16x16x8xbf16>, vector<16x16x8xbf16>, vector<16x16x8xbf16>, vector<16x16x8xbf16> -> vector<16x16x72xbf16>
    %55 = vector.shape_cast %54 : vector<16x16x72xbf16> to vector<256x72xbf16>
    %cst_13 = arith.constant dense<0.000000e+00> : vector<32x256xf32>
    %56 = tpu.matmul %7, %55, %cst_13 {dimension_numbers = #tpu.dot_dimension_numbers<[1], [1], [0], [0], [0, 0, 1, 0], [], []>} : vector<32x72xbf16>, vector<256x72xbf16>, vector<32x256xf32> -> vector<32x256xf32>
    %57 = vector.broadcast %8 : vector<32x1xf32> to vector<32x256xf32>
    %58 = arith.addf %56, %57 : vector<32x256xf32>
    %59 = arith.truncf %58 : vector<32x256xf32> to vector<32x256xbf16>
    %c1 = arith.constant 1 : index
    %c0_14 = arith.constant 0 : index
    %c0_15 = arith.constant 0 : index
    %60 = vector.load %arg11[%c1, %c0_14, %c0_15] : memref<4x32x256xbf16, #tpu.memory_space<vmem>>, vector<1x32x256xbf16>
    %61 = vector.shape_cast %60 : vector<1x32x256xbf16> to vector<32x256xbf16>
    %62 = vector.shape_cast %59 : vector<32x256xbf16> to vector<1x32x256xbf16>
    tpu.vector_store %arg11[%c1, %c0_14, %c0_15], %62 {strides = array<i32>} : memref<4x32x256xbf16, #tpu.memory_space<vmem>>, vector<1x32x256xbf16>,
    %63 = vector.extract_strided_slice %6 {offsets = [2, 0, 0, 0], sizes = [1, 16, 16, 8], strides = [1, 1, 1, 1]} : vector<4x18x18x8xbf16> to vector<1x16x16x8xbf16>
    %64 = vector.shape_cast %63 : vector<1x16x16x8xbf16> to vector<16x16x8xbf16>
    %65 = vector.extract_strided_slice %6 {offsets = [2, 0, 1, 0], sizes = [1, 16, 16, 8], strides = [1, 1, 1, 1]} : vector<4x18x18x8xbf16> to vector<1x16x16x8xbf16>
    %66 = vector.shape_cast %65 : vector<1x16x16x8xbf16> to vector<16x16x8xbf16>
    %67 = vector.extract_strided_slice %6 {offsets = [2, 0, 2, 0], sizes = [1, 16, 16, 8], strides = [1, 1, 1, 1]} : vector<4x18x18x8xbf16> to vector<1x16x16x8xbf16>
    %68 = vector.shape_cast %67 : vector<1x16x16x8xbf16> to vector<16x16x8xbf16>
    %69 = vector.extract_strided_slice %6 {offsets = [2, 1, 0, 0], sizes = [1, 16, 16, 8], strides = [1, 1, 1, 1]} : vector<4x18x18x8xbf16> to vector<1x16x16x8xbf16>
    %70 = vector.shape_cast %69 : vector<1x16x16x8xbf16> to vector<16x16x8xbf16>
    %71 = vector.extract_strided_slice %6 {offsets = [2, 1, 1, 0], sizes = [1, 16, 16, 8], strides = [1, 1, 1, 1]} : vector<4x18x18x8xbf16> to vector<1x16x16x8xbf16>
    %72 = vector.shape_cast %71 : vector<1x16x16x8xbf16> to vector<16x16x8xbf16>
    %73 = vector.extract_strided_slice %6 {offsets = [2, 1, 2, 0], sizes = [1, 16, 16, 8], strides = [1, 1, 1, 1]} : vector<4x18x18x8xbf16> to vector<1x16x16x8xbf16>
    %74 = vector.shape_cast %73 : vector<1x16x16x8xbf16> to vector<16x16x8xbf16>
    %75 = vector.extract_strided_slice %6 {offsets = [2, 2, 0, 0], sizes = [1, 16, 16, 8], strides = [1, 1, 1, 1]} : vector<4x18x18x8xbf16> to vector<1x16x16x8xbf16>
    %76 = vector.shape_cast %75 : vector<1x16x16x8xbf16> to vector<16x16x8xbf16>
    %77 = vector.extract_strided_slice %6 {offsets = [2, 2, 1, 0], sizes = [1, 16, 16, 8], strides = [1, 1, 1, 1]} : vector<4x18x18x8xbf16> to vector<1x16x16x8xbf16>
    %78 = vector.shape_cast %77 : vector<1x16x16x8xbf16> to vector<16x16x8xbf16>
    %79 = vector.extract_strided_slice %6 {offsets = [2, 2, 2, 0], sizes = [1, 16, 16, 8], strides = [1, 1, 1, 1]} : vector<4x18x18x8xbf16> to vector<1x16x16x8xbf16>
    %80 = vector.shape_cast %79 : vector<1x16x16x8xbf16> to vector<16x16x8xbf16>
    %81 = tpu.concatenate %64, %66, %68, %70, %72, %74, %76, %78, %80 in 2 : vector<16x16x8xbf16>, vector<16x16x8xbf16>, vector<16x16x8xbf16>, vector<16x16x8xbf16>, vector<16x16x8xbf16>, vector<16x16x8xbf16>, vector<16x16x8xbf16>, vector<16x16x8xbf16>, vector<16x16x8xbf16> -> vector<16x16x72xbf16>
    %82 = vector.shape_cast %81 : vector<16x16x72xbf16> to vector<256x72xbf16>
    %cst_16 = arith.constant dense<0.000000e+00> : vector<32x256xf32>
    %83 = tpu.matmul %7, %82, %cst_16 {dimension_numbers = #tpu.dot_dimension_numbers<[1], [1], [0], [0], [0, 0, 1, 0], [], []>} : vector<32x72xbf16>, vector<256x72xbf16>, vector<32x256xf32> -> vector<32x256xf32>
    %84 = vector.broadcast %8 : vector<32x1xf32> to vector<32x256xf32>
    %85 = arith.addf %83, %84 : vector<32x256xf32>
    %86 = arith.truncf %85 : vector<32x256xf32> to vector<32x256xbf16>
    %c2 = arith.constant 2 : index
    %c0_17 = arith.constant 0 : index
    %c0_18 = arith.constant 0 : index
    %87 = vector.load %arg11[%c2, %c0_17, %c0_18] : memref<4x32x256xbf16, #tpu.memory_space<vmem>>, vector<1x32x256xbf16>
    %88 = vector.shape_cast %87 : vector<1x32x256xbf16> to vector<32x256xbf16>
    %89 = vector.shape_cast %86 : vector<32x256xbf16> to vector<1x32x256xbf16>
    tpu.vector_store %arg11[%c2, %c0_17, %c0_18], %89 {strides = array<i32>} : memref<4x32x256xbf16, #tpu.memory_space<vmem>>, vector<1x32x256xbf16>,
    %90 = vector.extract_strided_slice %6 {offsets = [3, 0, 0, 0], sizes = [1, 16, 16, 8], strides = [1, 1, 1, 1]} : vector<4x18x18x8xbf16> to vector<1x16x16x8xbf16>
    %91 = vector.shape_cast %90 : vector<1x16x16x8xbf16> to vector<16x16x8xbf16>
    %92 = vector.extract_strided_slice %6 {offsets = [3, 0, 1, 0], sizes = [1, 16, 16, 8], strides = [1, 1, 1, 1]} : vector<4x18x18x8xbf16> to vector<1x16x16x8xbf16>
    %93 = vector.shape_cast %92 : vector<1x16x16x8xbf16> to vector<16x16x8xbf16>
    %94 = vector.extract_strided_slice %6 {offsets = [3, 0, 2, 0], sizes = [1, 16, 16, 8], strides = [1, 1, 1, 1]} : vector<4x18x18x8xbf16> to vector<1x16x16x8xbf16>
    %95 = vector.shape_cast %94 : vector<1x16x16x8xbf16> to vector<16x16x8xbf16>
    %96 = vector.extract_strided_slice %6 {offsets = [3, 1, 0, 0], sizes = [1, 16, 16, 8], strides = [1, 1, 1, 1]} : vector<4x18x18x8xbf16> to vector<1x16x16x8xbf16>
    %97 = vector.shape_cast %96 : vector<1x16x16x8xbf16> to vector<16x16x8xbf16>
    %98 = vector.extract_strided_slice %6 {offsets = [3, 1, 1, 0], sizes = [1, 16, 16, 8], strides = [1, 1, 1, 1]} : vector<4x18x18x8xbf16> to vector<1x16x16x8xbf16>
    %99 = vector.shape_cast %98 : vector<1x16x16x8xbf16> to vector<16x16x8xbf16>
    %100 = vector.extract_strided_slice %6 {offsets = [3, 1, 2, 0], sizes = [1, 16, 16, 8], strides = [1, 1, 1, 1]} : vector<4x18x18x8xbf16> to vector<1x16x16x8xbf16>
    %101 = vector.shape_cast %100 : vector<1x16x16x8xbf16> to vector<16x16x8xbf16>
    %102 = vector.extract_strided_slice %6 {offsets = [3, 2, 0, 0], sizes = [1, 16, 16, 8], strides = [1, 1, 1, 1]} : vector<4x18x18x8xbf16> to vector<1x16x16x8xbf16>
    %103 = vector.shape_cast %102 : vector<1x16x16x8xbf16> to vector<16x16x8xbf16>
    %104 = vector.extract_strided_slice %6 {offsets = [3, 2, 1, 0], sizes = [1, 16, 16, 8], strides = [1, 1, 1, 1]} : vector<4x18x18x8xbf16> to vector<1x16x16x8xbf16>
    %105 = vector.shape_cast %104 : vector<1x16x16x8xbf16> to vector<16x16x8xbf16>
    %106 = vector.extract_strided_slice %6 {offsets = [3, 2, 2, 0], sizes = [1, 16, 16, 8], strides = [1, 1, 1, 1]} : vector<4x18x18x8xbf16> to vector<1x16x16x8xbf16>
    %107 = vector.shape_cast %106 : vector<1x16x16x8xbf16> to vector<16x16x8xbf16>
    %108 = tpu.concatenate %91, %93, %95, %97, %99, %101, %103, %105, %107 in 2 : vector<16x16x8xbf16>, vector<16x16x8xbf16>, vector<16x16x8xbf16>, vector<16x16x8xbf16>, vector<16x16x8xbf16>, vector<16x16x8xbf16>, vector<16x16x8xbf16>, vector<16x16x8xbf16>, vector<16x16x8xbf16> -> vector<16x16x72xbf16>
    %109 = vector.shape_cast %108 : vector<16x16x72xbf16> to vector<256x72xbf16>
    %cst_19 = arith.constant dense<0.000000e+00> : vector<32x256xf32>
    %110 = tpu.matmul %7, %109, %cst_19 {dimension_numbers = #tpu.dot_dimension_numbers<[1], [1], [0], [0], [0, 0, 1, 0], [], []>} : vector<32x72xbf16>, vector<256x72xbf16>, vector<32x256xf32> -> vector<32x256xf32>
    %111 = vector.broadcast %8 : vector<32x1xf32> to vector<32x256xf32>
    %112 = arith.addf %110, %111 : vector<32x256xf32>
    %113 = arith.truncf %112 : vector<32x256xf32> to vector<32x256xbf16>
    %c3 = arith.constant 3 : index
    %c0_20 = arith.constant 0 : index
    %c0_21 = arith.constant 0 : index
    %114 = vector.load %arg11[%c3, %c0_20, %c0_21] : memref<4x32x256xbf16, #tpu.memory_space<vmem>>, vector<1x32x256xbf16>
    %115 = vector.shape_cast %114 : vector<1x32x256xbf16> to vector<32x256xbf16>
    %116 = vector.shape_cast %113 : vector<32x256xbf16> to vector<1x32x256xbf16>
    tpu.vector_store %arg11[%c3, %c0_20, %c0_21], %116 {strides = array<i32>} : memref<4x32x256xbf16, #tpu.memory_space<vmem>>, vector<1x32x256xbf16>,
    %c0_22 = arith.constant 0 : index
    %c0_23 = arith.constant 0 : index
    %117 = vector.load %arg5[%c0_22, %c0_23] : memref<32x96xbf16, #tpu.memory_space<vmem>>, vector<32x96xbf16>
    %c0_24 = arith.constant 0 : index
    %c0_25 = arith.constant 0 : index
    %118 = vector.load %arg6[%c0_24, %c0_25] : memref<32x1xf32, #tpu.memory_space<vmem>>, vector<32x1xf32>
    %cst_26 = arith.constant 0.000000e+00 : bf16
    %119 = vector.broadcast %cst_26 : bf16 to vector<32x256xbf16>
    %c0_27 = arith.constant 0 : index
    %c0_28 = arith.constant 0 : index
    %c0_29 = arith.constant 0 : index
    %120 = vector.load %arg11[%c0_27, %c0_28, %c0_29] : memref<4x32x256xbf16, #tpu.memory_space<vmem>>, vector<1x32x256xbf16>
    %121 = vector.shape_cast %120 : vector<1x32x256xbf16> to vector<32x256xbf16>
    %c1_30 = arith.constant 1 : index
    %c0_31 = arith.constant 0 : index
    %c0_32 = arith.constant 0 : index
    %122 = vector.load %arg11[%c1_30, %c0_31, %c0_32] : memref<4x32x256xbf16, #tpu.memory_space<vmem>>, vector<1x32x256xbf16>
    %123 = vector.shape_cast %122 : vector<1x32x256xbf16> to vector<32x256xbf16>
    %124 = tpu.concatenate %119, %121, %123 in 0 : vector<32x256xbf16>, vector<32x256xbf16>, vector<32x256xbf16> -> vector<96x256xbf16>
    %cst_33 = arith.constant dense<0.000000e+00> : vector<32x256xf32>
    %125 = tpu.matmul %117, %124, %cst_33 {dimension_numbers = #tpu.dot_dimension_numbers<[1], [0], [0], [1], [0, 0, 1, 1], [], []>} : vector<32x96xbf16>, vector<96x256xbf16>, vector<32x256xf32> -> vector<32x256xf32>
    %126 = vector.broadcast %118 : vector<32x1xf32> to vector<32x256xf32>
    %127 = arith.addf %125, %126 : vector<32x256xf32>
    %c0_34 = arith.constant 0 : index
    %c0_35 = arith.constant 0 : index
    %c0_36 = arith.constant 0 : index
    %c0_37 = arith.constant 0 : index
    %128 = vector.load %arg9[%c0_34, %c0_35, %c0_36, %c0_37] : memref<1x4x32x256xf32, #tpu.memory_space<vmem>>, vector<1x1x32x256xf32>
    %129 = vector.shape_cast %128 : vector<1x1x32x256xf32> to vector<32x256xf32>
    %130 = vector.shape_cast %127 : vector<32x256xf32> to vector<1x1x32x256xf32>
    tpu.vector_store %arg9[%c0_34, %c0_35, %c0_36, %c0_37], %130 {strides = array<i32>} : memref<1x4x32x256xf32, #tpu.memory_space<vmem>>, vector<1x1x32x256xf32>,
    %c0_38 = arith.constant 0 : index
    %c0_39 = arith.constant 0 : index
    %c0_40 = arith.constant 0 : index
    %131 = vector.load %arg11[%c0_38, %c0_39, %c0_40] : memref<4x32x256xbf16, #tpu.memory_space<vmem>>, vector<1x32x256xbf16>
    %132 = vector.shape_cast %131 : vector<1x32x256xbf16> to vector<32x256xbf16>
    %c1_41 = arith.constant 1 : index
    %c0_42 = arith.constant 0 : index
    %c0_43 = arith.constant 0 : index
    %133 = vector.load %arg11[%c1_41, %c0_42, %c0_43] : memref<4x32x256xbf16, #tpu.memory_space<vmem>>, vector<1x32x256xbf16>
    %134 = vector.shape_cast %133 : vector<1x32x256xbf16> to vector<32x256xbf16>
    %c2_44 = arith.constant 2 : index
    %c0_45 = arith.constant 0 : index
    %c0_46 = arith.constant 0 : index
    %135 = vector.load %arg11[%c2_44, %c0_45, %c0_46] : memref<4x32x256xbf16, #tpu.memory_space<vmem>>, vector<1x32x256xbf16>
    %136 = vector.shape_cast %135 : vector<1x32x256xbf16> to vector<32x256xbf16>
    %137 = tpu.concatenate %132, %134, %136 in 0 : vector<32x256xbf16>, vector<32x256xbf16>, vector<32x256xbf16> -> vector<96x256xbf16>
    %cst_47 = arith.constant dense<0.000000e+00> : vector<32x256xf32>
    %138 = tpu.matmul %117, %137, %cst_47 {dimension_numbers = #tpu.dot_dimension_numbers<[1], [0], [0], [1], [0, 0, 1, 1], [], []>} : vector<32x96xbf16>, vector<96x256xbf16>, vector<32x256xf32> -> vector<32x256xf32>
    %139 = vector.broadcast %118 : vector<32x1xf32> to vector<32x256xf32>
    %140 = arith.addf %138, %139 : vector<32x256xf32>
    %c0_48 = arith.constant 0 : index
    %c1_49 = arith.constant 1 : index
    %c0_50 = arith.constant 0 : index
    %c0_51 = arith.constant 0 : index
    %141 = vector.load %arg9[%c0_48, %c1_49, %c0_50, %c0_51] : memref<1x4x32x256xf32, #tpu.memory_space<vmem>>, vector<1x1x32x256xf32>
    %142 = vector.shape_cast %141 : vector<1x1x32x256xf32> to vector<32x256xf32>
    %143 = vector.shape_cast %140 : vector<32x256xf32> to vector<1x1x32x256xf32>
    tpu.vector_store %arg9[%c0_48, %c1_49, %c0_50, %c0_51], %143 {strides = array<i32>} : memref<1x4x32x256xf32, #tpu.memory_space<vmem>>, vector<1x1x32x256xf32>,
    %c1_52 = arith.constant 1 : index
    %c0_53 = arith.constant 0 : index
    %c0_54 = arith.constant 0 : index
    %144 = vector.load %arg11[%c1_52, %c0_53, %c0_54] : memref<4x32x256xbf16, #tpu.memory_space<vmem>>, vector<1x32x256xbf16>
    %145 = vector.shape_cast %144 : vector<1x32x256xbf16> to vector<32x256xbf16>
    %c2_55 = arith.constant 2 : index
    %c0_56 = arith.constant 0 : index
    %c0_57 = arith.constant 0 : index
    %146 = vector.load %arg11[%c2_55, %c0_56, %c0_57] : memref<4x32x256xbf16, #tpu.memory_space<vmem>>, vector<1x32x256xbf16>
    %147 = vector.shape_cast %146 : vector<1x32x256xbf16> to vector<32x256xbf16>
    %c3_58 = arith.constant 3 : index
    %c0_59 = arith.constant 0 : index
    %c0_60 = arith.constant 0 : index
    %148 = vector.load %arg11[%c3_58, %c0_59, %c0_60] : memref<4x32x256xbf16, #tpu.memory_space<vmem>>, vector<1x32x256xbf16>
    %149 = vector.shape_cast %148 : vector<1x32x256xbf16> to vector<32x256xbf16>
    %150 = tpu.concatenate %145, %147, %149 in 0 : vector<32x256xbf16>, vector<32x256xbf16>, vector<32x256xbf16> -> vector<96x256xbf16>
    %cst_61 = arith.constant dense<0.000000e+00> : vector<32x256xf32>
    %151 = tpu.matmul %117, %150, %cst_61 {dimension_numbers = #tpu.dot_dimension_numbers<[1], [0], [0], [1], [0, 0, 1, 1], [], []>} : vector<32x96xbf16>, vector<96x256xbf16>, vector<32x256xf32> -> vector<32x256xf32>
    %152 = vector.broadcast %118 : vector<32x1xf32> to vector<32x256xf32>
    %153 = arith.addf %151, %152 : vector<32x256xf32>
    %c0_62 = arith.constant 0 : index
    %c2_63 = arith.constant 2 : index
    %c0_64 = arith.constant 0 : index
    %c0_65 = arith.constant 0 : index
    %154 = vector.load %arg9[%c0_62, %c2_63, %c0_64, %c0_65] : memref<1x4x32x256xf32, #tpu.memory_space<vmem>>, vector<1x1x32x256xf32>
    %155 = vector.shape_cast %154 : vector<1x1x32x256xf32> to vector<32x256xf32>
    %156 = vector.shape_cast %153 : vector<32x256xf32> to vector<1x1x32x256xf32>
    tpu.vector_store %arg9[%c0_62, %c2_63, %c0_64, %c0_65], %156 {strides = array<i32>} : memref<1x4x32x256xf32, #tpu.memory_space<vmem>>, vector<1x1x32x256xf32>,
    %c2_66 = arith.constant 2 : index
    %c0_67 = arith.constant 0 : index
    %c0_68 = arith.constant 0 : index
    %157 = vector.load %arg11[%c2_66, %c0_67, %c0_68] : memref<4x32x256xbf16, #tpu.memory_space<vmem>>, vector<1x32x256xbf16>
    %158 = vector.shape_cast %157 : vector<1x32x256xbf16> to vector<32x256xbf16>
    %c3_69 = arith.constant 3 : index
    %c0_70 = arith.constant 0 : index
    %c0_71 = arith.constant 0 : index
    %159 = vector.load %arg11[%c3_69, %c0_70, %c0_71] : memref<4x32x256xbf16, #tpu.memory_space<vmem>>, vector<1x32x256xbf16>
    %160 = vector.shape_cast %159 : vector<1x32x256xbf16> to vector<32x256xbf16>
    %161 = tpu.concatenate %158, %160, %119 in 0 : vector<32x256xbf16>, vector<32x256xbf16>, vector<32x256xbf16> -> vector<96x256xbf16>
    %cst_72 = arith.constant dense<0.000000e+00> : vector<32x256xf32>
    %162 = tpu.matmul %117, %161, %cst_72 {dimension_numbers = #tpu.dot_dimension_numbers<[1], [0], [0], [1], [0, 0, 1, 1], [], []>} : vector<32x96xbf16>, vector<96x256xbf16>, vector<32x256xf32> -> vector<32x256xf32>
    %163 = vector.broadcast %118 : vector<32x1xf32> to vector<32x256xf32>
    %164 = arith.addf %162, %163 : vector<32x256xf32>
    %c0_73 = arith.constant 0 : index
    %c3_74 = arith.constant 3 : index
    %c0_75 = arith.constant 0 : index
    %c0_76 = arith.constant 0 : index
    %165 = vector.load %arg9[%c0_73, %c3_74, %c0_75, %c0_76] : memref<1x4x32x256xf32, #tpu.memory_space<vmem>>, vector<1x1x32x256xf32>
    %166 = vector.shape_cast %165 : vector<1x1x32x256xf32> to vector<32x256xf32>
    %167 = vector.shape_cast %164 : vector<32x256xf32> to vector<1x1x32x256xf32>
    tpu.vector_store %arg9[%c0_73, %c3_74, %c0_75, %c0_76], %167 {strides = array<i32>} : memref<1x4x32x256xf32, #tpu.memory_space<vmem>>, vector<1x1x32x256xf32>,
    %c0_77 = arith.constant 0 : index
    %c0_78 = arith.constant 0 : index
    %c0_79 = arith.constant 0 : index
    %168 = vector.load %arg2[%c0_77, %c0_78, %c0_79] : memref<1x8x64xf32, #tpu.memory_space<vmem>>, vector<1x8x64xf32>
    %169 = vector.shape_cast %168 : vector<1x8x64xf32> to vector<8x64xf32>
    %170 = arith.truncf %169 : vector<8x64xf32> to vector<8x64xbf16>
    %cst_80 = arith.constant 0.000000e+00 : bf16
    %171 = vector.broadcast %cst_80 : bf16 to vector<8x1xbf16>
    %172 = tpu.concatenate %171, %170, %171 in 1 : vector<8x1xbf16>, vector<8x64xbf16>, vector<8x1xbf16> -> vector<8x66xbf16>
    %173 = vector.extract_strided_slice %172 {offsets = [0, 0], sizes = [8, 64], strides = [1, 1]} : vector<8x66xbf16> to vector<8x64xbf16>
    %174 = vector.extract_strided_slice %172 {offsets = [0, 1], sizes = [8, 64], strides = [1, 1]} : vector<8x66xbf16> to vector<8x64xbf16>
    %175 = vector.extract_strided_slice %172 {offsets = [0, 2], sizes = [8, 64], strides = [1, 1]} : vector<8x66xbf16> to vector<8x64xbf16>
    %176 = tpu.concatenate %173, %174, %175 in 0 : vector<8x64xbf16>, vector<8x64xbf16>, vector<8x64xbf16> -> vector<24x64xbf16>
    %c0_81 = arith.constant 0 : index
    %c0_82 = arith.constant 0 : index
    %177 = vector.load %arg7[%c0_81, %c0_82] : memref<32x24xbf16, #tpu.memory_space<vmem>>, vector<32x24xbf16>
    %cst_83 = arith.constant dense<0.000000e+00> : vector<32x64xf32>
    %178 = tpu.matmul %177, %176, %cst_83 {dimension_numbers = #tpu.dot_dimension_numbers<[1], [0], [0], [1], [0, 0, 1, 1], [], []>} : vector<32x24xbf16>, vector<24x64xbf16>, vector<32x64xf32> -> vector<32x64xf32>
    %c0_84 = arith.constant 0 : index
    %c0_85 = arith.constant 0 : index
    %179 = vector.load %arg8[%c0_84, %c0_85] : memref<32x1xf32, #tpu.memory_space<vmem>>, vector<32x1xf32>
    %180 = vector.broadcast %179 : vector<32x1xf32> to vector<32x64xf32>
    %181 = arith.addf %178, %180 : vector<32x64xf32>
    %c0_86 = arith.constant 0 : index
    %c0_87 = arith.constant 0 : index
    %c0_88 = arith.constant 0 : index
    %182 = vector.load %arg10[%c0_86, %c0_87, %c0_88] : memref<1x32x64xf32, #tpu.memory_space<vmem>>, vector<1x32x64xf32>
    %183 = vector.shape_cast %182 : vector<1x32x64xf32> to vector<32x64xf32>
    %184 = vector.shape_cast %181 : vector<32x64xf32> to vector<1x32x64xf32>
    tpu.vector_store %arg10[%c0_86, %c0_87, %c0_88], %184 {strides = array<i32>} : memref<1x32x64xf32, #tpu.memory_space<vmem>>, vector<1x32x64xf32>,
    return
  }
  func.func @transform_0(%arg0: i32) -> (i32, i32, i32, i32, i32) {
    %c0_i32 = arith.constant 0 : i32
    %c0_i32_0 = arith.constant 0 : i32
    %c0_i32_1 = arith.constant 0 : i32
    %c0_i32_2 = arith.constant 0 : i32
    %c0_i32_3 = arith.constant 0 : i32
    return %arg0, %c0_i32, %c0_i32_0, %c0_i32_1, %c0_i32_2 : i32, i32, i32, i32, i32
  }
  func.func @transform_1(%arg0: i32) -> (i32, i32, i32) {
    %c0_i32 = arith.constant 0 : i32
    %c0_i32_0 = arith.constant 0 : i32
    %c0_i32_1 = arith.constant 0 : i32
    return %arg0, %c0_i32, %c0_i32_0 : i32, i32, i32
  }
  func.func @transform_2(%arg0: i32) -> (i32, i32) {
    %c0_i32 = arith.constant 0 : i32
    %c0_i32_0 = arith.constant 0 : i32
    %c0_i32_1 = arith.constant 0 : i32
    return %c0_i32, %c0_i32_0 : i32, i32
  }
  func.func @transform_3(%arg0: i32) -> (i32, i32) {
    %c0_i32 = arith.constant 0 : i32
    %c0_i32_0 = arith.constant 0 : i32
    %c0_i32_1 = arith.constant 0 : i32
    return %c0_i32, %c0_i32_0 : i32, i32
  }
  func.func @transform_4(%arg0: i32) -> (i32, i32) {
    %c0_i32 = arith.constant 0 : i32
    %c0_i32_0 = arith.constant 0 : i32
    %c0_i32_1 = arith.constant 0 : i32
    return %c0_i32, %c0_i32_0 : i32, i32
  }
  func.func @transform_5(%arg0: i32) -> (i32, i32) {
    %c0_i32 = arith.constant 0 : i32
    %c0_i32_0 = arith.constant 0 : i32
    %c0_i32_1 = arith.constant 0 : i32
    return %c0_i32, %c0_i32_0 : i32, i32
  }
  func.func @transform_6(%arg0: i32) -> (i32, i32) {
    %c0_i32 = arith.constant 0 : i32
    %c0_i32_0 = arith.constant 0 : i32
    %c0_i32_1 = arith.constant 0 : i32
    return %c0_i32, %c0_i32_0 : i32, i32
  }
  func.func @transform_7(%arg0: i32) -> (i32, i32) {
    %c0_i32 = arith.constant 0 : i32
    %c0_i32_0 = arith.constant 0 : i32
    %c0_i32_1 = arith.constant 0 : i32
    return %c0_i32, %c0_i32_0 : i32, i32
  }
  func.func @transform_8(%arg0: i32) -> (i32, i32, i32, i32) {
    %c0_i32 = arith.constant 0 : i32
    %c0_i32_0 = arith.constant 0 : i32
    %c0_i32_1 = arith.constant 0 : i32
    %c0_i32_2 = arith.constant 0 : i32
    return %arg0, %c0_i32, %c0_i32_0, %c0_i32_1 : i32, i32, i32, i32
  }
  func.func @transform_9(%arg0: i32) -> (i32, i32, i32) {
    %c0_i32 = arith.constant 0 : i32
    %c0_i32_0 = arith.constant 0 : i32
    %c0_i32_1 = arith.constant 0 : i32
    return %arg0, %c0_i32, %c0_i32_0 : i32, i32, i32
  }
}

</mosaic_0001>

<bundles_post_ra>
// kernel: initial_block_forward.1
= control target key start
LH: loop header
LB: loop body
LE: loop exit
PB: predicated region body
PF: predicated region fallthrough
CT: control target
= control target key end

     0   :  { %15 = vsyncpa [#allocation4], 0  ;;  %s10779_s0 = inlined_call_operand.vmem [shape: f32[2,4,16,16,8], index: 0, kind: input, shape index: {}]   ;;  %s10780_s1 = inlined_call_operand.vmem [shape: f32[2,8,64], index: 1, kind: input, shape index: {}]   ;;  %s10781_s2 = inlined_call_operand.vmem [shape: bf16[32,72], index: 2, kind: input, shape index: {}]   ;;  %s10782_s3 = inlined_call_operand.vmem [shape: f32[32,1], index: 3, kind: input, shape index: {}]   ;;  %s10783_s4 = inlined_call_operand.vmem [shape: bf16[32,96], index: 4, kind: input, shape index: {}]   ;;  %s10784_s5 = inlined_call_operand.vmem [shape: f32[32,1], index: 5, kind: input, shape index: {}]   ;;  %s10785_s6 = inlined_call_operand.vmem [shape: bf16[32,24], index: 6, kind: input, shape index: {}]   ;;  %s10786_s7 = inlined_call_operand.vmem [shape: f32[32,1], index: 7, kind: input, shape index: {}]   ;;  %s10787_s8 = inlined_call_operand.vmem [shape: f32[2,4,32,256], index: 8, kind: output, shape index: {0}]   ;;  %s10788_s9 = inlined_call_operand.hbm [shape: f32[2,32,64], index: 9, kind: output, shape index: {1}]  }
   0x1   :  { %17 = vsyncpa [#allocation4 + $0x1], 0  ;;  %s6309_s30 = smov 0   ;;  %s6311_s10 = smov 0  }
   0x2   :  { %s6313_s11 = smov 0   ;;  %s6315_s12 = smov 0  }
   0x3 LB: > { %s6330_s13 = sadd.s32 4294967295, %s6244_s12   ;;  %s5815_s14 = sadd.s32 4294967294, %s6244_s12   ;;  %s6244_s12 = sphi %s6315_s12, %s11623_s12   ;;  %s6240_s11 = sphi %s6313_s11, %s11622_s11   ;;  %s6236_s10 = sphi %s6311_s10, %s11621_s10   ;;  %s6232_s30 = sphi %s6309_s30, %s11620_s30  }
   0x4   : > { %s6334_s15 = sadd.s32 1, %s6244_s12   ;;  %s234_s16 = sadd.s32 1, %s6240_s11 }
   0x5   : > { %s231_s17 = ssub.s32 %s6244_s12, %s6334_s15  ;;  %p244_p0 = scmp.ne.s32.totalorder %s6240_s11, %s6236_s10 }
   0x6   : > { %p232_p1 = scmp.eq.s32.totalorder %s231_s17, 0  ;;  %p245_p2 = scmp.eq.s32.totalorder %s6330_s13, 1 }
   0x7   : > { %p250_p3 = scmp.ne.s32.totalorder %s6236_s10, %s6232_s30  ;;  %p251_p4 = scmp.eq.s32.totalorder %s5815_s14, 1 }
   0x8   : > { %s6345_s18 = scalar_select %p232_p1, %s6240_s11, %s234_s16  }
   0x9   : > { %p6347_p5 = por %p245_p2, %p244_p0  ;;  %p6351_p6 = por %p251_p4, %p250_p3 }
   0xa   : > { %p5818_p7 = scmp.ge.s32.totalorder %s6244_s12, 1  ;;  %p302_p8 = scmp.lt.s32.totalorder %s6244_s12, 3 }
   0xc   : > { %p303_p9 = pnand %p5818_p7, %p302_p8 }
   0xe   : > { %306 = sbr.rel (%p303_p9) target bundleno = 1900 (0x76c), region = 52 }
  0x13   : > { %vm1523_vm0 = vcmask 1040384   ;;  %vm1524_vm1 = vsmask.f32 256  ;;  %v10789_v0 = vmov 0   ;;  %v10933_v2 = vmov 0  ;;  %p347_p10 = scmp.lt.s32.totalorder %s6330_s13, 1 }
  0x14   : > { %v941_v1 = vrot.slane %v10789_v0, 7  ;;  %vm6358_vm2 = vmand %vm1523_vm0, %vm1524_vm1  ;;  %6176 = vset.pattern.permute.xlu0 %v10789_v0  ;;  %6175 = vset.pattern.permute.xlu2 %v10789_v0  ;;  %vm1664_vm3 = vsmask.f32 7424  ;;  %s6247_s26 = smov 8   ;;  %vm1921_vm4 = vcmask 1046528   ;;  %s6248_s27 = smov 16  }
  0x15   : > { %v10934_v2 = vsel %vm6358_vm2, 4294967295, %v10933_v2  ;;  %6177 = vset.pattern.permute.xlu1 %v10789_v0  ;;  %s6375_s21 = scalar_select %p347_p10, %s6330_s13, 1  ;;  %vm2211_vm5 = vcmask 64512   ;;  %vm2244_vm6 = vcmask 130048   ;;  %vm2277_vm7 = vcmask 195584  }
  0x16   : > { %10935 = vst [vmem:[#allocation6_spill] sm:$0xff] %v10934_v2  ;;  %v6368_v3 = vsel %vm6358_vm2, 0, %v941_v1  ;;  %v6372_v4 = vsel %vm6358_vm2, %v941_v1, 0  ;;  %s6249_s28 = smov 24   ;;  %s6250_s29 = smov 32   ;;  %vm2310_vm8 = vcmask 261120  }
  0x17   : > { %10936 = vst [vmem:[#allocation7_spill] sm:$0xff] %v6368_v3  ;;  %v1666_v5 = vshrl.u32 %v6368_v3, 16  ;;  %v1668_v6 = vshll.u32 %v6368_v3, 16  ;;  %v1673_v7 = vshll.u32 %v6372_v4, 16  ;;  %s6072_s22 = sshll.u32 %s6375_s21, 10  ;;  %s6251_s14 = smov 40  }
  0x18   : > { %s6384_s25 = scalar_lea.vmem %s10779_s0, %s6072_s22  ;;  %s10805_s16 = smov 48   ;;  %vm2343_vm9 = vcmask 326656   ;;  %vm2376_vm10 = vcmask 392192   ;;  %vm2409_vm11 = vcmask 457728   ;;  %vm2442_vm12 = vcmask 523264  }
  0x19   : > { %v1670_v8 = vrot.slane %v1668_v6, 1  ;;  %v1675_v9 = vrot.slane %v1673_v7, 1  ;;  %v368_v10 = vld [vmem:[%s6384_s25 + $0x30] sm:$0xff]  ;;  %v369_v11 = vld [vmem:[%s6384_s25 + $0x38] sm:$0xff]  ;;  %v362_v18 = vld [vmem:[%s6384_s25] sm:$0xff]  ;;  %s10803_s17 = smov 56  }
  0x1a   : > { %v364_v12 = vld [vmem:[%s6384_s25 + $0x10] sm:$0xff]  ;;  %v496_v14 = vpack.c.bf16 %v368_v10, %v368_v10  ;;  %v497_v15 = vpack.c.bf16 %v369_v11, %v369_v11  ;;  %v365_v16 = vld [vmem:[%s6384_s25 + $0x18] sm:$0xff]  ;;  %v363_v19 = vld [vmem:[%s6384_s25 + $0x8] sm:$0xff]  ;;  %v490_v21 = vpack.c.bf16 %v362_v18, %v362_v18  ;;  %s6254_s22 = smov 64   ;;  %vm2505_vm13 = vcmask 588800   ;;  %s11227_s23 = smov 48  }
  0x1b   : > { %v1671_v13 = vor.u32 %v1670_v8, %v1666_v5  ;;  %v492_v17 = vpack.c.bf16 %v364_v12, %v364_v12  ;;  %v493_v20 = vpack.c.bf16 %v365_v16, %v365_v16  ;;  %v491_v22 = vpack.c.bf16 %v363_v19, %v363_v19  ;;  %v370_v23 = vld [vmem:[%s6384_s25 + $0x40] sm:$0xff]  ;;  %v371_v24 = vld [vmem:[%s6384_s25 + $0x48] sm:$0xff]  ;;  %v372_v31 = vld [vmem:[%s6384_s25 + $0x50] sm:$0xff]  ;;  %s11245_s24 = smov 56  }
  0x1c   : > { %v366_v25 = vld [vmem:[%s6384_s25 + $0x20] sm:$0xff]  ;;  %v752_v27 = vunpack.c.l.b16 %v496_v14  ;;  %v753_v28 = vunpack.c.l.b16 %v497_v15  ;;  %v367_v30 = vld [vmem:[%s6384_s25 + $0x28] sm:$0xff]  ;;  %v746_v33 = vunpack.c.l.b16 %v490_v21  ;;  %v498_v35 = vpack.c.bf16 %v370_v23, %v370_v23  ;;  %v6403_v43 = vld [vmem:[%s6384_s25 + $0x58] sm:$0xff] }
  0x1d   : > { %v6396_v26 = vsel %vm1664_vm3, %v1671_v13, %v1675_v9  ;;  %v748_v29 = vunpack.c.l.b16 %v492_v17  ;;  %v749_v32 = vunpack.c.l.b16 %v493_v20  ;;  %v747_v34 = vunpack.c.l.b16 %v491_v22  ;;  %v6406_v49 = vld [vmem:[%s6384_s25 + $0x70] sm:$0xff] }
  0x1e   : > { %1857 = vrot.lane.b32.xlu0 %v6396_v26, %s6247_s26  ;;  %v877_v36 = vpack.c.b16 %v753_v28, %v752_v27  ;;  %v499_v37 = vpack.c.bf16 %v371_v24, %v371_v24  ;;  %v494_v38 = vpack.c.bf16 %v366_v25, %v366_v25  ;;  %v495_v39 = vpack.c.bf16 %v367_v30, %v367_v30 }
  0x1f   : > { %v875_v40 = vpack.c.b16 %v749_v32, %v748_v29  ;;  %v874_v41 = vpack.c.b16 %v747_v34, %v746_v33  ;;  %v754_v42 = vunpack.c.l.b16 %v498_v35  ;;  %v500_v44 = vpack.c.bf16 %v372_v31, %v372_v31 }
  0x20   : > { %v967_v45 = vshrl.u32 %v877_v36, 16  ;;  %v970_v46 = vshll.u32 %v877_v36, 16  ;;  %v755_v47 = vunpack.c.l.b16 %v499_v37  ;;  %v750_v48 = vunpack.c.l.b16 %v494_v38 }
  0x21   : > { %v953_v50 = vshrl.u32 %v875_v40, 16  ;;  %v956_v51 = vshll.u32 %v875_v40, 16  ;;  %v946_v52 = vshrl.u32 %v874_v41, 16  ;;  %v949_v53 = vshll.u32 %v874_v41, 16 }
  0x22   : > { %v969_v54 = vrot.slane %v967_v45, 7  ;;  %v878_v55 = vpack.c.b16 %v755_v47, %v754_v42  ;;  %v751_v56 = vunpack.c.l.b16 %v495_v39  ;;  %v501_v57 = vpack.c.bf16 %v6403_v43, %v6403_v43  ;;  %v377_v39 = vld [vmem:[%s6384_s25 + $0x78] sm:$0xff] }
  0x23   : > { %v955_v58 = vrot.slane %v953_v50, 7  ;;  %v948_v59 = vrot.slane %v946_v52, 7  ;;  %v756_v60 = vunpack.c.l.b16 %v500_v44  ;;  %v504_v61 = vpack.c.bf16 %v6406_v49, %v6406_v49  ;;  %v374_v44 = vld [vmem:[%s6384_s25 + $0x60] sm:$0xff]  ;;  %v375_v49 = vld [vmem:[%s6384_s25 + $0x68] sm:$0xff] }
  0x24   : > { %v972_v62 = vor.u32 %v970_v46, %v969_v54  ;;  %v6414_v63 = vsel %vm6358_vm2, %v969_v54, 0  ;;  %v974_v1 = vshrl.u32 %v878_v55, 16  ;;  %v977_v5 = vshll.u32 %v878_v55, 16 }
  0x25   : > { %v1721_v6 = vshll.u32 %v6414_v63, 16  ;;  %v958_v7 = vor.u32 %v956_v51, %v955_v58  ;;  %v6419_v8 = vsel %vm6358_vm2, %v955_v58, 0  ;;  %v951_v9 = vor.u32 %v949_v53, %v948_v59 }
  0x26   : > { %v6423_v10 = vsel %vm6358_vm2, 0, %v972_v62  ;;  %v1697_v11 = vshll.u32 %v6419_v8, 16  ;;  %v6428_v12 = vsel %vm6358_vm2, %v948_v59, 0  ;;  %v976_v13 = vrot.slane %v974_v1, 7 }
  0x27   : > { %10937 = vst [vmem:[#allocation8_spill] sm:$0xff] %v6423_v10  ;;  %v1714_v14 = vshrl.u32 %v6423_v10, 16  ;;  %v1716_v15 = vshll.u32 %v6423_v10, 16  ;;  %v1723_v16 = vrot.slane %v1721_v6, 1  ;;  %v6434_v17 = vsel %vm6358_vm2, 0, %v958_v7 }
  0x28   : > { %10938 = vst [vmem:[#allocation9_spill] sm:$0xff] %v6434_v17  ;;  %v1690_v18 = vshrl.u32 %v6434_v17, 16  ;;  %v1692_v19 = vshll.u32 %v6434_v17, 16  ;;  %v1699_v20 = vrot.slane %v1697_v11, 1  ;;  %v6440_v21 = vsel %vm6358_vm2, 0, %v951_v9  ;;  %v379_v11 = vld [vmem:[%s6384_s25 + $0x88] sm:$0xff] }
  0x29   : > { %10939 = vst [vmem:[#allocation10_spill] sm:$0xff] %v6440_v21  ;;  %v1718_v22 = vrot.slane %v1716_v15, 1  ;;  %v1678_v23 = vshrl.u32 %v6440_v21, 16  ;;  %v1680_v24 = vshll.u32 %v6440_v21, 16  ;;  %v1685_v25 = vshll.u32 %v6428_v12, 16 }
  0x2a   : > { %v1694_v27 = vrot.slane %v1692_v19, 1  ;;  %v979_v28 = vor.u32 %v977_v5, %v976_v13  ;;  %v6447_v29 = vsel %vm6358_vm2, %v976_v13, 0  ;;  %v876_v30 = vpack.c.b16 %v751_v56, %v750_v48  ;;  %v378_v5 = vld [vmem:[%s6384_s25 + $0x80] sm:$0xff] }
  0x2b   : > { %v1719_v31 = vor.u32 %v1718_v22, %v1714_v14  ;;  %v1682_v32 = vrot.slane %v1680_v24, 1  ;;  %v1687_v33 = vrot.slane %v1685_v25, 1  ;;  %v1733_v34 = vshll.u32 %v6447_v29, 16  ;;  %v382_v13 = vld [vmem:[%s6384_s25 + $0xa0] sm:$0xff]  ;;  %v383_v14 = vld [vmem:[%s6384_s25 + $0xa8] sm:$0xff] }
  0x2c   : > { %v1695_v35 = vor.u32 %v1694_v27, %v1690_v18  ;;  %v6452_v36 = vsel %vm6358_vm2, 0, %v979_v28  ;;  %v960_v37 = vshrl.u32 %v876_v30, 16  ;;  %v963_v38 = vshll.u32 %v876_v30, 16 }
  0x2d   : > { %10940 = vst [vmem:[#allocation11_spill] sm:$0xff] %v6452_v36  ;;  %v6456_v40 = vsel %vm1664_vm3, %v1719_v31, %v1723_v16  ;;  %v1683_v41 = vor.u32 %v1682_v32, %v1678_v23  ;;  %v1726_v42 = vshrl.u32 %v6452_v36, 16  ;;  %v1728_v43 = vshll.u32 %v6452_v36, 16 }
  0x2e   : > { %1865 = vrot.lane.b32.xlu2 %v6456_v40, %s6247_s26  ;;  %v6464_v45 = vsel %vm1664_vm3, %v1695_v35, %v1699_v20  ;;  %v1735_v46 = vrot.slane %v1733_v34, 1  ;;  %v962_v47 = vrot.slane %v960_v37, 7  ;;  %v757_v48 = vunpack.c.l.b16 %v501_v57 }
  0x2f   : > { %1861 = vrot.lane.b32.xlu1 %v6464_v45, %s6247_s26  ;;  %v6470_v50 = vsel %vm1664_vm3, %v1683_v41, %v1687_v33  ;;  %v1730_v51 = vrot.slane %v1728_v43, 1  ;;  %v505_v52 = vpack.c.bf16 %v377_v39, %v377_v39  ;;  %v760_v53 = vunpack.c.l.b16 %v504_v61 }
  0x30   : > { %1859 = vrot.lane.b32.xlu0 %v6470_v50, %s6247_s26  ;;  %v965_v54 = vor.u32 %v963_v38, %v962_v47  ;;  %v6476_v55 = vsel %vm6358_vm2, %v962_v47, 0  ;;  %v879_v56 = vpack.c.b16 %v757_v48, %v756_v60  ;;  %v502_v57 = vpack.c.bf16 %v374_v44, %v374_v44 }
  0x31   : > { %v1731_v58 = vor.u32 %v1730_v51, %v1726_v42  ;;  %v1709_v59 = vshll.u32 %v6476_v55, 16  ;;  %v761_v62 = vunpack.c.l.b16 %v505_v52  ;;  %v503_v1 = vpack.c.bf16 %v375_v49, %v375_v49  ;;  %v380_v49 = vld [vmem:[%s6384_s25 + $0x90] sm:$0xff]  ;;  %v381_v51 = vld [vmem:[%s6384_s25 + $0x98] sm:$0xff] }
  0x32   : > { %v6482_v61 = vsel %vm6358_vm2, 0, %v965_v54  ;;  %v981_v6 = vshrl.u32 %v879_v56, 16  ;;  %v984_v7 = vshll.u32 %v879_v56, 16  ;;  %v758_v9 = vunpack.c.l.b16 %v502_v57 }
  0x33   : > { %10941 = vst [vmem:[#allocation12_spill] sm:$0xff] %v6482_v61  ;;  %v6488_v15 = vsel %vm1664_vm3, %v1731_v58, %v1735_v46  ;;  %v1702_v60 = vshrl.u32 %v6482_v61, 16  ;;  %v1704_v16 = vshll.u32 %v6482_v61, 16  ;;  %v1711_v18 = vrot.slane %v1709_v59, 1 }
  0x34   : > { %v983_v19 = vrot.slane %v981_v6, 7  ;;  %v881_v20 = vpack.c.b16 %v761_v62, %v760_v53  ;;  %v759_v22 = vunpack.c.l.b16 %v503_v1  ;;  %v506_v23 = vpack.c.bf16 %v378_v5, %v378_v5 }
  0x35   : > { %v1706_v24 = vrot.slane %v1704_v16, 1  ;;  %v507_v25 = vpack.c.bf16 %v379_v11, %v379_v11  ;;  %v510_v27 = vpack.c.bf16 %v382_v13, %v382_v13  ;;  %v511_v28 = vpack.c.bf16 %v383_v14, %v383_v14 }
  0x36   : > { %1867 = vrot.lane.b32.xlu2 %v6488_v15, %s6247_s26  ;;  %v986_v30 = vor.u32 %v984_v7, %v983_v19  ;;  %v6496_v31 = vsel %vm6358_vm2, %v983_v19, 0  ;;  %v995_v32 = vshrl.u32 %v881_v20, 16  ;;  %v998_v33 = vshll.u32 %v881_v20, 16 }
  0x37   : > { %v1707_v34 = vor.u32 %v1706_v24, %v1702_v60  ;;  %v1745_v35 = vshll.u32 %v6496_v31, 16  ;;  %v880_v37 = vpack.c.b16 %v759_v22, %v758_v9  ;;  %v762_v38 = vunpack.c.l.b16 %v506_v23 }
  0x38   : > { %v6501_v39 = vsel %vm6358_vm2, 0, %v986_v30  ;;  %v997_v41 = vrot.slane %v995_v32, 7  ;;  %v763_v42 = vunpack.c.l.b16 %v507_v25  ;;  %v766_v43 = vunpack.c.l.b16 %v510_v27 }
  0x39   : > { %v6504_v44 = vsel %vm1664_vm3, %v1707_v34, %v1711_v18  ;;  %v1738_v46 = vshrl.u32 %v6501_v39, 16  ;;  %v1740_v47 = vshll.u32 %v6501_v39, 16  ;;  %v1747_v48 = vrot.slane %v1745_v35, 1 }
  0x3a   : > { %1863 = vrot.lane.b32.xlu1 %v6504_v44, %s6247_s26  ;;  %v1000_v52 = vor.u32 %v998_v33, %v997_v41  ;;  %v6514_v53 = vsel %vm6358_vm2, %v997_v41, 0  ;;  %v988_v54 = vshrl.u32 %v880_v37, 16  ;;  %v991_v56 = vshll.u32 %v880_v37, 16  ;;  %v384_v37 = vld [vmem:[%s6384_s25 + $0xb0] sm:$0xff] }
  0x3b   : > { %v1742_v57 = vrot.slane %v1740_v47, 1  ;;  %v1769_v58 = vshll.u32 %v6514_v53, 16  ;;  %v882_v59 = vpack.c.b16 %v763_v42, %v762_v38  ;;  %v767_v62 = vunpack.c.l.b16 %v511_v28  ;;  %v385_v38 = vld [vmem:[%s6384_s25 + $0xb8] sm:$0xff] }
  0x3c   : > { %v6519_v1 = vsel %vm6358_vm2, 0, %v1000_v52  ;;  %v990_v5 = vrot.slane %v988_v54, 7  ;;  %v508_v6 = vpack.c.bf16 %v380_v49, %v380_v49  ;;  %v509_v7 = vpack.c.bf16 %v381_v51, %v381_v51 }
  0x3d   : > { %10942 = vst [vmem:[#allocation13_spill] sm:$0xff] %v6519_v1  ;;  %v1743_v9 = vor.u32 %v1742_v57, %v1738_v46  ;;  %v1762_v11 = vshrl.u32 %v6519_v1, 16  ;;  %v1764_v13 = vshll.u32 %v6519_v1, 16  ;;  %v1771_v14 = vrot.slane %v1769_v58, 1 }
  0x3e   : > { %v993_v60 = vor.u32 %v991_v56, %v990_v5  ;;  %v6525_v16 = vsel %vm6358_vm2, %v990_v5, 0  ;;  %v1002_v18 = vshrl.u32 %v882_v59, 16  ;;  %v1005_v19 = vshll.u32 %v882_v59, 16 }
  0x3f   : > { %v6528_v20 = vsel %vm1664_vm3, %v1743_v9, %v1747_v48  ;;  %v1766_v22 = vrot.slane %v1764_v13, 1  ;;  %v1757_v23 = vshll.u32 %v6525_v16, 16  ;;  %v884_v24 = vpack.c.b16 %v767_v62, %v766_v43 }
  0x40   : > { %1869 = vrot.lane.b32.xlu0 %v6528_v20, %s6247_s26  ;;  %v6535_v25 = vsel %vm6358_vm2, 0, %v993_v60  ;;  %v1004_v27 = vrot.slane %v1002_v18, 7  ;;  %v764_v28 = vunpack.c.l.b16 %v508_v6  ;;  %v765_v30 = vunpack.c.l.b16 %v509_v7  ;;  %v388_v6 = vld [vmem:[%s6384_s25 + $0xd0] sm:$0xff] }
  0x41   : > { %v1767_v32 = vor.u32 %v1766_v22, %v1762_v11  ;;  %v1750_v33 = vshrl.u32 %v6535_v25, 16  ;;  %v1752_v34 = vshll.u32 %v6535_v25, 16  ;;  %v1759_v35 = vrot.slane %v1757_v23, 1  ;;  %v389_v22 = vld [vmem:[%s6384_s25 + $0xd8] sm:$0xff] }
  0x42   : > { %v1007_v41 = vor.u32 %v1005_v19, %v1004_v27  ;;  %v6543_v42 = vsel %vm6358_vm2, %v1004_v27, 0  ;;  %v1016_v43 = vshrl.u32 %v884_v24, 16  ;;  %v1019_v46 = vshll.u32 %v884_v24, 16 }
  0x43   : > { %v6546_v47 = vsel %vm1664_vm3, %v1767_v32, %v1771_v14  ;;  %v1754_v48 = vrot.slane %v1752_v34, 1  ;;  %v1781_v49 = vshll.u32 %v6543_v42, 16  ;;  %v883_v51 = vpack.c.b16 %v765_v30, %v764_v28 }
  0x44   : > { %1873 = vrot.lane.b32.xlu2 %v6546_v47, %s6247_s26  ;;  %v6553_v52 = vsel %vm6358_vm2, 0, %v1007_v41  ;;  %v1018_v54 = vrot.slane %v1016_v43, 7  ;;  %v512_v56 = vpack.c.bf16 %v384_v37, %v384_v37  ;;  %v513_v57 = vpack.c.bf16 %v385_v38, %v385_v38 }
  0x45   : > { %10943 = vst [vmem:[#allocation14_spill] sm:$0xff] %v6553_v52  ;;  %v1755_v58 = vor.u32 %v1754_v48, %v1750_v33  ;;  %v1774_v59 = vshrl.u32 %v6553_v52, 16  ;;  %v1776_v62 = vshll.u32 %v6553_v52, 16  ;;  %v1783_v5 = vrot.slane %v1781_v49, 1 }
  0x46   : > { %v1021_v7 = vor.u32 %v1019_v46, %v1018_v54  ;;  %v6560_v9 = vsel %vm6358_vm2, %v1018_v54, 0  ;;  %v1009_v11 = vshrl.u32 %v883_v51, 16  ;;  %v1012_v13 = vshll.u32 %v883_v51, 16  ;;  %v386_v51 = vld [vmem:[%s6384_s25 + $0xc0] sm:$0xff]  ;;  %v387_v54 = vld [vmem:[%s6384_s25 + $0xc8] sm:$0xff] }
  0x47   : > { %v6563_v14 = vsel %vm1664_vm3, %v1755_v58, %v1759_v35  ;;  %v1778_v60 = vrot.slane %v1776_v62, 1  ;;  %v1805_v18 = vshll.u32 %v6560_v9, 16  ;;  %v768_v19 = vunpack.c.l.b16 %v512_v56  ;;  %v390_v62 = vld [vmem:[%s6384_s25 + $0xe0] sm:$0xff] }
  0x48   : > { %1871 = vrot.lane.b32.xlu1 %v6563_v14, %s6247_s26  ;;  %v6571_v23 = vsel %vm6358_vm2, 0, %v1021_v7  ;;  %v1011_v24 = vrot.slane %v1009_v11, 7  ;;  %v769_v27 = vunpack.c.l.b16 %v513_v57  ;;  %v516_v28 = vpack.c.bf16 %v388_v6, %v388_v6  ;;  %v391_v6 = vld [vmem:[%s6384_s25 + $0xe8] sm:$0xff] }
  0x49   : > { %10944 = vst [vmem:[#allocation15_spill] sm:$0xff] %v6571_v23  ;;  %v1779_v30 = vor.u32 %v1778_v60, %v1774_v59  ;;  %v1798_v32 = vshrl.u32 %v6571_v23, 16  ;;  %v1800_v33 = vshll.u32 %v6571_v23, 16  ;;  %v1807_v34 = vrot.slane %v1805_v18, 1 }
  0x4a   : > { %v1014_v35 = vor.u32 %v1012_v13, %v1011_v24  ;;  %v6577_v37 = vsel %vm6358_vm2, %v1011_v24, 0  ;;  %v885_v38 = vpack.c.b16 %v769_v27, %v768_v19  ;;  %v517_v41 = vpack.c.bf16 %v389_v22, %v389_v22 }
  0x4b   : > { %v6580_v43 = vsel %vm1664_vm3, %v1779_v30, %v1783_v5  ;;  %v1802_v46 = vrot.slane %v1800_v33, 1  ;;  %v1793_v48 = vshll.u32 %v6577_v37, 16  ;;  %v772_v49 = vunpack.c.l.b16 %v516_v28 }
  0x4c   : > { %1875 = vrot.lane.b32.xlu0 %v6580_v43, %s6247_s26  ;;  %v6589_v56 = vsel %vm6358_vm2, 0, %v1014_v35  ;;  %v1023_v57 = vshrl.u32 %v885_v38, 16  ;;  %v1026_v58 = vshll.u32 %v885_v38, 16  ;;  %v773_v59 = vunpack.c.l.b16 %v517_v41 }
  0x4d   : > { %10945 = vst [vmem:[#allocation16_spill] sm:$0xff] %v6589_v56  ;;  %v1803_v5 = vor.u32 %v1802_v46, %v1798_v32  ;;  %v1786_v7 = vshrl.u32 %v6589_v56, 16  ;;  %v1788_v11 = vshll.u32 %v6589_v56, 16  ;;  %v1795_v13 = vrot.slane %v1793_v48, 1 }
  0x4e   : > { %v1025_v60 = vrot.slane %v1023_v57, 7  ;;  %v887_v18 = vpack.c.b16 %v773_v59, %v772_v49  ;;  %v514_v19 = vpack.c.bf16 %v386_v51, %v386_v51  ;;  %v515_v22 = vpack.c.bf16 %v387_v54, %v387_v54 }
  0x4f   : > { %v6596_v24 = vsel %vm1664_vm3, %v1803_v5, %v1807_v34  ;;  %v1790_v27 = vrot.slane %v1788_v11, 1  ;;  %v518_v28 = vpack.c.bf16 %v390_v62, %v390_v62  ;;  %v519_v30 = vpack.c.bf16 %v391_v6, %v391_v6 }
  0x50   : > { %1879 = vrot.lane.b32.xlu2 %v6596_v24, %s6247_s26  ;;  %v1028_v33 = vor.u32 %v1026_v58, %v1025_v60  ;;  %v6602_v32 = vsel %vm6358_vm2, %v1025_v60, 0  ;;  %v1037_v35 = vshrl.u32 %v887_v18, 16  ;;  %v1040_v38 = vshll.u32 %v887_v18, 16 }
  0x51   : > { %v1791_v41 = vor.u32 %v1790_v27, %v1786_v7  ;;  %v1817_v46 = vshll.u32 %v6602_v32, 16  ;;  %v770_v48 = vunpack.c.l.b16 %v514_v19  ;;  %v771_v49 = vunpack.c.l.b16 %v515_v22 }
  0x52   : > { %v6607_v34 = vsel %vm6358_vm2, 0, %v1028_v33  ;;  %v1039_v51 = vrot.slane %v1037_v35, 7  ;;  %v774_v54 = vunpack.c.l.b16 %v518_v28  ;;  %v775_v57 = vunpack.c.l.b16 %v519_v30 }
  0x53   : > { %10946 = vst [vmem:[#allocation17_spill] sm:$0xff] %v6607_v34  ;;  %v6610_v58 = vsel %vm1664_vm3, %v1791_v41, %v1795_v13  ;;  %v1810_v59 = vshrl.u32 %v6607_v34, 16  ;;  %v1812_v62 = vshll.u32 %v6607_v34, 16  ;;  %v886_v7 = vpack.c.b16 %v771_v49, %v770_v48 }
  0x54   : > { %1877 = vrot.lane.b32.xlu1 %v6610_v58, %s6247_s26  ;;  %v1042_v6 = vor.u32 %v1040_v38, %v1039_v51  ;;  %v6618_v5 = vsel %vm6358_vm2, %v1039_v51, 0  ;;  %v888_v11 = vpack.c.b16 %v775_v57, %v774_v54  ;;  %v1819_v18 = vrot.slane %v1817_v46, 1 }
  0x55   : > { %v1814_v60 = vrot.slane %v1812_v62, 1  ;;  %v1841_v19 = vshll.u32 %v6618_v5, 16  ;;  %v1030_v22 = vshrl.u32 %v886_v7, 16  ;;  %v1033_v27 = vshll.u32 %v886_v7, 16 }
  0x56   : > { %v6623_v13 = vsel %vm6358_vm2, 0, %v1042_v6  ;;  %v1044_v28 = vshrl.u32 %v888_v11, 16  ;;  %v1047_v48 = vshll.u32 %v888_v11, 16  ;;  %vm5214_vm14 = vcmask 785408  }
  0x57   : > { %10947 = vst [vmem:[#allocation18_spill] sm:$0xff] %v6623_v13  ;;  %v1815_v30 = vor.u32 %v1814_v60, %v1810_v59  ;;  %v1834_v33 = vshrl.u32 %v6623_v13, 16  ;;  %v1836_v35 = vshll.u32 %v6623_v13, 16  ;;  %v1032_v38 = vrot.slane %v1030_v22, 7 }
  0x58   : > { %v1046_v41 = vrot.slane %v1044_v28, 7  ;;  %v1843_v51 = vrot.slane %v1841_v19, 1  ;;  %vm5607_vm15 = vcmask 7168   ;;  %vm5610_vm0 = vcmask 531456  }
  0x59   : > { %v6628_v49 = vsel %vm1664_vm3, %v1815_v30, %v1819_v18  ;;  %v1838_v46 = vrot.slane %v1836_v35, 1  ;;  %v1035_v54 = vor.u32 %v1033_v27, %v1032_v38  ;;  %v6634_v57 = vsel %vm6358_vm2, %v1032_v38, 0 }
  0x5a   : > { %1881 = vrot.lane.b32.xlu0 %v6628_v49, %s6247_s26  ;;  %v1049_v59 = vor.u32 %v1047_v48, %v1046_v41  ;;  %v6638_v62 = vsel %vm6358_vm2, %v1046_v41, 0  ;;  %v1829_v7 = vshll.u32 %v6634_v57, 16  ;;  %v1925_v38 = vrot.slane %v6440_v21, 1 }
  0x5b   : > { %v1839_v6 = vor.u32 %v1838_v46, %v1834_v33  ;;  %v6643_v11 = vsel %vm6358_vm2, 0, %v1035_v54  ;;  %v1853_v18 = vshll.u32 %v6638_v62, 16  ;;  %v1926_v41 = vrot.slane %v6428_v12, 1 }
  0x5c   : > { %10948 = vst [vmem:[#allocation19_spill] sm:$0xff] %v6643_v11  ;;  %v6647_v60 = vsel %vm6358_vm2, 0, %v1049_v59  ;;  %v1822_v22 = vshrl.u32 %v6643_v11, 16  ;;  %v1824_v27 = vshll.u32 %v6643_v11, 16  ;;  %v1831_v35 = vrot.slane %v1829_v7, 1 }
  0x5d   : > { %10949 = vst [vmem:[#allocation20_spill] sm:$0xff] %v6647_v60  ;;  %v6651_v19 = vsel %vm1664_vm3, %v1839_v6, %v1843_v51  ;;  %v1846_v28 = vshrl.u32 %v6647_v60, 16  ;;  %v1848_v30 = vshll.u32 %v6647_v60, 16  ;;  %v1855_v46 = vrot.slane %v1853_v18, 1 }
  0x5e   : > { %1885 = vrot.lane.b32.xlu2 %v6651_v19, %s6247_s26  ;;  %v1826_v33 = vrot.slane %v1824_v27, 1  ;;  %v6665_v6 = vsel %vm1921_vm4, %v1925_v38, %v1926_v41  ;;  %v1922_v12 = vrot.slane %v6368_v3, 1  ;;  %v1923_v18 = vrot.slane %v6372_v4, 1 }
  0x5f   : > { %v1850_v48 = vrot.slane %v1848_v30, 1  ;;  %v1929_v27 = vrot.slane %v6419_v8, 1  ;;  %v1935_v30 = vrot.slane %v6414_v63, 1  ;;  %v1931_v8 = vrot.slane %v6482_v61, 1 }
  0x60   : > { %v1827_v51 = vor.u32 %v1826_v33, %v1822_v22  ;;  %v1928_v22 = vrot.slane %v6434_v17, 1  ;;  %v6683_v33 = vsel %vm1921_vm4, %v1922_v12, %v1923_v18  ;;  %v1932_v38 = vrot.slane %v6476_v55, 1 }
  0x61   : > { %v1851_v54 = vor.u32 %v1850_v48, %v1846_v28  ;;  %v1934_v28 = vrot.slane %v6423_v10, 1  ;;  %v1937_v63 = vrot.slane %v6452_v36, 1  ;;  %v1938_v41 = vrot.slane %v6447_v29, 1 }
  0x62   : > { %v6662_v59 = vsel %vm1664_vm3, %v1827_v51, %v1831_v35  ;;  %v6686_v35 = vsel %vm1921_vm4, %v1928_v22, %v1929_v27  ;;  %v1943_v48 = vrot.slane %v6535_v25, 1  ;;  %v6704_v51 = vsel %vm1921_vm4, %v1931_v8, %v1932_v38 }
  0x63   : > { %1883 = vrot.lane.b32.xlu1 %v6662_v59, %s6247_s26  ;;  %v6670_v7 = vsel %vm1664_vm3, %v1851_v54, %v1855_v46  ;;  %v6689_v4 = vsel %vm1921_vm4, %v1934_v28, %v1935_v30  ;;  %v1944_v46 = vrot.slane %v6525_v16, 1  ;;  %v6707_v54 = vsel %vm1921_vm4, %v1937_v63, %v1938_v41 }
  0x64   : > { %1887 = vrot.lane.b32.xlu0 %v6670_v7, %s6247_s26  ;;  %v1940_v29 = vrot.slane %v6501_v39, 1  ;;  %v1941_v55 = vrot.slane %v6496_v31, 1  ;;  %v1946_v16 = vrot.slane %v6519_v1, 1  ;;  %v1947_v18 = vrot.slane %v6514_v53, 1 }
  0x65   : > { %v6710_v12 = vsel %vm1921_vm4, %v1943_v48, %v1944_v46  ;;  %v1952_v22 = vrot.slane %v6589_v56, 1  ;;  %v1953_v27 = vrot.slane %v6577_v37, 1  ;;  %v1949_v31 = vrot.slane %v6553_v52, 1 }
  0x66   : > { %1972 = vrot.lane.b32.xlu2 %v6665_v6, %s6248_s27  ;;  %v6725_v28 = vsel %vm1921_vm4, %v1940_v29, %v1941_v55  ;;  %v6728_v30 = vsel %vm1921_vm4, %v1946_v16, %v1947_v18  ;;  %v1950_v53 = vrot.slane %v6543_v42, 1  ;;  %v1955_v37 = vrot.slane %v6571_v23, 1 }
  0x67   : > { %v6731_v8 = vsel %vm1921_vm4, %v1952_v22, %v1953_v27  ;;  %v1956_v38 = vrot.slane %v6560_v9, 1  ;;  %v1961_v63 = vrot.slane %v6643_v11, 1  ;;  %v1962_v41 = vrot.slane %v6634_v57, 1 }
  0x68   : > { %v6746_v48 = vsel %vm1921_vm4, %v1949_v31, %v1950_v53  ;;  %v1958_v42 = vrot.slane %v6607_v34, 1  ;;  %v1959_v9 = vrot.slane %v6602_v32, 1  ;;  %v1964_v57 = vrot.slane %v6623_v13, 1  ;;  %v392_v31 = vld [vmem:[%s6384_s25 + $0xf0] sm:$0xff] }
  0x69   : > { %v6749_v46 = vsel %vm1921_vm4, %v1955_v37, %v1956_v38  ;;  %v6752_v29 = vsel %vm1921_vm4, %v1961_v63, %v1962_v41  ;;  %v1965_v55 = vrot.slane %v6618_v5, 1  ;;  %v1967_v32 = vrot.slane %v6647_v60, 1 }
  0x6a   : > { %v6765_v16 = vsel %vm1921_vm4, %v1958_v42, %v1959_v9  ;;  %v1968_v22 = vrot.slane %v6638_v62, 1  ;;  %v393_v62 = vld [vmem:[%s6384_s25 + $0xf8] sm:$0xff]  ;;  %v520_v37 = vpack.c.bf16 %v392_v31, %v392_v31  ;;  %vm5618_vm1 = vcmask 1043456  }
  0x6b   : > { %1970 = vrot.lane.b32.xlu1 %v6683_v33, %s6248_s27  ;;  %v6768_v18 = vsel %vm1921_vm4, %v1964_v57, %v1965_v55  ;;  %v521_v38 = vpack.c.bf16 %v393_v62, %v393_v62 }
  0x6c   : > { %1974 = vrot.lane.b32.xlu0 %v6686_v35, %s6248_s27  ;;  %v6781_v27 = vsel %vm1921_vm4, %v1967_v32, %v1968_v22  ;;  %v776_v63 = vunpack.c.l.b16 %v520_v37 }
  0x6d   : > { %v777_v41 = vunpack.c.l.b16 %v521_v38 }
  0x6e   : > { %1978 = vrot.lane.b32.xlu2 %v6689_v4, %s6248_s27 }
  0x6f   : > { %v889_v42 = vpack.c.b16 %v777_v41, %v776_v63 }
  0x71   : > { %v1051_v55 = vshrl.u32 %v889_v42, 16  ;;  %v1054_v22 = vshll.u32 %v889_v42, 16 }
  0x73   : > { %1976 = vrot.lane.b32.xlu1 %v6704_v51, %s6248_s27  ;;  %v1053_v32 = vrot.slane %v1051_v55, 7 }
  0x74   : > { %1980 = vrot.lane.b32.xlu0 %v6707_v54, %s6248_s27 }
  0x75   : > { %v1056_v38 = vor.u32 %v1054_v22, %v1053_v32 }
  0x76   : > { %1984 = vrot.lane.b32.xlu2 %v6710_v12, %s6248_s27 }
  0x77   : > { %v6823_v63 = vsel %vm6358_vm2, 0, %v1056_v38 }
  0x7b   : > { %1982 = vrot.lane.b32.xlu1 %v6725_v28, %s6248_s27 }
  0x7c   : > { %1986 = vrot.lane.b32.xlu0 %v6728_v30, %s6248_s27 }
  0x7e   : > { %1990 = vrot.lane.b32.xlu2 %v6731_v8, %s6248_s27 }
  0x83   : > { %1988 = vrot.lane.b32.xlu1 %v6746_v48, %s6248_s27 }
  0x84   : > { %1992 = vrot.lane.b32.xlu0 %v6749_v46, %s6248_s27 }
  0x86   : > { %1996 = vrot.lane.b32.xlu2 %v6752_v29, %s6248_s27 }
  0x88   : > { %v6778_v5 = vpop.permute.xlu2 %1865 }
  0x89   : > { %10950 = vst [vmem:[#allocation21_spill] sm:$0xff] %v6778_v5 }
  0x8b   : > { %1994 = vrot.lane.b32.xlu1 %v6765_v16, %s6248_s27 }
  0x8c   : > { %1998 = vrot.lane.b32.xlu0 %v6768_v18, %s6248_s27 }
  0x8e   : > { %2003 = vrot.lane.b32.xlu2 %v6440_v21, %s6249_s28 }
  0x90   : > { %v6791_v53 = vpop.permute.xlu2 %1867  ;;  %v6805_v57 = vpop.permute.xlu0 %1857 }
  0x91   : > { %10951 = vst [vmem:[#allocation22_spill] sm:$0xff] %v6791_v53 }
  0x92   : > { %10953 = vst [vmem:[#allocation24_spill] sm:$0xff] %v6805_v57 }
  0x93   : > { %2000 = vrot.lane.b32.xlu1 %v6781_v27, %s6248_s27 }
  0x94   : > { %2005 = vrot.lane.b32.xlu0 %v6434_v17, %s6249_s28 }
  0x96   : > { %2009 = vrot.lane.b32.xlu2 %v6423_v10, %s6249_s28 }
  0x9b   : > { %2007 = vrot.lane.b32.xlu1 %v6482_v61, %s6249_s28 }
  0x9c   : > { %2011 = vrot.lane.b32.xlu0 %v6452_v36, %s6249_s28 }
  0x9e   : > { %2015 = vrot.lane.b32.xlu2 %v6535_v25, %s6249_s28  ;;  %v6801_v9 = vpop.permute.xlu2 %1873 }
  0x9f   : > { %10952 = vst [vmem:[#allocation23_spill] sm:$0xff] %v6801_v9 }
  0xa1   : > { %v6817_v62 = vpop.permute.xlu1 %1861 }
  0xa2   : > { %10955 = vst [vmem:[#allocation26_spill] sm:$0xff] %v6817_v62  ;;  %v6819_v37 = vpop.permute.xlu0 %1859 }
  0xa3   : > { %2013 = vrot.lane.b32.xlu1 %v6501_v39, %s6249_s28  ;;  %10956 = vst [vmem:[#allocation27_spill] sm:$0xff] %v6819_v37  ;;  %v2036_v37 = vshrl.u32 %v6823_v63, 16 }
  0xa4   : > { %2017 = vrot.lane.b32.xlu0 %v6519_v1, %s6249_s28 }
  0xa6   : > { %2021 = vrot.lane.b32.xlu2 %v6589_v56, %s6249_s28 }
  0xaa   : > { %v6815_v31 = vpop.permute.xlu2 %1879 }
  0xab   : > { %2019 = vrot.lane.b32.xlu1 %v6553_v52, %s6249_s28  ;;  %10954 = vst [vmem:[#allocation25_spill] sm:$0xff] %v6815_v31 }
  0xac   : > { %2023 = vrot.lane.b32.xlu0 %v6571_v23, %s6249_s28  ;;  %v6833_v42 = vpop.permute.xlu1 %1863 }
  0xad   : > { %10958 = vst [vmem:[#allocation29_spill] sm:$0xff] %v6833_v42 }
  0xae   : > { %2027 = vrot.lane.b32.xlu2 %v6643_v11, %s6249_s28 }
  0xb2   : > { %v6835_v55 = vpop.permute.xlu0 %1869 }
  0xb3   : > { %2025 = vrot.lane.b32.xlu1 %v6607_v34, %s6249_s28 }
  0xb4   : > { %2029 = vrot.lane.b32.xlu0 %v6623_v13, %s6249_s28 }
  0xb6   : > { %2033 = vrot.lane.b32.xlu2 %v6823_v63, %s6249_s28 }
  0xb8   : > { %v6831_v41 = vpop.permute.xlu2 %1885 }
  0xb9   : > { %10957 = vst [vmem:[#allocation28_spill] sm:$0xff] %v6831_v41 }
  0xba   : > { %v6845_v38 = vpop.permute.xlu1 %1871 }
  0xbb   : > { %2031 = vrot.lane.b32.xlu1 %v6647_v60, %s6249_s28 }
  0xbc   : > { %2047 = vrot.lane.b32.xlu0 %v6470_v50, %s6250_s29 }
  0xbe   : > { %2051 = vrot.lane.b32.xlu2 %v6504_v44, %s6250_s29  ;;  %v6847_v0 = vpop.permute.xlu0 %1875 }
  0xbf   : > { %10960 = vst [vmem:[#allocation31_spill] sm:$0xff] %v6847_v0 }
  0xc0   : > { %v6843_v22 = vpop.permute.xlu2 %1972 }
  0xc1   : > { %10959 = vst [vmem:[#allocation30_spill] sm:$0xff] %v6843_v22 }
  0xc3   : > { %2049 = vrot.lane.b32.xlu1 %v6464_v45, %s6250_s29 }
  0xc4   : > { %2053 = vrot.lane.b32.xlu0 %v6456_v40, %s6250_s29 }
  0xc6   : > { %2057 = vrot.lane.b32.xlu2 %v6528_v20, %s6250_s29  ;;  %v6859_v50 = vpop.permute.xlu1 %1877 }
  0xc7   : > { %10962 = vst [vmem:[#allocation33_spill] sm:$0xff] %v6859_v50  ;;  %v2038_v50 = vshll.u32 %v6823_v63, 16 }
  0xc8   : > { %v6855_v9 = vpop.permute.xlu2 %1978 }
  0xc9   : > { %10961 = vst [vmem:[#allocation32_spill] sm:$0xff] %v6855_v9  ;;  %v2040_v41 = vrot.slane %v2038_v50, 1 }
  0xcb   : > { %2055 = vrot.lane.b32.xlu1 %v6488_v15, %s6250_s29 }
  0xcc   : > { %2059 = vrot.lane.b32.xlu0 %v6563_v14, %s6250_s29  ;;  %v6863_v0 = vpop.permute.xlu0 %1881 }
  0xcd   : > { %10963 = vst [vmem:[#allocation34_spill] sm:$0xff] %v6863_v0  ;;  %v1607_v0 = vsel %vm6358_vm2, %v1053_v32, 0 }
  0xce   : > { %2063 = vrot.lane.b32.xlu2 %v6580_v43, %s6250_s29  ;;  %v2043_v62 = vshll.u32 %v1607_v0, 16 }
  0xd0   : > { %v6867_v31 = vpop.permute.xlu2 %1984  ;;  %v2045_v42 = vrot.slane %v2043_v62, 1 }
  0xd3   : > { %2061 = vrot.lane.b32.xlu1 %v6546_v47, %s6250_s29 }
  0xd4   : > { %2065 = vrot.lane.b32.xlu0 %v6610_v58, %s6250_s29 }
  0xd5   : > { %v6873_v57 = vpop.permute.xlu1 %1883 }
  0xd6   : > { %10964 = vst [vmem:[#allocation35_spill] sm:$0xff] %v6873_v57  ;;  %2069 = vrot.lane.b32.xlu2 %v6628_v49, %s6250_s29  ;;  %v6878_v22 = vpop.permute.xlu0 %1887 }
  0xd7   : > { %10965 = vst [vmem:[#allocation36_spill] sm:$0xff] %v6878_v22  ;;  %v2041_v22 = vor.u32 %v2040_v41, %v2036_v37 }
  0xd8   : > { %v6882_v21 = vpop.permute.xlu2 %1990 }
  0xd9   : > { %10966 = vst [vmem:[#allocation37_spill] sm:$0xff] %v6882_v21  ;;  %v6898_v50 = vsel %vm1664_vm3, %v2041_v22, %v2045_v42 }
  0xdb   : > { %2067 = vrot.lane.b32.xlu1 %v6596_v24, %s6250_s29 }
  0xdc   : > { %2071 = vrot.lane.b32.xlu0 %v6662_v59, %s6250_s29 }
  0xdd   : > { %v6889_v57 = vpop.permute.xlu1 %1970 }
  0xde   : > { %10967 = vst [vmem:[#allocation38_spill] sm:$0xff] %v6889_v57  ;;  %2075 = vrot.lane.b32.xlu2 %v6670_v7, %s6250_s29  ;;  %v6893_v32 = vpop.permute.xlu0 %1974 }
  0xdf   : > { %10968 = vst [vmem:[#allocation39_spill] sm:$0xff] %v6893_v32 }
  0xe0   : > { %v6895_v21 = vpop.permute.xlu2 %1996 }
  0xe1   : > { %10969 = vst [vmem:[#allocation40_spill] sm:$0xff] %v6895_v21 }
  0xe3   : > { %2073 = vrot.lane.b32.xlu1 %v6651_v19, %s6250_s29 }
  0xe4   : > { %2077 = vrot.lane.b32.xlu0 %v6898_v50, %s6250_s29 }
  0xe5   : > { %v6904_v9 = vpop.permute.xlu1 %1976 }
  0xe6   : > { %10970 = vst [vmem:[#allocation41_spill] sm:$0xff] %v6904_v9  ;;  %2085 = vrot.lane.b32.xlu2 %v6686_v35, %s6251_s14  ;;  %v6908_v62 = vpop.permute.xlu0 %1980 }
  0xe7   : > { %10971 = vst [vmem:[#allocation42_spill] sm:$0xff] %v6908_v62 }
  0xe8   : > { %v6910_v37 = vpop.permute.xlu2 %2003 }
  0xe9   : > { %10972 = vst [vmem:[#allocation43_spill] sm:$0xff] %v6910_v37 }
  0xeb   : > { %2083 = vrot.lane.b32.xlu1 %v6665_v6, %s6251_s14 }
  0xec   : > { %2087 = vrot.lane.b32.xlu0 %v6704_v51, %s6251_s14 }
  0xed   : > { %v6916_v41 = vpop.permute.xlu1 %1982 }
  0xee   : > { %2091 = vrot.lane.b32.xlu2 %v6707_v54, %s6251_s14  ;;  %v6920_v42 = vpop.permute.xlu0 %1986 }
  0xef   : > { %10973 = vst [vmem:[#allocation44_spill] sm:$0xff] %v6920_v42 }
  0xf0   : > { %v6922_v22 = vpop.permute.xlu2 %2009 }
  0xf1   : > { %10974 = vst [vmem:[#allocation45_spill] sm:$0xff] %v6922_v22 }
  0xf3   : > { %2089 = vrot.lane.b32.xlu1 %v6689_v4, %s6251_s14 }
  0xf4   : > { %2093 = vrot.lane.b32.xlu0 %v6725_v28, %s6251_s14 }
  0xf5   : > { %v6928_v37 = vpop.permute.xlu1 %1988 }
  0xf6   : > { %10975 = vst [vmem:[#allocation46_spill] sm:$0xff] %v6928_v37  ;;  %2097 = vrot.lane.b32.xlu2 %v6728_v30, %s6251_s14  ;;  %v6932_v6 = vpop.permute.xlu0 %1992 }
  0xf7   : > { %10976 = vst [vmem:[#allocation47_spill] sm:$0xff] %v6932_v6 }
  0xf8   : > { %v6934_v57 = vpop.permute.xlu2 %2015 }
  0xfb   : > { %2095 = vrot.lane.b32.xlu1 %v6710_v12, %s6251_s14 }
  0xfc   : > { %2099 = vrot.lane.b32.xlu0 %v6746_v48, %s6251_s14 }
  0xfd   : > { %v6940_v42 = vpop.permute.xlu1 %1994 }
  0xfe   : > { %10977 = vst [vmem:[#allocation48_spill] sm:$0xff] %v6940_v42  ;;  %2103 = vrot.lane.b32.xlu2 %v6749_v46, %s6251_s14  ;;  %v6944_v21 = vpop.permute.xlu0 %1998 }
  0xff   : > { %10978 = vst [vmem:[#allocation49_spill] sm:$0xff] %v6944_v21  ;;  %v2081_v21 = vrot.slane %v1607_v0, 1 }
 0x100   : > { %v6946_v37 = vpop.permute.xlu2 %2021 }
 0x101   : > { %10979 = vst [vmem:[#allocation50_spill] sm:$0xff] %v6946_v37  ;;  %v2080_v37 = vrot.slane %v6823_v63, 1 }
 0x103   : > { %2101 = vrot.lane.b32.xlu1 %v6731_v8, %s6251_s14 }
 0x104   : > { %2105 = vrot.lane.b32.xlu0 %v6765_v16, %s6251_s14 }
 0x105   : > { %v6952_v6 = vpop.permute.xlu1 %2000 }
 0x106   : > { %10980 = vst [vmem:[#allocation51_spill] sm:$0xff] %v6952_v6  ;;  %2109 = vrot.lane.b32.xlu2 %v6768_v18, %s6251_s14  ;;  %v6956_v32 = vpop.permute.xlu0 %2005 }
 0x107   : > { %10981 = vst [vmem:[#allocation52_spill] sm:$0xff] %v6956_v32 }
 0x108   : > { %v6958_v42 = vpop.permute.xlu2 %2027 }
 0x109   : > { %10982 = vst [vmem:[#allocation53_spill] sm:$0xff] %v6958_v42  ;;  %v6974_v42 = vsel %vm1921_vm4, %v2080_v37, %v2081_v21 }
 0x10b   : > { %2107 = vrot.lane.b32.xlu1 %v6752_v29, %s6251_s14 }
 0x10c   : > { %2111 = vrot.lane.b32.xlu0 %v6781_v27, %s6251_s14 }
 0x10d   : > { %v6965_v22 = vpop.permute.xlu1 %2007 }
 0x10e   : > { %10983 = vst [vmem:[#allocation54_spill] sm:$0xff] %v6965_v22  ;;  %2115 = vrot.lane.b32.xlu2 %v6434_v17, %s10805_s16  ;;  %v6969_v6 = vpop.permute.xlu0 %2011 }
 0x10f   : > { %10984 = vst [vmem:[#allocation55_spill] sm:$0xff] %v6969_v6 }
 0x110   : > { %v6971_v32 = vpop.permute.xlu2 %2033 }
 0x111   : > { %10985 = vst [vmem:[#allocation56_spill] sm:$0xff] %v6971_v32 }
 0x113   : > { %2113 = vrot.lane.b32.xlu1 %v6974_v42, %s6251_s14 }
 0x114   : > { %2117 = vrot.lane.b32.xlu0 %v6482_v61, %s10805_s16 }
 0x115   : > { %v6980_v0 = vpop.permute.xlu1 %2013 }
 0x116   : > { %10986 = vst [vmem:[#allocation57_spill] sm:$0xff] %v6980_v0  ;;  %2121 = vrot.lane.b32.xlu2 %v6452_v36, %s10805_s16  ;;  %v6984_v22 = vpop.permute.xlu0 %2017  ;;  %v423_v36 = vld [vmem:[%s6384_s25 + $0x1e8] sm:$0xff] }
 0x118   : > { %v6986_v17 = vpop.permute.xlu2 %2051 }
 0x119   : > { %10987 = vst [vmem:[#allocation58_spill] sm:$0xff] %v6986_v17 }
 0x11b   : > { %2119 = vrot.lane.b32.xlu1 %v6423_v10, %s10805_s16 }
 0x11c   : > { %2123 = vrot.lane.b32.xlu0 %v6501_v39, %s10805_s16 }
 0x11d   : > { %v6992_v21 = vpop.permute.xlu1 %2019 }
 0x11e   : > { %10988 = vst [vmem:[#allocation59_spill] sm:$0xff] %v6992_v21  ;;  %2127 = vrot.lane.b32.xlu2 %v6519_v1, %s10805_s16  ;;  %v6996_v37 = vpop.permute.xlu0 %2023 }
 0x11f   : > { %10989 = vst [vmem:[#allocation60_spill] sm:$0xff] %v6996_v37 }
 0x120   : > { %v6998_v32 = vpop.permute.xlu2 %2057 }
 0x121   : > { %10990 = vst [vmem:[#allocation61_spill] sm:$0xff] %v6998_v32 }
 0x123   : > { %2125 = vrot.lane.b32.xlu1 %v6535_v25, %s10805_s16 }
 0x124   : > { %2129 = vrot.lane.b32.xlu0 %v6553_v52, %s10805_s16 }
 0x125   : > { %v7004_v17 = vpop.permute.xlu1 %2025 }
 0x126   : > { %10991 = vst [vmem:[#allocation62_spill] sm:$0xff] %v7004_v17  ;;  %2133 = vrot.lane.b32.xlu2 %v6571_v23, %s10805_s16  ;;  %v7008_v9 = vpop.permute.xlu0 %2029 }
 0x127   : > { %10992 = vst [vmem:[#allocation63_spill] sm:$0xff] %v7008_v9 }
 0x128   : > { %v7010_v21 = vpop.permute.xlu2 %2063 }
 0x129   : > { %10993 = vst [vmem:[#allocation64_spill] sm:$0xff] %v7010_v21 }
 0x12b   : > { %2131 = vrot.lane.b32.xlu1 %v6589_v56, %s10805_s16 }
 0x12c   : > { %2135 = vrot.lane.b32.xlu0 %v6607_v34, %s10805_s16 }
 0x12d   : > { %v7016_v1 = vpop.permute.xlu1 %2031 }
 0x12e   : > { %10994 = vst [vmem:[#allocation65_spill] sm:$0xff] %v7016_v1  ;;  %2139 = vrot.lane.b32.xlu2 %v6623_v13, %s10805_s16  ;;  %v7020_v52 = vpop.permute.xlu0 %2047 }
 0x12f   : > { %10995 = vst [vmem:[#allocation66_spill] sm:$0xff] %v7020_v52 }
 0x130   : > { %v7022_v37 = vpop.permute.xlu2 %2069 }
 0x131   : > { %10996 = vst [vmem:[#allocation67_spill] sm:$0xff] %v7022_v37 }
 0x133   : > { %2137 = vrot.lane.b32.xlu1 %v6643_v11, %s10805_s16 }
 0x134   : > { %2141 = vrot.lane.b32.xlu0 %v6647_v60, %s10805_s16 }
 0x135   : > { %v7028_v21 = vpop.permute.xlu1 %2049 }
 0x136   : > { %10997 = vst [vmem:[#allocation68_spill] sm:$0xff] %v7028_v21  ;;  %2145 = vrot.lane.b32.xlu2 %v6368_v3, %s10805_s16  ;;  %v7032_v56 = vpop.permute.xlu0 %2053 }
 0x137   : > { %10998 = vst [vmem:[#allocation69_spill] sm:$0xff] %v7032_v56 }
 0x138   : > { %v7034_v17 = vpop.permute.xlu2 %2075 }
 0x139   : > { %10999 = vst [vmem:[#allocation70_spill] sm:$0xff] %v7034_v17 }
 0x13b   : > { %2143 = vrot.lane.b32.xlu1 %v6823_v63, %s10805_s16  ;;  %s344_s16 = sand.u32 1, %s6236_s10  }
 0x13c   : > { %2147 = vrot.lane.b32.xlu0 %v6464_v45, %s10803_s17 }
 0x13d   : > { %v7040_v37 = vpop.permute.xlu1 %2055 }
 0x13e   : > { %11000 = vst [vmem:[#allocation71_spill] sm:$0xff] %v7040_v37  ;;  %2151 = vrot.lane.b32.xlu2 %v6456_v40, %s10803_s17  ;;  %v7044_v23 = vpop.permute.xlu0 %2059 }
 0x13f   : > { %11001 = vst [vmem:[#allocation72_spill] sm:$0xff] %v7044_v23  ;;  %v420_v23 = vld [vmem:[%s6384_s25 + $0x1d0] sm:$0xff] }
 0x140   : > { %v7046_v52 = vpop.permute.xlu2 %2085 }
 0x141   : > { %11002 = vst [vmem:[#allocation73_spill] sm:$0xff] %v7046_v52  ;;  %v397_v52 = vld [vmem:[%s6384_s25 + $0x118] sm:$0xff] }
 0x142   : > { %v525_v21 = vpack.c.bf16 %v397_v52, %v397_v52 }
 0x143   : > { %2149 = vrot.lane.b32.xlu1 %v6504_v44, %s10803_s17 }
 0x144   : > { %2153 = vrot.lane.b32.xlu0 %v6488_v15, %s10803_s17 }
 0x145   : > { %v7052_v63 = vpop.permute.xlu1 %2061 }
 0x146   : > { %2157 = vrot.lane.b32.xlu2 %v6563_v14, %s10803_s17  ;;  %v7056_v45 = vpop.permute.xlu0 %2065 }
 0x147   : > { %11003 = vst [vmem:[#allocation74_spill] sm:$0xff] %v7056_v45  ;;  %v399_v45 = vld [vmem:[%s6384_s25 + $0x128] sm:$0xff] }
 0x148   : > { %v7058_v34 = vpop.permute.xlu2 %2091 }
 0x149   : > { %11004 = vst [vmem:[#allocation75_spill] sm:$0xff] %v7058_v34 }
 0x14b   : > { %2155 = vrot.lane.b32.xlu1 %v6528_v20, %s10803_s17 }
 0x14c   : > { %2159 = vrot.lane.b32.xlu0 %v6546_v47, %s10803_s17 }
 0x14d   : > { %v7064_v40 = vpop.permute.xlu1 %2067 }
 0x14e   : > { %11005 = vst [vmem:[#allocation76_spill] sm:$0xff] %v7064_v40  ;;  %2163 = vrot.lane.b32.xlu2 %v6610_v58, %s10803_s17  ;;  %v7068_v15 = vpop.permute.xlu0 %2071 }
 0x14f   : > { %11006 = vst [vmem:[#allocation77_spill] sm:$0xff] %v7068_v15  ;;  %v396_v15 = vld [vmem:[%s6384_s25 + $0x110] sm:$0xff] }
 0x150   : > { %v7070_v44 = vpop.permute.xlu2 %2097 }
 0x153   : > { %2161 = vrot.lane.b32.xlu1 %v6580_v43, %s10803_s17 }
 0x154   : > { %2165 = vrot.lane.b32.xlu0 %v6596_v24, %s10803_s17 }
 0x155   : > { %v7076_v14 = vpop.permute.xlu1 %2073 }
 0x156   : > { %11007 = vst [vmem:[#allocation78_spill] sm:$0xff] %v7076_v14  ;;  %2169 = vrot.lane.b32.xlu2 %v6662_v59, %s10803_s17  ;;  %v7080_v20 = vpop.permute.xlu0 %2077  ;;  %v404_v14 = vld [vmem:[%s6384_s25 + $0x150] sm:$0xff] }
 0x157   : > { %11008 = vst [vmem:[#allocation79_spill] sm:$0xff] %v7080_v20  ;;  %v532_v9 = vpack.c.bf16 %v404_v14, %v404_v14 }
 0x158   : > { %v7082_v47 = vpop.permute.xlu2 %2103 }
 0x159   : > { %11009 = vst [vmem:[#allocation80_spill] sm:$0xff] %v7082_v47 }
 0x15b   : > { %2167 = vrot.lane.b32.xlu1 %v6628_v49, %s10803_s17 }
 0x15c   : > { %2171 = vrot.lane.b32.xlu0 %v6651_v19, %s10803_s17 }
 0x15d   : > { %v7088_v43 = vpop.permute.xlu1 %2083 }
 0x15e   : > { %11010 = vst [vmem:[#allocation81_spill] sm:$0xff] %v7088_v43  ;;  %2175 = vrot.lane.b32.xlu2 %v6898_v50, %s10803_s17  ;;  %v7092_v24 = vpop.permute.xlu0 %2087  ;;  %v398_v50 = vld [vmem:[%s6384_s25 + $0x120] sm:$0xff] }
 0x15f   : > { %11011 = vst [vmem:[#allocation82_spill] sm:$0xff] %v7092_v24  ;;  %v526_v47 = vpack.c.bf16 %v398_v50, %v398_v50  ;;  %v394_v50 = vld [vmem:[%s6384_s25 + $0x100] sm:$0xff] }
 0x160   : > { %v7094_v58 = vpop.permute.xlu2 %2109 }
 0x161   : > { %11012 = vst [vmem:[#allocation83_spill] sm:$0xff] %v7094_v58  ;;  %v782_v40 = vunpack.c.l.b16 %v526_v47  ;;  %v522_v58 = vpack.c.bf16 %v394_v50, %v394_v50 }
 0x163   : > { %2173 = vrot.lane.b32.xlu1 %v6670_v7, %s10803_s17  ;;  %v527_v7 = vpack.c.bf16 %v399_v45, %v399_v45 }
 0x164   : > { %2177 = vrot.lane.b32.xlu0 %v6396_v26, %s10803_s17  ;;  %s6256_s17 = smov 126  }
 0x165   : > { %v7100_v59 = vpop.permute.xlu1 %2089  ;;  %v783_v26 = vunpack.c.l.b16 %v527_v7  ;;  %v395_v7 = vld [vmem:[%s6384_s25 + $0x108] sm:$0xff] }
 0x166   : > { %11013 = vst [vmem:[#allocation84_spill] sm:$0xff] %v7100_v59  ;;  %2181 = vrot.lane.b32.xlu2 %v6704_v51, %s6254_s22  ;;  %v7104_v49 = vpop.permute.xlu0 %2093 }
 0x167   : > { %11014 = vst [vmem:[#allocation85_spill] sm:$0xff] %v7104_v49  ;;  %v892_v51 = vpack.c.b16 %v783_v26, %v782_v40  ;;  %v523_v40 = vpack.c.bf16 %v395_v7, %v395_v7  ;;  %v524_v26 = vpack.c.bf16 %v396_v15, %v396_v15 }
 0x168   : > { %v7106_v19 = vpop.permute.xlu2 %2115 }
 0x169   : > { %11015 = vst [vmem:[#allocation86_spill] sm:$0xff] %v7106_v19  ;;  %v1072_v45 = vshrl.u32 %v892_v51, 16  ;;  %v780_v17 = vunpack.c.l.b16 %v524_v26 }
 0x16b   : > { %2179 = vrot.lane.b32.xlu1 %v6686_v35, %s6254_s22  ;;  %v1074_v3 = vrot.slane %v1072_v45, 7  ;;  %v1075_v35 = vshll.u32 %v892_v51, 16  ;;  %v781_v45 = vunpack.c.l.b16 %v525_v21  ;;  %v788_v51 = vunpack.c.l.b16 %v532_v9 }
 0x16c   : > { %2183 = vrot.lane.b32.xlu0 %v6689_v4, %s6254_s22  ;;  %v405_v4 = vld [vmem:[%s6384_s25 + $0x158] sm:$0xff] }
 0x16d   : > { %v7114_v43 = vpop.permute.xlu1 %2095  ;;  %v1077_v11 = vor.u32 %v1075_v35, %v1074_v3  ;;  %v533_v24 = vpack.c.bf16 %v405_v4, %v405_v4  ;;  %v891_v15 = vpack.c.b16 %v781_v45, %v780_v17  ;;  %v401_v35 = vld [vmem:[%s6384_s25 + $0x138] sm:$0xff]  ;;  %v7151_v17 = vsel %vm6358_vm2, %v1074_v3, 0  ;;  %v403_v3 = vld [vmem:[%s6384_s25 + $0x148] sm:$0xff] }
 0x16e   : > { %11016 = vst [vmem:[#allocation87_spill] sm:$0xff] %v7114_v43  ;;  %2187 = vrot.lane.b32.xlu2 %v6725_v28, %s6254_s22  ;;  %v7118_v19 = vpop.permute.xlu0 %2099  ;;  %v778_v28 = vunpack.c.l.b16 %v522_v58  ;;  %v529_v26 = vpack.c.bf16 %v401_v35, %v401_v35  ;;  %v531_v13 = vpack.c.bf16 %v403_v3, %v403_v3  ;;  %v551_v43 = vpack.c.bf16 %v423_v36, %v423_v36 }
 0x16f   : > { %11017 = vst [vmem:[#allocation88_spill] sm:$0xff] %v7118_v19  ;;  %v779_v19 = vunpack.c.l.b16 %v523_v40  ;;  %v789_v50 = vunpack.c.l.b16 %v533_v24  ;;  %v400_v24 = vld [vmem:[%s6384_s25 + $0x130] sm:$0xff] }
 0x170   : > { %v7120_v47 = vpop.permute.xlu2 %2121  ;;  %v528_v40 = vpack.c.bf16 %v400_v24, %v400_v24  ;;  %v2622_v24 = vshll.u32 %v7151_v17, 16 }
 0x171   : > { %11018 = vst [vmem:[#allocation89_spill] sm:$0xff] %v7120_v47  ;;  %v890_v52 = vpack.c.b16 %v779_v19, %v778_v28  ;;  %v895_v9 = vpack.c.b16 %v789_v50, %v788_v51  ;;  %v402_v28 = vld [vmem:[%s6384_s25 + $0x140] sm:$0xff]  ;;  %v1068_v51 = vshll.u32 %v891_v15, 16 }
 0x172   : > { %v2624_v20 = vrot.slane %v2622_v24, 1 }
 0x173   : > { %2185 = vrot.lane.b32.xlu1 %v6707_v54, %s6254_s22  ;;  %v7140_v54 = vsel %vm6358_vm2, 0, %v1077_v11  ;;  %v1058_v58 = vshrl.u32 %v890_v52, 16  ;;  %v1061_v19 = vshll.u32 %v890_v52, 16  ;;  %v1093_v11 = vshrl.u32 %v895_v9, 16 }
 0x174   : > { %2189 = vrot.lane.b32.xlu0 %v6710_v12, %s6254_s22  ;;  %11021 = vst [vmem:[#allocation92_spill] sm:$0xff] %v7140_v54  ;;  %v1065_v12 = vshrl.u32 %v891_v15, 16  ;;  %v2617_v4 = vshll.u32 %v7140_v54, 16 }
 0x175   : > { %v7132_v7 = vpop.permute.xlu1 %2101  ;;  %v1095_v15 = vrot.slane %v1093_v11, 7 }
 0x176   : > { %11019 = vst [vmem:[#allocation90_spill] sm:$0xff] %v7132_v7  ;;  %2193 = vrot.lane.b32.xlu2 %v6746_v48, %s6254_s22  ;;  %v7136_v14 = vpop.permute.xlu0 %2105  ;;  %v1060_v48 = vrot.slane %v1058_v58, 7  ;;  %v1067_v45 = vrot.slane %v1065_v12, 7  ;;  %v2619_v52 = vrot.slane %v2617_v4, 1  ;;  %v530_v7 = vpack.c.bf16 %v402_v28, %v402_v28  ;;  %v411_v28 = vld [vmem:[%s6384_s25 + $0x188] sm:$0xff] }
 0x177   : > { %11020 = vst [vmem:[#allocation91_spill] sm:$0xff] %v7136_v14  ;;  %v1096_v12 = vshll.u32 %v895_v9, 16  ;;  %v784_v14 = vunpack.c.l.b16 %v528_v40 }
 0x178   : > { %v7142_v21 = vpop.permute.xlu2 %2127  ;;  %v1063_v35 = vor.u32 %v1061_v19, %v1060_v48  ;;  %v1070_v1 = vor.u32 %v1068_v51, %v1067_v45  ;;  %v786_v19 = vunpack.c.l.b16 %v530_v7  ;;  %v787_v51 = vunpack.c.l.b16 %v531_v13 }
 0x179   : > { %11022 = vst [vmem:[#allocation93_spill] sm:$0xff] %v7142_v21  ;;  %v1098_v9 = vor.u32 %v1096_v12, %v1095_v15 }
 0x17a   : > { %v7170_v4 = vsel %vm6358_vm2, 0, %v1063_v35  ;;  %v894_v13 = vpack.c.b16 %v787_v51, %v786_v19 }
 0x17b   : > { %2191 = vrot.lane.b32.xlu1 %v6728_v30, %s6254_s22  ;;  %v2615_v30 = vshrl.u32 %v7140_v54, 16  ;;  %11026 = vst [vmem:[#allocation97_spill] sm:$0xff] %v7170_v4  ;;  %v7207_v35 = vsel %vm6358_vm2, 0, %v1098_v9 }
 0x17c   : > { %2195 = vrot.lane.b32.xlu0 %v6731_v8, %s6254_s22  ;;  %11032 = vst [vmem:[#allocation103_spill] sm:$0xff] %v7207_v35  ;;  %v1086_v19 = vshrl.u32 %v894_v13, 16 }
 0x17d   : > { %v7156_v50 = vpop.permute.xlu1 %2107  ;;  %v2620_v47 = vor.u32 %v2619_v52, %v2615_v30  ;;  %v406_v52 = vld [vmem:[%s6384_s25 + $0x160] sm:$0xff] }
 0x17e   : > { %11023 = vst [vmem:[#allocation94_spill] sm:$0xff] %v7156_v50  ;;  %2199 = vrot.lane.b32.xlu2 %v6765_v16, %s6254_s22  ;;  %v7162_v58 = vpop.permute.xlu0 %2111  ;;  %v785_v50 = vunpack.c.l.b16 %v529_v26  ;;  %v410_v16 = vld [vmem:[%s6384_s25 + $0x180] sm:$0xff]  ;;  %v7183_v26 = vsel %vm6358_vm2, 0, %v1070_v1  ;;  %v2591_v1 = vshrl.u32 %v7170_v4, 16  ;;  %v1088_v59 = vrot.slane %v1086_v19, 7 }
 0x17f   : > { %11024 = vst [vmem:[#allocation95_spill] sm:$0xff] %v7162_v58  ;;  %v7174_v58 = vsel %vm6358_vm2, %v1060_v48, 0  ;;  %v538_v40 = vpack.c.bf16 %v410_v16, %v410_v16  ;;  %v539_v48 = vpack.c.bf16 %v411_v28, %v411_v28  ;;  %v2605_v24 = vshll.u32 %v7183_v26, 16 }
 0x180   : > { %v7165_v8 = vpop.permute.xlu2 %2133  ;;  %v893_v11 = vpack.c.b16 %v785_v50, %v784_v14  ;;  %11027 = vst [vmem:[#allocation98_spill] sm:$0xff] %v7183_v26  ;;  %v2598_v7 = vshll.u32 %v7174_v58, 16  ;;  %v1089_v28 = vshll.u32 %v894_v13, 16  ;;  %v2603_v9 = vshrl.u32 %v7183_v26, 16 }
 0x181   : > { %11025 = vst [vmem:[#allocation96_spill] sm:$0xff] %v7165_v8  ;;  %v794_v12 = vunpack.c.l.b16 %v538_v40  ;;  %v2653_v40 = vshll.u32 %v7207_v35, 16 }
 0x182   : > { %v1079_v14 = vshrl.u32 %v893_v11, 16  ;;  %v1082_v16 = vshll.u32 %v893_v11, 16  ;;  %v7210_v8 = vrot.slane %v2598_v7, 1  ;;  %v2607_v11 = vrot.slane %v2605_v24, 1 }
 0x183   : > { %2197 = vrot.lane.b32.xlu1 %v6749_v46, %s6254_s22  ;;  %v2593_v46 = vshll.u32 %v7170_v4, 16  ;;  %v7224_v7 = vsel %vm6358_vm2, %v1095_v15, 0  ;;  %v2651_v15 = vshrl.u32 %v7207_v35, 16 }
 0x184   : > { %2201 = vrot.lane.b32.xlu0 %v6752_v29, %s6254_s22  ;;  %v7194_v29 = vsel %vm1664_vm3, %v2620_v47, %v2624_v20  ;;  %v407_v20 = vld [vmem:[%s6384_s25 + $0x168] sm:$0xff]  ;;  %v1081_v47 = vrot.slane %v1079_v14, 7  ;;  %v409_v14 = vld [vmem:[%s6384_s25 + $0x178] sm:$0xff] }
 0x185   : > { %v7185_v30 = vpop.permute.xlu1 %2113  ;;  %11030 = vst [vmem:[#allocation101_spill] sm:$0xff] %v7194_v29  ;;  %v2595_v51 = vrot.slane %v2593_v46, 1  ;;  %v535_v56 = vpack.c.bf16 %v407_v20, %v407_v20  ;;  %v537_v34 = vpack.c.bf16 %v409_v14, %v409_v14 }
 0x186   : > { %11028 = vst [vmem:[#allocation99_spill] sm:$0xff] %v7185_v30  ;;  %2205 = vrot.lane.b32.xlu2 %v6781_v27, %s6254_s22  ;;  %v7191_v50 = vpop.permute.xlu0 %2117  ;;  %v7202_v27 = vsel %vm6358_vm2, %v1067_v45, 0  ;;  %v408_v45 = vld [vmem:[%s6384_s25 + $0x170] sm:$0xff]  ;;  %v1660_v30 = vld [vmem:[%s10782_s3] sm:$0xff]  ;;  %v1084_v13 = vor.u32 %v1082_v16, %v1081_v47 }
 0x187   : > { %11029 = vst [vmem:[#allocation100_spill] sm:$0xff] %v7191_v50  ;;  %v534_v50 = vpack.c.bf16 %v406_v52, %v406_v52  ;;  %v2610_v46 = vshll.u32 %v7202_v27, 16  ;;  %v1091_v52 = vor.u32 %v1089_v28, %v1088_v59  ;;  %v536_v19 = vpack.c.bf16 %v408_v45, %v408_v45 }
 0x188   : > { %v7198_v3 = vpop.permute.xlu2 %2139  ;;  %v791_v24 = vunpack.c.l.b16 %v535_v56  ;;  %v2596_v16 = vor.u32 %v2595_v51, %v2591_v1  ;;  %v7242_v56 = vsel %vm6358_vm2, %v1081_v47, 0  ;;  %v2608_v45 = vor.u32 %v2607_v11, %v2603_v9  ;;  %v1663_v9 = vld [vmem:[%s10782_s3 + $0x18] sm:$0xff] }
 0x189   : > { %11031 = vst [vmem:[#allocation102_spill] sm:$0xff] %v7198_v3  ;;  %v795_v3 = vunpack.c.l.b16 %v539_v48  ;;  %v790_v60 = vunpack.c.l.b16 %v534_v50  ;;  %v7254_v1 = vsel %vm6358_vm2, %v1088_v59, 0  ;;  %v793_v51 = vunpack.c.l.b16 %v537_v34 }
 0x18b   : > { %2203 = vrot.lane.b32.xlu1 %v6768_v18, %s6254_s22  ;;  %v898_v48 = vpack.c.b16 %v795_v3, %v794_v12  ;;  %v2655_v3 = vrot.slane %v2653_v40, 1  ;;  %v2658_v12 = vshll.u32 %v7224_v7, 16  ;;  %v7246_v40 = vsel %vm6358_vm2, 0, %v1084_v13 }
 0x18c   : > { %2207 = vrot.lane.b32.xlu0 %v6974_v42, %s6254_s22  ;;  %v7236_v42 = vsel %vm6358_vm2, 0, %v1091_v52  ;;  %11037 = vst [vmem:[#allocation108_spill] sm:$0xff] %v7246_v40  ;;  %v896_v14 = vpack.c.b16 %v791_v24, %v790_v60  ;;  %v1661_v52 = vld [vmem:[%s10782_s3 + $0x8] sm:$0xff] }
 0x18d   : > { %v7228_v20 = vpop.permute.xlu1 %2119  ;;  %v1114_v61 = vshrl.u32 %v898_v48, 16  ;;  %v1117_v18 = vshll.u32 %v898_v48, 16  ;;  %11035 = vst [vmem:[#allocation106_spill] sm:$0xff] %v7236_v42  ;;  %v792_v48 = vunpack.c.l.b16 %v536_v19  ;;  %v2641_v47 = vshll.u32 %v7236_v42, 16  ;;  %v417_v19 = vld [vmem:[%s6384_s25 + $0x1b8] sm:$0xff] }
 0x18e   : > { %11033 = vst [vmem:[#allocation104_spill] sm:$0xff] %v7228_v20  ;;  %2477 = vperm.xlu2 %6175, %v1660_v30   ;;  %v7230_v37 = vpop.permute.xlu0 %2123  ;;  %v2612_v30 = vrot.slane %v2610_v46, 1  ;;  %v416_v20 = vld [vmem:[%s6384_s25 + $0x1b0] sm:$0xff]  ;;  %v2656_v11 = vor.u32 %v2655_v3, %v2651_v15  ;;  %v2660_v60 = vrot.slane %v2658_v12, 1  ;;  %v2634_v46 = vshll.u32 %v7242_v56, 16 }
 0x18f   : > { %11034 = vst [vmem:[#allocation105_spill] sm:$0xff] %v7230_v37  ;;  %v1116_v28 = vrot.slane %v1114_v61, 7  ;;  %v1100_v13 = vshrl.u32 %v896_v14, 16  ;;  %v1103_v24 = vshll.u32 %v896_v14, 16  ;;  %v544_v34 = vpack.c.bf16 %v416_v20, %v416_v20 }
 0x190   : > { %v7238_v50 = vpop.permute.xlu2 %2145  ;;  %v2639_v15 = vshrl.u32 %v7236_v42, 16  ;;  %v2646_v3 = vshll.u32 %v7254_v1, 16  ;;  %v7277_v20 = vsel %vm1664_vm3, %v2596_v16, %v7210_v8  ;;  %v7280_v14 = vsel %vm1664_vm3, %v2608_v45, %v2612_v30  ;;  %v1662_v8 = vld [vmem:[%s10782_s3 + $0x10] sm:$0xff] }
 0x191   : > { %11036 = vst [vmem:[#allocation107_spill] sm:$0xff] %v7238_v50  ;;  %v1119_v61 = vor.u32 %v1117_v18, %v1116_v28  ;;  %v897_v18 = vpack.c.b16 %v793_v51, %v792_v48  ;;  %v2629_v50 = vshll.u32 %v7246_v40, 16  ;;  %v1102_v12 = vrot.slane %v1100_v13, 7 }
 0x192   : > { %11040 = vst [vmem:[#allocation111_spill] sm:$0xff] %v7277_v20  ;;  %v7284_v48 = vsel %vm6358_vm2, %v1116_v28, 0  ;;  %v7290_v51 = vsel %vm1664_vm3, %v2656_v11, %v2660_v60  ;;  %v2627_v16 = vshrl.u32 %v7246_v40, 16  ;;  %v7297_v28 = vrot.slane %v2634_v46, 1 }
 0x193   : > { %2209 = vrot.lane.b32.xlu1 %v6683_v33, %s6254_s22  ;;  %v7266_v59 = vsel %vm6358_vm2, 0, %v1119_v61  ;;  %v2643_v33 = vrot.slane %v2641_v47, 1  ;;  %v1107_v6 = vshrl.u32 %v897_v18, 16  ;;  %v1110_v10 = vshll.u32 %v897_v18, 16  ;;  %11041 = vst [vmem:[#allocation112_spill] sm:$0xff] %v7280_v14  ;;  %v412_v18 = vld [vmem:[%s6384_s25 + $0x190] sm:$0xff] }
 0x194   : > { %11038 = vst [vmem:[#allocation109_spill] sm:$0xff] %v7266_v59  ;;  %2482 = vperm.xlu0 %6176, %v1661_v52   ;;  %v545_v61 = vpack.c.bf16 %v417_v19, %v417_v19  ;;  %v2689_v52 = vshll.u32 %v7266_v59, 16  ;;  %v800_v19 = vunpack.c.l.b16 %v544_v34  ;;  %v2631_v30 = vrot.slane %v2629_v50, 1 }
 0x195   : > { %v7271_v37 = vpop.permute.xlu1 %2125  ;;  %11043 = vst [vmem:[#allocation114_spill] sm:$0xff] %v7290_v51  ;;  %v1109_v13 = vrot.slane %v1107_v6, 7  ;;  %v2648_v49 = vrot.slane %v2646_v3, 1  ;;  %v2694_v11 = vshll.u32 %v7284_v48, 16  ;;  %v2687_v6 = vshrl.u32 %v7266_v59, 16  ;;  %v414_v3 = vld [vmem:[%s6384_s25 + $0x1a0] sm:$0xff] }
 0x196   : > { %11039 = vst [vmem:[#allocation110_spill] sm:$0xff] %v7271_v37  ;;  %2492 = vperm.xlu2 %6175, %v1663_v9   ;;  %v7273_v5 = vpop.permute.xlu0 %2129  ;;  %v1105_v9 = vor.u32 %v1103_v24, %v1102_v12  ;;  %v801_v45 = vunpack.c.l.b16 %v545_v61  ;;  %v413_v37 = vld [vmem:[%s6384_s25 + $0x198] sm:$0xff]  ;;  %v2691_v24 = vrot.slane %v2689_v52, 1  ;;  %v540_v32 = vpack.c.bf16 %v412_v18, %v412_v18 }
 0x197   : > { %v1112_v60 = vor.u32 %v1110_v10, %v1109_v13  ;;  %v7308_v46 = vsel %vm6358_vm2, %v1102_v12, 0  ;;  %v541_v10 = vpack.c.bf16 %v413_v37, %v413_v37  ;;  %v2632_v37 = vor.u32 %v2631_v30, %v2627_v16  ;;  %v422_v30 = vld [vmem:[%s6384_s25 + $0x1e0] sm:$0xff] }
 0x198   : > { %v7287_v47 = vpop.permute.xlu2 %2151  ;;  %v901_v34 = vpack.c.b16 %v801_v45, %v800_v19  ;;  %v7304_v50 = vsel %vm6358_vm2, 0, %v1105_v9  ;;  %v415_v19 = vld [vmem:[%s6384_s25 + $0x1a8] sm:$0xff]  ;;  %v2696_v18 = vrot.slane %v2694_v11, 1  ;;  %v2692_v11 = vor.u32 %v2691_v24, %v2687_v6 }
 0x199   : > { %11042 = vst [vmem:[#allocation113_spill] sm:$0xff] %v7287_v47  ;;  %v2644_v47 = vor.u32 %v2643_v33, %v2639_v15  ;;  %v7312_v15 = vsel %vm6358_vm2, 0, %v1112_v60  ;;  %v7319_v33 = vsel %vm6358_vm2, %v1109_v13, 0  ;;  %v797_v45 = vunpack.c.l.b16 %v541_v10 }
 0x19a   : > { %11044 = vst [vmem:[#allocation115_spill] sm:$0xff] %v7312_v15  ;;  %v2677_v61 = vshll.u32 %v7312_v15, 16  ;;  %v1135_v52 = vshrl.u32 %v901_v34, 16  ;;  %v1138_v9 = vshll.u32 %v901_v34, 16  ;;  %v542_v34 = vpack.c.bf16 %v414_v3, %v414_v3 }
 0x19b   : > { %2487 = vperm.xlu1 %6177, %v1662_v8   ;;  %v796_v8 = vunpack.c.l.b16 %v540_v32  ;;  %v7330_v13 = vsel %vm1664_vm3, %v2644_v47, %v2648_v49  ;;  %v543_v32 = vpack.c.bf16 %v415_v19, %v415_v19  ;;  %v2675_v10 = vshrl.u32 %v7312_v15, 16 }
 0x19c   : > { %2774 = vrot.lane.b32.xlu0 %v7194_v29, %s6247_s26  ;;  %11047 = vst [vmem:[#allocation118_spill] sm:$0xff] %v7330_v13  ;;  %v2670_v29 = vshll.u32 %v7308_v46, 16  ;;  %v1137_v0 = vrot.slane %v1135_v52, 7  ;;  %v2679_v49 = vrot.slane %v2677_v61, 1  ;;  %v2663_v53 = vshrl.u32 %v7304_v50, 16 }
 0x19d   : > { %v7323_v12 = vpop.permute.xlu1 %2131  ;;  %v899_v16 = vpack.c.b16 %v797_v45, %v796_v8  ;;  %v799_v6 = vunpack.c.l.b16 %v543_v32  ;;  %v550_v24 = vpack.c.bf16 %v422_v30, %v422_v30  ;;  %v418_v8 = vld [vmem:[%s6384_s25 + $0x1c0] sm:$0xff]  ;;  %v7361_v30 = vsel %vm1664_vm3, %v2632_v37, %v7297_v28 }
 0x19e   : > { %11045 = vst [vmem:[#allocation116_spill] sm:$0xff] %v7323_v12  ;;  %2772 = vrot.lane.b32.xlu2 %v7280_v14, %s6247_s26  ;;  %v7327_v60 = vpop.permute.xlu0 %2135  ;;  %v2665_v12 = vshll.u32 %v7304_v50, 16  ;;  %v2682_v14 = vshll.u32 %v7319_v33, 16  ;;  %v1140_v47 = vor.u32 %v1138_v9, %v1137_v0  ;;  %v7341_v52 = vsel %vm6358_vm2, %v1137_v0, 0 }
 0x19f   : > { %11046 = vst [vmem:[#allocation117_spill] sm:$0xff] %v7327_v60  ;;  %v1121_v3 = vshrl.u32 %v899_v16, 16  ;;  %v1124_v60 = vshll.u32 %v899_v16, 16  ;;  %v419_v16 = vld [vmem:[%s6384_s25 + $0x1c8] sm:$0xff]  ;;  %v2730_v21 = vshll.u32 %v7341_v52, 16  ;;  %v2672_v28 = vrot.slane %v2670_v29, 1 }
 0x1a0   : > { %v7333_v62 = vpop.permute.xlu2 %2157  ;;  %v7347_v19 = vsel %vm6358_vm2, 0, %v1140_v47  ;;  %v2667_v61 = vrot.slane %v2665_v12, 1  ;;  %v2684_v9 = vrot.slane %v2682_v14, 1  ;;  %11051 = vst [vmem:[#allocation122_spill] sm:$0xff] %v7361_v30  ;;  %v806_v12 = vunpack.c.l.b16 %v550_v24 }
 0x1a1   : > { %11048 = vst [vmem:[#allocation119_spill] sm:$0xff] %v7333_v62  ;;  %v798_v62 = vunpack.c.l.b16 %v542_v34  ;;  %v2725_v0 = vshll.u32 %v7347_v19, 16  ;;  %v1123_v45 = vrot.slane %v1121_v3, 7  ;;  %v2680_v34 = vor.u32 %v2679_v49, %v2675_v10 }
 0x1a2   : > { %11049 = vst [vmem:[#allocation120_spill] sm:$0xff] %v7347_v19  ;;  %v546_v3 = vpack.c.bf16 %v418_v8, %v418_v8  ;;  %v2723_v10 = vshrl.u32 %v7347_v19, 16  ;;  %v547_v49 = vpack.c.bf16 %v419_v16, %v419_v16  ;;  %v2732_v8 = vrot.slane %v2730_v21, 1 }
 0x1a3   : > { %2770 = vrot.lane.b32.xlu1 %v7277_v20, %s6247_s26  ;;  %v900_v47 = vpack.c.b16 %v799_v6, %v798_v62  ;;  %v1126_v14 = vor.u32 %v1124_v60, %v1123_v45  ;;  %v2727_v62 = vrot.slane %v2725_v0, 1  ;;  %v7369_v6 = vsel %vm1664_vm3, %v2692_v11, %v2696_v18 }
 0x1a4   : > { %2780 = vrot.lane.b32.xlu0 %v7290_v51, %s6247_s26  ;;  %11053 = vst [vmem:[#allocation124_spill] sm:$0xff] %v7369_v6  ;;  %v807_v20 = vunpack.c.l.b16 %v551_v43  ;;  %v2668_v60 = vor.u32 %v2667_v61, %v2663_v53  ;;  %v7376_v24 = vsel %vm1664_vm3, %v2680_v34, %v2684_v9  ;;  %v7380_v0 = vsel %vm6358_vm2, %v1123_v45, 0 }
 0x1a5   : > { %v7357_v32 = vpop.permute.xlu1 %2137  ;;  %v1128_v36 = vshrl.u32 %v900_v47, 16  ;;  %v1131_v37 = vshll.u32 %v900_v47, 16  ;;  %11055 = vst [vmem:[#allocation126_spill] sm:$0xff] %v7376_v24  ;;  %v7384_v18 = vsel %vm6358_vm2, 0, %v1126_v14  ;;  %v802_v29 = vunpack.c.l.b16 %v546_v3 }
 0x1a6   : > { %11050 = vst [vmem:[#allocation121_spill] sm:$0xff] %v7357_v32  ;;  %2778 = vrot.lane.b32.xlu2 %v7330_v13, %s6247_s26  ;;  %v7365_v51 = vpop.permute.xlu0 %2141  ;;  %v421_v13 = vld [vmem:[%s6384_s25 + $0x1d8] sm:$0xff]  ;;  %v904_v16 = vpack.c.b16 %v807_v20, %v806_v12  ;;  %v2728_v47 = vor.u32 %v2727_v62, %v2723_v10  ;;  %v803_v43 = vunpack.c.l.b16 %v547_v49  ;;  %v2701_v20 = vshll.u32 %v7384_v18, 16 }
 0x1a7   : > { %11052 = vst [vmem:[#allocation123_spill] sm:$0xff] %v7365_v51  ;;  %v1130_v11 = vrot.slane %v1128_v36, 7  ;;  %v549_v51 = vpack.c.bf16 %v421_v13, %v421_v13  ;;  %v7407_v62 = vsel %vm1664_vm3, %v2668_v60, %v2672_v28  ;;  %v2706_v36 = vshll.u32 %v7380_v0, 16 }
 0x1a8   : > { %v7371_v32 = vpop.permute.xlu2 %2163  ;;  %11056 = vst [vmem:[#allocation127_spill] sm:$0xff] %v7384_v18  ;;  %v1156_v61 = vshrl.u32 %v904_v16, 16  ;;  %v1159_v9 = vshll.u32 %v904_v16, 16  ;;  %v902_v34 = vpack.c.b16 %v803_v43, %v802_v29  ;;  %v2699_v29 = vshrl.u32 %v7384_v18, 16 }
 0x1a9   : > { %11054 = vst [vmem:[#allocation125_spill] sm:$0xff] %v7371_v32  ;;  %v548_v32 = vpack.c.bf16 %v420_v23, %v420_v23  ;;  %v1133_v53 = vor.u32 %v1131_v37, %v1130_v11  ;;  %v7390_v21 = vsel %vm6358_vm2, %v1130_v11, 0  ;;  %v805_v3 = vunpack.c.l.b16 %v549_v51 }
 0x1aa   : > { %v2718_v45 = vshll.u32 %v7390_v21, 16  ;;  %v1158_v14 = vrot.slane %v1156_v61, 7  ;;  %11059 = vst [vmem:[#allocation130_spill] sm:$0xff] %v7407_v62  ;;  %v7413_v11 = vsel %vm1664_vm3, %v2728_v47, %v2732_v8  ;;  %v2703_v28 = vrot.slane %v2701_v20, 1 }
 0x1ab   : > { %2776 = vrot.lane.b32.xlu1 %v7361_v30, %s6247_s26  ;;  %v7402_v13 = vsel %vm6358_vm2, 0, %v1133_v53  ;;  %v804_v12 = vunpack.c.l.b16 %v548_v32  ;;  %11060 = vst [vmem:[#allocation131_spill] sm:$0xff] %v7413_v11  ;;  %v1142_v53 = vshrl.u32 %v902_v34, 16  ;;  %v1145_v47 = vshll.u32 %v902_v34, 16 }
 0x1ac   : > { %2786 = vrot.lane.b32.xlu0 %v7369_v6, %s6247_s26  ;;  %11057 = vst [vmem:[#allocation128_spill] sm:$0xff] %v7402_v13  ;;  %v2711_v49 = vshrl.u32 %v7402_v13, 16  ;;  %v2713_v37 = vshll.u32 %v7402_v13, 16  ;;  %v1161_v32 = vor.u32 %v1159_v9, %v1158_v14  ;;  %v7420_v51 = vsel %vm6358_vm2, %v1158_v14, 0 }
 0x1ad   : > { %v7396_v23 = vpop.permute.xlu1 %2143  ;;  %v2720_v43 = vrot.slane %v2718_v45, 1  ;;  %v2766_v8 = vshll.u32 %v7420_v51, 16  ;;  %v903_v6 = vpack.c.b16 %v805_v3, %v804_v12  ;;  %v1144_v20 = vrot.slane %v1142_v53, 7 }
 0x1ae   : > { %2784 = vrot.lane.b32.xlu2 %v7376_v24, %s6247_s26  ;;  %v7404_v10 = vpop.permute.xlu0 %2147  ;;  %v2715_v60 = vrot.slane %v2713_v37, 1  ;;  %v7424_v61 = vsel %vm6358_vm2, 0, %v1161_v32  ;;  %v2704_v37 = vor.u32 %v2703_v28, %v2699_v29  ;;  %v2708_v32 = vrot.slane %v2706_v36, 1 }
 0x1af   : > { %11058 = vst [vmem:[#allocation129_spill] sm:$0xff] %v7404_v10  ;;  %v2761_v9 = vshll.u32 %v7424_v61, 16  ;;  %v1149_v14 = vshrl.u32 %v903_v6, 16  ;;  %v1152_v45 = vshll.u32 %v903_v6, 16  ;;  %v2768_v3 = vrot.slane %v2766_v8, 1 }
 0x1b0   : > { %v7415_v16 = vpop.permute.xlu2 %2169  ;;  %v2716_v24 = vor.u32 %v2715_v60, %v2711_v49  ;;  %v1147_v49 = vor.u32 %v1145_v47, %v1144_v20  ;;  %v7442_v60 = vsel %vm6358_vm2, %v1144_v20, 0  ;;  %v7457_v8 = vsel %vm1664_vm3, %v2704_v37, %v2708_v32 }
 0x1b1   : > { %11061 = vst [vmem:[#allocation132_spill] sm:$0xff] %v7415_v16  ;;  %v2759_v16 = vshrl.u32 %v7424_v61, 16  ;;  %v2763_v34 = vrot.slane %v2761_v9, 1  ;;  %v1151_v6 = vrot.slane %v1149_v14, 7 }
 0x1b2   : > { %v7434_v30 = vsel %vm1664_vm3, %v2716_v24, %v2720_v43  ;;  %v7450_v24 = vsel %vm6358_vm2, 0, %v1147_v49  ;;  %11064 = vst [vmem:[#allocation135_spill] sm:$0xff] %v7457_v8 }
 0x1b3   : > { %2782 = vrot.lane.b32.xlu1 %v7407_v62, %s6247_s26  ;;  %11062 = vst [vmem:[#allocation133_spill] sm:$0xff] %v7434_v30  ;;  %v2764_v29 = vor.u32 %v2763_v34, %v2759_v16  ;;  %v1154_v28 = vor.u32 %v1152_v45, %v1151_v6  ;;  %v7454_v43 = vsel %vm6358_vm2, %v1151_v6, 0  ;;  %v2735_v47 = vshrl.u32 %v7450_v24, 16 }
 0x1b4   : > { %2792 = vrot.lane.b32.xlu0 %v7413_v11, %s6247_s26  ;;  %11063 = vst [vmem:[#allocation134_spill] sm:$0xff] %v7450_v24  ;;  %v2737_v9 = vshll.u32 %v7450_v24, 16  ;;  %v2742_v16 = vshll.u32 %v7442_v60, 16  ;;  %v2754_v45 = vshll.u32 %v7454_v43, 16 }
 0x1b5   : > { %v7436_v12 = vpop.permute.xlu1 %2149  ;;  %v7463_v20 = vsel %vm1664_vm3, %v2764_v29, %v2768_v3  ;;  %v7467_v14 = vsel %vm6358_vm2, 0, %v1154_v28  ;;  %v2836_v28 = vrot.slane %v7140_v54, 1 }
 0x1b6   : > { %2790 = vrot.lane.b32.xlu2 %v7434_v30, %s6247_s26  ;;  %v7444_v53 = vpop.permute.xlu0 %2153  ;;  %11065 = vst [vmem:[#allocation136_spill] sm:$0xff] %v7463_v20  ;;  %v2739_v34 = vrot.slane %v2737_v9, 1  ;;  %v2747_v49 = vshrl.u32 %v7467_v14, 16  ;;  %v2749_v37 = vshll.u32 %v7467_v14, 16  ;;  %v2744_v3 = vrot.slane %v2742_v16, 1 }
 0x1b7   : > { %11066 = vst [vmem:[#allocation137_spill] sm:$0xff] %v7467_v14  ;;  %v2756_v29 = vrot.slane %v2754_v45, 1  ;;  %v2837_v9 = vrot.slane %v7151_v17, 1  ;;  %v2833_v16 = vrot.slane %v7183_v26, 1  ;;  %v2834_v17 = vrot.slane %v7202_v27, 1 }
 0x1b8   : > { %v7446_v36 = vpop.permute.xlu2 %2175  ;;  %v2740_v32 = vor.u32 %v2739_v34, %v2735_v47  ;;  %v2751_v6 = vrot.slane %v2749_v37, 1  ;;  %v2830_v45 = vrot.slane %v7170_v4, 1  ;;  %v2846_v37 = vrot.slane %v7224_v7, 1 }
 0x1b9   : > { %v7493_v47 = vsel %vm1921_vm4, %v2836_v28, %v2837_v9  ;;  %v2842_v28 = vrot.slane %v7236_v42, 1  ;;  %v2843_v9 = vrot.slane %v7254_v1, 1 }
 0x1ba   : > { %v2752_v62 = vor.u32 %v2751_v6, %v2747_v49  ;;  %v2845_v49 = vrot.slane %v7207_v35, 1 }
 0x1bb   : > { %2788 = vrot.lane.b32.xlu1 %v7457_v8, %s6247_s26  ;;  %v7485_v8 = vsel %vm1664_vm3, %v2740_v32, %v2744_v3  ;;  %v7508_v3 = vsel %vm1921_vm4, %v2833_v16, %v2834_v17  ;;  %v2854_v17 = vrot.slane %v7266_v59, 1 }
 0x1bc   : > { %2798 = vrot.lane.b32.xlu0 %v7463_v20, %s6247_s26  ;;  %v7488_v20 = vsel %vm1664_vm3, %v2752_v62, %v2756_v29  ;;  %v2831_v62 = vrot.slane %v7174_v58, 1  ;;  %v2227_v58 = vsel %vm2211_vm5, %v6535_v25, %v6845_v38  ;;  %v7521_v7 = vsel %vm1921_vm4, %v2845_v49, %v2846_v37 }
 0x1bd   : > { %v7476_v11 = vpop.permute.xlu1 %2155  ;;  %v2260_v29 = vsel %vm2244_vm6, %v2227_v58, %v6867_v31  ;;  %v2839_v31 = vrot.slane %v7246_v40, 1  ;;  %v2840_v38 = vrot.slane %v7242_v56, 1  ;;  %v7548_v49 = vsel %vm1921_vm4, %v2842_v28, %v2843_v9 }
 0x1be   : > { %v7480_v30 = vpop.permute.xlu0 %2159  ;;  %2796 = vrot.lane.b32.xlu2 %v7488_v20, %s6247_s26  ;;  %v7513_v6 = vsel %vm1921_vm4, %v2830_v45, %v2831_v62  ;;  %v2293_v16 = vsel %vm2277_vm7, %v2260_v29, %v6984_v22  ;;  %v2855_v45 = vrot.slane %v7284_v48, 1  ;;  %v2851_v29 = vrot.slane %v7312_v15, 1 }
 0x1bf   : > { %v2326_v25 = vsel %vm2310_vm8, %v2293_v16, %v7052_v63  ;;  %v2848_v28 = vrot.slane %v7304_v50, 1  ;;  %v2849_v9 = vrot.slane %v7308_v46, 1 }
 0x1c0   : > { %v7482_v10 = vpop.permute.xlu2 %2181  ;;  %v2359_v1 = vsel %vm2343_vm9, %v2326_v25, %v7070_v44  ;;  %v7552_v44 = vsel %vm1921_vm4, %v2839_v31, %v2840_v38  ;;  %v2863_v25 = vrot.slane %v7347_v19, 1  ;;  %v2864_v31 = vrot.slane %v7341_v52, 1 }
 0x1c1   : > { %v2392_v63 = vsel %vm2376_vm10, %v2359_v1, %v7273_v5  ;;  %v7558_v5 = vsel %vm1921_vm4, %v2854_v17, %v2855_v45  ;;  %v7581_v17 = vsel %vm1921_vm4, %v2848_v28, %v2849_v9  ;;  %v2860_v45 = vrot.slane %v7402_v13, 1 }
 0x1c2   : > { %v7586_v46 = vsel %vm1921_vm4, %v2863_v25, %v2864_v31  ;;  %v2861_v52 = vrot.slane %v7390_v21, 1  ;;  %v2869_v9 = vrot.slane %v7467_v14, 1  ;;  %v2866_v25 = vrot.slane %v7450_v24, 1 }
 0x1c3   : > { %2794 = vrot.lane.b32.xlu1 %v7485_v8, %s6247_s26  ;;  %v2867_v31 = vrot.slane %v7442_v60, 1 }
 0x1c4   : > { %2879 = vrot.lane.b32.xlu0 %v7493_v47, %s6248_s27  ;;  %v7603_v21 = vsel %vm1921_vm4, %v2860_v45, %v2861_v52 }
 0x1c5   : > { %v2162_v34 = vpop.permute.xlu1 %2161 }
 0x1c6   : > { %v7505_v32 = vpop.permute.xlu0 %2165  ;;  %2877 = vrot.lane.b32.xlu2 %v7508_v3, %s6248_s27  ;;  %v2425_v56 = vsel %vm2409_vm11, %v2392_v63, %v2162_v34  ;;  %v2852_v34 = vrot.slane %v7319_v33, 1  ;;  %v2857_v63 = vrot.slane %v7384_v18, 1 }
 0x1c8   : > { %v7510_v27 = vpop.permute.xlu2 %2187  ;;  %v7576_v33 = vsel %vm1921_vm4, %v2851_v29, %v2852_v34 }
 0x1cb   : > { %2875 = vrot.lane.b32.xlu1 %v7513_v6, %s6248_s27 }
 0x1cc   : > { %2885 = vrot.lane.b32.xlu0 %v7521_v7, %s6248_s27 }
 0x1cd   : > { %v7539_v22 = vpop.permute.xlu1 %2167 }
 0x1ce   : > { %v7545_v62 = vpop.permute.xlu0 %2171  ;;  %2883 = vrot.lane.b32.xlu2 %v7548_v49, %s6248_s27 }
 0x1d0   : > { %v2194_v37 = vpop.permute.xlu2 %2193 }
 0x1d1   : > { %v2458_v58 = vsel %vm2442_vm12, %v2425_v56, %v2194_v37  ;;  %v2858_v56 = vrot.slane %v7380_v0, 1 }
 0x1d2   : > { %v2526_v48 = vsel %vm2505_vm13, %v2458_v58, 0  ;;  %v2872_v58 = vrot.slane %v7424_v61, 1 }
 0x1d3   : > { %2544 = vmatpush.bf16.xpose.msra.mxu0 %v2526_v48  ;;  %2881 = vrot.lane.b32.xlu1 %v7552_v44, %s6248_s27  ;;  %v2873_v48 = vrot.slane %v7420_v51, 1  ;;  %v7608_v28 = vsel %vm1921_vm4, %v2857_v63, %v2858_v56  ;;  %v2870_v51 = vrot.slane %v7454_v43, 1  ;;  %v2225_v43 = vsel %vm2211_vm5, %v6501_v39, %v6835_v55  ;;  %v11073_v55 = vld [vmem:[#allocation93_spill] sm:$0xff] }
 0x1d4   : > { %2891 = vrot.lane.b32.xlu0 %v7558_v5, %s6248_s27 }
 0x1d5   : > { %v7569_v16 = vpop.permute.xlu1 %2173  ;;  %v7613_v0 = vsel %vm1921_vm4, %v2872_v58, %v2873_v48  ;;  %v7626_v63 = vsel %vm1921_vm4, %v2869_v9, %v2870_v51  ;;  %v2258_v58 = vsel %vm2244_vm6, %v2225_v43, %v6916_v41  ;;  %v7636_v48 = vsel %vm1921_vm4, %v2866_v25, %v2867_v31  ;;  %v11071_v9 = vld [vmem:[#allocation72_spill] sm:$0xff]  ;;  %v11074_v25 = vld [vmem:[#allocation22_spill] sm:$0xff] }
 0x1d6   : > { %v7573_v38 = vpop.permute.xlu0 %2177  ;;  %2889 = vrot.lane.b32.xlu2 %v7576_v33, %s6248_s27  ;;  %11068 = vst [vmem:[#allocation139_spill] sm:$0xff] %v7613_v0  ;;  %v2291_v60 = vsel %vm2277_vm7, %v2258_v58, %v6934_v57  ;;  %v11075_v57 = vld [vmem:[#allocation11_spill] sm:$0xff] }
 0x1d7   : > { %11067 = vst [vmem:[#allocation138_spill] sm:$0xff] %v7573_v38  ;;  %v2324_v51 = vsel %vm2310_vm8, %v2291_v60, %v11071_v9  ;;  %v2223_v31 = vsel %vm2211_vm5, %v11075_v57, %v11074_v25  ;;  %v11076_v60 = vld [vmem:[#allocation42_spill] sm:$0xff] }
 0x1d8   : > { %v7578_v1 = vpop.permute.xlu2 %2199  ;;  %11069 = vst [vmem:[#allocation140_spill] sm:$0xff] %v7626_v63  ;;  %v11081_v57 = vld [vmem:[#allocation110_spill] sm:$0xff] }
 0x1db   : > { %2887 = vrot.lane.b32.xlu1 %v7581_v17, %s6248_s27 }
 0x1dc   : > { %2897 = vrot.lane.b32.xlu0 %v7586_v46, %s6248_s27 }
 0x1dd   : > { %v7596_v37 = vpop.permute.xlu1 %2179 }
 0x1de   : > { %v7600_v29 = vpop.permute.xlu0 %2183  ;;  %2895 = vrot.lane.b32.xlu2 %v7603_v21, %s6248_s27 }
 0x1e0   : > { %v7605_v34 = vpop.permute.xlu2 %2205 }
 0x1e3   : > { %2893 = vrot.lane.b32.xlu1 %v7608_v28, %s6248_s27 }
 0x1e4   : > { %2903 = vrot.lane.b32.xlu0 %v7613_v0, %s6248_s27  ;;  %v11072_v0 = vld [vmem:[#allocation87_spill] sm:$0xff] }
 0x1e5   : > { %v7623_v45 = vpop.permute.xlu1 %2185  ;;  %v2357_v39 = vsel %vm2343_vm9, %v2324_v51, %v11072_v0  ;;  %v2256_v0 = vsel %vm2244_vm6, %v2223_v31, %v11076_v60  ;;  %v11084_v60 = vld [vmem:[#allocation8_spill] sm:$0xff] }
 0x1e6   : > { %v2190_v52 = vpop.permute.xlu0 %2189  ;;  %2901 = vrot.lane.b32.xlu2 %v7626_v63, %s6248_s27  ;;  %v2390_v41 = vsel %vm2376_vm10, %v2357_v39, %v11073_v55  ;;  %v11079_v63 = vld [vmem:[#allocation61_spill] sm:$0xff] }
 0x1e7   : > { %v2423_v43 = vsel %vm2409_vm11, %v2390_v41, %v7480_v30  ;;  %v11080_v30 = vld [vmem:[#allocation85_spill] sm:$0xff] }
 0x1e8   : > { %v7631_v56 = vpop.permute.xlu2 %2477 }
 0x1e9   : > { %11070 = vst [vmem:[#allocation141_spill] sm:$0xff] %v7631_v56  ;;  %v11077_v56 = vld [vmem:[#allocation57_spill] sm:$0xff] }
 0x1ea   : > { %v2289_v39 = vsel %vm2277_vm7, %v2256_v0, %v11077_v56 }
 0x1eb   : > { %2899 = vrot.lane.b32.xlu1 %v7636_v48, %s6248_s27  ;;  %v2322_v25 = vsel %vm2310_vm8, %v2289_v39, %v11079_v63  ;;  %v11085_v39 = vld [vmem:[#allocation32_spill] sm:$0xff] }
 0x1ec   : > { %2910 = vrot.lane.b32.xlu0 %v7140_v54, %s6249_s28  ;;  %v2355_v41 = vsel %vm2343_vm9, %v2322_v25, %v11080_v30  ;;  %v11086_v30 = vld [vmem:[#allocation55_spill] sm:$0xff] }
 0x1ed   : > { %v2192_v58 = vpop.permute.xlu1 %2191  ;;  %v2388_v31 = vsel %vm2376_vm10, %v2355_v41, %v11081_v57 }
 0x1ee   : > { %v7659_v9 = vpop.permute.xlu0 %2195  ;;  %v2456_v51 = vsel %vm2442_vm12, %v2423_v43, %v2192_v58  ;;  %2908 = vrot.lane.b32.xlu2 %v7183_v26, %s6249_s28  ;;  %v11082_v43 = vld [vmem:[#allocation119_spill] sm:$0xff]  ;;  %v11083_v58 = vld [vmem:[#allocation21_spill] sm:$0xff] }
 0x1ef   : > { %v2524_v55 = vsel %vm2505_vm13, %v2456_v51, 0  ;;  %v2421_v56 = vsel %vm2409_vm11, %v2388_v31, %v11082_v43  ;;  %v2221_v0 = vsel %vm2211_vm5, %v11084_v60, %v11083_v58  ;;  %v11090_v60 = vld [vmem:[#allocation105_spill] sm:$0xff] }
 0x1f0   : > { %v7665_v54 = vpop.permute.xlu2 %2492  ;;  %2545 = vmatpush.bf16.xpose.msra.mxu0 %v2524_v55  ;;  %v2454_v63 = vsel %vm2442_vm12, %v2421_v56, %v2190_v52  ;;  %v2254_v55 = vsel %vm2244_vm6, %v2221_v0, %v11085_v39  ;;  %v11088_v52 = vld [vmem:[#allocation71_spill] sm:$0xff] }
 0x1f1   : > { %11078 = vst [vmem:[#allocation72_spill] sm:$0xff] %v7665_v54  ;;  %v2287_v41 = vsel %vm2277_vm7, %v2254_v55, %v11086_v30  ;;  %v2522_v57 = vsel %vm2505_vm13, %v2454_v63, 0  ;;  %v11089_v56 = vld [vmem:[#allocation75_spill] sm:$0xff]  ;;  %v11091_v55 = vld [vmem:[#allocation29_spill] sm:$0xff]  ;;  %v11092_v30 = vld [vmem:[#allocation12_spill] sm:$0xff] }
 0x1f2   : > { %v2320_v43 = vsel %vm2310_vm8, %v2287_v41, %v11088_v52  ;;  %v2219_v41 = vsel %vm2211_vm5, %v11092_v30, %v11091_v55  ;;  %v424_v52 = vld [vmem:[%s6384_s25 + $0x1f0] sm:$0xff]  ;;  %v11098_v55 = vld [vmem:[#allocation51_spill] sm:$0xff] }
 0x1f3   : > { %2906 = vrot.lane.b32.xlu1 %v7170_v4, %s6249_s28  ;;  %v2353_v58 = vsel %vm2343_vm9, %v2320_v43, %v11089_v56  ;;  %v425_v43 = vld [vmem:[%s6384_s25 + $0x1f8] sm:$0xff] }
 0x1f4   : > { %2916 = vrot.lane.b32.xlu0 %v7207_v35, %s6249_s28  ;;  %v2386_v0 = vsel %vm2376_vm10, %v2353_v58, %v11090_v60  ;;  %v11093_v56 = vld [vmem:[#allocation41_spill] sm:$0xff]  ;;  %v11094_v60 = vld [vmem:[#allocation36_spill] sm:$0xff] }
 0x1f5   : > { %v7685_v51 = vpop.permute.xlu1 %2197  ;;  %v2419_v39 = vsel %vm2409_vm11, %v2386_v0, %v7476_v11  ;;  %v2252_v11 = vsel %vm2244_vm6, %v2219_v41, %v11093_v56  ;;  %v11095_v0 = vld [vmem:[#allocation20_spill] sm:$0xff]  ;;  %v552_v41 = vpack.c.bf16 %v424_v52, %v424_v52  ;;  %v553_v56 = vpack.c.bf16 %v425_v43, %v425_v43 }
 0x1f6   : > { %v7689_v25 = vpop.permute.xlu0 %2201  ;;  %2914 = vrot.lane.b32.xlu2 %v7236_v42, %s6249_s28  ;;  %v2452_v63 = vsel %vm2442_vm12, %v2419_v39, %v7510_v27  ;;  %v2243_v4 = vsel %vm2211_vm5, %v11095_v0, %v11094_v60  ;;  %v11100_v35 = vld [vmem:[#allocation56_spill] sm:$0xff] }
 0x1f7   : > { %v2520_v27 = vsel %vm2505_vm13, %v2452_v63, 0  ;;  %v2276_v30 = vsel %vm2244_vm6, %v2243_v4, %v11098_v55  ;;  %v11101_v60 = vld [vmem:[#allocation84_spill] sm:$0xff]  ;;  %v11104_v55 = vld [vmem:[#allocation99_spill] sm:$0xff]  ;;  %v808_v52 = vunpack.c.l.b16 %v552_v41  ;;  %v809_v43 = vunpack.c.l.b16 %v553_v56 }
 0x1f8   : > { %v7694_v31 = vpop.permute.xlu2 %2772  ;;  %2546 = vmatpush.bf16.xpose.msra.mxu0 %v2522_v57  ;;  %v2309_v26 = vsel %vm2277_vm7, %v2276_v30, %v11100_v35  ;;  %v11107_v30 = vld [vmem:[#allocation9_spill] sm:$0xff] }
 0x1f9   : > { %11087 = vst [vmem:[#allocation87_spill] sm:$0xff] %v7694_v31  ;;  %v11096_v31 = vld [vmem:[#allocation45_spill] sm:$0xff] }
 0x1fa   : > { %v2285_v54 = vsel %vm2277_vm7, %v2252_v11, %v11096_v31  ;;  %v11102_v31 = vld [vmem:[#allocation79_spill] sm:$0xff]  ;;  %v11103_v11 = vld [vmem:[#allocation89_spill] sm:$0xff] }
 0x1fb   : > { %2912 = vrot.lane.b32.xlu1 %v7246_v40, %s6249_s28  ;;  %v2342_v63 = vsel %vm2310_vm8, %v2309_v26, %v11102_v31 }
 0x1fc   : > { %2922 = vrot.lane.b32.xlu0 %v7266_v59, %s6249_s28  ;;  %v11099_v59 = vld [vmem:[#allocation69_spill] sm:$0xff] }
 0x1fd   : > { %v7715_v57 = vpop.permute.xlu1 %2203  ;;  %v2318_v42 = vsel %vm2310_vm8, %v2285_v54, %v11099_v59  ;;  %v2375_v54 = vsel %vm2343_vm9, %v2342_v63, %v11104_v55  ;;  %v11112_v55 = vld [vmem:[#allocation49_spill] sm:$0xff] }
 0x1fe   : > { %v2208_v58 = vpop.permute.xlu0 %2207  ;;  %v2351_v0 = vsel %vm2343_vm9, %v2318_v42, %v11101_v60  ;;  %2920 = vrot.lane.b32.xlu2 %v7312_v15, %s6249_s28  ;;  %v11105_v42 = vld [vmem:[#allocation107_spill] sm:$0xff] }
 0x1ff   : > { %v2384_v4 = vsel %vm2376_vm10, %v2351_v0, %v11103_v11  ;;  %v2408_v26 = vsel %vm2376_vm10, %v2375_v54, %v11105_v42  ;;  %v11108_v0 = vld [vmem:[#allocation28_spill] sm:$0xff] }
 0x200   : > { %v7727_v39 = vpop.permute.xlu2 %2778  ;;  %2547 = vmatpush.bf16.xpose.msra.mxu0 %v2520_v27  ;;  %v2417_v59 = vsel %vm2409_vm11, %v2384_v4, %v7444_v53  ;;  %v11106_v27 = vld [vmem:[#allocation26_spill] sm:$0xff]  ;;  %v2441_v11 = vsel %vm2409_vm11, %v2408_v26, %v7573_v38  ;;  %v11111_v4 = vld [vmem:[#allocation39_spill] sm:$0xff] }
 0x201   : > { %11097 = vst [vmem:[#allocation93_spill] sm:$0xff] %v7727_v39  ;;  %v2450_v35 = vsel %vm2442_vm12, %v2417_v59, %v7623_v45  ;;  %v2217_v60 = vsel %vm2211_vm5, %v11107_v30, %v11106_v27  ;;  %v11109_v53 = vld [vmem:[#allocation18_spill] sm:$0xff]  ;;  %v11115_v30 = vld [vmem:[#allocation65_spill] sm:$0xff] }
 0x202   : > { %v2241_v31 = vsel %vm2211_vm5, %v11109_v53, %v11108_v0  ;;  %v2250_v45 = vsel %vm2244_vm6, %v2217_v60, %v11111_v4  ;;  %v11114_v59 = vld [vmem:[#allocation54_spill] sm:$0xff]  ;;  %v2518_v53 = vsel %vm2505_vm13, %v2450_v35, 0  ;;  %v11121_v35 = vld [vmem:[#allocation104_spill] sm:$0xff] }
 0x203   : > { %2918 = vrot.lane.b32.xlu1 %v7304_v50, %s6249_s28  ;;  %v2274_v41 = vsel %vm2244_vm6, %v2241_v31, %v11112_v55  ;;  %v2283_v27 = vsel %vm2277_vm7, %v2250_v45, %v11114_v59  ;;  %v11117_v60 = vld [vmem:[#allocation58_spill] sm:$0xff]  ;;  %v11120_v59 = vld [vmem:[#allocation95_spill] sm:$0xff] }
 0x204   : > { %2928 = vrot.lane.b32.xlu0 %v7347_v19, %s6249_s28  ;;  %v2307_v0 = vsel %vm2277_vm7, %v2274_v41, %v11115_v30  ;;  %v2316_v31 = vsel %vm2310_vm8, %v2283_v27, %v11117_v60  ;;  %v11118_v4 = vld [vmem:[#allocation70_spill] sm:$0xff]  ;;  %v11122_v30 = vld [vmem:[#allocation113_spill] sm:$0xff] }
 0x205   : > { %v7761_v63 = vpop.permute.xlu1 %2209  ;;  %v2340_v55 = vsel %vm2310_vm8, %v2307_v0, %v11118_v4  ;;  %v11126_v4 = vld [vmem:[#allocation19_spill] sm:$0xff] }
 0x206   : > { %11110 = vst [vmem:[#allocation22_spill] sm:$0xff] %v7761_v63  ;;  %v7769_v56 = vpop.permute.xlu0 %2482  ;;  %v2474_v54 = vsel %vm2442_vm12, %v2441_v11, %v7761_v63  ;;  %v905_v11 = vpack.c.b16 %v809_v43, %v808_v52  ;;  %v11119_v63 = vld [vmem:[#allocation82_spill] sm:$0xff]  ;;  %v2373_v41 = vsel %vm2343_vm9, %v2340_v55, %v11120_v59  ;;  %2926 = vrot.lane.b32.xlu2 %v7402_v13, %s6249_s28 }
 0x207   : > { %11113 = vst [vmem:[#allocation11_spill] sm:$0xff] %v7769_v56  ;;  %v2542_v26 = vsel %vm2505_vm13, %v2474_v54, 0  ;;  %v2349_v45 = vsel %vm2343_vm9, %v2316_v31, %v11119_v63  ;;  %v2406_v27 = vsel %vm2376_vm10, %v2373_v41, %v7396_v23  ;;  %v11124_v23 = vld [vmem:[#allocation10_spill] sm:$0xff]  ;;  %v11125_v31 = vld [vmem:[#allocation35_spill] sm:$0xff]  ;;  %v11129_v41 = vld [vmem:[#allocation40_spill] sm:$0xff] }
 0x208   : > { %v7779_v39 = vpop.permute.xlu2 %2784  ;;  %2548 = vmatpush.bf16.xpose.msra.mxu0 %v2518_v53  ;;  %2563 = vmatpush.bf16.xpose.msra.mxu1 %v2542_v26  ;;  %v2382_v54 = vsel %vm2376_vm10, %v2349_v45, %v11121_v35  ;;  %v2439_v52 = vsel %vm2409_vm11, %v2406_v27, %v7446_v36  ;;  %v1163_v53 = vshrl.u32 %v905_v11, 16  ;;  %v11123_v26 = vld [vmem:[#allocation27_spill] sm:$0xff]  ;;  %v2239_v36 = vsel %vm2211_vm5, %v11126_v4, %v11125_v31  ;;  %v11128_v45 = vld [vmem:[#allocation30_spill] sm:$0xff] }
 0x209   : > { %11116 = vst [vmem:[#allocation42_spill] sm:$0xff] %v7779_v39  ;;  %v2415_v0 = vsel %vm2409_vm11, %v2382_v54, %v11122_v30  ;;  %v2472_v63 = vsel %vm2442_vm12, %v2439_v52, %v2208_v58  ;;  %v2215_v60 = vsel %vm2211_vm5, %v11124_v23, %v11123_v26  ;;  %v2272_v35 = vsel %vm2244_vm6, %v2239_v36, %v11129_v41  ;;  %v11131_v58 = vld [vmem:[#allocation52_spill] sm:$0xff]  ;;  %v11132_v27 = vld [vmem:[#allocation63_spill] sm:$0xff]  ;;  %v11134_v31 = vld [vmem:[#allocation78_spill] sm:$0xff] }
 0x20a   : > { %v2448_v43 = vsel %vm2442_vm12, %v2415_v0, %v7600_v29  ;;  %v2248_v59 = vsel %vm2244_vm6, %v2215_v60, %v11128_v45  ;;  %v2305_v30 = vsel %vm2277_vm7, %v2272_v35, %v11132_v27  ;;  %v2540_v52 = vsel %vm2505_vm13, %v2472_v63, 0  ;;  %v11133_v26 = vld [vmem:[#allocation68_spill] sm:$0xff]  ;;  %v11135_v45 = vld [vmem:[#allocation73_spill] sm:$0xff]  ;;  %v11136_v41 = vld [vmem:[#allocation83_spill] sm:$0xff] }
 0x20b   : > { %2924 = vrot.lane.b32.xlu1 %v7384_v18, %s6249_s28  ;;  %v2281_v54 = vsel %vm2277_vm7, %v2248_v59, %v11131_v58  ;;  %v2516_v0 = vsel %vm2505_vm13, %v2448_v43, 0  ;;  %v2338_v60 = vsel %vm2310_vm8, %v2305_v30, %v11134_v31  ;;  %v7830_v4 = vrot.slane %v1163_v53, 7  ;;  %v11138_v63 = vld [vmem:[#allocation100_spill] sm:$0xff]  ;;  %v11142_v31 = vld [vmem:[#allocation7_spill] sm:$0xff] }
 0x20c   : > { %2934 = vrot.lane.b32.xlu0 %v7424_v61, %s6249_s28  ;;  %v2314_v23 = vsel %vm2310_vm8, %v2281_v54, %v11133_v26  ;;  %v1166_v36 = vshll.u32 %v905_v11, 16  ;;  %v2371_v35 = vsel %vm2343_vm9, %v2338_v60, %v11136_v41  ;;  %v11139_v54 = vld [vmem:[#allocation123_spill] sm:$0xff]  ;;  %v11140_v30 = vld [vmem:[#allocation112_spill] sm:$0xff]  ;;  %v11143_v60 = vld [vmem:[#allocation34_spill] sm:$0xff] }
 0x20d   : > { %v7812_v55 = vpop.permute.xlu1 %2487  ;;  %v2347_v59 = vsel %vm2343_vm9, %v2314_v23, %v11135_v45  ;;  %v2404_v27 = vsel %vm2376_vm10, %v2371_v35, %v11139_v54  ;;  %v11141_v23 = vld [vmem:[#allocation24_spill] sm:$0xff]  ;;  %v11146_v41 = vld [vmem:[#allocation38_spill] sm:$0xff]  ;;  %v11150_v54 = vld [vmem:[#allocation53_spill] sm:$0xff] }
 0x20e   : > { %11127 = vst [vmem:[#allocation57_spill] sm:$0xff] %v7812_v55  ;;  %v7818_v29 = vpop.permute.xlu0 %2774  ;;  %2932 = vrot.lane.b32.xlu2 %v7467_v14, %s6249_s28  ;;  %v2380_v58 = vsel %vm2376_vm10, %v2347_v59, %v11138_v63  ;;  %v2437_v53 = vsel %vm2409_vm11, %v2404_v27, %v7569_v16  ;;  %v1168_v26 = vor.u32 %v1166_v36, %v7830_v4  ;;  %v11144_v16 = vld [vmem:[#allocation17_spill] sm:$0xff]  ;;  %v11149_v36 = vld [vmem:[#allocation43_spill] sm:$0xff] }
 0x20f   : > { %11130 = vst [vmem:[#allocation61_spill] sm:$0xff] %v7818_v29  ;;  %v2413_v11 = vsel %vm2409_vm11, %v2380_v58, %v7436_v12  ;;  %v2213_v12 = vsel %vm2211_vm5, %v11142_v31, %v11141_v23  ;;  %v2237_v45 = vsel %vm2211_vm5, %v11144_v16, %v11143_v60  ;;  %v11151_v23 = vld [vmem:[#allocation66_spill] sm:$0xff] }
 0x210   : > { %2549 = vmatpush.bf16.xpose.msra.mxu0 %v2516_v0  ;;  %2564 = vmatpush.bf16.xpose.msra.mxu1 %v2540_v52  ;;  %v7838_v43 = vpop.permute.xlu2 %2790  ;;  %v2446_v0 = vsel %vm2442_vm12, %v2413_v11, %v7482_v10  ;;  %v2470_v52 = vsel %vm2442_vm12, %v2437_v53, %v7605_v34  ;;  %v7867_v35 = vsel %vm2244_vm6, %v2213_v12, %v11146_v41  ;;  %v11148_v10 = vld [vmem:[#allocation48_spill] sm:$0xff]  ;;  %v11152_v12 = vld [vmem:[#allocation77_spill] sm:$0xff]  ;;  %v7886_v16 = vsel %vm6358_vm2, 0, %v1168_v26 }
 0x211   : > { %11137 = vst [vmem:[#allocation85_spill] sm:$0xff] %v7838_v43  ;;  %v2270_v63 = vsel %vm2244_vm6, %v2237_v45, %v11148_v10  ;;  %v2279_v58 = vsel %vm2277_vm7, %v7867_v35, %v11149_v36  ;;  %v2514_v11 = vsel %vm2505_vm13, %v2446_v0, 0  ;;  %v2538_v53 = vsel %vm2505_vm13, %v2470_v52, 0  ;;  %v11153_v45 = vld [vmem:[#allocation81_spill] sm:$0xff]  ;;  %v11154_v10 = vld [vmem:[#allocation94_spill] sm:$0xff]  ;;  %v11155_v52 = vld [vmem:[#allocation111_spill] sm:$0xff] }
 0x212   : > { %11147 = vst [vmem:[#allocation119_spill] sm:$0xff] %v7867_v35  ;;  %v2303_v27 = vsel %vm2277_vm7, %v2270_v63, %v11150_v54  ;;  %v2312_v31 = vsel %vm2310_vm8, %v2279_v58, %v11151_v23  ;;  %v11156_v63 = vld [vmem:[#allocation86_spill] sm:$0xff] }
 0x213   : > { %2930 = vrot.lane.b32.xlu1 %v7450_v24, %s6249_s28  ;;  %v2336_v60 = vsel %vm2310_vm8, %v2303_v27, %v11152_v12  ;;  %v2345_v41 = vsel %vm2343_vm9, %v2312_v31, %v11153_v45  ;;  %v11157_v58 = vld [vmem:[#allocation102_spill] sm:$0xff]  ;;  %v11158_v27 = vld [vmem:[#allocation129_spill] sm:$0xff]  ;;  %v11162_v45 = vld [vmem:[#allocation15_spill] sm:$0xff] }
 0x214   : > { %2952 = vrot.lane.b32.xlu0 %v11140_v30, %s6250_s29  ;;  %v2369_v0 = vsel %vm2343_vm9, %v2336_v60, %v11154_v10  ;;  %v2378_v36 = vsel %vm2376_vm10, %v2345_v41, %v11156_v63  ;;  %v11160_v23 = vld [vmem:[#allocation118_spill] sm:$0xff]  ;;  %v11161_v60 = vld [vmem:[#allocation25_spill] sm:$0xff] }
 0x215   : > { %v7863_v59 = vpop.permute.xlu1 %2770  ;;  %v2402_v54 = vsel %vm2376_vm10, %v2369_v0, %v11157_v58  ;;  %v2235_v41 = vsel %vm2211_vm5, %v11162_v45, %v11161_v60  ;;  %v11166_v63 = vld [vmem:[#allocation62_spill] sm:$0xff]  ;;  %v11170_v60 = vld [vmem:[#allocation121_spill] sm:$0xff] }
 0x216   : > { %11145 = vst [vmem:[#allocation110_spill] sm:$0xff] %v7863_v59  ;;  %v7871_v34 = vpop.permute.xlu0 %2780  ;;  %2950 = vrot.lane.b32.xlu2 %v11155_v52, %s6250_s29  ;;  %v2435_v26 = vsel %vm2409_vm11, %v2402_v54, %v7545_v62  ;;  %v11164_v62 = vld [vmem:[#allocation47_spill] sm:$0xff]  ;;  %v11182_v35 = vld [vmem:[#allocation130_spill] sm:$0xff] }
 0x217   : > { %v2468_v12 = vsel %vm2442_vm12, %v2435_v26, %v7715_v57  ;;  %v2268_v0 = vsel %vm2244_vm6, %v2235_v41, %v11164_v62  ;;  %v11167_v54 = vld [vmem:[#allocation67_spill] sm:$0xff]  ;;  %v11169_v26 = vld [vmem:[#allocation122_spill] sm:$0xff]  ;;  %v11171_v41 = vld [vmem:[#allocation132_spill] sm:$0xff] }
 0x218   : > { %2550 = vmatpush.bf16.xpose.msra.mxu0 %v2514_v11  ;;  %2565 = vmatpush.bf16.xpose.msra.mxu1 %v2538_v53  ;;  %v2411_v11 = vsel %vm2409_vm11, %v2378_v36, %v11158_v27  ;;  %v7904_v53 = vpop.permute.xlu2 %2796  ;;  %v2301_v36 = vsel %vm2277_vm7, %v2268_v0, %v11166_v63  ;;  %v11168_v27 = vld [vmem:[#allocation91_spill] sm:$0xff]  ;;  %v7942_v0 = vld [vmem:[%s10781_s2] sm:$0xff] }
 0x219   : > { %11159 = vst [vmem:[#allocation21_spill] sm:$0xff] %v7904_v53  ;;  %v2444_v31 = vsel %vm2442_vm12, %v2411_v11, %v7596_v37  ;;  %v2536_v37 = vsel %vm2505_vm13, %v2468_v12, 0  ;;  %v2334_v57 = vsel %vm2310_vm8, %v2301_v36, %v11167_v54  ;;  %v11174_v63 = vld [vmem:[#allocation126_spill] sm:$0xff] }
 0x21a   : > { %v2512_v58 = vsel %vm2505_vm13, %v2444_v31, 0  ;;  %v2367_v11 = vsel %vm2343_vm9, %v2334_v57, %v11168_v27  ;;  %v11172_v31 = vld [vmem:[#allocation101_spill] sm:$0xff]  ;;  %v11192_v43 = vld [vmem:[#allocation74_spill] sm:$0xff] }
 0x21b   : > { %2936 = vrot.lane.b32.xlu1 %v7886_v16, %s6249_s28  ;;  %v2400_v45 = vsel %vm2376_vm10, %v2367_v11, %v11170_v60  ;;  %v11177_v27 = vld [vmem:[#allocation37_spill] sm:$0xff] }
 0x21c   : > { %2958 = vrot.lane.b32.xlu0 %v11160_v23, %s6250_s29  ;;  %v2433_v62 = vsel %vm2409_vm11, %v2400_v45, %v11171_v41  ;;  %v11179_v45 = vld [vmem:[#allocation60_spill] sm:$0xff] }
 0x21d   : > { %v7915_v10 = vpop.permute.xlu1 %2776  ;;  %v2466_v36 = vsel %vm2442_vm12, %v2433_v62, %v7689_v25  ;;  %v11180_v25 = vld [vmem:[#allocation76_spill] sm:$0xff] }
 0x21e   : > { %11163 = vst [vmem:[#allocation8_spill] sm:$0xff] %v7915_v10  ;;  %v7919_v52 = vpop.permute.xlu0 %2786  ;;  %2956 = vrot.lane.b32.xlu2 %v11169_v26, %s6250_s29  ;;  %v2534_v39 = vsel %vm2505_vm13, %v2466_v36, 0  ;;  %v11203_v10 = vld [vmem:[#allocation59_spill] sm:$0xff] }
 0x21f   : > { %11165 = vst [vmem:[#allocation32_spill] sm:$0xff] %v7919_v52 }
 0x220   : > { %2551 = vmatpush.bf16.xpose.msra.mxu0 %v2512_v58  ;;  %2566 = vmatpush.bf16.xpose.msra.mxu1 %v2536_v37  ;;  %v7937_v12 = vpop.permute.xlu2 %2877  ;;  %v11175_v58 = vld [vmem:[#allocation33_spill] sm:$0xff]  ;;  %v11176_v37 = vld [vmem:[#allocation16_spill] sm:$0xff] }
 0x221   : > { %11173 = vst [vmem:[#allocation55_spill] sm:$0xff] %v7937_v12  ;;  %v2233_v54 = vsel %vm2211_vm5, %v11176_v37, %v11175_v58  ;;  %v11181_v58 = vld [vmem:[#allocation80_spill] sm:$0xff] }
 0x222   : > { %v2266_v11 = vsel %vm2244_vm6, %v2233_v54, %v11177_v27  ;;  %v11183_v54 = vld [vmem:[#allocation117_spill] sm:$0xff] }
 0x223   : > { %2954 = vrot.lane.b32.xlu1 %v11172_v31, %s6250_s29  ;;  %v2299_v41 = vsel %vm2277_vm7, %v2266_v11, %v11179_v45  ;;  %v11184_v45 = vld [vmem:[#allocation114_spill] sm:$0xff] }
 0x224   : > { %2964 = vrot.lane.b32.xlu0 %v11174_v63, %s6250_s29  ;;  %v2332_v62 = vsel %vm2310_vm8, %v2299_v41, %v11180_v25  ;;  %v11186_v41 = vld [vmem:[#allocation133_spill] sm:$0xff]  ;;  %v11187_v25 = vld [vmem:[#allocation31_spill] sm:$0xff] }
 0x225   : > { %v7951_v57 = vpop.permute.xlu1 %2782  ;;  %v2365_v37 = vsel %vm2343_vm9, %v2332_v62, %v11181_v58  ;;  %v11188_v62 = vld [vmem:[#allocation14_spill] sm:$0xff] }
 0x226   : > { %v7955_v60 = vpop.permute.xlu0 %2792  ;;  %2962 = vrot.lane.b32.xlu2 %v11182_v35, %s6250_s29  ;;  %v2398_v27 = vsel %vm2376_vm10, %v2365_v37, %v11183_v54  ;;  %v2231_v58 = vsel %vm2211_vm5, %v11188_v62, %v11187_v25  ;;  %v11190_v37 = vld [vmem:[#allocation46_spill] sm:$0xff]  ;;  %v11194_v25 = vld [vmem:[#allocation135_spill] sm:$0xff]  ;;  %v11195_v62 = vld [vmem:[#allocation96_spill] sm:$0xff] }
 0x227   : > { %11178 = vst [vmem:[#allocation71_spill] sm:$0xff] %v7955_v60  ;;  %5833 = vmatmul.msk.bf16.vlgmr.msra.gmra.mxu0 %vm2505_vm13, %v7942_v0  ;;  %v2431_v11 = vsel %vm2409_vm11, %v2398_v27, %v7539_v22  ;;  %v2264_v22 = vsel %vm2244_vm6, %v2231_v58, %v11190_v37  ;;  %v11191_v27 = vld [vmem:[#allocation50_spill] sm:$0xff]  ;;  %v2941_v37 = vshll.u32 %v7886_v16, 16 }
 0x228   : > { %2567 = vmatpush.bf16.xpose.msra.mxu1 %v2534_v39  ;;  %v7974_v36 = vpop.permute.xlu2 %2883  ;;  %v2464_v39 = vsel %vm2442_vm12, %v2431_v11, %v7578_v1  ;;  %v2297_v59 = vsel %vm2277_vm7, %v2264_v22, %v11191_v27  ;;  %v11193_v1 = vld [vmem:[#allocation90_spill] sm:$0xff] }
 0x229   : > { %11185 = vst [vmem:[#allocation75_spill] sm:$0xff] %v7974_v36  ;;  %v2532_v12 = vsel %vm2505_vm13, %v2464_v39, 0  ;;  %v2330_v60 = vsel %vm2310_vm8, %v2297_v59, %v11192_v43  ;;  %v11196_v39 = vld [vmem:[#allocation124_spill] sm:$0xff]  ;;  %v6075_v43 = vld [vmem:[%s10781_s2 + $0x8] sm:$0xff]  ;;  %v1623_v59 = vsel %vm6358_vm2, %v7830_v4, 0  ;;  %v2943_v4 = vrot.slane %v2941_v37, 1 }
 0x22a   : > { %v2363_v11 = vsel %vm2343_vm9, %v2330_v60, %v11193_v1  ;;  %v11199_v60 = vld [vmem:[#allocation13_spill] sm:$0xff]  ;;  %v2946_v29 = vshll.u32 %v1623_v59, 16 }
 0x22b   : > { %2960 = vrot.lane.b32.xlu1 %v11184_v45, %s6250_s29  ;;  %v2396_v58 = vsel %vm2376_vm10, %v2363_v11, %v11195_v62  ;;  %v11201_v62 = vld [vmem:[#allocation44_spill] sm:$0xff] }
 0x22c   : > { %2970 = vrot.lane.b32.xlu0 %v11186_v41, %s6250_s29  ;;  %v2429_v22 = vsel %vm2409_vm11, %v2396_v58, %v7505_v32  ;;  %v11198_v32 = vld [vmem:[#allocation23_spill] sm:$0xff] }
 0x22d   : > { %v7983_v52 = vpop.permute.xlu1 %2788  ;;  %v2229_v1 = vsel %vm2211_vm5, %v11199_v60, %v11198_v32  ;;  %v11205_v60 = vld [vmem:[#allocation88_spill] sm:$0xff] }
 0x22e   : > { %11189 = vst [vmem:[#allocation105_spill] sm:$0xff] %v7983_v52  ;;  %v7987_v54 = vpop.permute.xlu0 %2798  ;;  %2968 = vrot.lane.b32.xlu2 %v11194_v25, %s6250_s29  ;;  %v2262_v58 = vsel %vm2244_vm6, %v2229_v1, %v11201_v62  ;;  %v2939_v52 = vshrl.u32 %v7886_v16, 16  ;;  %v11206_v62 = vld [vmem:[#allocation116_spill] sm:$0xff] }
 0x22f   : > { %v2295_v53 = vsel %vm2277_vm7, %v2262_v58, %v11203_v10  ;;  %v11207_v10 = vld [vmem:[#allocation125_spill] sm:$0xff] }
 0x230   : > { %2568 = vmatpush.bf16.xpose.msra.mxu1 %v2532_v12  ;;  %v8005_v27 = vpop.permute.xlu2 %2889  ;;  %v2462_v12 = vsel %vm2442_vm12, %v2429_v22, %v7685_v51  ;;  %v11204_v22 = vld [vmem:[#allocation64_spill] sm:$0xff] }
 0x231   : > { %11197 = vst [vmem:[#allocation29_spill] sm:$0xff] %v8005_v27  ;;  %v2530_v51 = vsel %vm2505_vm13, %v2462_v12, 0  ;;  %v2328_v32 = vsel %vm2310_vm8, %v2295_v53, %v11204_v22  ;;  %v11208_v12 = vld [vmem:[#allocation131_spill] sm:$0xff] }
 0x232   : > { %v2361_v1 = vsel %vm2343_vm9, %v2328_v32, %v11205_v60 }
 0x233   : > { %2966 = vrot.lane.b32.xlu1 %v11196_v39, %s6250_s29  ;;  %v2394_v37 = vsel %vm2376_vm10, %v2361_v1, %v11206_v62 }
 0x234   : > { %2976 = vrot.lane.b32.xlu0 %v7488_v20, %s6250_s29  ;;  %v2427_v58 = vsel %vm2409_vm11, %v2394_v37, %v11207_v10 }
 0x235   : > { %v8020_v11 = vpop.permute.xlu1 %2794  ;;  %v2460_v53 = vsel %vm2442_vm12, %v2427_v58, %v7659_v9  ;;  %v2983_v58 = vrot.slane %v7886_v16, 1 }
 0x236   : > { %11200 = vst [vmem:[#allocation12_spill] sm:$0xff] %v8020_v11  ;;  %v8024_v27 = vpop.permute.xlu0 %2879  ;;  %2974 = vrot.lane.b32.xlu2 %v7485_v8, %s6250_s29  ;;  %v2948_v11 = vrot.slane %v2946_v29, 1 }
 0x237   : > { %11202 = vst [vmem:[#allocation41_spill] sm:$0xff] %v8024_v27  ;;  %5834 = vmatmul.msk.bf16.gmra.mxu0 %vm2505_vm13, %v6075_v43  ;;  %v2944_v27 = vor.u32 %v2943_v4, %v2939_v52  ;;  %v2528_v52 = vsel %vm2505_vm13, %v2460_v53, 0  ;;  %v11211_v4 = vld [vmem:[#allocation136_spill] sm:$0xff]  ;;  %v2984_v53 = vrot.slane %v1623_v59, 1  ;;  %v11224_v59 = vld [vmem:[#allocation139_spill] sm:$0xff] }
 0x238   : > { %2569 = vmatpush.bf16.xpose.msra.mxu1 %v2530_v51  ;;  %v8043_v36 = vpop.permute.xlu2 %2895 }
 0x239   : > { %11209 = vst [vmem:[#allocation36_spill] sm:$0xff] %v8043_v36  ;;  %v8054_v29 = vsel %vm1664_vm3, %v2944_v27, %v2948_v11 }
 0x23b   : > { %2972 = vrot.lane.b32.xlu1 %v11208_v12, %s6250_s29 }
 0x23c   : > { %2986 = vrot.lane.b32.xlu0 %v7513_v6, %s6251_s14 }
 0x23d   : > { %v8049_v51 = vpop.permute.xlu1 %2875 }
 0x23e   : > { %11210 = vst [vmem:[#allocation20_spill] sm:$0xff] %v8049_v51  ;;  %v8051_v22 = vpop.permute.xlu0 %2885  ;;  %2980 = vrot.lane.b32.xlu2 %v8054_v29, %s6250_s29  ;;  %v11225_v51 = vld [vmem:[#allocation140_spill] sm:$0xff] }
 0x240   : > { %2570 = vmatpush.bf16.xpose.msra.mxu1 %v2528_v52  ;;  %v8061_v6 = vpop.permute.xlu2 %2901 }
 0x241   : > { %11212 = vst [vmem:[#allocation45_spill] sm:$0xff] %v8061_v6 }
 0x243   : > { %2978 = vrot.lane.b32.xlu1 %v11211_v4, %s6250_s29 }
 0x244   : > { %2992 = vrot.lane.b32.xlu0 %v7552_v44, %s6251_s14 }
 0x245   : > { %v8065_v9 = vpop.permute.xlu1 %2881 }
 0x246   : > { %11213 = vst [vmem:[#allocation51_spill] sm:$0xff] %v8065_v9  ;;  %v8067_v32 = vpop.permute.xlu0 %2891  ;;  %2990 = vrot.lane.b32.xlu2 %v7493_v47, %s6251_s14 }
 0x247   : > { %11214 = vst [vmem:[#allocation69_spill] sm:$0xff] %v8067_v32  ;;  %5835 = vmatmul.msk.bf16.vlgmr.msra.gmra.mxu1 %vm2505_vm13, %v7942_v0 }
 0x248   : > { %v8075_v27 = vpop.permute.xlu2 %2908 }
 0x249   : > { %11215 = vst [vmem:[#allocation56_spill] sm:$0xff] %v8075_v27 }
 0x24b   : > { %2988 = vrot.lane.b32.xlu1 %v7508_v3, %s6251_s14 }
 0x24c   : > { %2998 = vrot.lane.b32.xlu0 %v7581_v17, %s6251_s14 }
 0x24d   : > { %v8079_v11 = vpop.permute.xlu1 %2887 }
 0x24e   : > { %v8081_v60 = vpop.permute.xlu0 %2897  ;;  %2996 = vrot.lane.b32.xlu2 %v7521_v7, %s6251_s14 }
 0x24f   : > { %11216 = vst [vmem:[#allocation84_spill] sm:$0xff] %v8081_v60 }
 0x250   : > { %v8087_v0 = vpop.permute.xlu2 %2914 }
 0x251   : > { %11217 = vst [vmem:[#allocation79_spill] sm:$0xff] %v8087_v0 }
 0x253   : > { %2994 = vrot.lane.b32.xlu1 %v7548_v49, %s6251_s14 }
 0x254   : > { %3004 = vrot.lane.b32.xlu0 %v7608_v28, %s6251_s14 }
 0x255   : > { %v8091_v1 = vpop.permute.xlu1 %2893 }
 0x256   : > { %11218 = vst [vmem:[#allocation89_spill] sm:$0xff] %v8091_v1  ;;  %v8093_v62 = vpop.permute.xlu0 %2903  ;;  %3002 = vrot.lane.b32.xlu2 %v7558_v5, %s6251_s14 }
 0x257   : > { %5836 = vmatmul.msk.bf16.gmra.mxu1 %vm2505_vm13, %v6075_v43  ;;  %v8112_v43 = vsel %vm1921_vm4, %v2983_v58, %v2984_v53 }
 0x258   : > { %v8100_v37 = vpop.permute.xlu2 %2920 }
 0x25b   : > { %3000 = vrot.lane.b32.xlu1 %v7576_v33, %s6251_s14 }
 0x25c   : > { %3010 = vrot.lane.b32.xlu0 %v7636_v48, %s6251_s14 }
 0x25d   : > { %v8104_v10 = vpop.permute.xlu1 %2899 }
 0x25e   : > { %11219 = vst [vmem:[#allocation99_spill] sm:$0xff] %v8104_v10  ;;  %v8107_v52 = vpop.permute.xlu0 %2910  ;;  %3008 = vrot.lane.b32.xlu2 %v7586_v46, %s6251_s14  ;;  %v11234_v10 = vld [vmem:[#allocation103_spill] sm:$0xff] }
 0x25f   : > { %11220 = vst [vmem:[#allocation26_spill] sm:$0xff] %v8107_v52  ;;  %v11230_v52 = vld [vmem:[#allocation92_spill] sm:$0xff] }
 0x260   : > { %v8116_v32 = vpop.permute.xlu2 %2926 }
 0x261   : > { %11221 = vst [vmem:[#allocation9_spill] sm:$0xff] %v8116_v32 }
 0x263   : > { %3006 = vrot.lane.b32.xlu1 %v7603_v21, %s6251_s14 }
 0x264   : > { %3016 = vrot.lane.b32.xlu0 %v8112_v43, %s6251_s14 }
 0x265   : > { %v8120_v1 = vpop.permute.xlu1 %2906 }
 0x266   : > { %11222 = vst [vmem:[#allocation28_spill] sm:$0xff] %v8120_v1  ;;  %v8122_v27 = vpop.permute.xlu0 %2916  ;;  %3014 = vrot.lane.b32.xlu2 %v11224_v59, %s6251_s14  ;;  %v11231_v1 = vld [vmem:[#allocation98_spill] sm:$0xff] }
 0x267   : > { %11223 = vst [vmem:[#allocation18_spill] sm:$0xff] %v8122_v27 }
 0x268   : > { %v8128_v58 = vpop.permute.xlu2 %2932 }
 0x269   : > { %11226 = vst [vmem:[#allocation39_spill] sm:$0xff] %v8128_v58 }
 0x26b   : > { %3012 = vrot.lane.b32.xlu1 %v11225_v51, %s6251_s14 }
 0x26c   : > { %3022 = vrot.lane.b32.xlu0 %v7246_v40, %s11227_s23 }
 0x26d   : > { %v8132_v53 = vpop.permute.xlu1 %2912 }
 0x26e   : > { %11228 = vst [vmem:[#allocation49_spill] sm:$0xff] %v8132_v53  ;;  %v8134_v32 = vpop.permute.xlu0 %2922  ;;  %3020 = vrot.lane.b32.xlu2 %v11230_v52, %s11227_s23  ;;  %v11239_v52 = vld [vmem:[#allocation109_spill] sm:$0xff] }
 0x26f   : > { %11229 = vst [vmem:[#allocation54_spill] sm:$0xff] %v8134_v32  ;;  %v11235_v32 = vld [vmem:[#allocation106_spill] sm:$0xff] }
 0x270   : > { %v8140_v36 = vpop.permute.xlu2 %2950 }
 0x271   : > { %11232 = vst [vmem:[#allocation65_spill] sm:$0xff] %v8140_v36 }
 0x273   : > { %3018 = vrot.lane.b32.xlu1 %v11231_v1, %s11227_s23 }
 0x274   : > { %3028 = vrot.lane.b32.xlu0 %v7304_v50, %s11227_s23 }
 0x275   : > { %v8144_v60 = vpop.permute.xlu1 %2918 }
 0x276   : > { %v8146_v58 = vpop.permute.xlu0 %2928  ;;  %3026 = vrot.lane.b32.xlu2 %v11234_v10, %s11227_s23 }
 0x277   : > { %11233 = vst [vmem:[#allocation58_spill] sm:$0xff] %v8146_v58 }
 0x278   : > { %v8152_v53 = vpop.permute.xlu2 %2956 }
 0x279   : > { %11236 = vst [vmem:[#allocation70_spill] sm:$0xff] %v8152_v53 }
 0x27b   : > { %3024 = vrot.lane.b32.xlu1 %v11235_v32, %s11227_s23 }
 0x27c   : > { %3034 = vrot.lane.b32.xlu0 %v7384_v18, %s11227_s23 }
 0x27d   : > { %v8156_v1 = vpop.permute.xlu1 %2924 }
 0x27e   : > { %11237 = vst [vmem:[#allocation82_spill] sm:$0xff] %v8156_v1  ;;  %v8158_v36 = vpop.permute.xlu0 %2934  ;;  %3032 = vrot.lane.b32.xlu2 %v11239_v52, %s11227_s23 }
 0x27f   : > { %11238 = vst [vmem:[#allocation95_spill] sm:$0xff] %v8158_v36 }
 0x280   : > { %v8164_v58 = vpop.permute.xlu2 %2962 }
 0x283   : > { %3030 = vrot.lane.b32.xlu1 %v7312_v15, %s11227_s23 }
 0x284   : > { %3040 = vrot.lane.b32.xlu0 %v7450_v24, %s11227_s23 }
 0x285   : > { %v8168_v0 = vpop.permute.xlu1 %2930 }
 0x286   : > { %11240 = vst [vmem:[#allocation104_spill] sm:$0xff] %v8168_v0  ;;  %v8170_v53 = vpop.permute.xlu0 %2952  ;;  %3038 = vrot.lane.b32.xlu2 %v7347_v19, %s11227_s23  ;;  %v426_v0 = vld [vmem:[%s6384_s25 + $0x200] sm:$0xff]  ;;  %v427_v19 = vld [vmem:[%s6384_s25 + $0x208] sm:$0xff] }
 0x287   : > { %11241 = vst [vmem:[#allocation113_spill] sm:$0xff] %v8170_v53 }
 0x288   : > { %v8176_v1 = vpop.permute.xlu2 %2968 }
 0x289   : > { %11242 = vst [vmem:[#allocation27_spill] sm:$0xff] %v8176_v1 }
 0x28b   : > { %3036 = vrot.lane.b32.xlu1 %v7402_v13, %s11227_s23 }
 0x28c   : > { %3046 = vrot.lane.b32.xlu0 %v7886_v16, %s11227_s23 }
 0x28d   : > { %v8180_v15 = vpop.permute.xlu1 %2936 }
 0x28e   : > { %v8182_v52 = vpop.permute.xlu0 %2958  ;;  %3044 = vrot.lane.b32.xlu2 %v7424_v61, %s11227_s23 }
 0x28f   : > { %11243 = vst [vmem:[#allocation10_spill] sm:$0xff] %v8182_v52 }
 0x290   : > { %v8188_v53 = vpop.permute.xlu2 %2974 }
 0x291   : > { %11244 = vst [vmem:[#allocation35_spill] sm:$0xff] %v8188_v53 }
 0x293   : > { %3042 = vrot.lane.b32.xlu1 %v7467_v14, %s11227_s23 }
 0x294   : > { %3052 = vrot.lane.b32.xlu0 %v11169_v26, %s11245_s24 }
 0x295   : > { %v8192_v18 = vpop.permute.xlu1 %2954 }
 0x296   : > { %11246 = vst [vmem:[#allocation19_spill] sm:$0xff] %v8192_v18  ;;  %v8194_v1 = vpop.permute.xlu0 %2964  ;;  %3050 = vrot.lane.b32.xlu2 %v11172_v31, %s11245_s24 }
 0x298   : > { %v8200_v16 = vpop.permute.xlu2 %2980 }
 0x29b   : > { %3048 = vrot.lane.b32.xlu1 %v11140_v30, %s11245_s24 }
 0x29c   : > { %3058 = vrot.lane.b32.xlu0 %v11182_v35, %s11245_s24 }
 0x29d   : > { %v8204_v13 = vpop.permute.xlu1 %2960 }
 0x29e   : > { %11247 = vst [vmem:[#allocation30_spill] sm:$0xff] %v8204_v13  ;;  %v8206_v53 = vpop.permute.xlu0 %2970  ;;  %3056 = vrot.lane.b32.xlu2 %v11184_v45, %s11245_s24 }
 0x29f   : > { %11248 = vst [vmem:[#allocation40_spill] sm:$0xff] %v8206_v53  ;;  %v11261_v53 = vld [vmem:[#allocation141_spill] sm:$0xff] }
 0x2a0   : > { %v8212_v26 = vpop.permute.xlu2 %2990 }
 0x2a1   : > { %11249 = vst [vmem:[#allocation52_spill] sm:$0xff] %v8212_v26 }
 0x2a3   : > { %3054 = vrot.lane.b32.xlu1 %v11160_v23, %s11245_s24 }
 0x2a4   : > { %3064 = vrot.lane.b32.xlu0 %v11194_v25, %s11245_s24 }
 0x2a5   : > { %v8216_v30 = vpop.permute.xlu1 %2966 }
 0x2a6   : > { %11250 = vst [vmem:[#allocation63_spill] sm:$0xff] %v8216_v30  ;;  %v8218_v31 = vpop.permute.xlu0 %2976  ;;  %3062 = vrot.lane.b32.xlu2 %v11196_v39, %s11245_s24 }
 0x2a7   : > { %11251 = vst [vmem:[#allocation68_spill] sm:$0xff] %v8218_v31 }
 0x2a8   : > { %v8224_v35 = vpop.permute.xlu2 %2996 }
 0x2a9   : > { %11252 = vst [vmem:[#allocation78_spill] sm:$0xff] %v8224_v35  ;;  %v453_v35 = vld [vmem:[%s6384_s25 + $0x2d8] sm:$0xff] }
 0x2ab   : > { %3060 = vrot.lane.b32.xlu1 %v11174_v63, %s11245_s24  ;;  %v2553_v63 = vpop.f32.mrf.mxu0 }
 0x2ac   : > { %3070 = vrot.lane.b32.xlu0 %v7485_v8, %s11245_s24 }
 0x2ad   : > { %v8228_v23 = vpop.permute.xlu1 %2972 }
 0x2ae   : > { %11253 = vst [vmem:[#allocation73_spill] sm:$0xff] %v8228_v23  ;;  %v8230_v45 = vpop.permute.xlu0 %2986  ;;  %3068 = vrot.lane.b32.xlu2 %v11208_v12, %s11245_s24 }
 0x2af   : > { %11254 = vst [vmem:[#allocation83_spill] sm:$0xff] %v8230_v45 }
 0x2b0   : > { %v8236_v25 = vpop.permute.xlu2 %3002 }
 0x2b1   : > { %11255 = vst [vmem:[#allocation100_spill] sm:$0xff] %v8236_v25 }
 0x2b3   : > { %3066 = vrot.lane.b32.xlu1 %v11186_v41, %s11245_s24  ;;  %v2555_v25 = vpop.f32.mrf.mxu0 }
 0x2b4   : > { %3076 = vrot.lane.b32.xlu0 %v8054_v29, %s11245_s24 }
 0x2b5   : > { %v8240_v39 = vpop.permute.xlu1 %2978 }
 0x2b6   : > { %11256 = vst [vmem:[#allocation123_spill] sm:$0xff] %v8240_v39  ;;  %v8242_v8 = vpop.permute.xlu0 %2992  ;;  %3074 = vrot.lane.b32.xlu2 %v11211_v4, %s11245_s24  ;;  %v431_v4 = vld [vmem:[%s6384_s25 + $0x228] sm:$0xff] }
 0x2b7   : > { %11257 = vst [vmem:[#allocation112_spill] sm:$0xff] %v8242_v8 }
 0x2b8   : > { %v8248_v12 = vpop.permute.xlu2 %3008 }
 0x2b9   : > { %11258 = vst [vmem:[#allocation24_spill] sm:$0xff] %v8248_v12  ;;  %v2554_v12 = vadd.f32 %v2553_v63, %v11261_v53 }
 0x2bb   : > { %3072 = vrot.lane.b32.xlu1 %v7488_v20, %s11245_s24  ;;  %v430_v20 = vld [vmem:[%s6384_s25 + $0x220] sm:$0xff] }
 0x2bc   : > { %3082 = vrot.lane.b32.xlu0 %v7552_v44, %s6254_s22  ;;  %v558_v45 = vpack.c.bf16 %v430_v20, %v430_v20  ;;  %v554_v20 = vpack.c.bf16 %v426_v0, %v426_v0 }
 0x2bd   : > { %v8252_v41 = vpop.permute.xlu1 %2988 }
 0x2be   : > { %11259 = vst [vmem:[#allocation7_spill] sm:$0xff] %v8252_v41  ;;  %v8254_v30 = vpop.permute.xlu0 %2998  ;;  %3080 = vrot.lane.b32.xlu2 %v7493_v47, %s6254_s22  ;;  %v559_v41 = vpack.c.bf16 %v431_v4, %v431_v4  ;;  %v555_v4 = vpack.c.bf16 %v427_v19, %v427_v19  ;;  %v3137_v19 = vsel %vm2211_vm5, %v7424_v61, %v7987_v54 }
 0x2c0   : > { %v8260_v29 = vpop.permute.xlu2 %3014  ;;  %v815_v18 = vunpack.c.l.b16 %v559_v41  ;;  %v429_v41 = vld [vmem:[%s6384_s25 + $0x218] sm:$0xff] }
 0x2c1   : > { %11260 = vst [vmem:[#allocation34_spill] sm:$0xff] %v8260_v29 }
 0x2c3   : > { %3078 = vrot.lane.b32.xlu1 %v7508_v3, %s6254_s22  ;;  %v814_v3 = vunpack.c.l.b16 %v558_v45  ;;  %v811_v45 = vunpack.c.l.b16 %v555_v4  ;;  %v557_v4 = vpack.c.bf16 %v429_v41, %v429_v41 }
 0x2c4   : > { %3088 = vrot.lane.b32.xlu0 %v7581_v17, %s6254_s22  ;;  %v2572_v44 = vpop.f32.mrf.mxu1  ;;  %v2558_v17 = vpop.f32.mrf.mxu0 }
 0x2c5   : > { %v2573_v23 = vadd.f32 %v2572_v44, %v11261_v53  ;;  %v8268_v47 = vpop.permute.xlu1 %2994  ;;  %v908_v31 = vpack.c.b16 %v815_v18, %v814_v3  ;;  %v810_v53 = vunpack.c.l.b16 %v554_v20  ;;  %v2556_v3 = vadd.f32 %v2555_v25, %v7769_v56 }
 0x2c6   : > { %11262 = vst [vmem:[#allocation17_spill] sm:$0xff] %v8268_v47  ;;  %v8270_v26 = vpop.permute.xlu0 %3004  ;;  %3086 = vrot.lane.b32.xlu2 %v7521_v7, %s6254_s22  ;;  %v813_v41 = vunpack.c.l.b16 %v557_v4 }
 0x2c7   : > { %11263 = vst [vmem:[#allocation38_spill] sm:$0xff] %v8270_v26  ;;  %v2582_v8 = vpack.c.bf16 %v2573_v23, %v2554_v12  ;;  %v1184_v63 = vshrl.u32 %v908_v31, 16  ;;  %v1187_v44 = vshll.u32 %v908_v31, 16  ;;  %v428_v12 = vld [vmem:[%s6384_s25 + $0x210] sm:$0xff]  ;;  %v906_v0 = vpack.c.b16 %v811_v45, %v810_v53 }
 0x2c8   : > { %v8278_v23 = vpop.permute.xlu2 %3020  ;;  %v436_v26 = vld [vmem:[%s6384_s25 + $0x250] sm:$0xff]  ;;  %v556_v31 = vpack.c.bf16 %v428_v12, %v428_v12  ;;  %v3167_v53 = vsel %vm2244_vm6, %v3137_v19, %v8093_v62 }
 0x2c9   : > { %2586 = vst [vmem:[#allocation2] sm:$0xff] %v2582_v8  ;;  %v1186_v7 = vrot.slane %v1184_v63, 7  ;;  %v437_v8 = vld [vmem:[%s6384_s25 + $0x258] sm:$0xff]  ;;  %v1173_v25 = vshll.u32 %v906_v0, 16 }
 0x2ca   : > { %11264 = vst [vmem:[#allocation48_spill] sm:$0xff] %v8278_v23  ;;  %v564_v23 = vpack.c.bf16 %v436_v26, %v436_v26  ;;  %v565_v54 = vpack.c.bf16 %v437_v8, %v437_v8  ;;  %v812_v26 = vunpack.c.l.b16 %v556_v31 }
 0x2cb   : > { %3084 = vrot.lane.b32.xlu1 %v7548_v49, %s6254_s22  ;;  %v1189_v52 = vor.u32 %v1187_v44, %v1186_v7  ;;  %v8297_v61 = vsel %vm6358_vm2, %v1186_v7, 0  ;;  %v3199_v44 = vsel %vm2277_vm7, %v3167_v53, %v8180_v15 }
 0x2cc   : > { %3094 = vrot.lane.b32.xlu0 %v7608_v28, %s6254_s22  ;;  %v2574_v18 = vpop.f32.mrf.mxu1  ;;  %v1170_v28 = vshrl.u32 %v906_v0, 16  ;;  %v3468_v62 = vshll.u32 %v8297_v61, 16  ;;  %v2560_v19 = vpop.f32.mrf.mxu0  ;;  %v907_v0 = vpack.c.b16 %v813_v41, %v812_v26  ;;  %v821_v8 = vunpack.c.l.b16 %v565_v54 }
 0x2cd   : > { %v2575_v49 = vadd.f32 %v2574_v18, %v7769_v56  ;;  %v8291_v20 = vpop.permute.xlu1 %3000  ;;  %v8303_v45 = vsel %vm6358_vm2, 0, %v1189_v52  ;;  %v820_v52 = vunpack.c.l.b16 %v564_v23  ;;  %v3231_v31 = vsel %vm2310_vm8, %v3199_v44, %v8200_v16 }
 0x2ce   : > { %v8293_v47 = vpop.permute.xlu0 %3010  ;;  %11266 = vst [vmem:[#allocation53_spill] sm:$0xff] %v8303_v45  ;;  %v1172_v12 = vrot.slane %v1170_v28, 7  ;;  %3092 = vrot.lane.b32.xlu2 %v7558_v5, %s6254_s22  ;;  %v3463_v18 = vshll.u32 %v8303_v45, 16  ;;  %v1177_v16 = vshrl.u32 %v907_v0, 16  ;;  %v1180_v4 = vshll.u32 %v907_v0, 16  ;;  %v11269_v28 = vld [vmem:[#allocation72_spill] sm:$0xff] }
 0x2cf   : > { %11265 = vst [vmem:[#allocation43_spill] sm:$0xff] %v8293_v47  ;;  %v2583_v63 = vpack.c.bf16 %v2575_v49, %v2556_v3  ;;  %v2559_v3 = vadd.f32 %v2558_v17, %v7812_v55  ;;  %v8330_v54 = vadd.f32 %v2560_v19, %v11269_v28  ;;  %v3461_v17 = vshrl.u32 %v8303_v45, 16 }
 0x2d0   : > { %v1175_v7 = vor.u32 %v1173_v25, %v1172_v12  ;;  %v8315_v15 = vpop.permute.xlu2 %3026  ;;  %v8319_v5 = vsel %vm6358_vm2, %v1172_v12, 0  ;;  %v3465_v25 = vrot.slane %v3463_v18, 1  ;;  %v3470_v12 = vrot.slane %v3468_v62, 1 }
 0x2d1   : > { %2587 = vst [vmem:[#allocation2 + $0x8] sm:$0xff] %v2583_v63  ;;  %v3444_v26 = vshll.u32 %v8319_v5, 16  ;;  %v1179_v41 = vrot.slane %v1177_v16, 7  ;;  %v911_v44 = vpack.c.b16 %v821_v8, %v820_v52  ;;  %v11271_v16 = vld [vmem:[#allocation22_spill] sm:$0xff] }
 0x2d2   : > { %11267 = vst [vmem:[#allocation66_spill] sm:$0xff] %v8315_v15  ;;  %v8326_v49 = vsel %vm6358_vm2, 0, %v1175_v7  ;;  %v433_v7 = vld [vmem:[%s6384_s25 + $0x238] sm:$0xff]  ;;  %v3466_v8 = vor.u32 %v3465_v25, %v3461_v17  ;;  %v439_v15 = vld [vmem:[%s6384_s25 + $0x268] sm:$0xff] }
 0x2d3   : > { %3090 = vrot.lane.b32.xlu1 %v7576_v33, %s6254_s22  ;;  %11268 = vst [vmem:[#allocation77_spill] sm:$0xff] %v8326_v49  ;;  %v432_v33 = vld [vmem:[%s6384_s25 + $0x230] sm:$0xff]  ;;  %v3439_v19 = vshll.u32 %v8326_v49, 16  ;;  %v8344_v18 = vsel %vm6358_vm2, %v1179_v41, 0  ;;  %v1205_v62 = vshrl.u32 %v911_v44, 16 }
 0x2d4   : > { %3100 = vrot.lane.b32.xlu0 %v7636_v48, %s6254_s22  ;;  %v2577_v23 = vpop.f32.mrf.mxu1  ;;  %v560_v47 = vpack.c.bf16 %v432_v33, %v432_v33  ;;  %v3437_v33 = vshrl.u32 %v8326_v49, 16 }
 0x2d5   : > { %v2578_v53 = vadd.f32 %v2577_v23, %v7812_v55  ;;  %v8333_v63 = vpop.permute.xlu1 %3006  ;;  %v1182_v55 = vor.u32 %v1180_v4, %v1179_v41  ;;  %v3441_v17 = vrot.slane %v3439_v19, 1  ;;  %v3456_v41 = vshll.u32 %v8344_v18, 16 }
 0x2d6   : > { %11270 = vst [vmem:[#allocation81_spill] sm:$0xff] %v8333_v63  ;;  %v3017_v48 = vpop.permute.xlu0 %3016  ;;  %3098 = vrot.lane.b32.xlu2 %v7586_v46, %s6254_s22  ;;  %v816_v19 = vunpack.c.l.b16 %v560_v47 }
 0x2d7   : > { %v2584_v56 = vpack.c.bf16 %v2578_v53, %v2559_v3  ;;  %v3263_v0 = vsel %vm2343_vm9, %v3231_v31, %v3017_v48  ;;  %v1208_v31 = vshll.u32 %v911_v44, 16  ;;  %v561_v3 = vpack.c.bf16 %v433_v7, %v433_v7  ;;  %v434_v44 = vld [vmem:[%s6384_s25 + $0x240] sm:$0xff]  ;;  %v435_v7 = vld [vmem:[%s6384_s25 + $0x248] sm:$0xff] }
 0x2d8   : > { %v3294_v23 = vsel %vm2376_vm10, %v3263_v0, %v11105_v42  ;;  %v8355_v53 = vsel %vm6358_vm2, 0, %v1182_v55  ;;  %v8360_v48 = vpop.permute.xlu2 %3032  ;;  %v3446_v0 = vrot.slane %v3444_v26, 1  ;;  %v8379_v26 = vsel %vm1664_vm3, %v3466_v8, %v3470_v12 }
 0x2d9   : > { %2588 = vst [vmem:[#allocation2 + $0x10] sm:$0xff] %v2584_v56  ;;  %v3325_v52 = vsel %vm2409_vm11, %v3294_v23, %v7573_v38  ;;  %v1207_v56 = vrot.slane %v1205_v62, 7  ;;  %v3451_v25 = vshll.u32 %v8355_v53, 16  ;;  %v562_v47 = vpack.c.bf16 %v434_v44, %v434_v44  ;;  %v443_v38 = vld [vmem:[%s6384_s25 + $0x288] sm:$0xff] }
 0x2da   : > { %v3356_v4 = vsel %vm2442_vm12, %v3325_v52, %v11271_v16  ;;  %11272 = vst [vmem:[#allocation94_spill] sm:$0xff] %v8355_v53  ;;  %v3458_v63 = vrot.slane %v3456_v41, 1 }
 0x2db   : > { %3096 = vrot.lane.b32.xlu1 %v7603_v21, %s6254_s22  ;;  %v3387_v46 = vsel %vm2505_vm13, %v3356_v4, 0  ;;  %v1210_v21 = vor.u32 %v1208_v31, %v1207_v56  ;;  %v8370_v23 = vsel %vm6358_vm2, %v1207_v56, 0  ;;  %v3449_v4 = vshrl.u32 %v8355_v53, 16  ;;  %11275 = vst [vmem:[#allocation102_spill] sm:$0xff] %v8379_v26 }
 0x2dc   : > { %3106 = vrot.lane.b32.xlu0 %v8112_v43, %s6254_s22  ;;  %3408 = vmatpush.bf16.xpose.msra.mxu3 %v3387_v46  ;;  %v2579_v55 = vpop.f32.mrf.mxu1  ;;  %v3453_v16 = vrot.slane %v3451_v25, 1  ;;  %v817_v43 = vunpack.c.l.b16 %v561_v3  ;;  %v563_v56 = vpack.c.bf16 %v435_v7, %v435_v7  ;;  %v3504_v3 = vshll.u32 %v8370_v23, 16  ;;  %v438_v25 = vld [vmem:[%s6384_s25 + $0x260] sm:$0xff] }
 0x2dd   : > { %v2580_v62 = vadd.f32 %v2579_v55, %v11269_v28  ;;  %v8373_v52 = vpop.permute.xlu1 %3012  ;;  %v8383_v31 = vsel %vm6358_vm2, 0, %v1210_v21  ;;  %v442_v55 = vld [vmem:[%s6384_s25 + $0x280] sm:$0xff]  ;;  %v3442_v28 = vor.u32 %v3441_v17, %v3437_v33 }
 0x2de   : > { %11273 = vst [vmem:[#allocation111_spill] sm:$0xff] %v8373_v52  ;;  %v8376_v46 = vpop.permute.xlu0 %3022  ;;  %v3499_v12 = vshll.u32 %v8383_v31, 16  ;;  %v909_v8 = vpack.c.b16 %v817_v43, %v816_v19  ;;  %v818_v52 = vunpack.c.l.b16 %v562_v47  ;;  %3104 = vrot.lane.b32.xlu2 %v11224_v59, %s6254_s22  ;;  %v3454_v44 = vor.u32 %v3453_v16, %v3449_v4 }
 0x2df   : > { %11274 = vst [vmem:[#allocation86_spill] sm:$0xff] %v8376_v46  ;;  %v2585_v42 = vpack.c.bf16 %v2580_v62, %v8330_v54  ;;  %v3497_v46 = vshrl.u32 %v8383_v31, 16  ;;  %v819_v7 = vunpack.c.l.b16 %v563_v56  ;;  %v570_v21 = vpack.c.bf16 %v442_v55, %v442_v55 }
 0x2e0   : > { %v571_v54 = vpack.c.bf16 %v443_v38, %v443_v38  ;;  %v3501_v33 = vrot.slane %v3499_v12, 1  ;;  %v1191_v17 = vshrl.u32 %v909_v8, 16  ;;  %v1194_v41 = vshll.u32 %v909_v8, 16  ;;  %v8397_v9 = vpop.permute.xlu2 %3038 }
 0x2e1   : > { %2589 = vst [vmem:[#allocation2 + $0x18] sm:$0xff] %v2585_v42  ;;  %v566_v62 = vpack.c.bf16 %v438_v25, %v438_v25  ;;  %v910_v19 = vpack.c.b16 %v819_v7, %v818_v52  ;;  %v826_v43 = vunpack.c.l.b16 %v570_v21  ;;  %v567_v42 = vpack.c.bf16 %v439_v15, %v439_v15 }
 0x2e2   : > { %11276 = vst [vmem:[#allocation129_spill] sm:$0xff] %v8397_v9  ;;  %v827_v47 = vunpack.c.l.b16 %v571_v54  ;;  %v3502_v59 = vor.u32 %v3501_v33, %v3497_v46  ;;  %v3506_v16 = vrot.slane %v3504_v3, 1  ;;  %v1193_v38 = vrot.slane %v1191_v17, 7  ;;  %v440_v54 = vld [vmem:[%s6384_s25 + $0x270] sm:$0xff] }
 0x2e3   : > { %3102 = vrot.lane.b32.xlu1 %v11225_v51, %s6254_s22  ;;  %v822_v4 = vunpack.c.l.b16 %v566_v62  ;;  %v1198_v55 = vshrl.u32 %v910_v19, 16  ;;  %v1201_v25 = vshll.u32 %v910_v19, 16  ;;  %v823_v51 = vunpack.c.l.b16 %v567_v42  ;;  %v441_v42 = vld [vmem:[%s6384_s25 + $0x278] sm:$0xff] }
 0x2e4   : > { %3620 = vrot.lane.b32.xlu0 %v8379_v26, %s6247_s26  ;;  %v914_v12 = vpack.c.b16 %v827_v47, %v826_v43  ;;  %v8406_v52 = vsel %vm1664_vm3, %v3454_v44, %v3458_v63  ;;  %v1196_v15 = vor.u32 %v1194_v41, %v1193_v38  ;;  %v8410_v7 = vsel %vm6358_vm2, %v1193_v38, 0 }
 0x2e5   : > { %v8401_v56 = vpop.permute.xlu1 %3018  ;;  %11279 = vst [vmem:[#allocation15_spill] sm:$0xff] %v8406_v52  ;;  %v3480_v46 = vshll.u32 %v8410_v7, 16  ;;  %v1200_v3 = vrot.slane %v1198_v55, 7  ;;  %v8415_v33 = vsel %vm1664_vm3, %v3442_v28, %v3446_v0  ;;  %v912_v44 = vpack.c.b16 %v823_v51, %v822_v4 }
 0x2e6   : > { %11277 = vst [vmem:[#allocation118_spill] sm:$0xff] %v8401_v56  ;;  %v8403_v8 = vpop.permute.xlu0 %3028  ;;  %v1226_v21 = vshrl.u32 %v914_v12, 16  ;;  %v8419_v17 = vsel %vm6358_vm2, 0, %v1196_v15  ;;  %v1229_v63 = vshll.u32 %v914_v12, 16  ;;  %3618 = vrot.lane.b32.xlu2 %v8406_v52, %s6247_s26  ;;  %v8424_v41 = vsel %vm1664_vm3, %v3502_v59, %v3506_v16 }
 0x2e7   : > { %11278 = vst [vmem:[#allocation25_spill] sm:$0xff] %v8403_v8  ;;  %v3473_v62 = vshrl.u32 %v8419_v17, 16  ;;  %v3475_v19 = vshll.u32 %v8419_v17, 16  ;;  %v1203_v43 = vor.u32 %v1201_v25, %v1200_v3  ;;  %v8430_v28 = vsel %vm6358_vm2, %v1200_v3, 0 }
 0x2e8   : > { %11280 = vst [vmem:[#allocation47_spill] sm:$0xff] %v8415_v33  ;;  %v1228_v0 = vrot.slane %v1226_v21, 7  ;;  %v1212_v47 = vshrl.u32 %v912_v44, 16  ;;  %v568_v38 = vpack.c.bf16 %v440_v54, %v440_v54  ;;  %v8435_v4 = vpop.permute.xlu2 %3044  ;;  %v3482_v16 = vrot.slane %v3480_v46, 1 }
 0x2e9   : > { %11281 = vst [vmem:[#allocation62_spill] sm:$0xff] %v8419_v17  ;;  %v3477_v59 = vrot.slane %v3475_v19, 1  ;;  %v8439_v55 = vsel %vm6358_vm2, 0, %v1203_v43  ;;  %v3492_v25 = vshll.u32 %v8430_v28, 16  ;;  %v1215_v3 = vshll.u32 %v912_v44, 16 }
 0x2ea   : > { %11282 = vst [vmem:[#allocation67_spill] sm:$0xff] %v8424_v41  ;;  %v3485_v12 = vshrl.u32 %v8439_v55, 16  ;;  %v3487_v51 = vshll.u32 %v8439_v55, 16  ;;  %v1231_v15 = vor.u32 %v1229_v63, %v1228_v0  ;;  %v8450_v54 = vsel %vm6358_vm2, %v1228_v0, 0 }
 0x2eb   : > { %3616 = vrot.lane.b32.xlu1 %v8415_v33, %s6247_s26  ;;  %11283 = vst [vmem:[#allocation91_spill] sm:$0xff] %v8435_v4  ;;  %v3478_v46 = vor.u32 %v3477_v59, %v3473_v62  ;;  %v1214_v19 = vrot.slane %v1212_v47, 7  ;;  %v569_v43 = vpack.c.bf16 %v441_v42, %v441_v42  ;;  %v3494_v33 = vrot.slane %v3492_v25, 1  ;;  %v448_v47 = vld [vmem:[%s6384_s25 + $0x2b0] sm:$0xff]  ;;  %v449_v42 = vld [vmem:[%s6384_s25 + $0x2b8] sm:$0xff] }
 0x2ec   : > { %3626 = vrot.lane.b32.xlu0 %v8424_v41, %s6247_s26  ;;  %v3489_v41 = vrot.slane %v3487_v51, 1  ;;  %v8456_v56 = vsel %vm6358_vm2, 0, %v1231_v15  ;;  %v3540_v63 = vshll.u32 %v8450_v54, 16  ;;  %v576_v4 = vpack.c.bf16 %v448_v47, %v448_v47 }
 0x2ed   : > { %v8446_v21 = vpop.permute.xlu1 %3024  ;;  %11286 = vst [vmem:[#allocation132_spill] sm:$0xff] %v8456_v56  ;;  %v8460_v44 = vsel %vm1664_vm3, %v3478_v46, %v3482_v16  ;;  %v3533_v62 = vshrl.u32 %v8456_v56, 16  ;;  %v3535_v0 = vshll.u32 %v8456_v56, 16  ;;  %v1217_v25 = vor.u32 %v1215_v3, %v1214_v19  ;;  %v445_v3 = vld [vmem:[%s6384_s25 + $0x298] sm:$0xff] }
 0x2ee   : > { %11284 = vst [vmem:[#allocation122_spill] sm:$0xff] %v8446_v21  ;;  %v8452_v26 = vpop.permute.xlu0 %3034  ;;  %v3490_v59 = vor.u32 %v3489_v41, %v3485_v12  ;;  %v3542_v51 = vrot.slane %v3540_v63, 1  ;;  %v8468_v15 = vsel %vm6358_vm2, %v1214_v19, 0  ;;  %v824_v16 = vunpack.c.l.b16 %v568_v38  ;;  %v444_v12 = vld [vmem:[%s6384_s25 + $0x290] sm:$0xff] }
 0x2ef   : > { %11285 = vst [vmem:[#allocation121_spill] sm:$0xff] %v8452_v26  ;;  %v3537_v26 = vrot.slane %v3535_v0, 1  ;;  %v3516_v52 = vshll.u32 %v8468_v15, 16  ;;  %v825_v46 = vunpack.c.l.b16 %v569_v43  ;;  %v8476_v21 = vsel %vm6358_vm2, 0, %v1217_v25 }
 0x2f0   : > { %11287 = vst [vmem:[#allocation101_spill] sm:$0xff] %v8460_v44  ;;  %v8472_v9 = vsel %vm1664_vm3, %v3490_v59, %v3494_v33  ;;  %v577_v41 = vpack.c.bf16 %v449_v42, %v449_v42  ;;  %v8484_v19 = vpop.permute.xlu2 %3050  ;;  %v3509_v33 = vshrl.u32 %v8476_v21, 16  ;;  %v3511_v43 = vshll.u32 %v8476_v21, 16 }
 0x2f1   : > { %11288 = vst [vmem:[#allocation126_spill] sm:$0xff] %v8472_v9  ;;  %3624 = vrot.lane.b32.xlu2 %v8472_v9, %s6247_s26  ;;  %v3538_v38 = vor.u32 %v3537_v26, %v3533_v62  ;;  %v3518_v63 = vrot.slane %v3516_v52, 1  ;;  %v913_v0 = vpack.c.b16 %v825_v46, %v824_v16  ;;  %v832_v47 = vunpack.c.l.b16 %v576_v4  ;;  %v446_v26 = vld [vmem:[%s6384_s25 + $0x2a0] sm:$0xff]  ;;  %v447_v16 = vld [vmem:[%s6384_s25 + $0x2a8] sm:$0xff] }
 0x2f2   : > { %11289 = vst [vmem:[#allocation33_spill] sm:$0xff] %v8484_v19  ;;  %v833_v42 = vunpack.c.l.b16 %v577_v41  ;;  %v572_v24 = vpack.c.bf16 %v444_v12, %v444_v12  ;;  %v573_v9 = vpack.c.bf16 %v445_v3, %v445_v3  ;;  %v575_v39 = vpack.c.bf16 %v447_v16, %v447_v16 }
 0x2f3   : > { %3622 = vrot.lane.b32.xlu1 %v8460_v44, %s6247_s26  ;;  %v8489_v59 = vsel %vm1664_vm3, %v3538_v38, %v3542_v51  ;;  %v3513_v44 = vrot.slane %v3511_v43, 1  ;;  %v1219_v19 = vshrl.u32 %v913_v0, 16  ;;  %v1222_v40 = vshll.u32 %v913_v0, 16 }
 0x2f4   : > { %11290 = vst [vmem:[#allocation16_spill] sm:$0xff] %v8489_v59  ;;  %3632 = vrot.lane.b32.xlu0 %v8489_v59, %s6247_s26  ;;  %v917_v52 = vpack.c.b16 %v833_v42, %v832_v47  ;;  %v828_v46 = vunpack.c.l.b16 %v572_v24  ;;  %v829_v41 = vunpack.c.l.b16 %v573_v9  ;;  %v574_v43 = vpack.c.bf16 %v446_v26, %v446_v26 }
 0x2f5   : > { %v8491_v25 = vpop.permute.xlu1 %3030  ;;  %v3514_v4 = vor.u32 %v3513_v44, %v3509_v33  ;;  %v1221_v51 = vrot.slane %v1219_v19, 7  ;;  %v831_v19 = vunpack.c.l.b16 %v575_v39  ;;  %v454_v33 = vld [vmem:[%s6384_s25 + $0x2e0] sm:$0xff] }
 0x2f6   : > { %v8496_v62 = vpop.permute.xlu0 %3040  ;;  %v1247_v38 = vshrl.u32 %v917_v52, 16  ;;  %v1250_v29 = vshll.u32 %v917_v52, 16  ;;  %v915_v3 = vpack.c.b16 %v829_v41, %v828_v46  ;;  %v830_v47 = vunpack.c.l.b16 %v574_v43 }
 0x2f7   : > { %11291 = vst [vmem:[#allocation37_spill] sm:$0xff] %v8496_v62  ;;  %v8500_v12 = vsel %vm1664_vm3, %v3514_v4, %v3518_v63  ;;  %v1224_v59 = vor.u32 %v1222_v40, %v1221_v51  ;;  %v8504_v62 = vsel %vm6358_vm2, %v1221_v51, 0  ;;  %v582_v51 = vpack.c.bf16 %v454_v33, %v454_v33 }
 0x2f8   : > { %11292 = vst [vmem:[#allocation60_spill] sm:$0xff] %v8500_v12  ;;  %v1249_v0 = vrot.slane %v1247_v38, 7  ;;  %v3528_v24 = vshll.u32 %v8504_v62, 16  ;;  %v8509_v9 = vpop.permute.xlu2 %3056  ;;  %v1233_v44 = vshrl.u32 %v915_v3, 16  ;;  %v1236_v26 = vshll.u32 %v915_v3, 16 }
 0x2f9   : > { %11293 = vst [vmem:[#allocation76_spill] sm:$0xff] %v8509_v9  ;;  %v8514_v63 = vsel %vm6358_vm2, 0, %v1224_v59  ;;  %v916_v41 = vpack.c.b16 %v831_v19, %v830_v47 }
 0x2fa   : > { %11294 = vst [vmem:[#allocation80_spill] sm:$0xff] %v8514_v63  ;;  %v1252_v40 = vor.u32 %v1250_v29, %v1249_v0  ;;  %v8518_v42 = vsel %vm6358_vm2, %v1249_v0, 0  ;;  %v3521_v52 = vshrl.u32 %v8514_v63, 16  ;;  %v3523_v16 = vshll.u32 %v8514_v63, 16 }
 0x2fb   : > { %3628 = vrot.lane.b32.xlu1 %v8500_v12, %s6247_s26  ;;  %v3576_v4 = vshll.u32 %v8518_v42, 16  ;;  %v1235_v29 = vrot.slane %v1233_v44, 7  ;;  %v3530_v43 = vrot.slane %v3528_v24, 1  ;;  %v455_v12 = vld [vmem:[%s6384_s25 + $0x2e8] sm:$0xff]  ;;  %v1243_v44 = vshll.u32 %v916_v41, 16 }
 0x2fc   : > { %v8527_v39 = vsel %vm6358_vm2, 0, %v1252_v40  ;;  %v3525_v38 = vrot.slane %v3523_v16, 1  ;;  %v1240_v40 = vshrl.u32 %v916_v41, 16  ;;  %v583_v33 = vpack.c.bf16 %v455_v12, %v455_v12 }
 0x2fd   : > { %v8523_v46 = vpop.permute.xlu1 %3036  ;;  %11296 = vst [vmem:[#allocation117_spill] sm:$0xff] %v8527_v39  ;;  %v3569_v3 = vshrl.u32 %v8527_v39, 16  ;;  %v3571_v0 = vshll.u32 %v8527_v39, 16  ;;  %v3578_v9 = vrot.slane %v3576_v4, 1  ;;  %v1238_v8 = vor.u32 %v1236_v26, %v1235_v29 }
 0x2fe   : > { %11295 = vst [vmem:[#allocation130_spill] sm:$0xff] %v8523_v46  ;;  %v8529_v59 = vpop.permute.xlu0 %3046  ;;  %v8536_v46 = vsel %vm6358_vm2, %v1235_v29, 0  ;;  %v3526_v36 = vor.u32 %v3525_v38, %v3521_v52  ;;  %v1242_v19 = vrot.slane %v1240_v40, 7  ;;  %v838_v16 = vunpack.c.l.b16 %v582_v51  ;;  %v451_v40 = vld [vmem:[%s6384_s25 + $0x2c8] sm:$0xff] }
 0x2ff   : > { %11297 = vst [vmem:[#allocation114_spill] sm:$0xff] %v8529_v59  ;;  %v3573_v59 = vrot.slane %v3571_v0, 1  ;;  %v3552_v47 = vshll.u32 %v8536_v46, 16  ;;  %v8541_v24 = vsel %vm6358_vm2, 0, %v1238_v8  ;;  %v450_v0 = vld [vmem:[%s6384_s25 + $0x2c0] sm:$0xff]  ;;  %v839_v41 = vunpack.c.l.b16 %v583_v33 }
 0x300   : > { %11298 = vst [vmem:[#allocation133_spill] sm:$0xff] %v8541_v24  ;;  %v8544_v26 = vsel %vm1664_vm3, %v3526_v36, %v3530_v43  ;;  %v3545_v29 = vshrl.u32 %v8541_v24, 16  ;;  %v3547_v52 = vshll.u32 %v8541_v24, 16  ;;  %v8548_v38 = vpop.permute.xlu2 %3062  ;;  %v1245_v8 = vor.u32 %v1243_v44, %v1242_v19 }
 0x301   : > { %11299 = vst [vmem:[#allocation31_spill] sm:$0xff] %v8544_v26  ;;  %v3574_v4 = vor.u32 %v3573_v59, %v3569_v3  ;;  %3630 = vrot.lane.b32.xlu2 %v8544_v26, %s6247_s26  ;;  %v8555_v12 = vsel %vm6358_vm2, %v1242_v19, 0  ;;  %v3554_v51 = vrot.slane %v3552_v47, 1  ;;  %v920_v19 = vpack.c.b16 %v839_v41, %v838_v16 }
 0x302   : > { %v3549_v59 = vrot.slane %v3547_v52, 1  ;;  %v3564_v43 = vshll.u32 %v8555_v12, 16  ;;  %v8568_v44 = vsel %vm6358_vm2, 0, %v1245_v8  ;;  %v578_v26 = vpack.c.bf16 %v450_v0, %v450_v0 }
 0x303   : > { %v8558_v36 = vsel %vm1664_vm3, %v3574_v4, %v3578_v9  ;;  %11302 = vst [vmem:[#allocation50_spill] sm:$0xff] %v8568_v44  ;;  %v452_v9 = vld [vmem:[%s6384_s25 + $0x2d0] sm:$0xff]  ;;  %v3557_v47 = vshrl.u32 %v8568_v44, 16  ;;  %v3559_v52 = vshll.u32 %v8568_v44, 16  ;;  %v1268_v6 = vshrl.u32 %v920_v19, 16 }
 0x304   : > { %11300 = vst [vmem:[#allocation14_spill] sm:$0xff] %v8558_v36  ;;  %3638 = vrot.lane.b32.xlu0 %v8558_v36, %s6247_s26  ;;  %v3550_v4 = vor.u32 %v3549_v59, %v3545_v29  ;;  %v1271_v13 = vshll.u32 %v920_v19, 16  ;;  %v579_v14 = vpack.c.bf16 %v451_v40, %v451_v40  ;;  %v834_v27 = vunpack.c.l.b16 %v578_v26 }
 0x305   : > { %v8561_v3 = vpop.permute.xlu1 %3042  ;;  %v3561_v8 = vrot.slane %v3559_v52, 1  ;;  %v580_v16 = vpack.c.bf16 %v452_v9, %v452_v9  ;;  %v1270_v0 = vrot.slane %v1268_v6, 7  ;;  %v581_v41 = vpack.c.bf16 %v453_v35, %v453_v35 }
 0x306   : > { %11301 = vst [vmem:[#allocation46_spill] sm:$0xff] %v8561_v3  ;;  %v8570_v33 = vpop.permute.xlu0 %3052  ;;  %v3566_v3 = vrot.slane %v3564_v43, 1  ;;  %v8577_v36 = vsel %vm1664_vm3, %v3550_v4, %v3554_v51  ;;  %v835_v29 = vunpack.c.l.b16 %v579_v14 }
 0x307   : > { %11303 = vst [vmem:[#allocation74_spill] sm:$0xff] %v8570_v33  ;;  %3634 = vrot.lane.b32.xlu1 %v8577_v36, %s6247_s26  ;;  %v3562_v59 = vor.u32 %v3561_v8, %v3557_v47  ;;  %v836_v33 = vunpack.c.l.b16 %v580_v16  ;;  %v1273_v43 = vor.u32 %v1271_v13, %v1270_v0  ;;  %v8585_v40 = vsel %vm6358_vm2, %v1270_v0, 0 }
 0x308   : > { %11304 = vst [vmem:[#allocation90_spill] sm:$0xff] %v8577_v36  ;;  %v8581_v32 = vpop.permute.xlu2 %3068  ;;  %v918_v51 = vpack.c.b16 %v835_v29, %v834_v27  ;;  %v837_v19 = vunpack.c.l.b16 %v581_v41  ;;  %v3612_v9 = vshll.u32 %v8585_v40, 16 }
 0x309   : > { %11305 = vst [vmem:[#allocation135_spill] sm:$0xff] %v8581_v32  ;;  %v8588_v26 = vsel %vm1664_vm3, %v3562_v59, %v3566_v3  ;;  %v8597_v14 = vsel %vm6358_vm2, 0, %v1273_v43 }
 0x30a   : > { %11306 = vst [vmem:[#allocation96_spill] sm:$0xff] %v8588_v26  ;;  %3636 = vrot.lane.b32.xlu2 %v8588_v26, %s6247_s26  ;;  %v1254_v13 = vshrl.u32 %v918_v51, 16  ;;  %v1257_v6 = vshll.u32 %v918_v51, 16  ;;  %v919_v35 = vpack.c.b16 %v837_v19, %v836_v33  ;;  %v3605_v27 = vshrl.u32 %v8597_v14, 16 }
 0x30b   : > { %v3607_v3 = vshll.u32 %v8597_v14, 16  ;;  %v3614_v29 = vrot.slane %v3612_v9, 1 }
 0x30c   : > { %v1256_v52 = vrot.slane %v1254_v13, 7  ;;  %v1261_v8 = vshrl.u32 %v919_v35, 16  ;;  %v1264_v16 = vshll.u32 %v919_v35, 16 }
 0x30d   : > { %v8591_v4 = vpop.permute.xlu1 %3048  ;;  %v3609_v0 = vrot.slane %v3607_v3, 1 }
 0x30e   : > { %11307 = vst [vmem:[#allocation124_spill] sm:$0xff] %v8591_v4  ;;  %v8599_v47 = vpop.permute.xlu0 %3058  ;;  %v1259_v41 = vor.u32 %v1257_v6, %v1256_v52  ;;  %v8605_v59 = vsel %vm6358_vm2, %v1256_v52, 0  ;;  %v1263_v43 = vrot.slane %v1261_v8, 7 }
 0x30f   : > { %v3610_v36 = vor.u32 %v3609_v0, %v3605_v27  ;;  %v3588_v33 = vshll.u32 %v8605_v59, 16 }
 0x310   : > { %v8608_v51 = vpop.permute.xlu2 %3074  ;;  %v8612_v19 = vsel %vm6358_vm2, 0, %v1259_v41  ;;  %v1266_v13 = vor.u32 %v1264_v16, %v1263_v43  ;;  %v8616_v35 = vsel %vm6358_vm2, %v1263_v43, 0  ;;  %v3682_v16 = vrot.slane %v8303_v45, 1 }
 0x311   : > { %11308 = vst [vmem:[#allocation23_spill] sm:$0xff] %v8608_v51  ;;  %v8619_v9 = vsel %vm1664_vm3, %v3610_v36, %v3614_v29  ;;  %v3581_v6 = vshrl.u32 %v8612_v19, 16  ;;  %v3583_v27 = vshll.u32 %v8612_v19, 16  ;;  %v3600_v8 = vshll.u32 %v8616_v35, 16 }
 0x312   : > { %11309 = vst [vmem:[#allocation13_spill] sm:$0xff] %v8612_v19  ;;  %3644 = vrot.lane.b32.xlu0 %v8619_v9, %s6247_s26  ;;  %v8629_v52 = vsel %vm6358_vm2, 0, %v1266_v13  ;;  %v3683_v36 = vrot.slane %v8297_v61, 1  ;;  %v3590_v41 = vrot.slane %v3588_v33, 1  ;;  %v3676_v33 = vrot.slane %v8326_v49, 1 }
 0x313   : > { %11310 = vst [vmem:[#allocation44_spill] sm:$0xff] %v8619_v9  ;;  %v3585_v29 = vrot.slane %v3583_v27, 1  ;;  %v3593_v43 = vshrl.u32 %v8629_v52, 16  ;;  %v3595_v26 = vshll.u32 %v8629_v52, 16  ;;  %v3602_v32 = vrot.slane %v3600_v8, 1 }
 0x314   : > { %v3680_v27 = vrot.slane %v8344_v18, 1 }
 0x315   : > { %v8623_v3 = vpop.permute.xlu1 %3054  ;;  %v3586_v4 = vor.u32 %v3585_v29, %v3581_v6  ;;  %v3597_v9 = vrot.slane %v3595_v26, 1  ;;  %v3677_v26 = vrot.slane %v8319_v5, 1  ;;  %v3121_v29 = vsel %vm2211_vm5, %v7304_v50, %v7951_v57 }
 0x316   : > { %11311 = vst [vmem:[#allocation59_spill] sm:$0xff] %v8623_v3  ;;  %v8634_v0 = vpop.permute.xlu0 %3064  ;;  %v8642_v3 = vsel %vm1921_vm4, %v3682_v16, %v3683_v36  ;;  %v3151_v18 = vsel %vm2244_vm6, %v3121_v29, %v8079_v11  ;;  %v3688_v57 = vrot.slane %v8439_v55, 1  ;;  %v3689_v11 = vrot.slane %v8430_v28, 1 }
 0x317   : > { %v8639_v13 = vsel %vm1664_vm3, %v3586_v4, %v3590_v41  ;;  %v3598_v2 = vor.u32 %v3597_v9, %v3593_v43  ;;  %11312 = vst [vmem:[#allocation64_spill] sm:$0xff] %v8642_v3  ;;  %v3679_v9 = vrot.slane %v8355_v53, 1  ;;  %v8666_v5 = vsel %vm1921_vm4, %v3676_v33, %v3677_v26 }
 0x318   : > { %v8644_v51 = vpop.permute.xlu2 %3080  ;;  %3640 = vrot.lane.b32.xlu1 %v8639_v13, %s6247_s26  ;;  %v3686_v41 = vrot.slane %v8410_v7, 1  ;;  %v3183_v33 = vsel %vm2277_vm7, %v3151_v18, %v8100_v37  ;;  %v3700_v26 = vrot.slane %v8456_v56, 1  ;;  %v3701_v7 = vrot.slane %v8450_v54, 1 }
 0x319   : > { %v8649_v61 = vsel %vm1664_vm3, %v3598_v2, %v3602_v32  ;;  %v3691_v2 = vrot.slane %v8383_v31, 1  ;;  %v3692_v32 = vrot.slane %v8370_v23, 1  ;;  %v8669_v8 = vsel %vm1921_vm4, %v3679_v9, %v3680_v27 }
 0x31a   : > { %3642 = vrot.lane.b32.xlu2 %v8649_v61, %s6247_s26  ;;  %3725 = vrot.lane.b32.xlu0 %v8642_v3, %s6248_s27  ;;  %11313 = vst [vmem:[#allocation88_spill] sm:$0xff] %v8669_v8  ;;  %v3685_v23 = vrot.slane %v8419_v17, 1  ;;  %v3215_v9 = vsel %vm2310_vm8, %v3183_v33, %v8194_v1  ;;  %v8711_v28 = vsel %vm1921_vm4, %v3688_v57, %v3689_v11  ;;  %v3695_v18 = vrot.slane %v8468_v15, 1 }
 0x31b   : > { %v8672_v16 = vsel %vm1921_vm4, %v3691_v2, %v3692_v32  ;;  %v3247_v37 = vsel %vm2343_vm9, %v3215_v9, %v8291_v20  ;;  %11315 = vst [vmem:[#allocation125_spill] sm:$0xff] %v8711_v28  ;;  %v8714_v54 = vsel %vm1921_vm4, %v3700_v26, %v3701_v7  ;;  %v3694_v20 = vrot.slane %v8476_v21, 1 }
 0x31c   : > { %v8704_v27 = vsel %vm1921_vm4, %v3685_v23, %v3686_v41  ;;  %v3279_v2 = vsel %vm2376_vm10, %v3247_v37, %v8360_v48  ;;  %v3697_v41 = vrot.slane %v8514_v63, 1  ;;  %v3698_v33 = vrot.slane %v8504_v62, 1 }
 0x31d   : > { %v8653_v6 = vpop.permute.xlu1 %3060  ;;  %11314 = vst [vmem:[#allocation116_spill] sm:$0xff] %v8704_v27  ;;  %v3310_v32 = vsel %vm2409_vm11, %v3279_v2, %v8548_v38  ;;  %v3709_v57 = vrot.slane %v8527_v39, 1  ;;  %v3710_v15 = vrot.slane %v8518_v42, 1  ;;  %v8735_v11 = vsel %vm1921_vm4, %v3694_v20, %v3695_v18 }
 0x31e   : > { %v8659_v4 = vpop.permute.xlu0 %3070  ;;  %v8738_v26 = vsel %vm1921_vm4, %v3697_v41, %v3698_v33  ;;  %v3703_v9 = vrot.slane %v8541_v24, 1  ;;  %v3704_v62 = vrot.slane %v8536_v46, 1  ;;  %v3706_v2 = vrot.slane %v8568_v44, 1 }
 0x31f   : > { %v8741_v7 = vsel %vm1921_vm4, %v3709_v57, %v3710_v15  ;;  %v3713_v41 = vrot.slane %v8605_v59, 1  ;;  %v3119_v57 = vsel %vm2211_vm5, %v11234_v10, %v7871_v34  ;;  %v3715_v15 = vrot.slane %v8629_v52, 1 }
 0x320   : > { %v8674_v36 = vpop.permute.xlu2 %3086  ;;  %3721 = vrot.lane.b32.xlu1 %v8666_v5, %s6248_s27  ;;  %11316 = vst [vmem:[#allocation131_spill] sm:$0xff] %v8741_v7  ;;  %v8758_v20 = vsel %vm1921_vm4, %v3703_v9, %v3704_v62  ;;  %v3716_v9 = vrot.slane %v8616_v35, 1  ;;  %v3149_v59 = vsel %vm2244_vm6, %v3119_v57, %v8051_v22  ;;  %v11320_v22 = vld [vmem:[#allocation93_spill] sm:$0xff] }
 0x321   : > { %11317 = vst [vmem:[#allocation136_spill] sm:$0xff] %v8758_v20  ;;  %v3181_v62 = vsel %vm2277_vm7, %v3149_v59, %v8144_v60  ;;  %v11321_v60 = vld [vmem:[#allocation106_spill] sm:$0xff]  ;;  %v11324_v59 = vld [vmem:[#allocation21_spill] sm:$0xff] }
 0x322   : > { %3723 = vrot.lane.b32.xlu2 %v8669_v8, %s6248_s27  ;;  %3731 = vrot.lane.b32.xlu0 %v8672_v16, %s6248_s27  ;;  %v8797_v34 = vsel %vm1921_vm4, %v3715_v15, %v3716_v9  ;;  %v3117_v35 = vsel %vm2211_vm5, %v11321_v60, %v11320_v22  ;;  %v11323_v15 = vld [vmem:[#allocation18_spill] sm:$0xff]  ;;  %v11327_v22 = vld [vmem:[#allocation45_spill] sm:$0xff] }
 0x325   : > { %v8685_v43 = vpop.permute.xlu1 %3066 }
 0x326   : > { %v8693_v50 = vpop.permute.xlu0 %3076 }
 0x328   : > { %v3093_v29 = vpop.permute.xlu2 %3092  ;;  %3727 = vrot.lane.b32.xlu1 %v8704_v27, %s6248_s27 }
 0x329   : > { %v3341_v1 = vsel %vm2442_vm12, %v3310_v32, %v3093_v29  ;;  %v3707_v32 = vrot.slane %v8555_v12, 1  ;;  %v3718_v29 = vrot.slane %v8597_v14, 1  ;;  %v3712_v12 = vrot.slane %v8612_v19, 1 }
 0x32a   : > { %v3371_v38 = vsel %vm2505_vm13, %v3341_v1, 0  ;;  %3729 = vrot.lane.b32.xlu2 %v8711_v28, %s6248_s27  ;;  %3737 = vrot.lane.b32.xlu0 %v8714_v54, %s6248_s27  ;;  %v3719_v1 = vrot.slane %v8585_v40, 1 }
 0x32b   : > { %3389 = vmatpush.bf16.xpose.msra.mxu2 %v3371_v38  ;;  %v8761_v46 = vsel %vm1921_vm4, %v3706_v2, %v3707_v32  ;;  %v8790_v2 = vsel %vm1921_vm4, %v3712_v12, %v3713_v41  ;;  %v3213_v32 = vsel %vm2310_vm8, %v3181_v62, %v8164_v58  ;;  %v11322_v12 = vld [vmem:[#allocation75_spill] sm:$0xff]  ;;  %v11325_v62 = vld [vmem:[#allocation137_spill] sm:$0xff] }
 0x32c   : > { %11318 = vst [vmem:[#allocation139_spill] sm:$0xff] %v8761_v46  ;;  %v8764_v18 = vsel %vm1921_vm4, %v3718_v29, %v3719_v1  ;;  %v3245_v29 = vsel %vm2343_vm9, %v3213_v32, %v8254_v30  ;;  %v3147_v30 = vsel %vm2244_vm6, %v3117_v35, %v11322_v12  ;;  %v3135_v32 = vsel %vm2211_vm5, %v11325_v62, %v11324_v59  ;;  %v11328_v35 = vld [vmem:[#allocation78_spill] sm:$0xff] }
 0x32d   : > { %v8721_v48 = vpop.permute.xlu1 %3072  ;;  %11319 = vst [vmem:[#allocation140_spill] sm:$0xff] %v8790_v2  ;;  %v3277_v10 = vsel %vm2376_vm10, %v3245_v29, %v8491_v25  ;;  %v3179_v9 = vsel %vm2277_vm7, %v3147_v30, %v11323_v15  ;;  %v11326_v29 = vld [vmem:[#allocation30_spill] sm:$0xff]  ;;  %v3165_v60 = vsel %vm2244_vm6, %v3135_v32, %v11327_v22  ;;  %v11330_v30 = vld [vmem:[#allocation25_spill] sm:$0xff]  ;;  %v11331_v15 = vld [vmem:[#allocation123_spill] sm:$0xff] }
 0x32e   : > { %v8728_v23 = vpop.permute.xlu0 %3082  ;;  %v3308_v1 = vsel %vm2409_vm11, %v3277_v10, %v8653_v6  ;;  %v3211_v10 = vsel %vm2310_vm8, %v3179_v9, %v11326_v29  ;;  %v11332_v9 = vld [vmem:[#allocation34_spill] sm:$0xff]  ;;  %v11333_v32 = vld [vmem:[#allocation8_spill] sm:$0xff] }
 0x32f   : > { %v3243_v12 = vsel %vm2343_vm9, %v3211_v10, %v11328_v35  ;;  %v11334_v29 = vld [vmem:[#allocation108_spill] sm:$0xff]  ;;  %v11335_v22 = vld [vmem:[#allocation114_spill] sm:$0xff] }
 0x330   : > { %3733 = vrot.lane.b32.xlu1 %v8735_v11, %s6248_s27  ;;  %v8768_v38 = vpop.permute.xlu2 %3098  ;;  %v3115_v10 = vsel %vm2211_vm5, %v11334_v29, %v11333_v32  ;;  %v11336_v35 = vld [vmem:[#allocation12_spill] sm:$0xff]  ;;  %v11341_v32 = vld [vmem:[#allocation39_spill] sm:$0xff]  ;;  %v11342_v29 = vld [vmem:[#allocation10_spill] sm:$0xff] }
 0x332   : > { %3735 = vrot.lane.b32.xlu2 %v8738_v26, %s6248_s27  ;;  %3743 = vrot.lane.b32.xlu0 %v8741_v7, %s6248_s27 }
 0x335   : > { %v8747_v37 = vpop.permute.xlu1 %3078 }
 0x336   : > { %v3089_v42 = vpop.permute.xlu0 %3088 }
 0x338   : > { %3739 = vrot.lane.b32.xlu1 %v8758_v20, %s6248_s27  ;;  %v3105_v25 = vpop.permute.xlu2 %3104 }
 0x33a   : > { %3741 = vrot.lane.b32.xlu2 %v8761_v46, %s6248_s27  ;;  %3749 = vrot.lane.b32.xlu0 %v8764_v18, %s6248_s27 }
 0x33d   : > { %v8772_v33 = vpop.permute.xlu1 %3084 }
 0x33e   : > { %v8778_v40 = vpop.permute.xlu0 %3094 }
 0x340   : > { %3745 = vrot.lane.b32.xlu1 %v8790_v2, %s6248_s27 }
 0x342   : > { %3747 = vrot.lane.b32.xlu2 %v8797_v34, %s6248_s27  ;;  %3756 = vrot.lane.b32.xlu0 %v8303_v45, %s6249_s28 }
 0x345   : > { %v3091_v58 = vpop.permute.xlu1 %3090 }
 0x346   : > { %v8814_v41 = vpop.permute.xlu0 %3100  ;;  %v3339_v57 = vsel %vm2442_vm12, %v3308_v1, %v3091_v58  ;;  %v11329_v1 = vld [vmem:[#allocation95_spill] sm:$0xff] }
 0x347   : > { %v3369_v6 = vsel %vm2505_vm13, %v3339_v57, 0  ;;  %v3197_v58 = vsel %vm2277_vm7, %v3165_v60, %v11329_v1  ;;  %v3275_v57 = vsel %vm2376_vm10, %v3243_v12, %v11330_v30  ;;  %v11337_v12 = vld [vmem:[#allocation134_spill] sm:$0xff]  ;;  %v11339_v30 = vld [vmem:[#allocation79_spill] sm:$0xff] }
 0x348   : > { %3390 = vmatpush.bf16.xpose.msra.mxu2 %v3369_v6  ;;  %v3229_v45 = vsel %vm2310_vm8, %v3197_v58, %v11331_v15  ;;  %v3306_v59 = vsel %vm2409_vm11, %v3275_v57, %v8599_v47  ;;  %3752 = vrot.lane.b32.xlu1 %v8326_v49, %s6249_s28  ;;  %v3133_v1 = vsel %vm2211_vm5, %v11337_v12, %v11336_v35  ;;  %v11338_v47 = vld [vmem:[#allocation51_spill] sm:$0xff]  ;;  %v11344_v12 = vld [vmem:[#allocation68_spill] sm:$0xff] }
 0x349   : > { %v3261_v6 = vsel %vm2343_vm9, %v3229_v45, %v11332_v9  ;;  %v3337_v62 = vsel %vm2442_vm12, %v3306_v59, %v3089_v42  ;;  %v3145_v58 = vsel %vm2244_vm6, %v3115_v10, %v11338_v47  ;;  %v11340_v15 = vld [vmem:[#allocation99_spill] sm:$0xff]  ;;  %v11345_v47 = vld [vmem:[#allocation17_spill] sm:$0xff] }
 0x34a   : > { %v3293_v60 = vsel %vm2376_vm10, %v3261_v6, %v11335_v22  ;;  %3754 = vrot.lane.b32.xlu2 %v8355_v53, %s6249_s28  ;;  %3762 = vrot.lane.b32.xlu0 %v8383_v31, %s6249_s28  ;;  %v3177_v57 = vsel %vm2277_vm7, %v3145_v58, %v11339_v30  ;;  %v3163_v59 = vsel %vm2244_vm6, %v3133_v1, %v11340_v15  ;;  %v3367_v9 = vsel %vm2505_vm13, %v3337_v62, 0  ;;  %v8868_v22 = vpop.permute.xlu2 %3618  ;;  %v11346_v58 = vld [vmem:[#allocation66_spill] sm:$0xff] }
 0x34b   : > { %v3324_v45 = vsel %vm2409_vm11, %v3293_v60, %v8693_v50  ;;  %v3195_v50 = vsel %vm2277_vm7, %v3163_v59, %v11341_v32  ;;  %v3209_v10 = vsel %vm2310_vm8, %v3177_v57, %v11342_v29  ;;  %11343 = vst [vmem:[#allocation103_spill] sm:$0xff] %v8868_v22  ;;  %v11348_v57 = vld [vmem:[#allocation91_spill] sm:$0xff]  ;;  %v11349_v59 = vld [vmem:[#allocation76_spill] sm:$0xff]  ;;  %v11351_v29 = vld [vmem:[#allocation61_spill] sm:$0xff] }
 0x34c   : > { %v3227_v1 = vsel %vm2310_vm8, %v3195_v50, %v11344_v12  ;;  %v3241_v62 = vsel %vm2343_vm9, %v3209_v10, %v11345_v47  ;;  %v11352_v10 = vld [vmem:[#allocation92_spill] sm:$0xff] }
 0x34d   : > { %v8870_v60 = vpop.permute.xlu1 %3096  ;;  %v11354_v47 = vld [vmem:[#allocation120_spill] sm:$0xff] }
 0x34e   : > { %v3107_v42 = vpop.permute.xlu0 %3106 }
 0x34f   : > { %v3355_v6 = vsel %vm2442_vm12, %v3324_v45, %v3107_v42  ;;  %v3273_v45 = vsel %vm2376_vm10, %v3241_v62, %v11346_v58  ;;  %v11347_v42 = vld [vmem:[#allocation111_spill] sm:$0xff]  ;;  %v11355_v58 = vld [vmem:[#allocation41_spill] sm:$0xff] }
 0x350   : > { %3391 = vmatpush.bf16.xpose.msra.mxu2 %v3367_v9  ;;  %v3385_v35 = vsel %vm2505_vm13, %v3355_v6, 0  ;;  %v3259_v30 = vsel %vm2343_vm9, %v3227_v1, %v11347_v42  ;;  %v3304_v9 = vsel %vm2409_vm11, %v3273_v45, %v11349_v59  ;;  %v11350_v6 = vld [vmem:[#allocation23_spill] sm:$0xff]  ;;  %3758 = vrot.lane.b32.xlu1 %v8419_v17, %s6249_s28  ;;  %v457_v42 = vld [vmem:[%s6384_s25 + $0x2f8] sm:$0xff] }
 0x351   : > { %3409 = vmatpush.bf16.xpose.msra.mxu3 %v3385_v35  ;;  %v3291_v15 = vsel %vm2376_vm10, %v3259_v30, %v11348_v57  ;;  %v3335_v50 = vsel %vm2442_vm12, %v3304_v9, %v8674_v36  ;;  %v3113_v35 = vsel %vm2211_vm5, %v11352_v10, %v11351_v29  ;;  %v11353_v1 = vld [vmem:[#allocation71_spill] sm:$0xff]  ;;  %v456_v36 = vld [vmem:[%s6384_s25 + $0x2f0] sm:$0xff]  ;;  %v11358_v9 = vld [vmem:[#allocation70_spill] sm:$0xff] }
 0x352   : > { %v3322_v32 = vsel %vm2409_vm11, %v3291_v15, %v11350_v6  ;;  %v3131_v62 = vsel %vm2211_vm5, %v11354_v47, %v11353_v1  ;;  %v3143_v45 = vsel %vm2244_vm6, %v3113_v35, %v11355_v58  ;;  %3760 = vrot.lane.b32.xlu2 %v8439_v55, %s6249_s28  ;;  %3768 = vrot.lane.b32.xlu0 %v8456_v56, %s6249_s28  ;;  %v11356_v30 = vld [vmem:[#allocation84_spill] sm:$0xff]  ;;  %v11357_v15 = vld [vmem:[#allocation49_spill] sm:$0xff]  ;;  %v3365_v59 = vsel %vm2505_vm13, %v3335_v50, 0  ;;  %v11360_v35 = vld [vmem:[#allocation35_spill] sm:$0xff] }
 0x353   : > { %v3353_v12 = vsel %vm2442_vm12, %v3322_v32, %v3105_v25  ;;  %v3161_v57 = vsel %vm2244_vm6, %v3131_v62, %v11356_v30  ;;  %v3175_v25 = vsel %vm2277_vm7, %v3143_v45, %v11357_v15  ;;  %v11359_v32 = vld [vmem:[#allocation104_spill] sm:$0xff]  ;;  %v584_v58 = vpack.c.bf16 %v456_v36, %v456_v36  ;;  %v11362_v30 = vld [vmem:[#allocation43_spill] sm:$0xff]  ;;  %v11363_v15 = vld [vmem:[#allocation122_spill] sm:$0xff] }
 0x354   : > { %v3207_v6 = vsel %vm2310_vm8, %v3175_v25, %v11358_v9  ;;  %v3193_v29 = vsel %vm2277_vm7, %v3161_v57, %v11359_v32  ;;  %v3383_v10 = vsel %vm2505_vm13, %v3353_v12, 0  ;;  %v11361_v47 = vld [vmem:[#allocation112_spill] sm:$0xff]  ;;  %v585_v45 = vpack.c.bf16 %v457_v42, %v457_v42  ;;  %v8924_v9 = vpop.permute.xlu2 %3624  ;;  %v11365_v32 = vld [vmem:[#allocation59_spill] sm:$0xff] }
 0x355   : > { %v3225_v1 = vsel %vm2310_vm8, %v3193_v29, %v11360_v35  ;;  %v3239_v62 = vsel %vm2343_vm9, %v3207_v6, %v11361_v47  ;;  %v3103_v57 = vpop.permute.xlu1 %3102  ;;  %v11366_v42 = vld [vmem:[#allocation87_spill] sm:$0xff]  ;;  %v840_v47 = vunpack.c.l.b16 %v584_v58 }
 0x356   : > { %v3257_v50 = vsel %vm2343_vm9, %v3225_v1, %v11362_v30  ;;  %v3271_v25 = vsel %vm2376_vm10, %v3239_v62, %v11363_v15  ;;  %v841_v62 = vunpack.c.l.b16 %v585_v45  ;;  %v11368_v30 = vld [vmem:[#allocation85_spill] sm:$0xff] }
 0x357   : > { %v3302_v29 = vsel %vm2409_vm11, %v3271_v25, %v11365_v32  ;;  %v11370_v25 = vld [vmem:[#allocation55_spill] sm:$0xff] }
 0x358   : > { %3392 = vmatpush.bf16.xpose.msra.mxu2 %v3365_v59  ;;  %v11364_v59 = vld [vmem:[#allocation46_spill] sm:$0xff]  ;;  %3764 = vrot.lane.b32.xlu1 %v8476_v21, %s6249_s28  ;;  %v3333_v36 = vsel %vm2442_vm12, %v3302_v29, %v8772_v33  ;;  %v11371_v33 = vld [vmem:[#allocation36_spill] sm:$0xff]  ;;  %v11374_v29 = vld [vmem:[#allocation19_spill] sm:$0xff] }
 0x359   : > { %3410 = vmatpush.bf16.xpose.msra.mxu3 %v3383_v10  ;;  %v3289_v12 = vsel %vm2376_vm10, %v3257_v50, %v11364_v59  ;;  %v11367_v10 = vld [vmem:[#allocation98_spill] sm:$0xff]  ;;  %v11369_v50 = vld [vmem:[#allocation128_spill] sm:$0xff]  ;;  %v3363_v45 = vsel %vm2505_vm13, %v3333_v36, 0 }
 0x35a   : > { %v3320_v6 = vsel %vm2409_vm11, %v3289_v12, %v8721_v48  ;;  %v3111_v35 = vsel %vm2211_vm5, %v11367_v10, %v11366_v42  ;;  %v3129_v15 = vsel %vm2211_vm5, %v11369_v50, %v11368_v30  ;;  %3766 = vrot.lane.b32.xlu2 %v8514_v63, %s6249_s28  ;;  %3774 = vrot.lane.b32.xlu0 %v8527_v39, %s6249_s28  ;;  %v11372_v12 = vld [vmem:[#allocation26_spill] sm:$0xff]  ;;  %v8958_v42 = vpop.permute.xlu0 %3620  ;;  %v11377_v50 = vld [vmem:[#allocation73_spill] sm:$0xff]  ;;  %v11378_v36 = vld [vmem:[#allocation24_spill] sm:$0xff] }
 0x35b   : > { %v3351_v1 = vsel %vm2442_vm12, %v3320_v6, %v3103_v57  ;;  %v3141_v48 = vsel %vm2244_vm6, %v3111_v35, %v11370_v25  ;;  %v3159_v59 = vsel %vm2244_vm6, %v3129_v15, %v11371_v33  ;;  %v11373_v57 = vld [vmem:[#allocation58_spill] sm:$0xff]  ;;  %11375 = vst [vmem:[#allocation93_spill] sm:$0xff] %v8958_v42  ;;  %v11376_v35 = vld [vmem:[#allocation52_spill] sm:$0xff]  ;;  %v921_v25 = vpack.c.b16 %v841_v62, %v840_v47 }
 0x35c   : > { %v3173_v58 = vsel %vm2277_vm7, %v3141_v48, %v11372_v12  ;;  %v3191_v32 = vsel %vm2277_vm7, %v3159_v59, %v11373_v57  ;;  %v3381_v10 = vsel %vm2505_vm13, %v3351_v1, 0  ;;  %v11379_v33 = vld [vmem:[#allocation86_spill] sm:$0xff]  ;;  %v11380_v12 = vld [vmem:[#allocation37_spill] sm:$0xff]  ;;  %v11444_v42 = vld [vmem:[#allocation44_spill] sm:$0xff] }
 0x35d   : > { %v3205_v6 = vsel %vm2310_vm8, %v3173_v58, %v11374_v29  ;;  %v3223_v15 = vsel %vm2310_vm8, %v3191_v32, %v11377_v50  ;;  %v8977_v32 = vpop.permute.xlu2 %3630  ;;  %v11383_v62 = vld [vmem:[#allocation110_spill] sm:$0xff]  ;;  %v11384_v29 = vld [vmem:[#allocation97_spill] sm:$0xff]  ;;  %v11386_v50 = vld [vmem:[#allocation127_spill] sm:$0xff] }
 0x35e   : > { %v3237_v30 = vsel %vm2343_vm9, %v3205_v6, %v11376_v35  ;;  %v3255_v48 = vsel %vm2343_vm9, %v3223_v15, %v11378_v36  ;;  %11382 = vst [vmem:[#allocation106_spill] sm:$0xff] %v8977_v32  ;;  %v3109_v6 = vsel %vm2211_vm5, %v11384_v29, %v11383_v62  ;;  %v11387_v15 = vld [vmem:[#allocation20_spill] sm:$0xff]  ;;  %v6179_v32 = vld [vmem:[%s10781_s2 + $0x8] sm:$0xff] }
 0x35f   : > { %v3269_v59 = vsel %vm2376_vm10, %v3237_v30, %v11379_v33  ;;  %v3287_v58 = vsel %vm2376_vm10, %v3255_v48, %v11380_v12  ;;  %v11385_v30 = vld [vmem:[#allocation105_spill] sm:$0xff]  ;;  %v3139_v36 = vsel %vm2244_vm6, %v3109_v6, %v11387_v15  ;;  %v11389_v48 = vld [vmem:[#allocation56_spill] sm:$0xff] }
 0x360   : > { %3393 = vmatpush.bf16.xpose.msra.mxu2 %v3363_v45  ;;  %v11381_v45 = vld [vmem:[#allocation74_spill] sm:$0xff]  ;;  %v3318_v57 = vsel %vm2409_vm11, %v3287_v58, %v8659_v4  ;;  %3770 = vrot.lane.b32.xlu1 %v8541_v24, %s6249_s28  ;;  %v3127_v4 = vsel %vm2211_vm5, %v11386_v50, %v11385_v30  ;;  %v3171_v33 = vsel %vm2277_vm7, %v3139_v36, %v11389_v48  ;;  %v11391_v58 = vld [vmem:[#allocation9_spill] sm:$0xff]  ;;  %v11393_v29 = vld [vmem:[#allocation40_spill] sm:$0xff] }
 0x361   : > { %3411 = vmatpush.bf16.xpose.msra.mxu3 %v3381_v10  ;;  %v3300_v1 = vsel %vm2409_vm11, %v3269_v59, %v11381_v45  ;;  %v1275_v10 = vshrl.u32 %v921_v25, 16  ;;  %v3349_v35 = vsel %vm2442_vm12, %v3318_v57, %v8814_v41  ;;  %v11390_v59 = vld [vmem:[#allocation89_spill] sm:$0xff]  ;;  %v11394_v30 = vld [vmem:[#allocation7_spill] sm:$0xff] }
 0x362   : > { %v3331_v47 = vsel %vm2442_vm12, %v3300_v1, %v8728_v23  ;;  %3772 = vrot.lane.b32.xlu2 %v8568_v44, %s6249_s28  ;;  %3780 = vrot.lane.b32.xlu0 %v8597_v14, %s6249_s28  ;;  %v8995_v23 = vpop.permute.xlu1 %3616  ;;  %v3157_v41 = vsel %vm2244_vm6, %v3127_v4, %v11390_v59  ;;  %v11392_v1 = vld [vmem:[#allocation113_spill] sm:$0xff]  ;;  %v3379_v62 = vsel %vm2505_vm13, %v3349_v35, 0  ;;  %v1278_v4 = vshll.u32 %v921_v25, 16 }
 0x363   : > { %11388 = vst [vmem:[#allocation75_spill] sm:$0xff] %v8995_v23  ;;  %v3361_v12 = vsel %vm2505_vm13, %v3331_v47, 0  ;;  %v3189_v45 = vsel %vm2277_vm7, %v3157_v41, %v11391_v58  ;;  %v3203_v57 = vsel %vm2310_vm8, %v3171_v33, %v11392_v1  ;;  %v9011_v15 = vrot.slane %v1275_v10, 7  ;;  %v11395_v47 = vld [vmem:[#allocation48_spill] sm:$0xff]  ;;  %v11396_v48 = vld [vmem:[#allocation81_spill] sm:$0xff]  ;;  %v9017_v33 = vpop.permute.xlu0 %3626 }
 0x364   : > { %v3221_v6 = vsel %vm2310_vm8, %v3189_v45, %v11393_v29  ;;  %v3235_v50 = vsel %vm2343_vm9, %v3203_v57, %v11394_v30  ;;  %v11397_v41 = vld [vmem:[#allocation129_spill] sm:$0xff]  ;;  %v11399_v45 = vld [vmem:[#allocation135_spill] sm:$0xff] }
 0x365   : > { %v3267_v36 = vsel %vm2376_vm10, %v3235_v50, %v11395_v47  ;;  %v3253_v59 = vsel %vm2343_vm9, %v3221_v6, %v11396_v48  ;;  %v1280_v1 = vor.u32 %v1278_v4, %v9011_v15  ;;  %v11401_v29 = vld [vmem:[#allocation109_spill] sm:$0xff]  ;;  %v11402_v30 = vld [vmem:[#allocation15_spill] sm:$0xff]  ;;  %v9039_v50 = vpop.permute.xlu2 %3636 }
 0x366   : > { %v3285_v35 = vsel %vm2376_vm10, %v3253_v59, %v11397_v41  ;;  %11403 = vst [vmem:[#allocation18_spill] sm:$0xff] %v9039_v50  ;;  %v11404_v47 = vld [vmem:[#allocation69_spill] sm:$0xff]  ;;  %v11406_v4 = vld [vmem:[#allocation119_spill] sm:$0xff] }
 0x367   : > { %v3316_v10 = vsel %vm2409_vm11, %v3285_v35, %v11399_v45  ;;  %v11407_v59 = vld [vmem:[#allocation65_spill] sm:$0xff]  ;;  %v11408_v35 = vld [vmem:[#allocation82_spill] sm:$0xff] }
 0x368   : > { %3394 = vmatpush.bf16.xpose.msra.mxu2 %v3361_v12  ;;  %v11398_v12 = vld [vmem:[#allocation33_spill] sm:$0xff]  ;;  %3776 = vrot.lane.b32.xlu1 %v8612_v19, %s6249_s28  ;;  %v3347_v57 = vsel %vm2442_vm12, %v3316_v10, %v8768_v38  ;;  %v11410_v10 = vld [vmem:[#allocation27_spill] sm:$0xff] }
 0x369   : > { %3412 = vmatpush.bf16.xpose.msra.mxu3 %v3379_v62  ;;  %v3298_v58 = vsel %vm2409_vm11, %v3267_v36, %v11398_v12  ;;  %v11400_v62 = vld [vmem:[#allocation32_spill] sm:$0xff]  ;;  %v3377_v45 = vsel %vm2505_vm13, %v3347_v57, 0 }
 0x36a   : > { %v3329_v25 = vsel %vm2442_vm12, %v3298_v58, %v8644_v51  ;;  %v3125_v6 = vsel %vm2211_vm5, %v11401_v29, %v11400_v62  ;;  %3778 = vrot.lane.b32.xlu2 %v8629_v52, %s6249_s28  ;;  %3798 = vrot.lane.b32.xlu0 %v11402_v30, %s6250_s29  ;;  %v11405_v36 = vld [vmem:[#allocation28_spill] sm:$0xff]  ;;  %v9051_v58 = vpop.permute.xlu1 %3622  ;;  %v11411_v29 = vld [vmem:[#allocation83_spill] sm:$0xff] }
 0x36b   : > { %v3155_v51 = vsel %vm2244_vm6, %v3125_v6, %v11404_v47  ;;  %v3169_v48 = vsel %vm2277_vm7, %v11406_v4, %v11405_v36  ;;  %v3359_v38 = vsel %vm2505_vm13, %v3329_v25, 0  ;;  %11409 = vst [vmem:[#allocation21_spill] sm:$0xff] %v9051_v58  ;;  %v9060_v25 = vsel %vm6358_vm2, 0, %v1280_v1  ;;  %v11413_v36 = vld [vmem:[#allocation38_spill] sm:$0xff]  ;;  %v9074_v1 = vpop.permute.xlu0 %3632 }
 0x36c   : > { %v3201_v41 = vsel %vm2310_vm8, %v3169_v48, %v11407_v59  ;;  %v3187_v12 = vsel %vm2277_vm7, %v3155_v51, %v11408_v35  ;;  %v11414_v51 = vld [vmem:[#allocation118_spill] sm:$0xff]  ;;  %v11416_v35 = vld [vmem:[#allocation124_spill] sm:$0xff]  ;;  %11417 = vst [vmem:[#allocation137_spill] sm:$0xff] %v9074_v1  ;;  %v1639_v1 = vsel %vm6358_vm2, %v9011_v15, 0  ;;  %v3785_v49 = vshrl.u32 %v9060_v25, 16 }
 0x36d   : > { %v3219_v62 = vsel %vm2310_vm8, %v3187_v12, %v11410_v10  ;;  %v3233_v6 = vsel %vm2343_vm9, %v3201_v41, %v11411_v29  ;;  %v11419_v29 = vld [vmem:[#allocation115_spill] sm:$0xff] }
 0x36e   : > { %v3251_v48 = vsel %vm2343_vm9, %v3219_v62, %v11413_v36  ;;  %v3265_v59 = vsel %vm2376_vm10, %v3233_v6, %v11414_v51  ;;  %v11418_v62 = vld [vmem:[#allocation42_spill] sm:$0xff]  ;;  %v11420_v36 = vld [vmem:[#allocation47_spill] sm:$0xff] }
 0x36f   : > { %v3296_v12 = vsel %vm2409_vm11, %v3265_v59, %v11416_v35  ;;  %v3123_v6 = vsel %vm2211_vm5, %v11419_v29, %v11418_v62  ;;  %v11424_v35 = vld [vmem:[#allocation63_spill] sm:$0xff] }
 0x370   : > { %3395 = vmatpush.bf16.xpose.msra.mxu2 %v3359_v38  ;;  %v11415_v38 = vld [vmem:[#allocation130_spill] sm:$0xff]  ;;  %3782 = vrot.lane.b32.xlu1 %v9060_v25, %s6249_s28 }
 0x371   : > { %3413 = vmatpush.bf16.xpose.msra.mxu3 %v3377_v45  ;;  %v3283_v57 = vsel %vm2376_vm10, %v3251_v48, %v11415_v38  ;;  %v3327_v45 = vsel %vm2442_vm12, %v3296_v12, %v8747_v37  ;;  %v11422_v48 = vld [vmem:[#allocation29_spill] sm:$0xff]  ;;  %v11423_v38 = vld [vmem:[#allocation54_spill] sm:$0xff] }
 0x372   : > { %v3314_v41 = vsel %vm2409_vm11, %v3283_v57, %v8685_v43  ;;  %3796 = vrot.lane.b32.xlu2 %v11420_v36, %s6250_s29  ;;  %v11421_v43 = vld [vmem:[#allocation126_spill] sm:$0xff]  ;;  %v3153_v51 = vsel %vm2244_vm6, %v3123_v6, %v11422_v48  ;;  %v3357_v59 = vsel %vm2505_vm13, %v3327_v45, 0  ;;  %v9099_v29 = vpop.permute.xlu1 %3628  ;;  %v11426_v6 = vld [vmem:[#allocation121_spill] sm:$0xff] }
 0x373   : > { %v3345_v10 = vsel %vm2442_vm12, %v3314_v41, %v8870_v60  ;;  %3804 = vrot.lane.b32.xlu0 %v11421_v43, %s6250_s29  ;;  %v3185_v37 = vsel %vm2277_vm7, %v3153_v51, %v11423_v38  ;;  %v11425_v41 = vld [vmem:[#allocation100_spill] sm:$0xff]  ;;  %v11427_v48 = vld [vmem:[#allocation102_spill] sm:$0xff]  ;;  %v11428_v51 = vld [vmem:[#allocation101_spill] sm:$0xff] }
 0x374   : > { %v9092_v57 = vpop.permute.xlu2 %3642  ;;  %v3375_v60 = vsel %vm2505_vm13, %v3345_v10, 0  ;;  %v3217_v12 = vsel %vm2310_vm8, %v3185_v37, %v11424_v35  ;;  %v6178_v37 = vld [vmem:[%s10781_s2] sm:$0xff] }
 0x375   : > { %v3249_v62 = vsel %vm2343_vm9, %v3217_v12, %v11425_v41  ;;  %v11434_v12 = vld [vmem:[#allocation60_spill] sm:$0xff] }
 0x376   : > { %v3281_v45 = vsel %vm2376_vm10, %v3249_v62, %v11426_v6  ;;  %v9113_v38 = vpop.permute.xlu0 %3638  ;;  %v11435_v41 = vld [vmem:[#allocation96_spill] sm:$0xff] }
 0x377   : > { %v3312_v36 = vsel %vm2409_vm11, %v3281_v45, %v8634_v0  ;;  %11430 = vst [vmem:[#allocation30_spill] sm:$0xff] %v9113_v38  ;;  %v11436_v45 = vld [vmem:[#allocation16_spill] sm:$0xff] }
 0x378   : > { %3396 = vmatpush.bf16.xpose.msra.mxu2 %v3357_v59  ;;  %3800 = vrot.lane.b32.xlu1 %v11427_v48, %s6250_s29  ;;  %v3343_v10 = vsel %vm2442_vm12, %v3312_v36, %v8778_v40  ;;  %v11429_v59 = vld [vmem:[#allocation31_spill] sm:$0xff]  ;;  %v11437_v36 = vld [vmem:[#allocation90_spill] sm:$0xff] }
 0x379   : > { %3414 = vmatpush.bf16.xpose.msra.mxu3 %v3375_v60  ;;  %v3373_v60 = vsel %vm2505_vm13, %v3343_v10, 0  ;;  %v11432_v40 = vld [vmem:[#allocation67_spill] sm:$0xff] }
 0x37a   : > { %3802 = vrot.lane.b32.xlu2 %v11428_v51, %s6250_s29  ;;  %v9124_v35 = vpop.permute.xlu1 %3634 }
 0x37b   : > { %3810 = vrot.lane.b32.xlu0 %v11429_v59, %s6250_s29  ;;  %11433 = vst [vmem:[#allocation78_spill] sm:$0xff] %v9124_v35  ;;  %v3792_v35 = vshll.u32 %v1639_v1, 16 }
 0x37c   : > { %v9119_v0 = vpop.permute.xlu2 %3723 }
 0x37d   : > { %11431 = vst [vmem:[#allocation45_spill] sm:$0xff] %v9119_v0  ;;  %v11441_v0 = vld [vmem:[#allocation14_spill] sm:$0xff]  ;;  %v3794_v50 = vrot.slane %v3792_v35, 1 }
 0x37f   : > { %5837 = vmatmul.msk.bf16.vlgmr.msra.gmra.mxu2 %vm2505_vm13, %v6178_v37 }
 0x380   : > { %3806 = vrot.lane.b32.xlu1 %v11432_v40, %s6250_s29 }
 0x381   : > { %3415 = vmatpush.bf16.xpose.msra.mxu3 %v3373_v60  ;;  %v3787_v60 = vshll.u32 %v9060_v25, 16 }
 0x382   : > { %3808 = vrot.lane.b32.xlu2 %v11434_v12, %s6250_s29 }
 0x383   : > { %3816 = vrot.lane.b32.xlu0 %v11435_v41, %s6250_s29  ;;  %v3789_v23 = vrot.slane %v3787_v60, 1 }
 0x384   : > { %v9130_v62 = vpop.permute.xlu2 %3729  ;;  %v9132_v6 = vpop.permute.xlu0 %3644 }
 0x385   : > { %v3790_v22 = vor.u32 %v3789_v23, %v3785_v49 }
 0x387   : > { %v9170_v60 = vsel %vm1664_vm3, %v3790_v22, %v3794_v50 }
 0x388   : > { %5839 = vmatmul.msk.bf16.vlgmr.msra.gmra.mxu3 %vm2505_vm13, %v6178_v37  ;;  %3812 = vrot.lane.b32.xlu1 %v11436_v45, %s6250_s29 }
 0x38a   : > { %3814 = vrot.lane.b32.xlu2 %v11437_v36, %s6250_s29  ;;  %v9141_v10 = vpop.permute.xlu1 %3640 }
 0x38b   : > { %3822 = vrot.lane.b32.xlu0 %v8649_v61, %s6250_s29  ;;  %11438 = vst [vmem:[#allocation95_spill] sm:$0xff] %v9141_v10 }
 0x38c   : > { %v9148_v37 = vpop.permute.xlu2 %3735  ;;  %v9150_v4 = vpop.permute.xlu0 %3725 }
 0x38d   : > { %11439 = vst [vmem:[#allocation25_spill] sm:$0xff] %v9148_v37 }
 0x38e   : > { %11440 = vst [vmem:[#allocation123_spill] sm:$0xff] %v9150_v4 }
 0x38f   : > { %5838 = vmatmul.msk.bf16.gmra.mxu2 %vm2505_vm13, %v6179_v32 }
 0x390   : > { %3818 = vrot.lane.b32.xlu1 %v11441_v0, %s6250_s29 }
 0x392   : > { %3820 = vrot.lane.b32.xlu2 %v8639_v13, %s6250_s29  ;;  %v9162_v37 = vpop.permute.xlu1 %3721 }
 0x393   : > { %3832 = vrot.lane.b32.xlu0 %v8666_v5, %s6251_s14  ;;  %11442 = vst [vmem:[#allocation34_spill] sm:$0xff] %v9162_v37 }
 0x394   : > { %v9164_v4 = vpop.permute.xlu2 %3741  ;;  %v9166_v15 = vpop.permute.xlu0 %3731 }
 0x395   : > { %11443 = vst [vmem:[#allocation8_spill] sm:$0xff] %v9164_v4 }
 0x398   : > { %5840 = vmatmul.msk.bf16.gmra.mxu3 %vm2505_vm13, %v6179_v32  ;;  %3824 = vrot.lane.b32.xlu1 %v11444_v42, %s6250_s29 }
 0x39a   : > { %3826 = vrot.lane.b32.xlu2 %v9170_v60, %s6250_s29  ;;  %v9178_v49 = vpop.permute.xlu1 %3727 }
 0x39b   : > { %3838 = vrot.lane.b32.xlu0 %v8704_v27, %s6251_s14  ;;  %11445 = vst [vmem:[#allocation108_spill] sm:$0xff] %v9178_v49 }
 0x39c   : > { %v9180_v5 = vpop.permute.xlu2 %3747  ;;  %v9182_v23 = vpop.permute.xlu0 %3737 }
 0x39d   : > { %11446 = vst [vmem:[#allocation114_spill] sm:$0xff] %v9182_v23 }
 0x3a0   : > { %3834 = vrot.lane.b32.xlu1 %v8669_v8, %s6251_s14  ;;  %v3829_v8 = vrot.slane %v9060_v25, 1 }
 0x3a2   : > { %3836 = vrot.lane.b32.xlu2 %v8642_v3, %s6251_s14  ;;  %v9190_v22 = vpop.permute.xlu1 %3733 }
 0x3a3   : > { %3844 = vrot.lane.b32.xlu0 %v8735_v11, %s6251_s14 }
 0x3a4   : > { %v9192_v32 = vpop.permute.xlu2 %3754  ;;  %v9194_v50 = vpop.permute.xlu0 %3743 }
 0x3a5   : > { %11447 = vst [vmem:[#allocation12_spill] sm:$0xff] %v9192_v32 }
 0x3a6   : > { %11448 = vst [vmem:[#allocation134_spill] sm:$0xff] %v9194_v50 }
 0x3a8   : > { %3840 = vrot.lane.b32.xlu1 %v8711_v28, %s6251_s14 }
 0x3aa   : > { %3842 = vrot.lane.b32.xlu2 %v8672_v16, %s6251_s14  ;;  %v9202_v35 = vpop.permute.xlu1 %3739 }
 0x3ab   : > { %3850 = vrot.lane.b32.xlu0 %v8758_v20, %s6251_s14  ;;  %11449 = vst [vmem:[#allocation51_spill] sm:$0xff] %v9202_v35  ;;  %v3830_v20 = vrot.slane %v1639_v1, 1 }
 0x3ac   : > { %v9204_v23 = vpop.permute.xlu2 %3760  ;;  %v9206_v37 = vpop.permute.xlu0 %3749 }
 0x3ad   : > { %11450 = vst [vmem:[#allocation79_spill] sm:$0xff] %v9204_v23  ;;  %v9222_v3 = vsel %vm1921_vm4, %v3829_v8, %v3830_v20 }
 0x3b0   : > { %3846 = vrot.lane.b32.xlu1 %v8738_v26, %s6251_s14 }
 0x3b2   : > { %3848 = vrot.lane.b32.xlu2 %v8714_v54, %s6251_s14  ;;  %v9214_v32 = vpop.permute.xlu1 %3745 }
 0x3b3   : > { %3856 = vrot.lane.b32.xlu0 %v8790_v2, %s6251_s14  ;;  %11451 = vst [vmem:[#allocation99_spill] sm:$0xff] %v9214_v32  ;;  %v488_v32 = vld [vmem:[%s6384_s25 + $0x3f0] sm:$0xff] }
 0x3b4   : > { %v9217_v4 = vpop.permute.xlu2 %3766  ;;  %v9219_v35 = vpop.permute.xlu0 %3756 }
 0x3b5   : > { %11452 = vst [vmem:[#allocation39_spill] sm:$0xff] %v9219_v35 }
 0x3b8   : > { %3852 = vrot.lane.b32.xlu1 %v8761_v46, %s6251_s14 }
 0x3ba   : > { %3854 = vrot.lane.b32.xlu2 %v8741_v7, %s6251_s14  ;;  %v9230_v50 = vpop.permute.xlu1 %3752 }
 0x3bb   : > { %3862 = vrot.lane.b32.xlu0 %v9222_v3, %s6251_s14  ;;  %11453 = vst [vmem:[#allocation10_spill] sm:$0xff] %v9230_v50  ;;  %v11458_v50 = vld [vmem:[#allocation53_spill] sm:$0xff] }
 0x3bc   : > { %v9232_v38 = vpop.permute.xlu2 %3772  ;;  %v9234_v1 = vpop.permute.xlu0 %3762 }
 0x3bd   : > { %11454 = vst [vmem:[#allocation68_spill] sm:$0xff] %v9232_v38 }
 0x3c0   : > { %3858 = vrot.lane.b32.xlu1 %v8797_v34, %s6251_s14 }
 0x3c2   : > { %3860 = vrot.lane.b32.xlu2 %v8764_v18, %s6251_s14  ;;  %v9242_v8 = vpop.permute.xlu1 %3758 }
 0x3c3   : > { %3868 = vrot.lane.b32.xlu0 %v8419_v17, %s11227_s23  ;;  %11455 = vst [vmem:[#allocation17_spill] sm:$0xff] %v9242_v8 }
 0x3c4   : > { %v9244_v20 = vpop.permute.xlu2 %3778  ;;  %v9246_v35 = vpop.permute.xlu0 %3768 }
 0x3c5   : > { %11456 = vst [vmem:[#allocation66_spill] sm:$0xff] %v9244_v20 }
 0x3c6   : > { %11457 = vst [vmem:[#allocation111_spill] sm:$0xff] %v9246_v35 }
 0x3c8   : > { %3864 = vrot.lane.b32.xlu1 %v8355_v53, %s11227_s23 }
 0x3ca   : > { %3866 = vrot.lane.b32.xlu2 %v11458_v50, %s11227_s23  ;;  %v9254_v38 = vpop.permute.xlu1 %3764 }
 0x3cb   : > { %3874 = vrot.lane.b32.xlu0 %v8476_v21, %s11227_s23 }
 0x3cc   : > { %v9256_v46 = vpop.permute.xlu2 %3796  ;;  %v9258_v27 = vpop.permute.xlu0 %3774 }
 0x3cd   : > { %11459 = vst [vmem:[#allocation91_spill] sm:$0xff] %v9256_v46 }
 0x3ce   : > { %11460 = vst [vmem:[#allocation76_spill] sm:$0xff] %v9258_v27 }
 0x3d0   : > { %3870 = vrot.lane.b32.xlu1 %v8439_v55, %s11227_s23 }
 0x3d2   : > { %3872 = vrot.lane.b32.xlu2 %v8383_v31, %s11227_s23  ;;  %v9266_v35 = vpop.permute.xlu1 %3770 }
 0x3d3   : > { %3880 = vrot.lane.b32.xlu0 %v8541_v24, %s11227_s23  ;;  %11461 = vst [vmem:[#allocation23_spill] sm:$0xff] %v9266_v35 }
 0x3d4   : > { %v9268_v53 = vpop.permute.xlu2 %3802  ;;  %v9270_v8 = vpop.permute.xlu0 %3780 }
 0x3d5   : > { %11462 = vst [vmem:[#allocation61_spill] sm:$0xff] %v9268_v53  ;;  %v470_v53 = vld [vmem:[%s6384_s25 + $0x360] sm:$0xff] }
 0x3d8   : > { %3876 = vrot.lane.b32.xlu1 %v8514_v63, %s11227_s23 }
 0x3da   : > { %3878 = vrot.lane.b32.xlu2 %v8456_v56, %s11227_s23  ;;  %v9278_v46 = vpop.permute.xlu1 %3776 }
 0x3db   : > { %3886 = vrot.lane.b32.xlu0 %v8612_v19, %s11227_s23  ;;  %11463 = vst [vmem:[#allocation92_spill] sm:$0xff] %v9278_v46 }
 0x3dc   : > { %v9280_v27 = vpop.permute.xlu2 %3808  ;;  %v9282_v24 = vpop.permute.xlu0 %3798 }
 0x3dd   : > { %11464 = vst [vmem:[#allocation71_spill] sm:$0xff] %v9282_v24 }
 0x3e0   : > { %3882 = vrot.lane.b32.xlu1 %v8568_v44, %s11227_s23 }
 0x3e2   : > { %3884 = vrot.lane.b32.xlu2 %v8527_v39, %s11227_s23  ;;  %v9290_v63 = vpop.permute.xlu1 %3782 }
 0x3e3   : > { %3892 = vrot.lane.b32.xlu0 %v9060_v25, %s11227_s23 }
 0x3e4   : > { %v9292_v35 = vpop.permute.xlu2 %3814 }
 0x3e5   : > { %11465 = vst [vmem:[#allocation120_spill] sm:$0xff] %v9292_v35  ;;  %v9294_v56 = vpop.permute.xlu0 %3804 }
 0x3e6   : > { %11466 = vst [vmem:[#allocation41_spill] sm:$0xff] %v9294_v56  ;;  %v487_v56 = vld [vmem:[%s6384_s25 + $0x3e8] sm:$0xff] }
 0x3e8   : > { %3888 = vrot.lane.b32.xlu1 %v8629_v52, %s11227_s23 }
 0x3ea   : > { %3890 = vrot.lane.b32.xlu2 %v8597_v14, %s11227_s23  ;;  %v9302_v24 = vpop.permute.xlu1 %3800 }
 0x3eb   : > { %3898 = vrot.lane.b32.xlu0 %v11428_v51, %s11245_s24  ;;  %11467 = vst [vmem:[#allocation84_spill] sm:$0xff] %v9302_v24  ;;  %v471_v51 = vld [vmem:[%s6384_s25 + $0x368] sm:$0xff]  ;;  %v598_v24 = vpack.c.bf16 %v470_v53, %v470_v53 }
 0x3ec   : > { %v9304_v44 = vpop.permute.xlu2 %3820  ;;  %v599_v50 = vpack.c.bf16 %v471_v51, %v471_v51  ;;  %v486_v51 = vld [vmem:[%s6384_s25 + $0x3e0] sm:$0xff] }
 0x3ed   : > { %11468 = vst [vmem:[#allocation49_spill] sm:$0xff] %v9304_v44  ;;  %v9306_v25 = vpop.permute.xlu0 %3810  ;;  %v854_v39 = vunpack.c.l.b16 %v598_v24  ;;  %v614_v24 = vpack.c.bf16 %v486_v51, %v486_v51 }
 0x3ef   : > { %v870_v23 = vunpack.c.l.b16 %v614_v24 }
 0x3f0   : > { %3894 = vrot.lane.b32.xlu1 %v11402_v30, %s11245_s24  ;;  %v855_v30 = vunpack.c.l.b16 %v599_v50 }
 0x3f2   : > { %3896 = vrot.lane.b32.xlu2 %v11427_v48, %s11245_s24  ;;  %v9314_v35 = vpop.permute.xlu1 %3806  ;;  %v928_v7 = vpack.c.b16 %v855_v30, %v854_v39  ;;  %v615_v39 = vpack.c.bf16 %v487_v56, %v487_v56 }
 0x3f3   : > { %3904 = vrot.lane.b32.xlu0 %v11434_v12, %s11245_s24 }
 0x3f4   : > { %v9318_v44 = vpop.permute.xlu2 %3826  ;;  %v1324_v48 = vshrl.u32 %v928_v7, 16  ;;  %v1327_v12 = vshll.u32 %v928_v7, 16 }
 0x3f5   : > { %v9320_v46 = vpop.permute.xlu0 %3816 }
 0x3f6   : > { %11469 = vst [vmem:[#allocation70_spill] sm:$0xff] %v9320_v46  ;;  %v1326_v46 = vrot.slane %v1324_v48, 7  ;;  %v472_v48 = vld [vmem:[%s6384_s25 + $0x370] sm:$0xff] }
 0x3f7   : > { %v600_v24 = vpack.c.bf16 %v472_v48, %v472_v48 }
 0x3f8   : > { %3900 = vrot.lane.b32.xlu1 %v11421_v43, %s11245_s24  ;;  %v1329_v7 = vor.u32 %v1327_v12, %v1326_v46  ;;  %v473_v12 = vld [vmem:[%s6384_s25 + $0x378] sm:$0xff] }
 0x3fa   : > { %3902 = vrot.lane.b32.xlu2 %v11432_v40, %s11245_s24  ;;  %v9328_v53 = vpop.permute.xlu1 %3812  ;;  %v871_v40 = vunpack.c.l.b16 %v615_v39  ;;  %v601_v39 = vpack.c.bf16 %v473_v12, %v473_v12 }
 0x3fb   : > { %3910 = vrot.lane.b32.xlu0 %v11437_v36, %s11245_s24  ;;  %11470 = vst [vmem:[#allocation104_spill] sm:$0xff] %v9328_v53  ;;  %v9340_v36 = vsel %vm6358_vm2, 0, %v1329_v7 }
 0x3fc   : > { %v9332_v50 = vpop.permute.xlu2 %3836  ;;  %v936_v53 = vpack.c.b16 %v871_v40, %v870_v23  ;;  %v4357_v51 = vshll.u32 %v9340_v36, 16  ;;  %v9357_v23 = vsel %vm6358_vm2, %v1326_v46, 0  ;;  %v857_v7 = vunpack.c.l.b16 %v601_v39 }
 0x3fd   : > { %11471 = vst [vmem:[#allocation35_spill] sm:$0xff] %v9332_v50  ;;  %v9334_v43 = vpop.permute.xlu0 %3822  ;;  %v4355_v40 = vshrl.u32 %v9340_v36, 16  ;;  %v4362_v49 = vshll.u32 %v9357_v23, 16 }
 0x3fe   : > { %11472 = vst [vmem:[#allocation112_spill] sm:$0xff] %v9334_v43  ;;  %v1383_v20 = vshll.u32 %v936_v53, 16 }
 0x400   : > { %3906 = vrot.lane.b32.xlu1 %v11429_v59, %s11245_s24 }
 0x402   : > { %v3398_v30 = vpop.f32.mrf.mxu2  ;;  %3908 = vrot.lane.b32.xlu2 %v11436_v45, %s11245_s24  ;;  %v9346_v56 = vpop.permute.xlu1 %3818  ;;  %v1380_v45 = vshrl.u32 %v936_v53, 16 }
 0x403   : > { %3916 = vrot.lane.b32.xlu0 %v8639_v13, %s11245_s24  ;;  %11473 = vst [vmem:[#allocation43_spill] sm:$0xff] %v9346_v56  ;;  %v856_v13 = vunpack.c.l.b16 %v600_v24  ;;  %v4359_v56 = vrot.slane %v4357_v51, 1  ;;  %v489_v24 = vld [vmem:[%s6384_s25 + $0x3f8] sm:$0xff] }
 0x404   : > { %v9351_v59 = vpop.permute.xlu2 %3842  ;;  %v1382_v43 = vrot.slane %v1380_v45, 7  ;;  %v617_v10 = vpack.c.bf16 %v489_v24, %v489_v24 }
 0x405   : > { %11474 = vst [vmem:[#allocation122_spill] sm:$0xff] %v9351_v59  ;;  %v9353_v50 = vpop.permute.xlu0 %3832  ;;  %v929_v17 = vpack.c.b16 %v857_v7, %v856_v13  ;;  %v4360_v19 = vor.u32 %v4359_v56, %v4355_v40 }
 0x406   : > { %11475 = vst [vmem:[#allocation46_spill] sm:$0xff] %v9353_v50  ;;  %v11476_v50 = vld [vmem:[#allocation141_spill] sm:$0xff]  ;;  %v1385_v45 = vor.u32 %v1383_v20, %v1382_v43  ;;  %v873_v28 = vunpack.c.l.b16 %v617_v10 }
 0x407   : > { %v3399_v58 = vadd.f32 %v3398_v30, %v11476_v50  ;;  %v1331_v13 = vshrl.u32 %v929_v17, 16  ;;  %v1334_v7 = vshll.u32 %v929_v17, 16  ;;  %v4364_v30 = vrot.slane %v4362_v49, 1 }
 0x408   : > { %3912 = vrot.lane.b32.xlu1 %v11435_v41, %s11245_s24  ;;  %v616_v41 = vpack.c.bf16 %v488_v32, %v488_v32  ;;  %v1654_v17 = vsel %vm6358_vm2, %v1382_v43, 0  ;;  %v9387_v32 = vsel %vm6358_vm2, 0, %v1385_v45  ;;  %v474_v45 = vld [vmem:[%s6384_s25 + $0x380] sm:$0xff] }
 0x409   : > { %v4453_v40 = vshll.u32 %v9387_v32, 16  ;;  %v4565_v24 = vrot.slane %v1654_v17, 1 }
 0x40a   : > { %v3400_v48 = vpop.f32.mrf.mxu2  ;;  %3914 = vrot.lane.b32.xlu2 %v11441_v0, %s11245_s24  ;;  %v9371_v51 = vpop.permute.xlu1 %3824  ;;  %v872_v0 = vunpack.c.l.b16 %v616_v41 }
 0x40b   : > { %v3417_v12 = vpop.f32.mrf.mxu3  ;;  %3922 = vrot.lane.b32.xlu0 %v9170_v60, %s11245_s24  ;;  %v9378_v60 = vsel %vm1664_vm3, %v4360_v19, %v4364_v30  ;;  %v4455_v41 = vrot.slane %v4453_v40, 1  ;;  %v4458_v30 = vshll.u32 %v1654_v17, 16 }
 0x40c   : > { %v3418_v46 = vadd.f32 %v3417_v12, %v11476_v50  ;;  %v9373_v12 = vpop.permute.xlu2 %3848  ;;  %v1333_v50 = vrot.slane %v1331_v13, 7  ;;  %v937_v19 = vpack.c.b16 %v873_v28, %v872_v0  ;;  %v475_v0 = vld [vmem:[%s6384_s25 + $0x388] sm:$0xff] }
 0x40d   : > { %11477 = vst [vmem:[#allocation59_spill] sm:$0xff] %v9373_v12  ;;  %v9375_v53 = vpop.permute.xlu0 %3838 }
 0x40e   : > { %v3427_v39 = vpack.c.bf16 %v3418_v46, %v3399_v58  ;;  %11478 = vst [vmem:[#allocation87_spill] sm:$0xff] %v9375_v53  ;;  %v1336_v2 = vor.u32 %v1334_v7, %v1333_v50  ;;  %v11479_v58 = vld [vmem:[#allocation11_spill] sm:$0xff]  ;;  %v1387_v13 = vshrl.u32 %v937_v19, 16  ;;  %v4451_v7 = vshrl.u32 %v9387_v32, 16 }
 0x40f   : > { %v3401_v46 = vadd.f32 %v3400_v48, %v11479_v58  ;;  %v4564_v48 = vrot.slane %v9387_v32, 1  ;;  %v1390_v53 = vshll.u32 %v937_v19, 16 }
 0x410   : > { %3432 = vst [vmem:[#allocation2 + $0x20] sm:$0xff] %v3427_v39  ;;  %3938 = vrot.lane.b32.xlu1 %v8714_v54, %s6254_s22  ;;  %v9392_v10 = vsel %vm6358_vm2, 0, %v1336_v2  ;;  %v1389_v40 = vrot.slane %v1387_v13, 7 }
 0x411   : > { %11480 = vst [vmem:[#allocation98_spill] sm:$0xff] %v9392_v10  ;;  %v4369_v2 = vshll.u32 %v9392_v10, 16 }
 0x412   : > { %v3403_v56 = vpop.f32.mrf.mxu2  ;;  %3918 = vrot.lane.b32.xlu2 %v8649_v61, %s11245_s24  ;;  %v9399_v54 = vpop.permute.xlu1 %3834  ;;  %v9409_v61 = vsel %vm6358_vm2, %v1333_v50, 0  ;;  %v11483_v50 = vld [vmem:[#allocation57_spill] sm:$0xff] }
 0x413   : > { %v3419_v49 = vpop.f32.mrf.mxu3  ;;  %4474 = vrot.lane.b32.xlu0 %v9378_v60, %s6247_s26  ;;  %11481 = vst [vmem:[#allocation85_spill] sm:$0xff] %v9399_v54  ;;  %v4371_v12 = vrot.slane %v4369_v2, 1 }
 0x414   : > { %v3420_v20 = vadd.f32 %v3419_v49, %v11479_v58  ;;  %v9403_v28 = vpop.permute.xlu2 %3854  ;;  %v603_v49 = vpack.c.bf16 %v475_v0, %v475_v0  ;;  %v4367_v58 = vshrl.u32 %v9392_v10, 16  ;;  %v4460_v0 = vrot.slane %v4458_v30, 1 }
 0x415   : > { %11482 = vst [vmem:[#allocation128_spill] sm:$0xff] %v9403_v28  ;;  %v9405_v39 = vpop.permute.xlu0 %3844  ;;  %v3404_v28 = vadd.f32 %v3403_v56, %v11483_v50  ;;  %v4541_v56 = vrot.slane %v9357_v23, 1 }
 0x416   : > { %v3428_v43 = vpack.c.bf16 %v3420_v20, %v3401_v46  ;;  %v602_v46 = vpack.c.bf16 %v474_v45, %v474_v45  ;;  %v9415_v20 = vsel %vm1921_vm4, %v4564_v48, %v4565_v24  ;;  %v4456_v45 = vor.u32 %v4455_v41, %v4451_v7 }
 0x417   : > { %v859_v48 = vunpack.c.l.b16 %v603_v49 }
 0x418   : > { %3433 = vst [vmem:[#allocation2 + $0x28] sm:$0xff] %v3428_v43  ;;  %v4374_v43 = vshll.u32 %v9409_v61, 16  ;;  %3936 = vrot.lane.b32.xlu1 %v8738_v26, %s6254_s22  ;;  %v858_v59 = vunpack.c.l.b16 %v602_v46  ;;  %v4540_v26 = vrot.slane %v9340_v36, 1  ;;  %v9436_v46 = vsel %vm1664_vm3, %v4456_v45, %v4460_v0 }
 0x41a   : > { %3952 = vrot.lane.b32.xlu2 %v9222_v3, %s6254_s22  ;;  %v9427_v24 = vpop.permute.xlu1 %3840  ;;  %v4376_v13 = vrot.slane %v4374_v43, 1  ;;  %v3405_v19 = vpop.f32.mrf.mxu2  ;;  %v930_v7 = vpack.c.b16 %v859_v48, %v858_v59  ;;  %v1392_v3 = vor.u32 %v1390_v53, %v1389_v40 }
 0x41b   : > { %v3422_v54 = vpop.f32.mrf.mxu3  ;;  %4595 = vrot.lane.b32.xlu0 %v9415_v20, %s6248_s27  ;;  %11484 = vst [vmem:[#allocation55_spill] sm:$0xff] %v9427_v24 }
 0x41c   : > { %v3423_v17 = vadd.f32 %v3422_v54, %v11483_v50  ;;  %v4372_v54 = vor.u32 %v4371_v12, %v4367_v58  ;;  %v9431_v41 = vpop.permute.xlu2 %3860  ;;  %v1338_v49 = vshrl.u32 %v930_v7, 16  ;;  %v9439_v50 = vsel %vm1921_vm4, %v4540_v26, %v4541_v56  ;;  %v11487_v12 = vld [vmem:[#allocation72_spill] sm:$0xff] }
 0x41d   : > { %v9433_v30 = vpop.permute.xlu0 %3850  ;;  %v3406_v59 = vadd.f32 %v3405_v19, %v11487_v12  ;;  %v1655_v58 = vsel %vm6358_vm2, %v1389_v40, 0  ;;  %v9451_v53 = vsel %vm6358_vm2, 0, %v1392_v3  ;;  %v1341_v45 = vshll.u32 %v930_v7, 16  ;;  %v468_v26 = vld [vmem:[%s6384_s25 + $0x350] sm:$0xff] }
 0x41e   : > { %v3429_v2 = vpack.c.bf16 %v3423_v17, %v3404_v28  ;;  %11485 = vst [vmem:[#allocation36_spill] sm:$0xff] %v9433_v30  ;;  %v9442_v23 = vsel %vm1664_vm3, %v4372_v54, %v4376_v13  ;;  %v1340_v17 = vrot.slane %v1338_v49, 7  ;;  %v4633_v0 = vshll.u32 %v9451_v53, 16 }
 0x41f   : > { %11486 = vst [vmem:[#allocation26_spill] sm:$0xff] %v9442_v23  ;;  %v4675_v56 = vrot.slane %v9451_v53, 1  ;;  %v4676_v54 = vrot.slane %v1655_v58, 1  ;;  %v596_v13 = vpack.c.bf16 %v468_v26, %v468_v26  ;;  %v4631_v49 = vshrl.u32 %v9451_v53, 16 }
 0x420   : > { %3434 = vst [vmem:[#allocation2 + $0x30] sm:$0xff] %v3429_v2  ;;  %4490 = vrot.lane.b32.xlu1 %v9436_v46, %s6247_s26  ;;  %v469_v2 = vld [vmem:[%s6384_s25 + $0x358] sm:$0xff]  ;;  %v4638_v30 = vshll.u32 %v1655_v58, 16  ;;  %v3983_v26 = vsel %vm2211_vm5, %v8597_v14, %v9132_v6  ;;  %v4543_v6 = vrot.slane %v9392_v10, 1 }
 0x421   : > { %v597_v19 = vpack.c.bf16 %v469_v2, %v469_v2  ;;  %v9470_v24 = vsel %vm1921_vm4, %v4675_v56, %v4676_v54  ;;  %v4013_v56 = vsel %vm2244_vm6, %v3983_v26, %v9206_v37  ;;  %v4544_v54 = vrot.slane %v9409_v61, 1 }
 0x422   : > { %4579 = vrot.lane.b32.xlu2 %v9439_v50, %s6248_s27  ;;  %v9459_v40 = vpop.permute.xlu1 %3846  ;;  %v1648_v26 = vsel %vm6358_vm2, %v1340_v17, 0 }
 0x423   : > { %v3424_v28 = vpop.f32.mrf.mxu3  ;;  %4656 = vrot.lane.b32.xlu0 %v9442_v23, %s6250_s29 }
 0x424   : > { %v3425_v43 = vadd.f32 %v3424_v28, %v11487_v12  ;;  %v9464_v7 = vpop.permute.xlu2 %3866  ;;  %v1343_v28 = vor.u32 %v1341_v45, %v1340_v17  ;;  %v4635_v12 = vrot.slane %v4633_v0, 1  ;;  %v484_v45 = vld [vmem:[%s6384_s25 + $0x3d0] sm:$0xff]  ;;  %v485_v0 = vld [vmem:[%s6384_s25 + $0x3d8] sm:$0xff]  ;;  %v4386_v17 = vshll.u32 %v1648_v26, 16 }
 0x425   : > { %11488 = vst [vmem:[#allocation58_spill] sm:$0xff] %v9464_v7  ;;  %v9466_v3 = vpop.permute.xlu0 %3856  ;;  %v613_v7 = vpack.c.bf16 %v485_v0, %v485_v0 }
 0x426   : > { %v3430_v48 = vpack.c.bf16 %v3425_v43, %v3406_v59  ;;  %11489 = vst [vmem:[#allocation19_spill] sm:$0xff] %v9466_v3  ;;  %v852_v59 = vunpack.c.l.b16 %v596_v13  ;;  %v853_v43 = vunpack.c.l.b16 %v597_v19  ;;  %v4636_v58 = vor.u32 %v4635_v12, %v4631_v49 }
 0x427   : > { %v4640_v13 = vrot.slane %v4638_v30, 1  ;;  %v612_v19 = vpack.c.bf16 %v484_v45, %v484_v45  ;;  %v4045_v30 = vsel %vm2277_vm7, %v4013_v56, %v9290_v63  ;;  %v11493_v63 = vld [vmem:[#allocation107_spill] sm:$0xff] }
 0x428   : > { %3435 = vst [vmem:[#allocation2 + $0x38] sm:$0xff] %v3430_v48  ;;  %4612 = vrot.lane.b32.xlu1 %v9392_v10, %s6249_s28  ;;  %v9479_v48 = vsel %vm6358_vm2, 0, %v1343_v28  ;;  %v927_v2 = vpack.c.b16 %v853_v43, %v852_v59  ;;  %v869_v28 = vunpack.c.l.b16 %v613_v7  ;;  %v4077_v37 = vsel %vm2310_vm8, %v4045_v30, %v9318_v44  ;;  %v11495_v44 = vld [vmem:[#allocation138_spill] sm:$0xff] }
 0x429   : > { %11490 = vst [vmem:[#allocation52_spill] sm:$0xff] %v9479_v48  ;;  %v4381_v12 = vshll.u32 %v9479_v48, 16  ;;  %v868_v49 = vunpack.c.l.b16 %v612_v19  ;;  %v9504_v61 = vsel %vm1664_vm3, %v4636_v58, %v4640_v13  ;;  %v9509_v7 = vsel %vm1921_vm4, %v4543_v6, %v4544_v54 }
 0x42a   : > { %4628 = vrot.lane.b32.xlu2 %v9451_v53, %s6249_s28  ;;  %v9489_v14 = vpop.permute.xlu1 %3852  ;;  %v1317_v45 = vshrl.u32 %v927_v2, 16  ;;  %11494 = vst [vmem:[#allocation86_spill] sm:$0xff] %v9509_v7 }
 0x42b   : > { %4708 = vrot.lane.b32.xlu0 %v9470_v24, %s6251_s14  ;;  %11491 = vst [vmem:[#allocation73_spill] sm:$0xff] %v9489_v14  ;;  %v935_v19 = vpack.c.b16 %v869_v28, %v868_v49  ;;  %v4379_v14 = vshrl.u32 %v9479_v48, 16  ;;  %v4383_v3 = vrot.slane %v4381_v12, 1  ;;  %v4388_v28 = vrot.slane %v4386_v17, 1 }
 0x42c   : > { %v9498_v59 = vpop.permute.xlu2 %3872  ;;  %v1319_v13 = vrot.slane %v1317_v45, 7  ;;  %v4546_v17 = vrot.slane %v9479_v48, 1 }
 0x42d   : > { %11492 = vst [vmem:[#allocation24_spill] sm:$0xff] %v9498_v59  ;;  %v3863_v43 = vpop.permute.xlu0 %3862  ;;  %v1373_v6 = vshrl.u32 %v935_v19, 16  ;;  %v1376_v54 = vshll.u32 %v935_v19, 16  ;;  %v4384_v49 = vor.u32 %v4383_v3, %v4379_v14 }
 0x42e   : > { %v4109_v0 = vsel %vm2343_vm9, %v4077_v37, %v3863_v43  ;;  %v11496_v37 = vld [vmem:[#allocation22_spill] sm:$0xff]  ;;  %v1320_v43 = vshll.u32 %v927_v2, 16  ;;  %v1645_v3 = vsel %vm6358_vm2, %v1319_v13, 0 }
 0x42f   : > { %v4140_v56 = vsel %vm2376_vm10, %v4109_v0, %v11493_v63  ;;  %v9530_v19 = vsel %vm1664_vm3, %v4384_v49, %v4388_v28 }
 0x430   : > { %v4171_v30 = vsel %vm2409_vm11, %v4140_v56, %v11495_v44  ;;  %4672 = vrot.lane.b32.xlu1 %v9504_v61, %s6250_s29  ;;  %v1375_v56 = vrot.slane %v1373_v6, 7  ;;  %v1322_v2 = vor.u32 %v1320_v43, %v1319_v13  ;;  %11499 = vst [vmem:[#allocation110_spill] sm:$0xff] %v9530_v19  ;;  %v4538_v13 = vrot.slane %v1645_v3, 1 }
 0x431   : > { %v4202_v58 = vsel %vm2442_vm12, %v4171_v30, %v11496_v37 }
 0x432   : > { %v4233_v0 = vsel %vm2505_vm13, %v4202_v58, 0  ;;  %4692 = vrot.lane.b32.xlu2 %v9509_v7, %s6251_s14  ;;  %v9523_v12 = vpop.permute.xlu1 %3858  ;;  %v1378_v30 = vor.u32 %v1376_v54, %v1375_v56  ;;  %v4547_v58 = vrot.slane %v1648_v26, 1  ;;  %v1653_v26 = vsel %vm6358_vm2, %v1375_v56, 0 }
 0x433   : > { %3920 = vrot.lane.b32.xlu0 %v11444_v42, %s11245_s24  ;;  %11497 = vst [vmem:[#allocation37_spill] sm:$0xff] %v9523_v12  ;;  %4254 = vmatpush.bf16.xpose.msrb.mxu1 %v4233_v0  ;;  %v9536_v42 = vsel %vm6358_vm2, 0, %v1322_v2  ;;  %v4446_v12 = vshll.u32 %v1653_v26, 16 }
 0x434   : > { %v9525_v59 = vpop.permute.xlu2 %3878  ;;  %v9542_v14 = vsel %vm6358_vm2, 0, %v1378_v30  ;;  %v4345_v43 = vshll.u32 %v9536_v42, 16  ;;  %v4537_v6 = vrot.slane %v9536_v42, 1  ;;  %v9561_v2 = vsel %vm1921_vm4, %v4546_v17, %v4547_v58 }
 0x435   : > { %v9527_v45 = vpop.permute.xlu0 %3868  ;;  %v4441_v54 = vshll.u32 %v9542_v14, 16  ;;  %11502 = vst [vmem:[#allocation127_spill] sm:$0xff] %v9561_v2  ;;  %v4343_v30 = vshrl.u32 %v9536_v42, 16  ;;  %v4448_v17 = vrot.slane %v4446_v12, 1 }
 0x436   : > { %11498 = vst [vmem:[#allocation74_spill] sm:$0xff] %v9527_v45 }
 0x437   : > { %v4443_v45 = vrot.slane %v4441_v54, 1 }
 0x438   : > { %4724 = vrot.lane.b32.xlu1 %v9479_v48, %s11227_s23  ;;  %v4350_v48 = vshll.u32 %v1645_v3, 16 }
 0x43a   : > { %4754 = vrot.lane.b32.xlu2 %v9530_v19, %s11245_s24  ;;  %v9550_v0 = vpop.permute.xlu1 %3864  ;;  %v4439_v19 = vshrl.u32 %v9542_v14, 16  ;;  %v4352_v37 = vrot.slane %v4350_v48, 1 }
 0x43b   : > { %3950 = vrot.lane.b32.xlu0 %v8764_v18, %s6254_s22  ;;  %11500 = vst [vmem:[#allocation97_spill] sm:$0xff] %v9550_v0  ;;  %v4347_v18 = vrot.slane %v4345_v43, 1  ;;  %v9565_v0 = vsel %vm1921_vm4, %v4537_v6, %v4538_v13  ;;  %v4562_v13 = vrot.slane %v1653_v26, 1  ;;  %v467_v26 = vld [vmem:[%s6384_s25 + $0x348] sm:$0xff] }
 0x43c   : > { %v9554_v49 = vpop.permute.xlu2 %3884  ;;  %v4444_v3 = vor.u32 %v4443_v45, %v4439_v19 }
 0x43d   : > { %11501 = vst [vmem:[#allocation105_spill] sm:$0xff] %v9554_v49  ;;  %v9556_v28 = vpop.permute.xlu0 %3874  ;;  %v4348_v49 = vor.u32 %v4347_v18, %v4343_v30  ;;  %v595_v18 = vpack.c.bf16 %v467_v26, %v467_v26 }
 0x43e   : > { %v9584_v48 = vsel %vm1664_vm3, %v4444_v3, %v4448_v17 }
 0x43f   : > { %v9581_v6 = vsel %vm1664_vm3, %v4348_v49, %v4352_v37  ;;  %v466_v49 = vld [vmem:[%s6384_s25 + $0x340] sm:$0xff] }
 0x440   : > { %4784 = vrot.lane.b32.xlu1 %v9561_v2, %s6254_s22  ;;  %v594_v30 = vpack.c.bf16 %v466_v49, %v466_v49  ;;  %v483_v2 = vld [vmem:[%s6384_s25 + $0x3c8] sm:$0xff] }
 0x442   : > { %3934 = vrot.lane.b32.xlu2 %v8735_v11, %s6254_s22  ;;  %v9574_v56 = vpop.permute.xlu1 %3870  ;;  %v4561_v11 = vrot.slane %v9542_v14, 1 }
 0x443   : > { %4577 = vrot.lane.b32.xlu0 %v9565_v0, %s6248_s27  ;;  %11503 = vst [vmem:[#allocation20_spill] sm:$0xff] %v9574_v56  ;;  %v611_v56 = vpack.c.bf16 %v483_v2, %v483_v2 }
 0x444   : > { %v9576_v58 = vpop.permute.xlu2 %3890  ;;  %v9600_v19 = vsel %vm1921_vm4, %v4561_v11, %v4562_v13  ;;  %v850_v11 = vunpack.c.l.b16 %v594_v30  ;;  %v851_v13 = vunpack.c.l.b16 %v595_v18 }
 0x445   : > { %11504 = vst [vmem:[#allocation56_spill] sm:$0xff] %v9576_v58  ;;  %v9578_v43 = vpop.permute.xlu0 %3880 }
 0x446   : > { %11505 = vst [vmem:[#allocation89_spill] sm:$0xff] %v9578_v43  ;;  %v926_v43 = vpack.c.b16 %v851_v13, %v850_v11 }
 0x448   : > { %4472 = vrot.lane.b32.xlu1 %v9581_v6, %s6247_s26 }
 0x44a   : > { %4488 = vrot.lane.b32.xlu2 %v9584_v48, %s6247_s26  ;;  %v9593_v12 = vpop.permute.xlu1 %3876 }
 0x44b   : > { %4626 = vrot.lane.b32.xlu0 %v9387_v32, %s6249_s28 }
 0x44c   : > { %v9595_v37 = vpop.permute.xlu2 %3896 }
 0x44d   : > { %11506 = vst [vmem:[#allocation9_spill] sm:$0xff] %v9595_v37  ;;  %v9597_v45 = vpop.permute.xlu0 %3886  ;;  %v482_v37 = vld [vmem:[%s6384_s25 + $0x3c0] sm:$0xff] }
 0x44e   : > { %11507 = vst [vmem:[#allocation113_spill] sm:$0xff] %v9597_v45  ;;  %v610_v45 = vpack.c.bf16 %v482_v37, %v482_v37  ;;  %v1313_v37 = vshll.u32 %v926_v43, 16 }
 0x450   : > { %4593 = vrot.lane.b32.xlu1 %v9600_v19, %s6248_s27  ;;  %v866_v26 = vunpack.c.l.b16 %v610_v45 }
 0x452   : > { %4610 = vrot.lane.b32.xlu2 %v9340_v36, %s6249_s28  ;;  %v9608_v54 = vpop.permute.xlu1 %3882 }
 0x453   : > { %4690 = vrot.lane.b32.xlu0 %v9439_v50, %s6251_s14  ;;  %11508 = vst [vmem:[#allocation40_spill] sm:$0xff] %v9608_v54  ;;  %v867_v54 = vunpack.c.l.b16 %v611_v56 }
 0x454   : > { %v9612_v3 = vpop.permute.xlu2 %3902 }
 0x455   : > { %11509 = vst [vmem:[#allocation7_spill] sm:$0xff] %v9612_v3  ;;  %v9614_v17 = vpop.permute.xlu0 %3892  ;;  %v1310_v3 = vshrl.u32 %v926_v43, 16  ;;  %v934_v11 = vpack.c.b16 %v867_v54, %v866_v26 }
 0x457   : > { %v1312_v2 = vrot.slane %v1310_v3, 7  ;;  %v1366_v13 = vshrl.u32 %v934_v11, 16  ;;  %v1369_v58 = vshll.u32 %v934_v11, 16 }
 0x458   : > { %4654 = vrot.lane.b32.xlu1 %v9378_v60, %s6250_s29 }
 0x459   : > { %v1368_v56 = vrot.slane %v1366_v13, 7  ;;  %v1315_v54 = vor.u32 %v1313_v37, %v1312_v2  ;;  %v1644_v3 = vsel %vm6358_vm2, %v1312_v2, 0 }
 0x45a   : > { %4670 = vrot.lane.b32.xlu2 %v9436_v46, %s6250_s29  ;;  %v9624_v49 = vpop.permute.xlu1 %3888 }
 0x45b   : > { %4738 = vrot.lane.b32.xlu0 %v9451_v53, %s11227_s23  ;;  %11510 = vst [vmem:[#allocation48_spill] sm:$0xff] %v9624_v49  ;;  %v1371_v26 = vor.u32 %v1369_v58, %v1368_v56  ;;  %v9646_v43 = vsel %vm6358_vm2, 0, %v1315_v54  ;;  %v4535_v54 = vrot.slane %v1644_v3, 1 }
 0x45c   : > { %v9626_v30 = vpop.permute.xlu2 %3908  ;;  %v4333_v13 = vshll.u32 %v9646_v43, 16  ;;  %v4534_v37 = vrot.slane %v9646_v43, 1 }
 0x45d   : > { %v9628_v18 = vpop.permute.xlu0 %3898  ;;  %v9652_v11 = vsel %vm6358_vm2, 0, %v1371_v26  ;;  %v1652_v26 = vsel %vm6358_vm2, %v1368_v56, 0 }
 0x45e   : > { %11511 = vst [vmem:[#allocation81_spill] sm:$0xff] %v9628_v18  ;;  %v4434_v49 = vshll.u32 %v1652_v26, 16 }
 0x460   : > { %4706 = vrot.lane.b32.xlu1 %v9415_v20, %s6251_s14 }
 0x462   : > { %4722 = vrot.lane.b32.xlu2 %v9392_v10, %s11227_s23  ;;  %v9636_v53 = vpop.permute.xlu1 %3894  ;;  %v4429_v10 = vshll.u32 %v9652_v11, 16 }
 0x463   : > { %4782 = vrot.lane.b32.xlu0 %v9509_v7, %s6254_s22  ;;  %11512 = vst [vmem:[#allocation129_spill] sm:$0xff] %v9636_v53  ;;  %v4338_v7 = vshll.u32 %v1644_v3, 16 }
 0x464   : > { %v9638_v45 = vpop.permute.xlu2 %3914 }
 0x465   : > { %11513 = vst [vmem:[#allocation33_spill] sm:$0xff] %v9638_v45  ;;  %v9640_v18 = vpop.permute.xlu0 %3904  ;;  %v4427_v45 = vshrl.u32 %v9652_v11, 16  ;;  %v4340_v44 = vrot.slane %v4338_v7, 1 }
 0x468   : > { %4752 = vrot.lane.b32.xlu1 %v9442_v23, %s11245_s24  ;;  %v4331_v23 = vshrl.u32 %v9646_v43, 16 }
 0x46a   : > { %4768 = vrot.lane.b32.xlu2 %v9504_v61, %s11245_s24  ;;  %v9659_v58 = vpop.permute.xlu1 %3900  ;;  %v4335_v61 = vrot.slane %v4333_v13, 1  ;;  %v4436_v13 = vrot.slane %v4434_v49, 1  ;;  %v4558_v49 = vrot.slane %v9652_v11, 1 }
 0x46b   : > { %3948 = vrot.lane.b32.xlu0 %v8797_v34, %s6254_s22  ;;  %11514 = vst [vmem:[#allocation135_spill] sm:$0xff] %v9659_v58  ;;  %v9671_v34 = vsel %vm1921_vm4, %v4534_v37, %v4535_v54  ;;  %v4431_v58 = vrot.slane %v4429_v10, 1 }
 0x46c   : > { %v9663_v2 = vpop.permute.xlu2 %3918 }
 0x46d   : > { %11515 = vst [vmem:[#allocation32_spill] sm:$0xff] %v9663_v2  ;;  %v9665_v53 = vpop.permute.xlu0 %3910  ;;  %v4336_v2 = vor.u32 %v4335_v61, %v4331_v23  ;;  %v4432_v3 = vor.u32 %v4431_v58, %v4427_v45 }
 0x46f   : > { %v9683_v10 = vsel %vm1664_vm3, %v4336_v2, %v4340_v44  ;;  %v9689_v23 = vsel %vm1664_vm3, %v4432_v3, %v4436_v13  ;;  %v4559_v44 = vrot.slane %v1652_v26, 1  ;;  %v464_v13 = vld [vmem:[%s6384_s25 + $0x330] sm:$0xff] }
 0x470   : > { %4798 = vrot.lane.b32.xlu1 %v9470_v24, %s6254_s22  ;;  %v3981_v24 = vsel %vm2211_vm5, %v8629_v52, %v9092_v57 }
 0x471   : > { %v9719_v61 = vsel %vm1921_vm4, %v4558_v49, %v4559_v44 }
 0x472   : > { %3932 = vrot.lane.b32.xlu2 %v8672_v16, %s6254_s22  ;;  %v3907_v56 = vpop.permute.xlu1 %3906  ;;  %v4011_v16 = vsel %vm2244_vm6, %v3981_v24, %v9180_v5  ;;  %v3967_v5 = vsel %vm2211_vm5, %v8476_v21, %v9099_v29  ;;  %v592_v24 = vpack.c.bf16 %v464_v13, %v464_v13 }
 0x473   : > { %4575 = vrot.lane.b32.xlu0 %v9671_v34, %s6248_s27  ;;  %v4043_v7 = vsel %vm2277_vm7, %v4011_v16, %v9270_v8  ;;  %v3997_v2 = vsel %vm2244_vm6, %v3967_v5, %v9190_v22 }
 0x474   : > { %v3953_v37 = vpop.permute.xlu2 %3952  ;;  %v4075_v45 = vsel %vm2310_vm8, %v4043_v7, %v9371_v51 }
 0x475   : > { %v9680_v54 = vpop.permute.xlu0 %3916  ;;  %v4107_v57 = vsel %vm2343_vm9, %v4075_v45, %v9431_v41  ;;  %v4029_v41 = vsel %vm2277_vm7, %v3997_v2, %v9217_v4  ;;  %v848_v45 = vunpack.c.l.b16 %v592_v24  ;;  %v481_v2 = vld [vmem:[%s6384_s25 + $0x3b8] sm:$0xff] }
 0x476   : > { %v4139_v8 = vsel %vm2376_vm10, %v4107_v57, %v9614_v17  ;;  %v4061_v29 = vsel %vm2310_vm8, %v4029_v41, %v9306_v25  ;;  %v609_v41 = vpack.c.bf16 %v481_v2, %v481_v2 }
 0x477   : > { %v4093_v3 = vsel %vm2343_vm9, %v4061_v29, %v9459_v40 }
 0x478   : > { %4470 = vrot.lane.b32.xlu1 %v9683_v10, %s6247_s26  ;;  %v4125_v22 = vsel %vm2376_vm10, %v4093_v3, %v9525_v59  ;;  %v3965_v59 = vsel %vm2211_vm5, %v8383_v31, %v9017_v33  ;;  %v480_v33 = vld [vmem:[%s6384_s25 + $0x3b0] sm:$0xff] }
 0x479   : > { %v4156_v4 = vsel %vm2409_vm11, %v4125_v22, %v9626_v30  ;;  %v3995_v44 = vsel %vm2244_vm6, %v3965_v59, %v9166_v15 }
 0x47a   : > { %4486 = vrot.lane.b32.xlu2 %v9689_v23, %s6247_s26  ;;  %v9704_v52 = vpop.permute.xlu1 %3912  ;;  %v4027_v5 = vsel %vm2277_vm7, %v3995_v44, %v9254_v38 }
 0x47b   : > { %4624 = vrot.lane.b32.xlu0 %v9542_v14, %s6249_s28 }
 0x47c   : > { %v9713_v58 = vpop.permute.xlu2 %4579 }
 0x47d   : > { %v3923_v51 = vpop.permute.xlu0 %3922 }
 0x47e   : > { %v4170_v26 = vsel %vm2409_vm11, %v4139_v8, %v3923_v51  ;;  %v4059_v8 = vsel %vm2310_vm8, %v4027_v5, %v9280_v27 }
 0x47f   : > { %v4201_v21 = vsel %vm2442_vm12, %v4170_v26, %v3953_v37  ;;  %v465_v37 = vld [vmem:[%s6384_s25 + $0x338] sm:$0xff]  ;;  %v4091_v31 = vsel %vm2343_vm9, %v4059_v8, %v9405_v39  ;;  %v608_v26 = vpack.c.bf16 %v480_v33, %v480_v33 }
 0x480   : > { %v4231_v17 = vsel %vm2505_vm13, %v4201_v21, 0  ;;  %4591 = vrot.lane.b32.xlu1 %v9719_v61, %s6248_s27  ;;  %v593_v16 = vpack.c.bf16 %v465_v37, %v465_v37  ;;  %v4123_v15 = vsel %vm2376_vm10, %v4091_v31, %v9593_v12 }
 0x481   : > { %4255 = vmatpush.bf16.xpose.msrb.mxu1 %v4231_v17  ;;  %v4154_v21 = vsel %vm2409_vm11, %v4123_v15, %v3907_v56  ;;  %v864_v29 = vunpack.c.l.b16 %v608_v26  ;;  %v865_v17 = vunpack.c.l.b16 %v609_v41 }
 0x482   : > { %4608 = vrot.lane.b32.xlu2 %v9536_v42, %s6249_s28  ;;  %v3939_v25 = vpop.permute.xlu1 %3938  ;;  %v849_v57 = vunpack.c.l.b16 %v593_v16 }
 0x483   : > { %4688 = vrot.lane.b32.xlu0 %v9565_v0, %s6251_s14  ;;  %v4187_v40 = vsel %vm2442_vm12, %v4156_v4, %v3939_v25  ;;  %v933_v4 = vpack.c.b16 %v865_v17, %v864_v29 }
 0x484   : > { %v9745_v30 = vpop.permute.xlu2 %4628  ;;  %v4217_v49 = vsel %vm2505_vm13, %v4187_v40, 0  ;;  %v925_v51 = vpack.c.b16 %v849_v57, %v848_v45  ;;  %v3963_v45 = vsel %vm2211_vm5, %v8439_v55, %v8924_v9 }
 0x485   : > { %v9747_v7 = vpop.permute.xlu0 %4474  ;;  %4235 = vmatpush.bf16.xpose.msrb.mxu0 %v4217_v49  ;;  %v1359_v13 = vshrl.u32 %v933_v4, 16  ;;  %v1362_v37 = vshll.u32 %v933_v4, 16  ;;  %v3993_v57 = vsel %vm2244_vm6, %v3963_v45, %v9130_v62  ;;  %v11516_v62 = vld [vmem:[#allocation122_spill] sm:$0xff] }
 0x486   : > { %v1303_v39 = vshrl.u32 %v925_v51, 16  ;;  %v1306_v25 = vshll.u32 %v925_v51, 16  ;;  %v4025_v8 = vsel %vm2277_vm7, %v3993_v57, %v9234_v1  ;;  %v11517_v1 = vld [vmem:[#allocation140_spill] sm:$0xff] }
 0x487   : > { %v1361_v40 = vrot.slane %v1359_v13, 7  ;;  %v4057_v55 = vsel %vm2310_vm8, %v4025_v8, %v9314_v35 }
 0x488   : > { %4652 = vrot.lane.b32.xlu1 %v9581_v6, %s6250_s29  ;;  %v1305_v56 = vrot.slane %v1303_v39, 7  ;;  %v4089_v31 = vsel %vm2343_vm9, %v4057_v55, %v11516_v62 }
 0x489   : > { %v1364_v44 = vor.u32 %v1362_v37, %v1361_v40  ;;  %v4121_v15 = vsel %vm2376_vm10, %v4089_v31, %v9556_v28  ;;  %v11518_v37 = vld [vmem:[#allocation125_spill] sm:$0xff]  ;;  %v11521_v31 = vld [vmem:[#allocation138_spill] sm:$0xff] }
 0x48a   : > { %4668 = vrot.lane.b32.xlu2 %v9584_v48, %s6250_s29  ;;  %v3937_v27 = vpop.permute.xlu1 %3936  ;;  %v1308_v16 = vor.u32 %v1306_v25, %v1305_v56  ;;  %v4152_v26 = vsel %vm2409_vm11, %v4121_v15, %v9640_v18  ;;  %v11523_v15 = vld [vmem:[#allocation22_spill] sm:$0xff] }
 0x48b   : > { %4736 = vrot.lane.b32.xlu0 %v9387_v32, %s11227_s23  ;;  %v4185_v38 = vsel %vm2442_vm12, %v4154_v21, %v3937_v27  ;;  %v9800_v51 = vsel %vm6358_vm2, 0, %v1364_v44  ;;  %v1651_v27 = vsel %vm6358_vm2, %v1361_v40, 0 }
 0x48c   : > { %v9770_v3 = vpop.permute.xlu2 %4692  ;;  %v4215_v12 = vsel %vm2505_vm13, %v4185_v38, 0  ;;  %v9790_v5 = vsel %vm6358_vm2, 0, %v1308_v16  ;;  %v4417_v35 = vshll.u32 %v9800_v51, 16 }
 0x48d   : > { %v4596_v22 = vpop.permute.xlu0 %4595  ;;  %4236 = vmatpush.bf16.xpose.msrb.mxu0 %v4215_v12  ;;  %v4321_v9 = vshll.u32 %v9790_v5, 16  ;;  %v4319_v39 = vshrl.u32 %v9790_v5, 16 }
 0x48e   : > { %v4419_v4 = vrot.slane %v4417_v35, 1 }
 0x48f   : > { %v4323_v29 = vrot.slane %v4321_v9, 1  ;;  %v11520_v9 = vld [vmem:[#allocation13_spill] sm:$0xff] }
 0x490   : > { %4704 = vrot.lane.b32.xlu1 %v9600_v19, %s6251_s14 }
 0x491   : > { %v4324_v25 = vor.u32 %v4323_v29, %v4319_v39  ;;  %v4556_v39 = vrot.slane %v1651_v27, 1  ;;  %v11526_v29 = vld [vmem:[#allocation37_spill] sm:$0xff] }
 0x492   : > { %4720 = vrot.lane.b32.xlu2 %v9340_v36, %s11227_s23  ;;  %v4491_v24 = vpop.permute.xlu1 %4490 }
 0x493   : > { %4780 = vrot.lane.b32.xlu0 %v9439_v50, %s6254_s22  ;;  %v1643_v50 = vsel %vm6358_vm2, %v1305_v56, 0  ;;  %v4829_v41 = vsel %vm2211_vm5, %v9387_v32, %v4491_v24  ;;  %v4415_v32 = vshrl.u32 %v9800_v51, 16  ;;  %v4422_v56 = vshll.u32 %v1651_v27, 16 }
 0x494   : > { %v9779_v59 = vpop.permute.xlu2 %4754  ;;  %v4532_v2 = vrot.slane %v1643_v50, 1  ;;  %v4326_v17 = vshll.u32 %v1643_v50, 16  ;;  %v4859_v18 = vsel %vm2244_vm6, %v4829_v41, %v4596_v22 }
 0x495   : > { %v9781_v49 = vpop.permute.xlu0 %4656  ;;  %v4891_v22 = vsel %vm2277_vm7, %v4859_v18, %v9745_v30  ;;  %v4420_v16 = vor.u32 %v4419_v4, %v4415_v32  ;;  %v4424_v44 = vrot.slane %v4422_v56, 1  ;;  %v11519_v30 = vld [vmem:[#allocation95_spill] sm:$0xff] }
 0x496   : > { %v4328_v13 = vrot.slane %v4326_v17, 1  ;;  %v3979_v62 = vsel %vm2211_vm5, %v11520_v9, %v11519_v30 }
 0x498   : > { %4750 = vrot.lane.b32.xlu1 %v9378_v60, %s11245_s24  ;;  %v4531_v60 = vrot.slane %v9790_v5, 1  ;;  %v9845_v8 = vsel %vm1664_vm3, %v4324_v25, %v4328_v13 }
 0x49a   : > { %4766 = vrot.lane.b32.xlu2 %v9436_v46, %s11245_s24  ;;  %v4613_v33 = vpop.permute.xlu1 %4612  ;;  %v9825_v12 = vsel %vm1921_vm4, %v4531_v60, %v4532_v2  ;;  %v11522_v60 = vld [vmem:[#allocation99_spill] sm:$0xff]  ;;  %v9859_v2 = vsel %vm1664_vm3, %v4420_v16, %v4424_v44 }
 0x49b   : > { %3946 = vrot.lane.b32.xlu0 %v11517_v1, %s6254_s22  ;;  %v463_v16 = vld [vmem:[%s6384_s25 + $0x328] sm:$0xff] }
 0x49c   : > { %v3935_v21 = vpop.permute.xlu2 %3934 }
 0x49d   : > { %v4709_v46 = vpop.permute.xlu0 %4708  ;;  %v4183_v38 = vsel %vm2442_vm12, %v4152_v26, %v3935_v21 }
 0x49e   : > { %v4213_v28 = vsel %vm2505_vm13, %v4183_v38, 0 }
 0x49f   : > { %4237 = vmatpush.bf16.xpose.msrb.mxu0 %v4213_v28  ;;  %v11527_v28 = vld [vmem:[#allocation56_spill] sm:$0xff] }
 0x4a0   : > { %4796 = vrot.lane.b32.xlu1 %v9415_v20, %s6254_s22  ;;  %v4813_v20 = vsel %vm2211_vm5, %v9340_v36, %v9747_v7  ;;  %v4009_v36 = vsel %vm2244_vm6, %v3979_v62, %v11522_v60 }
 0x4a1   : > { %v4843_v7 = vsel %vm2244_vm6, %v4813_v20, %v9713_v58  ;;  %v4555_v58 = vrot.slane %v9800_v51, 1 }
 0x4a2   : > { %3930 = vrot.lane.b32.xlu2 %v11518_v37, %s6254_s22  ;;  %v4673_v40 = vpop.permute.xlu1 %4672  ;;  %v4875_v41 = vsel %vm2277_vm7, %v4843_v7, %v4613_v33 }
 0x4a3   : > { %4573 = vrot.lane.b32.xlu0 %v9825_v12, %s6248_s27  ;;  %v4923_v24 = vsel %vm2310_vm8, %v4891_v22, %v4673_v40  ;;  %v4907_v32 = vsel %vm2310_vm8, %v4875_v41, %v9781_v49  ;;  %v9887_v13 = vsel %vm1921_vm4, %v4555_v58, %v4556_v39 }
 0x4a4   : > { %v4955_v45 = vsel %vm2343_vm9, %v4923_v24, %v4709_v46  ;;  %v9842_v57 = vpop.permute.xlu2 %4488  ;;  %v11525_v46 = vld [vmem:[#allocation112_spill] sm:$0xff]  ;;  %v4939_v37 = vsel %vm2343_vm9, %v4907_v32, %v9770_v3  ;;  %v462_v24 = vld [vmem:[%s6384_s25 + $0x320] sm:$0xff] }
 0x4a5   : > { %v3921_v50 = vpop.permute.xlu0 %3920  ;;  %v4986_v55 = vsel %vm2376_vm10, %v4955_v45, %v11493_v63  ;;  %v11524_v63 = vld [vmem:[#allocation66_spill] sm:$0xff]  ;;  %v590_v20 = vpack.c.bf16 %v462_v24, %v462_v24  ;;  %v591_v45 = vpack.c.bf16 %v463_v16, %v463_v16  ;;  %v11532_v16 = vld [vmem:[#allocation41_spill] sm:$0xff] }
 0x4a6   : > { %v5017_v1 = vsel %vm2409_vm11, %v4986_v55, %v11521_v31  ;;  %v4041_v26 = vsel %vm2277_vm7, %v4009_v36, %v11524_v63 }
 0x4a7   : > { %v5048_v35 = vsel %vm2442_vm12, %v5017_v1, %v11523_v15  ;;  %v4073_v38 = vsel %vm2310_vm8, %v4041_v26, %v11525_v46  ;;  %v846_v9 = vunpack.c.l.b16 %v590_v20  ;;  %v847_v62 = vunpack.c.l.b16 %v591_v45  ;;  %v479_v1 = vld [vmem:[%s6384_s25 + $0x3a8] sm:$0xff] }
 0x4a8   : > { %4468 = vrot.lane.b32.xlu1 %v9845_v8, %s6247_s26  ;;  %v5079_v21 = vsel %vm2505_vm13, %v5048_v35, 0  ;;  %v4105_v17 = vsel %vm2343_vm9, %v4073_v38, %v11526_v29  ;;  %v607_v36 = vpack.c.bf16 %v479_v1, %v479_v1  ;;  %v11533_v45 = vld [vmem:[#allocation55_spill] sm:$0xff] }
 0x4a9   : > { %5100 = vmatpush.bf16.xpose.msrb.mxu3 %v5079_v21  ;;  %v4137_v18 = vsel %vm2376_vm10, %v4105_v17, %v11527_v28  ;;  %v924_v31 = vpack.c.b16 %v847_v62, %v846_v9  ;;  %v11535_v62 = vld [vmem:[#allocation24_spill] sm:$0xff] }
 0x4aa   : > { %4484 = vrot.lane.b32.xlu2 %v9859_v2, %s6247_s26  ;;  %v4725_v33 = vpop.permute.xlu1 %4724  ;;  %v4168_v27 = vsel %vm2409_vm11, %v4137_v18, %v3921_v50  ;;  %v863_v35 = vunpack.c.l.b16 %v607_v36  ;;  %v11536_v36 = vld [vmem:[#allocation7_spill] sm:$0xff] }
 0x4ab   : > { %4622 = vrot.lane.b32.xlu0 %v9652_v11, %s6249_s28  ;;  %v4971_v22 = vsel %vm2376_vm10, %v4939_v37, %v4725_v33  ;;  %v1296_v41 = vshrl.u32 %v924_v31, 16  ;;  %v1299_v58 = vshll.u32 %v924_v31, 16  ;;  %v11530_v37 = vld [vmem:[#allocation108_spill] sm:$0xff] }
 0x4ac   : > { %v9883_v4 = vpop.permute.xlu2 %4610  ;;  %v5002_v3 = vsel %vm2409_vm11, %v4971_v22, %v9779_v59  ;;  %v478_v59 = vld [vmem:[%s6384_s25 + $0x3a0] sm:$0xff]  ;;  %v11531_v22 = vld [vmem:[#allocation79_spill] sm:$0xff] }
 0x4ad   : > { %v3951_v56 = vpop.permute.xlu0 %3950  ;;  %v606_v60 = vpack.c.bf16 %v478_v59, %v478_v59  ;;  %v1298_v38 = vrot.slane %v1296_v41, 7 }
 0x4ae   : > { %v4199_v25 = vsel %vm2442_vm12, %v4168_v27, %v3951_v56  ;;  %v11528_v27 = vld [vmem:[#allocation21_spill] sm:$0xff]  ;;  %v11529_v56 = vld [vmem:[#allocation62_spill] sm:$0xff] }
 0x4af   : > { %v4229_v40 = vsel %vm2505_vm13, %v4199_v25, 0  ;;  %v862_v15 = vunpack.c.l.b16 %v606_v60  ;;  %v1301_v18 = vor.u32 %v1299_v58, %v1298_v38  ;;  %v3961_v25 = vsel %vm2211_vm5, %v11529_v56, %v11528_v27 }
 0x4b0   : > { %4256 = vmatpush.bf16.xpose.msrb.mxu1 %v4229_v40  ;;  %4589 = vrot.lane.b32.xlu1 %v9887_v13, %s6248_s27  ;;  %v3991_v40 = vsel %vm2244_vm6, %v3961_v25, %v11530_v37  ;;  %v11537_v37 = vld [vmem:[#allocation116_spill] sm:$0xff] }
 0x4b1   : > { %v932_v21 = vpack.c.b16 %v863_v35, %v862_v15 }
 0x4b2   : > { %4606 = vrot.lane.b32.xlu2 %v9646_v43, %s6249_s28  ;;  %v4785_v49 = vpop.permute.xlu1 %4784 }
 0x4b3   : > { %4686 = vrot.lane.b32.xlu0 %v9671_v34, %s6251_s14  ;;  %v5033_v44 = vsel %vm2442_vm12, %v5002_v3, %v4785_v49  ;;  %v1352_v46 = vshrl.u32 %v932_v21, 16  ;;  %v1355_v39 = vshll.u32 %v932_v21, 16  ;;  %v4023_v49 = vsel %vm2277_vm7, %v3991_v40, %v11531_v22 }
 0x4b4   : > { %v9904_v50 = vpop.permute.xlu2 %4670  ;;  %v5063_v30 = vsel %vm2505_vm13, %v5033_v44, 0  ;;  %v1642_v3 = vsel %vm6358_vm2, %v1298_v38, 0  ;;  %v4055_v44 = vsel %vm2310_vm8, %v4023_v49, %v11532_v16 }
 0x4b5   : > { %v9906_v55 = vpop.permute.xlu0 %4577  ;;  %5081 = vmatpush.bf16.xpose.msrb.mxu2 %v5063_v30  ;;  %v1354_v29 = vrot.slane %v1352_v46, 7  ;;  %v4087_v30 = vsel %vm2343_vm9, %v4055_v44, %v11533_v45  ;;  %v4529_v1 = vrot.slane %v1642_v3, 1 }
 0x4b6   : > { %v4119_v31 = vsel %vm2376_vm10, %v4087_v30, %v11535_v62  ;;  %v11538_v30 = vld [vmem:[#allocation30_spill] sm:$0xff] }
 0x4b7   : > { %v1357_v32 = vor.u32 %v1355_v39, %v1354_v29  ;;  %v4150_v15 = vsel %vm2409_vm11, %v4119_v31, %v11536_v36  ;;  %v1650_v21 = vsel %vm6358_vm2, %v1354_v29, 0  ;;  %v4314_v39 = vshll.u32 %v1642_v3, 16  ;;  %v11540_v62 = vld [vmem:[#allocation134_spill] sm:$0xff] }
 0x4b8   : > { %4650 = vrot.lane.b32.xlu1 %v9683_v10, %s6250_s29 }
 0x4b9   : > { %v9946_v24 = vsel %vm6358_vm2, 0, %v1357_v32  ;;  %v4316_v25 = vrot.slane %v4314_v39, 1  ;;  %v11545_v39 = vld [vmem:[#allocation32_spill] sm:$0xff] }
 0x4ba   : > { %4666 = vrot.lane.b32.xlu2 %v9689_v23, %s6250_s29  ;;  %v4473_v7 = vpop.permute.xlu1 %4472  ;;  %v4405_v60 = vshll.u32 %v9946_v24, 16  ;;  %v4403_v27 = vshrl.u32 %v9946_v24, 16  ;;  %v4552_v36 = vrot.slane %v9946_v24, 1 }
 0x4bb   : > { %4734 = vrot.lane.b32.xlu0 %v9542_v14, %s11227_s23  ;;  %v4811_v35 = vsel %vm2211_vm5, %v9536_v42, %v4473_v7  ;;  %v4410_v7 = vshll.u32 %v1650_v21, 16 }
 0x4bc   : > { %v9917_v63 = vpop.permute.xlu2 %4722  ;;  %v4841_v56 = vsel %vm2244_vm6, %v4811_v35, %v9906_v55  ;;  %v4827_v55 = vsel %vm2211_vm5, %v9542_v14, %v9842_v57  ;;  %v11541_v57 = vld [vmem:[#allocation92_spill] sm:$0xff]  ;;  %v11543_v35 = vld [vmem:[#allocation19_spill] sm:$0xff] }
 0x4bd   : > { %v9919_v26 = vpop.permute.xlu0 %4626  ;;  %v4873_v22 = vsel %vm2277_vm7, %v4841_v56, %v9883_v4  ;;  %v4412_v3 = vrot.slane %v4410_v7, 1 }
 0x4c0   : > { %4702 = vrot.lane.b32.xlu1 %v9719_v61, %s6251_s14 }
 0x4c2   : > { %4718 = vrot.lane.b32.xlu2 %v9536_v42, %s11227_s23  ;;  %v4594_v17 = vpop.permute.xlu1 %4593  ;;  %v4407_v42 = vrot.slane %v4405_v60, 1 }
 0x4c3   : > { %4778 = vrot.lane.b32.xlu0 %v9565_v0, %s6254_s22  ;;  %v9940_v0 = vsel %vm6358_vm2, 0, %v1301_v18 }
 0x4c4   : > { %v9927_v33 = vpop.permute.xlu2 %4768  ;;  %v4309_v20 = vshll.u32 %v9940_v0, 16  ;;  %v4528_v59 = vrot.slane %v9940_v0, 1  ;;  %v4307_v38 = vshrl.u32 %v9940_v0, 16  ;;  %v4408_v49 = vor.u32 %v4407_v42, %v4403_v27 }
 0x4c5   : > { %v4691_v28 = vpop.permute.xlu0 %4690 }
 0x4c6   : > { %v4311_v58 = vrot.slane %v4309_v20, 1  ;;  %v9971_v32 = vsel %vm1921_vm4, %v4528_v59, %v4529_v1  ;;  %v4857_v20 = vsel %vm2244_vm6, %v4827_v55, %v4594_v17  ;;  %v10001_v14 = vsel %vm1664_vm3, %v4408_v49, %v4412_v3  ;;  %v11542_v1 = vld [vmem:[#allocation49_spill] sm:$0xff]  ;;  %v460_v49 = vld [vmem:[%s6384_s25 + $0x310] sm:$0xff] }
 0x4c7   : > { %v4889_v17 = vsel %vm2277_vm7, %v4857_v20, %v9919_v26  ;;  %v461_v3 = vld [vmem:[%s6384_s25 + $0x318] sm:$0xff]  ;;  %v588_v55 = vpack.c.bf16 %v460_v49, %v460_v49 }
 0x4c8   : > { %4748 = vrot.lane.b32.xlu1 %v9581_v6, %s11245_s24  ;;  %v11534_v6 = vld [vmem:[#allocation131_spill] sm:$0xff]  ;;  %v4312_v29 = vor.u32 %v4311_v58, %v4307_v38  ;;  %v4921_v58 = vsel %vm2310_vm8, %v4889_v17, %v9904_v50 }
 0x4ca   : > { %4764 = vrot.lane.b32.xlu2 %v9584_v48, %s11245_s24  ;;  %v4655_v9 = vpop.permute.xlu1 %4654  ;;  %v9992_v45 = vsel %vm1664_vm3, %v4312_v29, %v4316_v25 }
 0x4cb   : > { %3944 = vrot.lane.b32.xlu0 %v11534_v6, %s6254_s22  ;;  %v11539_v6 = vld [vmem:[#allocation117_spill] sm:$0xff] }
 0x4cc   : > { %v3933_v41 = vpop.permute.xlu2 %3932  ;;  %v3977_v4 = vsel %vm2211_vm5, %v11539_v6, %v11538_v30  ;;  %v844_v6 = vunpack.c.l.b16 %v588_v55 }
 0x4cd   : > { %v4739_v48 = vpop.permute.xlu0 %4738  ;;  %v4181_v46 = vsel %vm2442_vm12, %v4150_v15, %v3933_v41  ;;  %v4007_v31 = vsel %vm2244_vm6, %v3977_v4, %v11540_v62  ;;  %v4553_v15 = vrot.slane %v1650_v21, 1 }
 0x4ce   : > { %v4211_v18 = vsel %vm2505_vm13, %v4181_v46, 0  ;;  %v11544_v46 = vld [vmem:[#allocation48_spill] sm:$0xff] }
 0x4cf   : > { %4238 = vmatpush.bf16.xpose.msrb.mxu0 %v4211_v18  ;;  %v10034_v50 = vsel %vm1921_vm4, %v4552_v36, %v4553_v15 }
 0x4d0   : > { %4794 = vrot.lane.b32.xlu1 %v9600_v19, %s6254_s22  ;;  %v4905_v19 = vsel %vm2310_vm8, %v4873_v22, %v4655_v9  ;;  %v4039_v9 = vsel %vm2277_vm7, %v4007_v31, %v11541_v57  ;;  %v477_v31 = vld [vmem:[%s6384_s25 + $0x398] sm:$0xff] }
 0x4d1   : > { %v4937_v59 = vsel %vm2343_vm9, %v4905_v19, %v4691_v28  ;;  %v4071_v60 = vsel %vm2310_vm8, %v4039_v9, %v11542_v1  ;;  %v589_v19 = vpack.c.bf16 %v461_v3, %v461_v3  ;;  %v605_v57 = vpack.c.bf16 %v477_v31, %v477_v31  ;;  %v11550_v3 = vld [vmem:[#allocation61_spill] sm:$0xff] }
 0x4d2   : > { %3928 = vrot.lane.b32.xlu2 %v11537_v37, %s6254_s22  ;;  %v4707_v40 = vpop.permute.xlu1 %4706  ;;  %v4103_v28 = vsel %vm2343_vm9, %v4071_v60, %v11543_v35  ;;  %v4969_v26 = vsel %vm2376_vm10, %v4937_v59, %v9917_v63 }
 0x4d3   : > { %4571 = vrot.lane.b32.xlu0 %v9971_v32, %s6248_s27  ;;  %v4135_v38 = vsel %vm2376_vm10, %v4103_v28, %v11544_v46  ;;  %v4953_v27 = vsel %vm2343_vm9, %v4921_v58, %v4707_v40  ;;  %v845_v4 = vunpack.c.l.b16 %v589_v19  ;;  %v861_v1 = vunpack.c.l.b16 %v605_v57  ;;  %v11551_v19 = vld [vmem:[#allocation87_spill] sm:$0xff] }
 0x4d4   : > { %v9988_v16 = vpop.permute.xlu2 %4486  ;;  %v4166_v18 = vsel %vm2409_vm11, %v4135_v38, %v11545_v39  ;;  %v4985_v37 = vsel %vm2376_vm10, %v4953_v27, %v4739_v48  ;;  %v11554_v57 = vld [vmem:[#allocation135_spill] sm:$0xff] }
 0x4d5   : > { %v4783_v44 = vpop.permute.xlu0 %4782  ;;  %v5016_v22 = vsel %vm2409_vm11, %v4985_v37, %v9927_v33  ;;  %v923_v62 = vpack.c.b16 %v845_v4, %v844_v6  ;;  %v476_v33 = vld [vmem:[%s6384_s25 + $0x390] sm:$0xff]  ;;  %v11549_v37 = vld [vmem:[#allocation17_spill] sm:$0xff] }
 0x4d6   : > { %v604_v59 = vpack.c.bf16 %v476_v33, %v476_v33  ;;  %v11553_v4 = vld [vmem:[#allocation20_spill] sm:$0xff] }
 0x4d7   : > { %v1289_v15 = vshrl.u32 %v923_v62, 16 }
 0x4d8   : > { %4466 = vrot.lane.b32.xlu1 %v9992_v45, %s6247_s26  ;;  %v860_v17 = vunpack.c.l.b16 %v604_v59 }
 0x4da   : > { %4482 = vrot.lane.b32.xlu2 %v10001_v14, %s6247_s26  ;;  %v4753_v41 = vpop.permute.xlu1 %4752  ;;  %v931_v35 = vpack.c.b16 %v861_v1, %v860_v17 }
 0x4db   : > { %4620 = vrot.lane.b32.xlu0 %v9800_v51, %s6249_s28  ;;  %v5000_v21 = vsel %vm2409_vm11, %v4969_v26, %v4753_v41  ;;  %v1291_v41 = vrot.slane %v1289_v15, 7  ;;  %v1292_v26 = vshll.u32 %v923_v62, 16 }
 0x4dc   : > { %v10028_v42 = vpop.permute.xlu2 %4608  ;;  %v5031_v63 = vsel %vm2442_vm12, %v5000_v21, %v4783_v44  ;;  %v1345_v28 = vshrl.u32 %v931_v35, 16  ;;  %v1348_v46 = vshll.u32 %v931_v35, 16 }
 0x4dd   : > { %v3949_v7 = vpop.permute.xlu0 %3948  ;;  %v5061_v29 = vsel %vm2505_vm13, %v5031_v63, 0  ;;  %v11547_v63 = vld [vmem:[#allocation53_spill] sm:$0xff] }
 0x4de   : > { %v4197_v56 = vsel %vm2442_vm12, %v4166_v18, %v3949_v7  ;;  %5082 = vmatpush.bf16.xpose.msrb.mxu2 %v5061_v29  ;;  %v1347_v38 = vrot.slane %v1345_v28, 7  ;;  %v1294_v18 = vor.u32 %v1292_v26, %v1291_v41  ;;  %v11546_v7 = vld [vmem:[#allocation93_spill] sm:$0xff]  ;;  %v11548_v29 = vld [vmem:[#allocation123_spill] sm:$0xff] }
 0x4df   : > { %v4227_v25 = vsel %vm2505_vm13, %v4197_v56, 0  ;;  %v3959_v56 = vsel %vm2211_vm5, %v11547_v63, %v11546_v7 }
 0x4e0   : > { %4257 = vmatpush.bf16.xpose.msrb.mxu1 %v4227_v25  ;;  %4587 = vrot.lane.b32.xlu1 %v10034_v50, %s6248_s27  ;;  %v1350_v27 = vor.u32 %v1348_v46, %v1347_v38  ;;  %v3989_v25 = vsel %vm2244_vm6, %v3959_v56, %v11548_v29  ;;  %v1649_v35 = vsel %vm6358_vm2, %v1347_v38, 0  ;;  %v11555_v29 = vld [vmem:[#allocation64_spill] sm:$0xff] }
 0x4e2   : > { %4604 = vrot.lane.b32.xlu2 %v9790_v5, %s6249_s28  ;;  %v4799_v40 = vpop.permute.xlu1 %4798  ;;  %v10091_v49 = vsel %vm6358_vm2, 0, %v1350_v27 }
 0x4e3   : > { %4684 = vrot.lane.b32.xlu0 %v9825_v12, %s6251_s14  ;;  %v5047_v48 = vsel %vm2442_vm12, %v5016_v22, %v4799_v40  ;;  %v4021_v40 = vsel %vm2277_vm7, %v3989_v25, %v11549_v37  ;;  %v1641_v22 = vsel %vm6358_vm2, %v1291_v41, 0  ;;  %v4393_v59 = vshll.u32 %v10091_v49, 16 }
 0x4e4   : > { %v10049_v44 = vpop.permute.xlu2 %4668  ;;  %v5077_v30 = vsel %vm2505_vm13, %v5047_v48, 0  ;;  %v4053_v48 = vsel %vm2310_vm8, %v4021_v40, %v11550_v3  ;;  %v4526_v31 = vrot.slane %v1641_v22, 1  ;;  %v4302_v46 = vshll.u32 %v1641_v22, 16 }
 0x4e5   : > { %v10051_v20 = vpop.permute.xlu0 %4575  ;;  %5101 = vmatpush.bf16.xpose.msrb.mxu3 %v5077_v30  ;;  %v4085_v30 = vsel %vm2343_vm9, %v4053_v48, %v11551_v19  ;;  %v4391_v7 = vshrl.u32 %v10091_v49, 16 }
 0x4e6   : > { %v4117_v62 = vsel %vm2376_vm10, %v4085_v30, %v11553_v4  ;;  %v4304_v56 = vrot.slane %v4302_v46, 1  ;;  %v11556_v30 = vld [vmem:[#allocation18_spill] sm:$0xff]  ;;  %v11558_v4 = vld [vmem:[#allocation8_spill] sm:$0xff] }
 0x4e7   : > { %v4148_v17 = vsel %vm2409_vm11, %v4117_v62, %v11554_v57  ;;  %v4549_v57 = vrot.slane %v10091_v49, 1 }
 0x4e8   : > { %4648 = vrot.lane.b32.xlu1 %v9845_v8, %s6250_s29 }
 0x4ea   : > { %4664 = vrot.lane.b32.xlu2 %v9859_v2, %s6250_s29  ;;  %v4471_v9 = vpop.permute.xlu1 %4470 }
 0x4eb   : > { %4732 = vrot.lane.b32.xlu0 %v9652_v11, %s11227_s23  ;;  %v4809_v1 = vsel %vm2211_vm5, %v9646_v43, %v4471_v9  ;;  %v4398_v9 = vshll.u32 %v1649_v35, 16 }
 0x4ec   : > { %v10062_v60 = vpop.permute.xlu2 %4720  ;;  %v4839_v63 = vsel %vm2244_vm6, %v4809_v1, %v10051_v20  ;;  %v4825_v20 = vsel %vm2211_vm5, %v9652_v11, %v9988_v16  ;;  %v11559_v16 = vld [vmem:[#allocation76_spill] sm:$0xff] }
 0x4ed   : > { %v10064_v36 = vpop.permute.xlu0 %4624  ;;  %v4871_v37 = vsel %vm2277_vm7, %v4839_v63, %v10028_v42  ;;  %v4400_v22 = vrot.slane %v4398_v9, 1  ;;  %v11561_v1 = vld [vmem:[#allocation128_spill] sm:$0xff] }
 0x4f0   : > { %4700 = vrot.lane.b32.xlu1 %v9887_v13, %s6251_s14 }
 0x4f2   : > { %4716 = vrot.lane.b32.xlu2 %v9646_v43, %s11227_s23  ;;  %v4592_v58 = vpop.permute.xlu1 %4591  ;;  %v4395_v43 = vrot.slane %v4393_v59, 1 }
 0x4f3   : > { %4776 = vrot.lane.b32.xlu0 %v9671_v34, %s6254_s22  ;;  %v10085_v34 = vsel %vm6358_vm2, 0, %v1294_v18 }
 0x4f4   : > { %v10072_v21 = vpop.permute.xlu2 %4766  ;;  %v4297_v55 = vshll.u32 %v10085_v34, 16  ;;  %v4525_v33 = vrot.slane %v10085_v34, 1  ;;  %v4295_v41 = vshrl.u32 %v10085_v34, 16  ;;  %v4396_v40 = vor.u32 %v4395_v43, %v4391_v7 }
 0x4f5   : > { %v4689_v39 = vpop.permute.xlu0 %4688 }
 0x4f6   : > { %v4299_v26 = vrot.slane %v4297_v55, 1  ;;  %v10116_v27 = vsel %vm1921_vm4, %v4525_v33, %v4526_v31  ;;  %v4855_v55 = vsel %vm2244_vm6, %v4825_v20, %v4592_v58  ;;  %v10146_v11 = vsel %vm1664_vm3, %v4396_v40, %v4400_v22  ;;  %v11560_v31 = vld [vmem:[#allocation43_spill] sm:$0xff]  ;;  %v458_v22 = vld [vmem:[%s6384_s25 + $0x300] sm:$0xff] }
 0x4f7   : > { %v4887_v58 = vsel %vm2277_vm7, %v4855_v55, %v10064_v36  ;;  %v459_v20 = vld [vmem:[%s6384_s25 + $0x308] sm:$0xff]  ;;  %s5822_s25 = sshll.u32 %s6375_s21, 3 }
 0x4f8   : > { %4746 = vrot.lane.b32.xlu1 %v9683_v10, %s11245_s24  ;;  %v11552_v10 = vld [vmem:[#allocation139_spill] sm:$0xff]  ;;  %v4300_v38 = vor.u32 %v4299_v26, %v4295_v41  ;;  %v4919_v26 = vsel %vm2310_vm8, %v4887_v58, %v10049_v44 }
 0x4fa   : > { %4762 = vrot.lane.b32.xlu2 %v9689_v23, %s11245_s24  ;;  %v4653_v6 = vpop.permute.xlu1 %4652  ;;  %v10137_v19 = vsel %vm1664_vm3, %v4300_v38, %v4304_v56 }
 0x4fb   : > { %3942 = vrot.lane.b32.xlu0 %v11552_v10, %s6254_s22  ;;  %v11557_v10 = vld [vmem:[#allocation50_spill] sm:$0xff] }
 0x4fc   : > { %v3931_v15 = vpop.permute.xlu2 %3930  ;;  %v3975_v42 = vsel %vm2211_vm5, %v11557_v10, %v11556_v30 }
 0x4fd   : > { %v4737_v23 = vpop.permute.xlu0 %4736  ;;  %v4179_v28 = vsel %vm2442_vm12, %v4148_v17, %v3931_v15  ;;  %v4005_v62 = vsel %vm2244_vm6, %v3975_v42, %v11558_v4  ;;  %v4550_v17 = vrot.slane %v1649_v35, 1 }
 0x4fe   : > { %v4209_v18 = vsel %vm2505_vm13, %v4179_v28, 0  ;;  %v11562_v28 = vld [vmem:[#allocation113_spill] sm:$0xff] }
 0x4ff   : > { %4239 = vmatpush.bf16.xpose.msrb.mxu0 %v4209_v18  ;;  %v10179_v38 = vsel %vm1921_vm4, %v4549_v57, %v4550_v17  ;;  %v11563_v57 = vld [vmem:[#allocation103_spill] sm:$0xff]  ;;  %v11564_v17 = vld [vmem:[#allocation94_spill] sm:$0xff] }
 0x500   : > { %4792 = vrot.lane.b32.xlu1 %v9719_v61, %s6254_s22  ;;  %v4903_v61 = vsel %vm2310_vm8, %v4871_v37, %v4653_v6  ;;  %v4037_v6 = vsel %vm2277_vm7, %v4005_v62, %v11559_v16 }
 0x501   : > { %v4935_v33 = vsel %vm2343_vm9, %v4903_v61, %v4689_v39  ;;  %v4069_v59 = vsel %vm2310_vm8, %v4037_v6, %v11560_v31  ;;  %v586_v61 = vpack.c.bf16 %v458_v22, %v458_v22 }
 0x502   : > { %3926 = vrot.lane.b32.xlu2 %v11555_v29, %s6254_s22  ;;  %v4705_v25 = vpop.permute.xlu1 %4704  ;;  %v4101_v39 = vsel %vm2343_vm9, %v4069_v59, %v11561_v1  ;;  %v4967_v36 = vsel %vm2376_vm10, %v4935_v33, %v10062_v60  ;;  %v3957_v1 = vsel %vm2211_vm5, %v11564_v17, %v11563_v57 }
 0x503   : > { %4569 = vrot.lane.b32.xlu0 %v10116_v27, %s6248_s27  ;;  %v4133_v41 = vsel %vm2376_vm10, %v4101_v39, %v11562_v28  ;;  %v4951_v18 = vsel %vm2343_vm9, %v4919_v26, %v4705_v25  ;;  %v842_v55 = vunpack.c.l.b16 %v586_v61  ;;  %v11566_v28 = vld [vmem:[#allocation39_spill] sm:$0xff] }
 0x504   : > { %v10133_v3 = vpop.permute.xlu2 %4484  ;;  %v4164_v46 = vsel %vm2409_vm11, %v4133_v41, %v9680_v54  ;;  %v4983_v54 = vsel %vm2376_vm10, %v4951_v18, %v4737_v23 }
 0x505   : > { %v4781_v48 = vpop.permute.xlu0 %4780  ;;  %v5014_v29 = vsel %vm2409_vm11, %v4983_v54, %v10072_v21 }
 0x508   : > { %4464 = vrot.lane.b32.xlu1 %v10137_v19, %s6247_s26 }
 0x50a   : > { %4480 = vrot.lane.b32.xlu2 %v10146_v11, %s6247_s26  ;;  %v4751_v15 = vpop.permute.xlu1 %4750 }
 0x50b   : > { %4618 = vrot.lane.b32.xlu0 %v9946_v24, %s6249_s28  ;;  %v4998_v35 = vsel %vm2409_vm11, %v4967_v36, %v4751_v15  ;;  %v11565_v15 = vld [vmem:[#allocation45_spill] sm:$0xff] }
 0x50c   : > { %v10173_v7 = vpop.permute.xlu2 %4606  ;;  %v5029_v9 = vsel %vm2442_vm12, %v4998_v35, %v4781_v48  ;;  %v587_v48 = vpack.c.bf16 %v459_v20, %v459_v20  ;;  %v3987_v36 = vsel %vm2244_vm6, %v3957_v1, %v11565_v15  ;;  %v11573_v1 = vld [vmem:[#allocation78_spill] sm:$0xff]  ;;  %v11574_v15 = vld [vmem:[#allocation133_spill] sm:$0xff] }
 0x50d   : > { %v3947_v43 = vpop.permute.xlu0 %3946  ;;  %v5059_v63 = vsel %vm2505_vm13, %v5029_v9, 0  ;;  %v4019_v41 = vsel %vm2277_vm7, %v3987_v36, %v11566_v28  ;;  %v3973_v36 = vsel %vm2211_vm5, %v11574_v15, %v11573_v1  ;;  %v11575_v28 = vld [vmem:[#allocation51_spill] sm:$0xff]  ;;  %v11585_v1 = vld [vmem:[#allocation34_spill] sm:$0xff] }
 0x50e   : > { %v4195_v60 = vsel %vm2442_vm12, %v4164_v46, %v3947_v43  ;;  %5083 = vmatpush.bf16.xpose.msrb.mxu2 %v5059_v63  ;;  %v843_v30 = vunpack.c.l.b16 %v587_v48  ;;  %v11568_v46 = vld [vmem:[#allocation35_spill] sm:$0xff]  ;;  %v11569_v43 = vld [vmem:[#allocation136_spill] sm:$0xff]  ;;  %v11570_v63 = vld [vmem:[#allocation74_spill] sm:$0xff] }
 0x50f   : > { %v4225_v44 = vsel %vm2505_vm13, %v4195_v60, 0 }
 0x510   : > { %4258 = vmatpush.bf16.xpose.msrb.mxu1 %v4225_v44  ;;  %4585 = vrot.lane.b32.xlu1 %v10179_v38, %s6248_s27  ;;  %v922_v10 = vpack.c.b16 %v843_v30, %v842_v55 }
 0x512   : > { %4602 = vrot.lane.b32.xlu2 %v9940_v0, %s6249_s28  ;;  %v4797_v56 = vpop.permute.xlu1 %4796  ;;  %v1282_v62 = vshrl.u32 %v922_v10, 16  ;;  %v1285_v16 = vshll.u32 %v922_v10, 16  ;;  %v11572_v10 = vld [vmem:[#allocation88_spill] sm:$0xff] }
 0x513   : > { %4682 = vrot.lane.b32.xlu0 %v9971_v32, %s6251_s14  ;;  %v5045_v25 = vsel %vm2442_vm12, %v5014_v29, %v4797_v56  ;;  %v11571_v56 = vld [vmem:[#allocation81_spill] sm:$0xff] }
 0x514   : > { %v10192_v37 = vpop.permute.xlu2 %4666  ;;  %v5075_v23 = vsel %vm2505_vm13, %v5045_v25, 0  ;;  %v1284_v33 = vrot.slane %v1282_v62, 7 }
 0x515   : > { %v4574_v40 = vpop.permute.xlu0 %4573  ;;  %5102 = vmatpush.bf16.xpose.msrb.mxu3 %v5075_v23 }
 0x516   : > { %v1287_v58 = vor.u32 %v1285_v16, %v1284_v33  ;;  %v1640_v60 = vsel %vm6358_vm2, %v1284_v33, 0  ;;  %v4823_v16 = vsel %vm2211_vm5, %v9800_v51, %v10133_v3 }
 0x517   : > { %v4523_v54 = vrot.slane %v1640_v60, 1  ;;  %v4290_v61 = vshll.u32 %v1640_v60, 16 }
 0x518   : > { %4646 = vrot.lane.b32.xlu1 %v9992_v45, %s6250_s29  ;;  %v10216_v39 = vsel %vm6358_vm2, 0, %v1287_v58 }
 0x519   : > { %v4285_v35 = vshll.u32 %v10216_v39, 16  ;;  %v4522_v44 = vrot.slane %v10216_v39, 1  ;;  %v4283_v20 = vshrl.u32 %v10216_v39, 16 }
 0x51a   : > { %4662 = vrot.lane.b32.xlu2 %v10001_v14, %s6250_s29  ;;  %v4469_v21 = vpop.permute.xlu1 %4468 }
 0x51b   : > { %4730 = vrot.lane.b32.xlu0 %v9800_v51, %s11227_s23  ;;  %v4807_v25 = vsel %vm2211_vm5, %v9790_v5, %v4469_v21  ;;  %v4287_v47 = vrot.slane %v4285_v35, 1  ;;  %v10246_v55 = vsel %vm1921_vm4, %v4522_v44, %v4523_v54  ;;  %v4292_v21 = vrot.slane %v4290_v61, 1  ;;  %v11576_v51 = vld [vmem:[#allocation68_spill] sm:$0xff]  ;;  %v11578_v35 = vld [vmem:[#allocation73_spill] sm:$0xff] }
 0x51c   : > { %v4719_v42 = vpop.permute.xlu2 %4718  ;;  %v4837_v30 = vsel %vm2244_vm6, %v4807_v25, %v4574_v40 }
 0x51d   : > { %v4623_v4 = vpop.permute.xlu0 %4622  ;;  %v4869_v33 = vsel %vm2277_vm7, %v4837_v30, %v10173_v7  ;;  %v4003_v7 = vsel %vm2244_vm6, %v3973_v36, %v11575_v28  ;;  %v11586_v36 = vld [vmem:[#allocation12_spill] sm:$0xff] }
 0x51e   : > { %v4035_v3 = vsel %vm2277_vm7, %v4003_v7, %v11576_v51  ;;  %v11587_v7 = vld [vmem:[#allocation71_spill] sm:$0xff] }
 0x520   : > { %4698 = vrot.lane.b32.xlu1 %v10034_v50, %s6251_s14 }
 0x522   : > { %4714 = vrot.lane.b32.xlu2 %v9790_v5, %s11227_s23  ;;  %v4590_v6 = vpop.permute.xlu1 %4589  ;;  %v4288_v5 = vor.u32 %v4287_v47, %v4283_v20  ;;  %v11582_v20 = vld [vmem:[#allocation127_spill] sm:$0xff] }
 0x523   : > { %4774 = vrot.lane.b32.xlu0 %v9825_v12, %s6254_s22  ;;  %v11567_v12 = vld [vmem:[#allocation84_spill] sm:$0xff]  ;;  %v4853_v57 = vsel %vm2244_vm6, %v4823_v16, %v4590_v6  ;;  %v11577_v6 = vld [vmem:[#allocation70_spill] sm:$0xff] }
 0x524   : > { %v10209_v31 = vpop.permute.xlu2 %4764  ;;  %v4051_v26 = vsel %vm2310_vm8, %v4019_v41, %v11567_v12  ;;  %v10265_v17 = vsel %vm1664_vm3, %v4288_v5, %v4292_v21  ;;  %v4885_v12 = vsel %vm2277_vm7, %v4853_v57, %v4623_v4 }
 0x525   : > { %v4687_v59 = vpop.permute.xlu0 %4686  ;;  %v4083_v18 = vsel %vm2343_vm9, %v4051_v26, %v11568_v46  ;;  %v4067_v26 = vsel %vm2310_vm8, %v4035_v3, %v11577_v6  ;;  %v4917_v60 = vsel %vm2310_vm8, %v4885_v12, %v10192_v37  ;;  %v11589_v12 = vld [vmem:[#allocation86_spill] sm:$0xff] }
 0x526   : > { %v4099_v46 = vsel %vm2343_vm9, %v4067_v26, %v11578_v35  ;;  %v11590_v6 = vld [vmem:[#allocation58_spill] sm:$0xff]  ;;  %v11591_v35 = vld [vmem:[#allocation9_spill] sm:$0xff] }
 0x528   : > { %4744 = vrot.lane.b32.xlu1 %v9845_v8, %s11245_s24  ;;  %v4115_v8 = vsel %vm2376_vm10, %v4083_v18, %v11570_v63 }
 0x529   : > { %v4146_v29 = vsel %vm2409_vm11, %v4115_v8, %v11571_v56  ;;  %v11581_v8 = vld [vmem:[#allocation33_spill] sm:$0xff] }
 0x52a   : > { %4760 = vrot.lane.b32.xlu2 %v9859_v2, %s11245_s24  ;;  %v4651_v9 = vpop.permute.xlu1 %4650 }
 0x52b   : > { %3940 = vrot.lane.b32.xlu0 %v11569_v43, %s6254_s22  ;;  %v4901_v40 = vsel %vm2310_vm8, %v4869_v33, %v4651_v9  ;;  %v11580_v9 = vld [vmem:[#allocation105_spill] sm:$0xff] }
 0x52c   : > { %v3929_v2 = vpop.permute.xlu2 %3928  ;;  %v4933_v41 = vsel %vm2343_vm9, %v4901_v40, %v4687_v59  ;;  %v11579_v59 = vld [vmem:[#allocation110_spill] sm:$0xff]  ;;  %v4131_v4 = vsel %vm2376_vm10, %v4099_v46, %v11580_v9  ;;  %v11583_v40 = vld [vmem:[#allocation75_spill] sm:$0xff] }
 0x52d   : > { %v4735_v23 = vpop.permute.xlu0 %4734  ;;  %v4177_v22 = vsel %vm2442_vm12, %v4146_v29, %v3929_v2  ;;  %v4965_v43 = vsel %vm2376_vm10, %v4933_v41, %v4719_v42  ;;  %v4162_v44 = vsel %vm2409_vm11, %v4131_v4, %v11581_v8  ;;  %v11588_v41 = vld [vmem:[#allocation85_spill] sm:$0xff] }
 0x52e   : > { %v4207_v48 = vsel %vm2505_vm13, %v4177_v22, 0 }
 0x52f   : > { %4240 = vmatpush.bf16.xpose.msrb.mxu0 %v4207_v48 }
 0x530   : > { %4790 = vrot.lane.b32.xlu1 %v9887_v13, %s6254_s22 }
 0x532   : > { %3924 = vrot.lane.b32.xlu2 %v11572_v10, %s6254_s22  ;;  %v4703_v62 = vpop.permute.xlu1 %4702 }
 0x533   : > { %4567 = vrot.lane.b32.xlu0 %v10246_v55, %s6248_s27  ;;  %v4949_v54 = vsel %vm2343_vm9, %v4917_v60, %v4703_v62 }
 0x534   : > { %v10261_v58 = vpop.permute.xlu2 %4482  ;;  %v4981_v37 = vsel %vm2376_vm10, %v4949_v54, %v4735_v23 }
 0x535   : > { %v4779_v13 = vpop.permute.xlu0 %4778  ;;  %v5012_v61 = vsel %vm2409_vm11, %v4981_v37, %v10209_v31  ;;  %v11596_v37 = vld [vmem:[#allocation23_spill] sm:$0xff] }
 0x538   : > { %4462 = vrot.lane.b32.xlu1 %v10265_v17, %s6247_s26 }
 0x53a   : > { %v4749_v18 = vpop.permute.xlu1 %4748  ;;  %4478 = vrot.lane.b32.xlu2 %v11579_v59, %s6247_s26 }
 0x53b   : > { %4616 = vrot.lane.b32.xlu0 %v10091_v49, %s6249_s28  ;;  %v4996_v63 = vsel %vm2409_vm11, %v4965_v43, %v4749_v18 }
 0x53c   : > { %v4605_v42 = vpop.permute.xlu2 %4604  ;;  %v5027_v29 = vsel %vm2442_vm12, %v4996_v63, %v4779_v13  ;;  %v11584_v13 = vld [vmem:[#allocation77_spill] sm:$0xff]  ;;  %v11592_v63 = vld [vmem:[#allocation26_spill] sm:$0xff] }
 0x53d   : > { %v3945_v56 = vpop.permute.xlu0 %3944  ;;  %v5057_v2 = vsel %vm2505_vm13, %v5027_v29, 0  ;;  %v3955_v57 = vsel %vm2211_vm5, %v11584_v13, %v11583_v40  ;;  %v11593_v29 = vld [vmem:[#allocation137_spill] sm:$0xff] }
 0x53e   : > { %v4193_v25 = vsel %vm2442_vm12, %v4162_v44, %v3945_v56  ;;  %5084 = vmatpush.bf16.xpose.msrb.mxu2 %v5057_v2  ;;  %v3985_v15 = vsel %vm2244_vm6, %v3955_v57, %v11585_v1  ;;  %v11595_v2 = vld [vmem:[#allocation114_spill] sm:$0xff] }
 0x53f   : > { %v4223_v22 = vsel %vm2505_vm13, %v4193_v25, 0  ;;  %v4017_v28 = vsel %vm2277_vm7, %v3985_v15, %v11586_v36  ;;  %v11594_v25 = vld [vmem:[#allocation132_spill] sm:$0xff] }
 0x540   : > { %4259 = vmatpush.bf16.xpose.msrb.mxu1 %v4223_v22  ;;  %4583 = vrot.lane.b32.xlu1 %v11582_v20, %s6248_s27 }
 0x542   : > { %v4795_v47 = vpop.permute.xlu1 %4794  ;;  %4600 = vrot.lane.b32.xlu2 %v10085_v34, %s6249_s28 }
 0x543   : > { %4680 = vrot.lane.b32.xlu0 %v10116_v27, %s6251_s14  ;;  %v5043_v48 = vsel %vm2442_vm12, %v5012_v61, %v4795_v47 }
 0x544   : > { %v4665_v30 = vpop.permute.xlu2 %4664  ;;  %v5073_v23 = vsel %vm2505_vm13, %v5043_v48, 0  ;;  %v11598_v48 = vld [vmem:[#allocation36_spill] sm:$0xff] }
 0x545   : > { %v4572_v5 = vpop.permute.xlu0 %4571  ;;  %5103 = vmatpush.bf16.xpose.msrb.mxu3 %v5073_v23 }
 0x548   : > { %4644 = vrot.lane.b32.xlu1 %v10137_v19, %s6250_s29 }
 0x54a   : > { %v4467_v21 = vpop.permute.xlu1 %4466  ;;  %4660 = vrot.lane.b32.xlu2 %v10146_v11, %s6250_s29 }
 0x54b   : > { %4728 = vrot.lane.b32.xlu0 %v9946_v24, %s11227_s23  ;;  %v4805_v43 = vsel %vm2211_vm5, %v9940_v0, %v4467_v21 }
 0x54c   : > { %v4717_v31 = vpop.permute.xlu2 %4716  ;;  %v4835_v60 = vsel %vm2244_vm6, %v4805_v43, %v4572_v5  ;;  %v11601_v43 = vld [vmem:[#allocation10_spill] sm:$0xff] }
 0x54d   : > { %v4621_v10 = vpop.permute.xlu0 %4620  ;;  %v4867_v8 = vsel %vm2277_vm7, %v4835_v60, %v4605_v42 }
 0x550   : > { %4696 = vrot.lane.b32.xlu1 %v10179_v38, %s6251_s14 }
 0x552   : > { %v4588_v62 = vpop.permute.xlu1 %4587  ;;  %4712 = vrot.lane.b32.xlu2 %v9940_v0, %s11227_s23  ;;  %v4821_v0 = vsel %vm2211_vm5, %v9946_v24, %v10261_v58  ;;  %v11597_v58 = vld [vmem:[#allocation120_spill] sm:$0xff] }
 0x553   : > { %4772 = vrot.lane.b32.xlu0 %v9971_v32, %s6254_s22  ;;  %v4049_v32 = vsel %vm2310_vm8, %v4017_v28, %v11587_v7 }
 0x554   : > { %v4763_v33 = vpop.permute.xlu2 %4762  ;;  %v4081_v51 = vsel %vm2343_vm9, %v4049_v32, %v11588_v41 }
 0x555   : > { %v4685_v16 = vpop.permute.xlu0 %4684  ;;  %v4113_v26 = vsel %vm2376_vm10, %v4081_v51, %v11590_v6 }
 0x556   : > { %v4144_v46 = vsel %vm2409_vm11, %v4113_v26, %v11591_v35 }
 0x558   : > { %4742 = vrot.lane.b32.xlu1 %v9992_v45, %s11245_s24 }
 0x55a   : > { %v4649_v3 = vpop.permute.xlu1 %4648  ;;  %4758 = vrot.lane.b32.xlu2 %v10001_v14, %s11245_s24 }
 0x55b   : > { %4581 = vrot.lane.b32.xlu0 %v11589_v12, %s6248_s27  ;;  %v4899_v44 = vsel %vm2310_vm8, %v4867_v8, %v4649_v3  ;;  %v11605_v8 = vld [vmem:[#allocation97_spill] sm:$0xff]  ;;  %s6073_s27 = sshll.u32 %s6375_s21, 8 }
 0x55c   : > { %v3927_v45 = vpop.permute.xlu2 %3926  ;;  %v4931_v42 = vsel %vm2343_vm9, %v4899_v44, %v4685_v16  ;;  %v11600_v16 = vld [vmem:[#allocation40_spill] sm:$0xff]  ;;  %v11606_v44 = vld [vmem:[#allocation129_spill] sm:$0xff] }
 0x55d   : > { %v4733_v18 = vpop.permute.xlu0 %4732  ;;  %v4175_v9 = vsel %vm2442_vm12, %v4144_v46, %v3927_v45  ;;  %v4963_v21 = vsel %vm2376_vm10, %v4931_v42, %v4717_v31 }
 0x55e   : > { %v4205_v4 = vsel %vm2505_vm13, %v4175_v9, 0 }
 0x55f   : > { %4241 = vmatpush.bf16.xpose.msrb.mxu0 %v4205_v4  ;;  %v11603_v4 = vld [vmem:[#allocation91_spill] sm:$0xff] }
 0x560   : > { %4788 = vrot.lane.b32.xlu1 %v10034_v50, %s6254_s22  ;;  %v4851_v50 = vsel %vm2244_vm6, %v4821_v0, %v4588_v62  ;;  %v11599_v62 = vld [vmem:[#allocation52_spill] sm:$0xff]  ;;  %v6085_v0 = vld [vmem:[#allocation2 + $0x34] sm:$0xf0] }
 0x561   : > { %v4883_v24 = vsel %vm2277_vm7, %v4851_v50, %v4621_v10 }
 0x562   : > { %v4701_v14 = vpop.permute.xlu1 %4700  ;;  %4476 = vrot.lane.b32.xlu2 %v11592_v63, %s6247_s26  ;;  %v4915_v40 = vsel %vm2310_vm8, %v4883_v24, %v4665_v30 }
 0x563   : > { %4642 = vrot.lane.b32.xlu0 %v10265_v17, %s6250_s29  ;;  %v3971_v17 = vsel %vm2211_vm5, %v11594_v25, %v11593_v29  ;;  %v4947_v1 = vsel %vm2343_vm9, %v4915_v40, %v4701_v14  ;;  %v11604_v14 = vld [vmem:[#allocation46_spill] sm:$0xff] }
 0x564   : > { %v10359_v54 = vpop.permute.xlu2 %4480  ;;  %v4001_v22 = vsel %vm2244_vm6, %v3971_v17, %v11595_v2  ;;  %v4979_v30 = vsel %vm2376_vm10, %v4947_v1, %v4733_v18  ;;  %v5875_v2 = vld [vmem:[#allocation2 + $0x30] sm:$0xf]  ;;  %v11607_v1 = vld [vmem:[#allocation106_spill] sm:$0xff] }
 0x565   : > { %v4777_v56 = vpop.permute.xlu0 %4776  ;;  %v4033_v47 = vsel %vm2277_vm7, %v4001_v22, %v11596_v37  ;;  %v5010_v32 = vsel %vm2409_vm11, %v4979_v30, %v4763_v33  ;;  %v5132_v22 = vld [vmem:[%s10784_s5] sm:$0xff]  ;;  %v5876_v37 = vor.u32 %v6085_v0, %v5875_v2  ;;  %v11610_v30 = vld [vmem:[#allocation111_spill] sm:$0xff] }
 0x566   : > { %v4065_v61 = vsel %vm2310_vm8, %v4033_v47, %v11597_v58  ;;  %v6083_v47 = vld [vmem:[#allocation2 + $0x24] sm:$0xf0]  ;;  %v5867_v58 = vld [vmem:[#allocation2 + $0x20] sm:$0xf] }
 0x567   : > { %v4097_v5 = vsel %vm2343_vm9, %v4065_v61, %v11598_v48  ;;  %v5868_v48 = vor.u32 %v6083_v47, %v5867_v58  ;;  %v6080_v58 = vld [vmem:[#allocation2 + $0x14] sm:$0xf] }
 0x568   : > { %4598 = vrot.lane.b32.xlu1 %v10216_v39, %s6249_s28  ;;  %v4129_v10 = vsel %vm2376_vm10, %v4097_v5, %v11600_v16  ;;  %v6081_v5 = vld [vmem:[#allocation2 + $0x14] sm:$0xf0] }
 0x569   : > { %v4160_v57 = vsel %vm2409_vm11, %v4129_v10, %v9704_v52 }
 0x56a   : > { %v4747_v23 = vpop.permute.xlu1 %4746  ;;  %4614 = vrot.lane.b32.xlu2 %v11599_v62, %s6249_s28  ;;  %s6202_s28 = scalar_lea.hbm %s10788_s9, 64 }
 0x56b   : > { %4694 = vrot.lane.b32.xlu0 %v11582_v20, %s6251_s14  ;;  %v4994_v13 = vsel %vm2409_vm11, %v4963_v21, %v4747_v23  ;;  %v4819_v23 = vsel %vm2211_vm5, %v10091_v49, %v10359_v54 }
 0x56c   : > { %v4603_v31 = vpop.permute.xlu2 %4602  ;;  %v5025_v20 = vsel %vm2442_vm12, %v4994_v13, %v4777_v56  ;;  %v5859_v13 = vld [vmem:[#allocation2 + $0x10] sm:$0xf] }
 0x56d   : > { %v3943_v15 = vpop.permute.xlu0 %3942  ;;  %v5055_v28 = vsel %vm2505_vm13, %v5025_v20, 0  ;;  %v5860_v54 = vor.u32 %v6081_v5, %v5859_v13  ;;  %v11609_v20 = vld [vmem:[#allocation25_spill] sm:$0xff]  ;;  %v10507_v13 = vld [vmem:[%s10783_s4] sm:$0xff] }
 0x56e   : > { %v4191_v36 = vsel %vm2442_vm12, %v4160_v57, %v3943_v15  ;;  %5085 = vmatpush.bf16.xpose.msrb.mxu2 %v5055_v28  ;;  %v5628_v57 = vld [vmem:[%s10786_s7 + $0x10] sm:$0xff] }
 0x56f   : > { %v4221_v7 = vsel %vm2505_vm13, %v4191_v36, 0 }
 0x570   : > { %4260 = vmatpush.bf16.xpose.msrb.mxu1 %v4221_v7  ;;  %4658 = vrot.lane.b32.xlu1 %v11579_v59, %s6250_s29  ;;  %s355_s29 = scalar_lea.vmem %s10780_s1, %s5822_s25  ;;  %v6079_v7 = vld [vmem:[#allocation2 + $0x4] sm:$0xf0]  ;;  %s6257_s25 = smov 127  }
 0x572   : > { %v4793_v52 = vpop.permute.xlu1 %4792  ;;  %4678 = vrot.lane.b32.xlu2 %v10246_v55, %s6251_s14  ;;  %s6255_s14 = smov 1  }
 0x573   : > { %4740 = vrot.lane.b32.xlu0 %v10137_v19, %s11245_s24  ;;  %v5041_v41 = vsel %vm2442_vm12, %v5010_v32, %v4793_v52  ;;  %v5600_v19 = vld [vmem:[%s355_s29] sm:$0xff] }
 0x574   : > { %v10403_v51 = vpop.permute.xlu2 %4662  ;;  %v5071_v12 = vsel %vm2505_vm13, %v5041_v41, 0  ;;  %v5601_v6 = vpack.c.bf16 %v5600_v19, %v5600_v19  ;;  %v11611_v41 = vld [vmem:[#allocation104_spill] sm:$0xff]  ;;  %v11612_v19 = vld [vmem:[#allocation59_spill] sm:$0xff] }
 0x575   : > { %v4570_v3 = vpop.permute.xlu0 %4569  ;;  %5104 = vmatpush.bf16.xpose.msrb.mxu3 %v5071_v12  ;;  %v5851_v12 = vld [vmem:[#allocation2] sm:$0xf] }
 0x576   : > { %v5603_v26 = vunpack.c.l.b16 %v5601_v6 }
 0x578   : > { %4710 = vrot.lane.b32.xlu1 %v10085_v34, %s11227_s23  ;;  %v5604_v18 = vpack.c.b16 %v5603_v26, %v5603_v26 }
 0x57a   : > { %v4465_v59 = vpop.permute.xlu1 %4464  ;;  %4726 = vrot.lane.b32.xlu2 %v10091_v49, %s11227_s23  ;;  %v10457_v49 = vld [vmem:[%s10781_s2] sm:$0xff] }
 0x57b   : > { %4786 = vrot.lane.b32.xlu0 %v10179_v38, %s6254_s22  ;;  %v11602_v38 = vld [vmem:[#allocation119_spill] sm:$0xff]  ;;  %v4803_v25 = vsel %vm2211_vm5, %v10085_v34, %v4465_v59 }
 0x57c   : > { %v4715_v55 = vpop.permute.xlu2 %4714  ;;  %v4015_v9 = vsel %vm2277_vm7, %v11602_v38, %v11601_v43  ;;  %v4833_v24 = vsel %vm2244_vm6, %v4803_v25, %v4570_v3  ;;  %v11614_v25 = vmov 0  }
 0x57d   : > { %v4619_v33 = vpop.permute.xlu0 %4618  ;;  %v4047_v60 = vsel %vm2310_vm8, %v4015_v9, %v11603_v4  ;;  %v4865_v34 = vsel %vm2277_vm7, %v4833_v24, %v4603_v31  ;;  %v11608_v31 = vld [vmem:[#allocation80_spill] sm:$0xff]  ;;  %v5877_v9 = vld [vmem:[#allocation2 + $0x38] sm:$0xf0] }
 0x57e   : > { %v3969_v15 = vsel %vm2211_vm5, %v11608_v31, %v11607_v1 }
 0x57f   : > { %v3999_v36 = vsel %vm2244_vm6, %v3969_v15, %v11609_v20 }
 0x580   : > { %4756 = vrot.lane.b32.xlu1 %v10146_v11, %s11245_s24  ;;  %v4079_v11 = vsel %vm2343_vm9, %v4047_v60, %v11604_v14  ;;  %v4031_v52 = vsel %vm2277_vm7, %v3999_v36, %v11610_v30 }
 0x581   : > { %v4063_v3 = vsel %vm2310_vm8, %v4031_v52, %v11611_v41 }
 0x582   : > { %v4586_v35 = vpop.permute.xlu1 %4585  ;;  %4770 = vrot.lane.b32.xlu2 %v10116_v27, %s6254_s22  ;;  %v4111_v27 = vsel %vm2376_vm10, %v4079_v11, %v11605_v8  ;;  %v4095_v59 = vsel %vm2343_vm9, %v4063_v3, %v11612_v19 }
 0x583   : > { %v4142_v56 = vsel %vm2409_vm11, %v4111_v27, %v11606_v44  ;;  %v4849_v40 = vsel %vm2244_vm6, %v4819_v23, %v4586_v35  ;;  %v5852_v35 = vor.u32 %v6079_v7, %v5851_v12  ;;  %v6084_v27 = vld [vmem:[#allocation2 + $0x34] sm:$0xf] }
 0x584   : > { %v10419_v46 = vpop.permute.xlu2 %4760  ;;  %v4881_v32 = vsel %vm2277_vm7, %v4849_v40, %v4619_v33 }
 0x585   : > { %v4683_v45 = vpop.permute.xlu0 %4682  ;;  %v4913_v43 = vsel %vm2310_vm8, %v4881_v32, %v10403_v51  ;;  %v5134_v51 = vld [vmem:[%s10784_s5 + $0x10] sm:$0xff] }
 0x588   : > { %5605 = vrot.lane.b32.xlu1 %v5604_v18, %s6255_s14  ;;  %s10601_s14 = scalar_lea.vmem %s10787_s8, %s6073_s27 }
 0x58a   : > { %v4647_v63 = vpop.permute.xlu1 %4646 }
 0x58b   : > { %v4897_v21 = vsel %vm2310_vm8, %v4865_v34, %v4647_v63  ;;  %v6078_v34 = vld [vmem:[#allocation2 + $0x4] sm:$0xf] }
 0x58c   : > { %v3925_v50 = vpop.permute.xlu2 %3924  ;;  %v4929_v28 = vsel %vm2343_vm9, %v4897_v21, %v4683_v45  ;;  %v11613_v45 = vld [vmem:[#allocation89_spill] sm:$0xff] }
 0x58d   : > { %v4731_v29 = vpop.permute.xlu0 %4730  ;;  %v4173_v17 = vsel %vm2442_vm12, %v4142_v56, %v3925_v50  ;;  %v4961_v26 = vsel %vm2376_vm10, %v4929_v28, %v4715_v55  ;;  %v4127_v18 = vsel %vm2376_vm10, %v4095_v59, %v11613_v45  ;;  %v5869_v56 = vld [vmem:[#allocation2 + $0x28] sm:$0xf0]  ;;  %v6082_v50 = vld [vmem:[#allocation2 + $0x24] sm:$0xf] }
 0x58e   : > { %v4203_v42 = vsel %vm2505_vm13, %v4173_v17, 0  ;;  %v4158_v4 = vsel %vm2409_vm11, %v4127_v18, %v9665_v53  ;;  %v5880_v53 = vor.u32 %v6084_v27, %v5877_v9  ;;  %v5872_v2 = vor.u32 %v6082_v50, %v5869_v56  ;;  %v10520_v28 = vld [vmem:[%s10783_s4 + $0x8] sm:$0xff] }
 0x58f   : > { %4242 = vmatpush.bf16.xpose.msrb.mxu0 %v4203_v42 }
 0x590   : > { %5186 = vperm.xlu1 %6177, %v5132_v22  }
 0x592   : > { %v4699_v61 = vpop.permute.xlu1 %4698 }
 0x593   : > { %v4945_v60 = vsel %vm2343_vm9, %v4913_v43, %v4699_v61  ;;  %v10497_v61 = vld [vmem:[%s10781_s2 + $0x8] sm:$0xff] }
 0x594   : > { %v10445_v10 = vpop.permute.xlu2 %4478  ;;  %v4977_v44 = vsel %vm2376_vm10, %v4945_v60, %v4731_v29 }
 0x595   : > { %v4775_v16 = vpop.permute.xlu0 %4774  ;;  %v5008_v22 = vsel %vm2409_vm11, %v4977_v44, %v10419_v46  ;;  %v4817_v52 = vsel %vm2211_vm5, %v11599_v62, %v10445_v10 }
 0x596   : > { %5841 = vmatmul.msk.bf16.vlgmr.msrb.gmra.mxu0 %vm2505_vm13, %v10457_v49 }
 0x597   : > { %5223 = vmatpush.bf16.msra.mxu0 %v5876_v37  ;;  %v5861_v37 = vld [vmem:[#allocation2 + $0x18] sm:$0xf0] }
 0x598   : > { %5642 = vperm.xlu1 %6177, %v5628_v57   ;;  %v5864_v46 = vor.u32 %v6080_v58, %v5861_v37 }
 0x59a   : > { %v4745_v6 = vpop.permute.xlu1 %4744 }
 0x59b   : > { %5224 = vmatpush.bf16.msra.mxu0 %v5868_v48  ;;  %v4992_v33 = vsel %vm2409_vm11, %v4961_v26, %v4745_v6  ;;  %v5853_v48 = vld [vmem:[#allocation2 + $0x8] sm:$0xf0] }
 0x59c   : > { %v5023_v11 = vsel %vm2442_vm12, %v4992_v33, %v4775_v16  ;;  %v4601_v55 = vpop.permute.xlu2 %4600  ;;  %v5856_v23 = vor.u32 %v6078_v34, %v5853_v48 }
 0x59d   : > { %v3941_v14 = vpop.permute.xlu0 %3940  ;;  %v5053_v8 = vsel %vm2505_vm13, %v5023_v11, 0 }
 0x59e   : > { %v4189_v63 = vsel %vm2442_vm12, %v4158_v4, %v3941_v14  ;;  %5086 = vmatpush.bf16.xpose.msrb.mxu2 %v5053_v8 }
 0x59f   : > { %5225 = vmatpush.bf16.msra.mxu0 %v5860_v54  ;;  %v4219_v0 = vsel %vm2505_vm13, %v4189_v63, 0 }
 0x5a0   : > { %4261 = vmatpush.bf16.xpose.msrb.mxu1 %v4219_v0  ;;  %5196 = vperm.xlu1 %6177, %v5134_v51   ;;  %v11615_v0 = vld [vmem:[#allocation98_spill] sm:$0xff] }
 0x5a2   : > { %v4791_v17 = vpop.permute.xlu1 %4790 }
 0x5a3   : > { %5226 = vmatpush.bf16.msra.mxu0 %v5852_v35  ;;  %v5039_v42 = vsel %vm2442_vm12, %v5008_v22, %v4791_v17 }
 0x5a4   : > { %v5069_v47 = vsel %vm2505_vm13, %v5039_v42, 0  ;;  %v4661_v29 = vpop.permute.xlu2 %4660 }
 0x5a5   : > { %v4568_v24 = vpop.permute.xlu0 %4567  ;;  %5105 = vmatpush.bf16.xpose.msrb.mxu3 %v5069_v47 }
 0x5a6   : > { %5842 = vmatmul.msk.bf16.gmra.mxu0 %vm2505_vm13, %v10497_v61 }
 0x5a7   : > { %5227 = vmatpush.bf16.msra.mxu0 %v11614_v25  ;;  %5843 = vmatmul.msk.bf16.vlgmr.msrb.gmra.mxu1 %vm2505_vm13, %v10457_v49 }
 0x5a8   : > { %5242 = vmatpush.bf16.msra.mxu1 %v5880_v53 }
 0x5aa   : > { %v4463_v5 = vpop.permute.xlu1 %4462 }
 0x5ab   : > { %5228 = vmatpush.bf16.msra.mxu0 %v11614_v25  ;;  %v4801_v54 = vsel %vm2211_vm5, %v10216_v39, %v4463_v5 }
 0x5ac   : > { %5243 = vmatpush.bf16.msra.mxu1 %v5872_v2  ;;  %v4713_v16 = vpop.permute.xlu2 %4712  ;;  %v4831_v20 = vsel %vm2244_vm6, %v4801_v54, %v4568_v24  ;;  %v5135_v54 = vld [vmem:[%s10784_s5 + $0x18] sm:$0xff] }
 0x5ad   : > { %v4617_v21 = vpop.permute.xlu0 %4616  ;;  %v4863_v30 = vsel %vm2277_vm7, %v4831_v20, %v4601_v55 }
 0x5b0   : > { %5244 = vmatpush.bf16.msra.mxu1 %v5864_v46 }
 0x5b2   : > { %v4584_v40 = vpop.permute.xlu1 %4583 }
 0x5b3   : > { %v4847_v39 = vsel %vm2244_vm6, %v4817_v52, %v4584_v40  ;;  %v11616_v52 = vld [vmem:[#allocation141_spill] sm:$0xff] }
 0x5b4   : > { %5245 = vmatpush.bf16.msra.mxu1 %v5856_v23  ;;  %v4759_v1 = vpop.permute.xlu2 %4758  ;;  %v4879_v12 = vsel %vm2277_vm7, %v4847_v39, %v4617_v21 }
 0x5b5   : > { %v4681_v57 = vpop.permute.xlu0 %4680  ;;  %v4911_v62 = vsel %vm2310_vm8, %v4879_v12, %v4661_v29 }
 0x5b6   : > { %5889 = vmatmul.msk.bf16.vlgmr.msra.gmra.mxu0 %vm5214_vm14, %v10507_v13 }
 0x5b7   : > { %5844 = vmatmul.msk.bf16.gmra.mxu1 %vm2505_vm13, %v10497_v61 }
 0x5b8   : > { %5246 = vmatpush.bf16.msra.mxu1 %v11614_v25 }
 0x5ba   : > { %v4645_v31 = vpop.permute.xlu1 %4644 }
 0x5bb   : > { %v4895_v32 = vsel %vm2310_vm8, %v4863_v30, %v4645_v31  ;;  %v5627_v31 = vld [vmem:[%s10786_s7 + $0x8] sm:$0xff] }
 0x5bc   : > { %5247 = vmatpush.bf16.msra.mxu1 %v11614_v25  ;;  %v4477_v7 = vpop.permute.xlu2 %4476  ;;  %v4927_v3 = vsel %vm2343_vm9, %v4895_v32, %v4681_v57 }
 0x5bd   : > { %v4729_v15 = vpop.permute.xlu0 %4728  ;;  %v4959_v19 = vsel %vm2376_vm10, %v4927_v3, %v4713_v16  ;;  %v4815_v53 = vsel %vm2211_vm5, %v11615_v0, %v4477_v7 }
 0x5c2   : > { %v4697_v36 = vpop.permute.xlu1 %4696 }
 0x5c3   : > { %v4943_v6 = vsel %vm2343_vm9, %v4911_v62, %v4697_v36 }
 0x5c4   : > { %v4615_v45 = vpop.permute.xlu2 %4614  ;;  %v4975_v43 = vsel %vm2376_vm10, %v4943_v6, %v4729_v15  ;;  %v5629_v15 = vld [vmem:[%s10786_s7 + $0x18] sm:$0xff] }
 0x5c5   : > { %v4773_v41 = vpop.permute.xlu0 %4772  ;;  %v5006_v33 = vsel %vm2409_vm11, %v4975_v43, %v4759_v1  ;;  %v5626_v1 = vld [vmem:[%s10786_s7] sm:$0xff] }
 0x5c6   : > { %5890 = vmatmul.msk.bf16.gmra.mxu0 %vm5214_vm14, %v10520_v28 }
 0x5c7   : > { %5891 = vmatmul.msk.bf16.vlgmr.msra.gmra.mxu1 %vm5214_vm14, %v10507_v13 }
 0x5ca   : > { %v4743_v59 = vpop.permute.xlu1 %4742 }
 0x5cb   : > { %v4990_v10 = vsel %vm2409_vm11, %v4959_v19, %v4743_v59 }
 0x5cc   : > { %v5021_v26 = vsel %vm2442_vm12, %v4990_v10, %v4773_v41  ;;  %v4679_v11 = vpop.permute.xlu2 %4678 }
 0x5cd   : > { %v4582_v35 = vpop.permute.xlu0 %4581  ;;  %v5051_v18 = vsel %vm2505_vm13, %v5021_v26, 0 }
 0x5ce   : > { %5087 = vmatpush.bf16.xpose.msrb.mxu2 %v5051_v18  ;;  %v4845_v50 = vsel %vm2244_vm6, %v4815_v53, %v4582_v35  ;;  %v11618_v35 = vld [vmem:[#allocation57_spill] sm:$0xff] }
 0x5cf   : > { %v4877_v22 = vsel %vm2277_vm7, %v4845_v50, %v4615_v45 }
 0x5d2   : > { %v4789_v9 = vpop.permute.xlu1 %4788 }
 0x5d3   : > { %v5037_v4 = vsel %vm2442_vm12, %v5006_v33, %v4789_v9 }
 0x5d4   : > { %v5067_v60 = vsel %vm2505_vm13, %v5037_v4, 0  ;;  %v4727_v8 = vpop.permute.xlu2 %4726 }
 0x5d5   : > { %v4643_v14 = vpop.permute.xlu0 %4642  ;;  %5106 = vmatpush.bf16.xpose.msrb.mxu3 %v5067_v60 }
 0x5d7   : > { %5892 = vmatmul.msk.bf16.gmra.mxu1 %vm5214_vm14, %v10520_v28 }
 0x5da   : > { %v4599_v55 = vpop.permute.xlu1 %4598 }
 0x5db   : > { %v4861_v51 = vsel %vm2277_vm7, %v11602_v38, %v4599_v55 }
 0x5dc   : > { %v4893_v44 = vsel %vm2310_vm8, %v4861_v51, %v4643_v14  ;;  %v4771_v2 = vpop.permute.xlu2 %4770  ;;  %v11619_v14 = vld [vmem:[#allocation72_spill] sm:$0xff] }
 0x5dd   : > { %v4695_v63 = vpop.permute.xlu0 %4694  ;;  %v4925_v25 = vsel %vm2343_vm9, %v4893_v44, %v4679_v11 }
 0x5e2   : > { %v4659_v27 = vpop.permute.xlu1 %4658 }
 0x5e3   : > { %v4909_v37 = vsel %vm2310_vm8, %v4877_v22, %v4659_v27 }
 0x5e4   : > { %v4941_v29 = vsel %vm2343_vm9, %v4909_v37, %v4695_v63 }
 0x5e5   : > { %v4741_v56 = vpop.permute.xlu0 %4740  ;;  %v4973_v46 = vsel %vm2376_vm10, %v4941_v29, %v4727_v8 }
 0x5ea   : > { %v4711_v17 = vpop.permute.xlu1 %4710 }
 0x5eb   : > { %v4957_v42 = vsel %vm2376_vm10, %v4925_v25, %v4711_v17 }
 0x5ec   : > { %v4988_v38 = vsel %vm2409_vm11, %v4957_v42, %v4741_v56 }
 0x5ed   : > { %v5019_v47 = vsel %vm2442_vm12, %v4988_v38, %v4771_v2  ;;  %v4787_v58 = vpop.permute.xlu0 %4786 }
 0x5ee   : > { %v5049_v24 = vsel %vm2505_vm13, %v5019_v47, 0 }
 0x5ef   : > { %5088 = vmatpush.bf16.xpose.msrb.mxu2 %v5049_v24 }
 0x5f2   : > { %v4757_v48 = vpop.permute.xlu1 %4756 }
 0x5f3   : > { %v5004_v34 = vsel %vm2409_vm11, %v4973_v46, %v4757_v48  ;;  %v5921_v46 = vld [vmem:[#allocation2 + $0x38] sm:$0xf0]  ;;  %v5919_v48 = vld [vmem:[#allocation2 + $0x30] sm:$0xf] }
 0x5f4   : > { %v5035_v5 = vsel %vm2442_vm12, %v5004_v34, %v4787_v58  ;;  %v6093_v58 = vld [vmem:[#allocation2 + $0x34] sm:$0xf0]  ;;  %v6092_v34 = vld [vmem:[#allocation2 + $0x34] sm:$0xf] }
 0x5f5   : > { %v5065_v23 = vsel %vm2505_vm13, %v5035_v5, 0  ;;  %v5920_v5 = vor.u32 %v6093_v58, %v5919_v48 }
 0x5f6   : > { %5845 = vmatmul.msk.bf16.vlgmr.msrb.gmra.mxu2 %vm2505_vm13, %v10457_v49  ;;  %5107 = vmatpush.bf16.xpose.msrb.mxu3 %v5065_v23  ;;  %v5924_v23 = vor.u32 %v6092_v34, %v5921_v46 }
 0x5fa   : > { %v5606_v21 = vpop.permute.xlu1 %5605 }
 0x5fb   : > { %v5609_v16 = vsel %vm5607_vm15, 0, %v5606_v21  ;;  %v6091_v21 = vld [vmem:[#allocation2 + $0x24] sm:$0xf0] }
 0x5fc   : > { %v10566_v40 = vsel %vm5610_vm0, %v5609_v16, 0  ;;  %v5913_v16 = vld [vmem:[#allocation2 + $0x28] sm:$0xf0] }
 0x5fd   : > { %v5613_v57 = vrot.slane %v10566_v40, 4  ;;  %5616 = vrot.lane.b32.xlu2 %v10566_v40, %s6256_s17  ;;  %5847 = vmatmul.msk.bf16.vlgmr.msrb.gmra.mxu3 %vm2505_vm13, %v10457_v49  ;;  %v5133_v49 = vld [vmem:[%s10784_s5 + $0x8] sm:$0xff]  ;;  %s5819_s17 = sshll.u32 %s344_s16, 5 }
 0x5fe   : > { %s346_s27 = scalar_lea.vmem [#allocation3], %s5819_s17 }
 0x5ff   : > { %5614 = vrot.lane.b32.xlu0 %v5613_v57, %s6257_s25  ;;  %s6120_s25 = sshll.u32 %s6330_s13, 5  ;;  %s5713_s22 = sshll.u32 %s346_s27, 4  ;;  %s5714_s22 = int_to_ptr.vmem [resolvable:$true] %s5713_s22 }
 0x600   : > { %s5712_s21 = scalar_lea.hbm %s10788_s9, %s6120_s25  ;;  %s5698_s13 = scalar_lea.sflag [#allocation4], %s344_s16 }
 0x602   : > { %v10595_v62 = vpop.permute.xlu1 %5186 }
 0x605   : > { %5632 = vperm.xlu2 %6175, %v5626_v1   ;;  %v5911_v1 = vld [vmem:[#allocation2 + $0x20] sm:$0xf] }
 0x606   : > { %5846 = vmatmul.msk.bf16.gmra.mxu2 %vm2505_vm13, %v10497_v61 }
 0x607   : > { %5637 = vperm.xlu0 %6176, %v5627_v31   ;;  %v6090_v31 = vld [vmem:[#allocation2 + $0x24] sm:$0xf] }
 0x60a   : > { %v10607_v9 = vpop.permute.xlu1 %5642 }
 0x60d   : > { %5647 = vperm.xlu2 %6175, %v5629_v15   ;;  %5848 = vmatmul.msk.bf16.gmra.mxu3 %vm2505_vm13, %v10497_v61  ;;  %v11617_v61 = vld [vmem:[#allocation11_spill] sm:$0xff] }
 0x60f   : > { %5191 = vperm.xlu0 %6176, %v5133_v49   ;;  %v5912_v49 = vor.u32 %v6091_v21, %v5911_v1 }
 0x612   : > { %v10613_v8 = vpop.permute.xlu1 %5196 }
 0x613   : > { %v4244_v20 = vpop.f32.mrf.mxu0 }
 0x614   : > { %v4245_v32 = vadd.f32 %v4244_v20, %v11616_v52  ;;  %v6089_v20 = vld [vmem:[#allocation2 + $0x14] sm:$0xf0] }
 0x615   : > { %5201 = vperm.xlu2 %6175, %v5135_v54   ;;  %v5916_v54 = vor.u32 %v6090_v31, %v5913_v16 }
 0x61b   : > { %v4246_v36 = vpop.f32.mrf.mxu0 }
 0x61c   : > { %v4247_v19 = vadd.f32 %v4246_v36, %v11617_v61  ;;  %v5905_v36 = vld [vmem:[#allocation2 + $0x18] sm:$0xf0] }
 0x623   : > { %v4249_v7 = vpop.f32.mrf.mxu0 }
 0x624   : > { %v4263_v30 = vpop.f32.mrf.mxu1  ;;  %v4250_v45 = vadd.f32 %v4249_v7, %v11618_v35 }
 0x625   : > { %v4264_v41 = vadd.f32 %v4263_v30, %v11616_v52  ;;  %v5903_v30 = vld [vmem:[#allocation2 + $0x10] sm:$0xf] }
 0x627   : > { %v4273_v39 = vpack.c.bf16 %v4264_v41, %v4245_v32  ;;  %v6088_v32 = vld [vmem:[#allocation2 + $0x14] sm:$0xf]  ;;  %v5904_v41 = vor.u32 %v6089_v20, %v5903_v30 }
 0x629   : > { %4278 = vst [vmem:[#allocation2 + $0x40] sm:$0xff] %v4273_v39  ;;  %v5908_v39 = vor.u32 %v6088_v32, %v5905_v36 }
 0x62b   : > { %v4251_v3 = vpop.f32.mrf.mxu0 }
 0x62c   : > { %v4265_v12 = vpop.f32.mrf.mxu1  ;;  %v4252_v11 = vadd.f32 %v4251_v3, %v11619_v14  ;;  %v6087_v3 = vld [vmem:[#allocation2 + $0x4] sm:$0xf0] }
 0x62d   : > { %v4266_v59 = vadd.f32 %v4265_v12, %v11617_v61  ;;  %v5897_v12 = vld [vmem:[#allocation2 + $0x8] sm:$0xf0] }
 0x62f   : > { %v4274_v10 = vpack.c.bf16 %v4266_v59, %v4247_v19  ;;  %v5895_v19 = vld [vmem:[#allocation2] sm:$0xf]  ;;  %v6086_v59 = vld [vmem:[#allocation2 + $0x4] sm:$0xf] }
 0x630   : > { %v5927_v38 = vld [vmem:[#allocation2 + $0x40] sm:$0xf]  ;;  %v6094_v47 = vld [vmem:[#allocation2 + $0x44] sm:$0xf] }
 0x631   : > { %4279 = vst [vmem:[#allocation2 + $0x48] sm:$0xff] %v4274_v10  ;;  %v5896_v10 = vor.u32 %v6087_v3, %v5895_v19 }
 0x633   : > { %v5230_v26 = vpop.f32.mrf.mxu0 }
 0x634   : > { %v4268_v6 = vpop.f32.mrf.mxu1  ;;  %v5231_v43 = vadd.f32 %v5230_v26, %v10595_v62 }
 0x635   : > { %v4269_v18 = vadd.f32 %v4268_v6, %v11618_v35  ;;  %v5900_v6 = vor.u32 %v6086_v59, %v5897_v12 }
 0x636   : > { %5259 = vst [vmem:[%s10601_s14] sm:$0xff] %v5231_v43 }
 0x637   : > { %v4275_v33 = vpack.c.bf16 %v4269_v18, %v4250_v45 }
 0x638   : > { %v6095_v22 = vld [vmem:[#allocation2 + $0x44] sm:$0xf0]  ;;  %v5929_v42 = vld [vmem:[#allocation2 + $0x48] sm:$0xf0] }
 0x639   : > { %4280 = vst [vmem:[#allocation2 + $0x50] sm:$0xff] %v4275_v33  ;;  %v5928_v24 = vor.u32 %v6095_v22, %v5927_v38  ;;  %v5932_v29 = vor.u32 %v6094_v47, %v5929_v42 }
 0x63b   : > { %v10609_v60 = vpop.f32.mrf.mxu0 }
 0x63c   : > { %v4270_v4 = vpop.f32.mrf.mxu1 }
 0x63d   : > { %v4271_v55 = vadd.f32 %v4270_v4, %v11619_v14 }
 0x63f   : > { %v4276_v63 = vpack.c.bf16 %v4271_v55, %v4252_v11 }
 0x640   : > { %v5935_v44 = vld [vmem:[#allocation2 + $0x50] sm:$0xf]  ;;  %v6096_v56 = vld [vmem:[#allocation2 + $0x54] sm:$0xf] }
 0x641   : > { %4281 = vst [vmem:[#allocation2 + $0x58] sm:$0xff] %v4276_v63 }
 0x643   : > { %v5235_v27 = vpop.f32.mrf.mxu0 }
 0x644   : > { %v5249_v51 = vpop.f32.mrf.mxu1  ;;  %v5236_v0 = vadd.f32 %v5235_v27, %v10613_v8 }
 0x645   : > { %v5250_v53 = vadd.f32 %v5249_v51, %v10595_v62 }
 0x646   : > { %5263 = vst [vmem:[%s10601_s14 + $0x20] sm:$0xff] %v5236_v0 }
 0x647   : > { %5260 = vst [vmem:[%s10601_s14 + $0x8] sm:$0xff] %v5250_v53 }
 0x648   : > { %v6097_v50 = vld [vmem:[#allocation2 + $0x54] sm:$0xf0]  ;;  %v5937_v25 = vld [vmem:[#allocation2 + $0x58] sm:$0xf0] }
 0x649   : > { %v5936_v17 = vor.u32 %v6097_v50, %v5935_v44  ;;  %v5940_v2 = vor.u32 %v6096_v56, %v5937_v25 }
 0x64b   : > { %5341 = vmatpush.bf16.msra.mxu2 %v5936_v17  ;;  %5360 = vmatpush.bf16.msra.mxu3 %v5940_v2  ;;  %v5237_v18 = vpop.f32.mrf.mxu0 }
 0x64c   : > { %v10619_v37 = vpop.f32.mrf.mxu1 }
 0x64f   : > { %5342 = vmatpush.bf16.msra.mxu2 %v5928_v24  ;;  %5361 = vmatpush.bf16.msra.mxu3 %v5932_v29 }
 0x653   : > { %5343 = vmatpush.bf16.msra.mxu2 %v5920_v5  ;;  %5362 = vmatpush.bf16.msra.mxu3 %v5924_v23 }
 0x654   : > { %v5254_v57 = vpop.f32.mrf.mxu1 }
 0x655   : > { %v5255_v15 = vadd.f32 %v5254_v57, %v10613_v8 }
 0x657   : > { %5264 = vst [vmem:[%s10601_s14 + $0x28] sm:$0xff] %v5255_v15  ;;  %5344 = vmatpush.bf16.msra.mxu2 %v5912_v49  ;;  %5363 = vmatpush.bf16.msra.mxu3 %v5916_v54  ;;  %v10623_v7 = vpop.permute.xlu2 %5616 }
 0x65b   : > { %5345 = vmatpush.bf16.msra.mxu2 %v5904_v41  ;;  %5364 = vmatpush.bf16.msra.mxu3 %v5908_v39 }
 0x65c   : > { %v5256_v43 = vpop.f32.mrf.mxu1 }
 0x65f   : > { %5346 = vmatpush.bf16.msra.mxu2 %v5896_v10  ;;  %5365 = vmatpush.bf16.msra.mxu3 %v5900_v6  ;;  %v10625_v26 = vpop.permute.xlu2 %5632  ;;  %v6105_v6 = vld [vmem:[#allocation2 + $0x54] sm:$0xf0] }
 0x662   : > { %5941 = vmatmul.msk.bf16.vlgmr.msra.gmra.mxu2 %vm5214_vm14, %v10507_v13  ;;  %5943 = vmatmul.msk.bf16.vlgmr.msra.gmra.mxu3 %vm5214_vm14, %v10507_v13 }
 0x667   : > { %v10631_v45 = vpop.permute.xlu2 %5647 }
 0x66f   : > { %v10633_v33 = vpop.permute.xlu2 %5201 }
 0x670   : > { %v5238_v4 = vadd.f32 %v5237_v18, %v10633_v33  ;;  %v5257_v11 = vadd.f32 %v5256_v43, %v10633_v33  ;;  %v5981_v18 = vld [vmem:[#allocation2 + $0x58] sm:$0xf0]  ;;  %v6113_v43 = vld [vmem:[#allocation2 + $0x54] sm:$0xf0] }
 0x671   : > { %v10641_v55 = vpop.permute.xlu0 %5614 }
 0x672   : > { %5942 = vmatmul.msk.bf16.gmra.mxu2 %vm5214_vm14, %v10520_v28  ;;  %5944 = vmatmul.msk.bf16.gmra.mxu3 %vm5214_vm14, %v10520_v28  ;;  %5265 = vst [vmem:[%s10601_s14 + $0x30] sm:$0xff] %v5238_v4  ;;  %v6025_v4 = vld [vmem:[#allocation2 + $0x58] sm:$0xf0] }
 0x673   : > { %5266 = vst [vmem:[%s10601_s14 + $0x38] sm:$0xff] %v5257_v11  ;;  %v5979_v11 = vld [vmem:[#allocation2 + $0x50] sm:$0xf] }
 0x679   : > { %v5090_v63 = vpop.f32.mrf.mxu2  ;;  %v10645_v27 = vpop.permute.xlu0 %5637 }
 0x67a   : > { %v5091_v0 = vadd.f32 %v5090_v63, %v11616_v52  ;;  %v6104_v63 = vld [vmem:[#allocation2 + $0x54] sm:$0xf] }
 0x680   : > { %v5109_v51 = vpop.f32.mrf.mxu3 }
 0x681   : > { %v5110_v53 = vadd.f32 %v5109_v51, %v11616_v52  ;;  %v10649_v44 = vpop.permute.xlu0 %5191  ;;  %v5092_v56 = vpop.f32.mrf.mxu2  ;;  %v5980_v51 = vor.u32 %v6105_v6, %v5979_v11 }
 0x682   : > { %v5233_v50 = vadd.f32 %v10609_v60, %v10649_v44  ;;  %v5252_v25 = vadd.f32 %v10619_v37, %v10649_v44  ;;  %v5093_v22 = vadd.f32 %v5092_v56, %v11617_v61  ;;  %v6112_v56 = vld [vmem:[#allocation2 + $0x54] sm:$0xf] }
 0x683   : > { %v5119_v17 = vpack.c.bf16 %v5110_v53, %v5091_v0  ;;  %v5984_v0 = vor.u32 %v6104_v63, %v5981_v18  ;;  %v6023_v53 = vld [vmem:[#allocation2 + $0x50] sm:$0xf] }
 0x684   : > { %5261 = vst [vmem:[%s10601_s14 + $0x10] sm:$0xff] %v5233_v50  ;;  %v6024_v50 = vor.u32 %v6113_v43, %v6023_v53 }
 0x685   : > { %5124 = vst [vmem:[#allocation2 + $0x60] sm:$0xff] %v5119_v17  ;;  %v6103_v17 = vld [vmem:[#allocation2 + $0x44] sm:$0xf0] }
 0x686   : > { %5262 = vst [vmem:[%s10601_s14 + $0x18] sm:$0xff] %v5252_v25  ;;  %v6028_v25 = vor.u32 %v6112_v56, %v6025_v4 }
 0x688   : > { %v5111_v2 = vpop.f32.mrf.mxu3 }
 0x689   : > { %v5112_v42 = vadd.f32 %v5111_v2, %v11617_v61  ;;  %v5095_v52 = vpop.f32.mrf.mxu2  ;;  %v5973_v2 = vld [vmem:[#allocation2 + $0x48] sm:$0xf0] }
 0x68a   : > { %v5096_v24 = vadd.f32 %v5095_v52, %v11618_v35  ;;  %v6102_v52 = vld [vmem:[#allocation2 + $0x44] sm:$0xf] }
 0x68b   : > { %v5120_v38 = vpack.c.bf16 %v5112_v42, %v5093_v22  ;;  %v6111_v22 = vld [vmem:[#allocation2 + $0x44] sm:$0xf0]  ;;  %v6017_v42 = vld [vmem:[#allocation2 + $0x48] sm:$0xf0] }
 0x68c   : > { %v5987_v32 = vld [vmem:[#allocation2 + $0x60] sm:$0xf]  ;;  %v6106_v41 = vld [vmem:[#allocation2 + $0x64] sm:$0xf] }
 0x68d   : > { %5125 = vst [vmem:[#allocation2 + $0x68] sm:$0xff] %v5120_v38  ;;  %v6031_v12 = vld [vmem:[#allocation2 + $0x60] sm:$0xf]  ;;  %v6114_v19 = vld [vmem:[#allocation2 + $0x64] sm:$0xf] }
 0x68e   : > { %v5971_v38 = vld [vmem:[#allocation2 + $0x40] sm:$0xf] }
 0x690   : > { %v5114_v47 = vpop.f32.mrf.mxu3 }
 0x691   : > { %v5115_v60 = vadd.f32 %v5114_v47, %v11618_v35  ;;  %v5097_v37 = vpop.f32.mrf.mxu2  ;;  %v5972_v47 = vor.u32 %v6103_v17, %v5971_v38 }
 0x692   : > { %v5098_v46 = vadd.f32 %v5097_v37, %v11619_v14 }
 0x693   : > { %v5121_v29 = vpack.c.bf16 %v5115_v60, %v5096_v24  ;;  %v5976_v24 = vor.u32 %v6102_v52, %v5973_v2  ;;  %v6015_v60 = vld [vmem:[#allocation2 + $0x40] sm:$0xf] }
 0x694   : > { %v6107_v20 = vld [vmem:[#allocation2 + $0x64] sm:$0xf0]  ;;  %v5989_v36 = vld [vmem:[#allocation2 + $0x68] sm:$0xf0]  ;;  %v6016_v37 = vor.u32 %v6111_v22, %v6015_v60 }
 0x695   : > { %5126 = vst [vmem:[#allocation2 + $0x70] sm:$0xff] %v5121_v29  ;;  %v6115_v30 = vld [vmem:[#allocation2 + $0x64] sm:$0xf0]  ;;  %v5988_v39 = vor.u32 %v6107_v20, %v5987_v32  ;;  %v5992_v3 = vor.u32 %v6106_v41, %v5989_v36  ;;  %v6110_v29 = vld [vmem:[#allocation2 + $0x44] sm:$0xf] }
 0x696   : > { %v6032_v59 = vor.u32 %v6115_v30, %v6031_v12 }
 0x698   : > { %v5116_v58 = vpop.f32.mrf.mxu3 }
 0x699   : > { %v5117_v48 = vadd.f32 %v5116_v58, %v11619_v14  ;;  %v6033_v14 = vld [vmem:[#allocation2 + $0x68] sm:$0xf0]  ;;  %v6020_v58 = vor.u32 %v6110_v29, %v6017_v42 }
 0x69a   : > { %v6036_v10 = vor.u32 %v6114_v19, %v6033_v14 }
 0x69b   : > { %v5122_v34 = vpack.c.bf16 %v5117_v48, %v5098_v46  ;;  %v6101_v46 = vld [vmem:[#allocation2 + $0x34] sm:$0xf0]  ;;  %v5965_v48 = vld [vmem:[#allocation2 + $0x38] sm:$0xf0] }
 0x69c   : > { %v5995_v5 = vld [vmem:[#allocation2 + $0x70] sm:$0xf]  ;;  %v6108_v61 = vld [vmem:[#allocation2 + $0x74] sm:$0xf] }
 0x69d   : > { %5127 = vst [vmem:[#allocation2 + $0x78] sm:$0xff] %v5122_v34  ;;  %v6039_v23 = vld [vmem:[#allocation2 + $0x70] sm:$0xf]  ;;  %v6116_v35 = vld [vmem:[#allocation2 + $0x74] sm:$0xf] }
 0x69e   : > { %v5963_v34 = vld [vmem:[#allocation2 + $0x30] sm:$0xf] }
 0x6a4   : > { %v6109_v21 = vld [vmem:[#allocation2 + $0x74] sm:$0xf0]  ;;  %v5997_v16 = vld [vmem:[#allocation2 + $0x78] sm:$0xf0] }
 0x6a5   : > { %v6117_v57 = vld [vmem:[#allocation2 + $0x74] sm:$0xf0]  ;;  %v5996_v1 = vor.u32 %v6109_v21, %v5995_v5  ;;  %v6000_v31 = vor.u32 %v6108_v61, %v5997_v16  ;;  %v6041_v49 = vld [vmem:[#allocation2 + $0x78] sm:$0xf0]  ;;  %v6100_v5 = vld [vmem:[#allocation2 + $0x34] sm:$0xf]  ;;  %v5964_v61 = vor.u32 %v6101_v46, %v5963_v34 }
 0x6a6   : > { %v6040_v15 = vor.u32 %v6117_v57, %v6039_v23  ;;  %v6044_v54 = vor.u32 %v6116_v35, %v6041_v49  ;;  %v5968_v23 = vor.u32 %v6100_v5, %v5965_v48  ;;  %v6099_v21 = vld [vmem:[#allocation2 + $0x24] sm:$0xf0]  ;;  %v5957_v16 = vld [vmem:[#allocation2 + $0x28] sm:$0xf0]  ;;  %v5955_v57 = vld [vmem:[#allocation2 + $0x20] sm:$0xf]  ;;  %v5620_v49 = vsel %vm5618_vm1, %v10566_v40, %v10641_v55 }
 0x6a7   : > { %5460 = vmatpush.bf16.msrb.mxu0 %v5996_v1  ;;  %5479 = vmatpush.bf16.msrb.mxu1 %v6000_v31  ;;  %v6098_v1 = vld [vmem:[#allocation2 + $0x24] sm:$0xf]  ;;  %v5667_v31 = vsel %vm5618_vm1, %v10623_v7, 0  ;;  %v6119_v40 = vld [vmem:[%s10785_s6 + $0x8] sm:$0xff] }
 0x6a8   : > { %5557 = vmatpush.bf16.msrb.mxu2 %v6040_v15  ;;  %5576 = vmatpush.bf16.msrb.mxu3 %v6044_v54  ;;  %v5956_v15 = vor.u32 %v6099_v21, %v5955_v57  ;;  %v5960_v35 = vor.u32 %v6098_v1, %v5957_v16 }
 0x6ab   : > { %5461 = vmatpush.bf16.msrb.mxu0 %v5988_v39  ;;  %5480 = vmatpush.bf16.msrb.mxu1 %v5992_v3 }
 0x6ac   : > { %5558 = vmatpush.bf16.msrb.mxu2 %v6032_v59  ;;  %5577 = vmatpush.bf16.msrb.mxu3 %v6036_v10 }
 0x6af   : > { %5462 = vmatpush.bf16.msrb.mxu0 %v5980_v51  ;;  %5481 = vmatpush.bf16.msrb.mxu1 %v5984_v0 }
 0x6b0   : > { %5559 = vmatpush.bf16.msrb.mxu2 %v6024_v50  ;;  %5578 = vmatpush.bf16.msrb.mxu3 %v6028_v25 }
 0x6b3   : > { %5463 = vmatpush.bf16.msrb.mxu0 %v5972_v47  ;;  %5482 = vmatpush.bf16.msrb.mxu1 %v5976_v24 }
 0x6b4   : > { %5560 = vmatpush.bf16.msrb.mxu2 %v6016_v37  ;;  %5579 = vmatpush.bf16.msrb.mxu3 %v6020_v58 }
 0x6b7   : > { %6045 = vmatmul.msk.bf16.vlgmr.msrb.gmra.mxu2 %vm5214_vm14, %v10507_v13  ;;  %6047 = vmatmul.msk.bf16.vlgmr.msrb.gmra.mxu3 %vm5214_vm14, %v10507_v13 }
 0x6b8   : > { %5464 = vmatpush.bf16.msrb.mxu0 %v5964_v61  ;;  %5483 = vmatpush.bf16.msrb.mxu1 %v5968_v23 }
 0x6bc   : > { %5465 = vmatpush.bf16.msrb.mxu0 %v5956_v15  ;;  %5484 = vmatpush.bf16.msrb.mxu1 %v5960_v35 }
 0x6bf   : > { %6001 = vmatmul.msk.bf16.vlgmr.msrb.gmra.mxu0 %vm5214_vm14, %v10507_v13  ;;  %6003 = vmatmul.msk.bf16.vlgmr.msrb.gmra.mxu1 %vm5214_vm14, %v10507_v13  ;;  %v6118_v13 = vld [vmem:[%s10785_s6] sm:$0xff] }
 0x6c0   : > { %5675 = vmatpush.bf16.msra.mxu0 %v5667_v31  ;;  %6121 = vmatpush.bf16.msra.mxu1 %v5667_v31 }
 0x6c4   : > { %5676 = vmatpush.bf16.msra.mxu0 %v5620_v49  ;;  %6122 = vmatpush.bf16.msra.mxu1 %v5620_v49 }
 0x6c7   : > { %6046 = vmatmul.msk.bf16.gmra.mxu2 %vm5214_vm14, %v10520_v28  ;;  %6048 = vmatmul.msk.bf16.gmra.mxu3 %vm5214_vm14, %v10520_v28 }
 0x6cf   : > { %6002 = vmatmul.msk.bf16.gmra.mxu0 %vm5214_vm14, %v10520_v28  ;;  %6004 = vmatmul.msk.bf16.gmra.mxu1 %vm5214_vm14, %v10520_v28 }
 0x6df   : > { %6065 = vmatmul.msk.bf16.vlgmr.msra.gmra.mxu0 %vm2277_vm7, %v6118_v13  ;;  %6066 = vmatmul.msk.bf16.vlgmr.msra.gmra.mxu1 %vm2277_vm7, %v6119_v40 }
 0x6e5   : > { %v5348_v7 = vpop.f32.mrf.mxu2  ;;  %v5367_v55 = vpop.f32.mrf.mxu3 }
 0x6e6   : > { %v5349_v54 = vadd.f32 %v5348_v7, %v10595_v62  ;;  %v5368_v28 = vadd.f32 %v5367_v55, %v10595_v62 }
 0x6e8   : > { %5945 = vst [vmem:[%s10601_s14 + $0x40] sm:$0xff] %v5349_v54 }
 0x6e9   : > { %5946 = vst [vmem:[%s10601_s14 + $0x48] sm:$0xff] %v5368_v28 }
 0x6ed   : > { %v5350_v20 = vpop.f32.mrf.mxu2  ;;  %v5369_v36 = vpop.f32.mrf.mxu3 }
 0x6ee   : > { %v5351_v30 = vadd.f32 %v5350_v20, %v10649_v44  ;;  %v5370_v14 = vadd.f32 %v5369_v36, %v10649_v44 }
 0x6f0   : > { %5947 = vst [vmem:[%s10601_s14 + $0x50] sm:$0xff] %v5351_v30 }
 0x6f1   : > { %5948 = vst [vmem:[%s10601_s14 + $0x58] sm:$0xff] %v5370_v14 }
 0x6f5   : > { %v5353_v32 = vpop.f32.mrf.mxu2  ;;  %v5372_v41 = vpop.f32.mrf.mxu3 }
 0x6f6   : > { %v5354_v39 = vadd.f32 %v5353_v32, %v10613_v8  ;;  %v5373_v3 = vadd.f32 %v5372_v41, %v10613_v8 }
 0x6f8   : > { %5949 = vst [vmem:[%s10601_s14 + $0x60] sm:$0xff] %v5354_v39 }
 0x6f9   : > { %5950 = vst [vmem:[%s10601_s14 + $0x68] sm:$0xff] %v5373_v3 }
 0x6fd   : > { %v5355_v12 = vpop.f32.mrf.mxu2  ;;  %v5374_v19 = vpop.f32.mrf.mxu3 }
 0x6fe   : > { %v5356_v59 = vadd.f32 %v5355_v12, %v10633_v33  ;;  %v5375_v10 = vadd.f32 %v5374_v19, %v10633_v33 }
 0x700   : > { %5951 = vst [vmem:[%s10601_s14 + $0x70] sm:$0xff] %v5356_v59 }
 0x701   : > { %5952 = vst [vmem:[%s10601_s14 + $0x78] sm:$0xff] %v5375_v10 }
 0x73a   : > { %v5562_v6 = vpop.f32.mrf.mxu2  ;;  %v5581_v18 = vpop.f32.mrf.mxu3 }
 0x73b   : > { %v5563_v43 = vadd.f32 %v5562_v6, %v10595_v62  ;;  %v5582_v4 = vadd.f32 %v5581_v18, %v10595_v62 }
 0x73c   : > { %v5467_v11 = vpop.f32.mrf.mxu0  ;;  %v5486_v63 = vpop.f32.mrf.mxu1 }
 0x73d   : > { %6049 = vst [vmem:[%s10601_s14 + $0xc0] sm:$0xff] %v5563_v43  ;;  %v5468_v51 = vadd.f32 %v5467_v11, %v10595_v62  ;;  %v5487_v0 = vadd.f32 %v5486_v63, %v10595_v62 }
 0x73e   : > { %6050 = vst [vmem:[%s10601_s14 + $0xc8] sm:$0xff] %v5582_v4 }
 0x73f   : > { %6005 = vst [vmem:[%s10601_s14 + $0x80] sm:$0xff] %v5468_v51 }
 0x740   : > { %6006 = vst [vmem:[%s10601_s14 + $0x88] sm:$0xff] %v5487_v0 }
 0x742   : > { %v5564_v53 = vpop.f32.mrf.mxu2  ;;  %v5583_v56 = vpop.f32.mrf.mxu3 }
 0x743   : > { %v5565_v50 = vadd.f32 %v5564_v53, %v10649_v44  ;;  %v5584_v25 = vadd.f32 %v5583_v56, %v10649_v44 }
 0x744   : > { %v5469_v17 = vpop.f32.mrf.mxu0  ;;  %v5488_v2 = vpop.f32.mrf.mxu1 }
 0x745   : > { %6051 = vst [vmem:[%s10601_s14 + $0xd0] sm:$0xff] %v5565_v50  ;;  %v5470_v22 = vadd.f32 %v5469_v17, %v10649_v44  ;;  %v5489_v62 = vadd.f32 %v5488_v2, %v10649_v44 }
 0x746   : > { %6052 = vst [vmem:[%s10601_s14 + $0xd8] sm:$0xff] %v5584_v25 }
 0x747   : > { %6007 = vst [vmem:[%s10601_s14 + $0x90] sm:$0xff] %v5470_v22 }
 0x748   : > { %6008 = vst [vmem:[%s10601_s14 + $0x98] sm:$0xff] %v5489_v62 }
 0x74a   : > { %v5567_v42 = vpop.f32.mrf.mxu2  ;;  %v5586_v38 = vpop.f32.mrf.mxu3 }
 0x74b   : > { %v5568_v52 = vadd.f32 %v5567_v42, %v10613_v8  ;;  %v5587_v47 = vadd.f32 %v5586_v38, %v10613_v8 }
 0x74c   : > { %v5472_v24 = vpop.f32.mrf.mxu0  ;;  %v5491_v60 = vpop.f32.mrf.mxu1 }
 0x74d   : > { %6053 = vst [vmem:[%s10601_s14 + $0xe0] sm:$0xff] %v5568_v52  ;;  %v5473_v29 = vadd.f32 %v5472_v24, %v10613_v8  ;;  %v5492_v44 = vadd.f32 %v5491_v60, %v10613_v8 }
 0x74e   : > { %6054 = vst [vmem:[%s10601_s14 + $0xe8] sm:$0xff] %v5587_v47 }
 0x74f   : > { %6009 = vst [vmem:[%s10601_s14 + $0xa0] sm:$0xff] %v5473_v29 }
 0x750   : > { %6010 = vst [vmem:[%s10601_s14 + $0xa8] sm:$0xff] %v5492_v44 }
 0x752   : > { %v5569_v37 = vpop.f32.mrf.mxu2  ;;  %v5588_v58 = vpop.f32.mrf.mxu3 }
 0x753   : > { %v5570_v46 = vadd.f32 %v5569_v37, %v10633_v33  ;;  %v5589_v48 = vadd.f32 %v5588_v58, %v10633_v33 }
 0x754   : > { %v5474_v34 = vpop.f32.mrf.mxu0  ;;  %v5493_v5 = vpop.f32.mrf.mxu1 }
 0x755   : > { %6055 = vst [vmem:[%s10601_s14 + $0xf0] sm:$0xff] %v5570_v46  ;;  %v5475_v61 = vadd.f32 %v5474_v34, %v10633_v33  ;;  %v5494_v23 = vadd.f32 %v5493_v5, %v10633_v33 }
 0x756   : > { %6056 = vst [vmem:[%s10601_s14 + $0xf8] sm:$0xff] %v5589_v48 }
 0x757   : > { %6011 = vst [vmem:[%s10601_s14 + $0xb0] sm:$0xff] %v5475_v61 }
 0x758   : > { %6012 = vst [vmem:[%s10601_s14 + $0xb8] sm:$0xff] %v5494_v23  ;;  %s5715_s14 = sshll.u32 %s5712_s21, 4  ;;  %s5716_s14 = int_to_ptr.hbm [resolvable:$true] %s5715_s14 }
 0x759   : > { %s6196_s23 = sshra.s32 %s5716_s14, 4  ;;  %s6197_s23 = int_to_ptr.hbm [resolvable:$true] %s6196_s23 }
 0x75a   : > { %s6198_s24 = scalar_lea.hbm %s6197_s23, 32  ;;  %p6203_p0 = scmp.lt.s32.totalorder %s6197_s23, %s10788_s9 }
 0x75b   : > { %p6199_p11 = scmp.ne.s32.totalorder %s6197_s23, %s6198_s24  ;;  %p6204_p1 = scmp.lt.s32.totalorder %s6202_s28, %s6198_s24 }
 0x75c   : > { %v5678_v8 = vpop.f32.mrf.mxu0  ;;  %v5683_v21 = vpop.f32.mrf.mxu1 }
 0x75d   : > { %v5679_v16 = vadd.f32 %v5678_v8, %v10625_v26  ;;  %v5684_v57 = vadd.f32 %v5683_v21, %v10607_v9  ;;  %p6200_p12 = pnand %p6199_p11, %p6347_p5  ;;  %p6205_p2 = por %p6204_p1, %p6203_p0 }
 0x75f   : > { %5688 = vst.msk [vmem:[%s346_s27] sm:$0xff] %vm2442_vm12, %v5679_v16  ;;  %p6201_p13 = pneg %p6200_p12 }
 0x760   : > { %5690 = vst.msk [vmem:[%s346_s27 + $0x10] sm:$0xff] %vm2442_vm12, %v5684_v57 }
 0x761   : > { %p6206_p3 = pnand %p6205_p2, %p6201_p13 }
 0x764   : > { %v5680_v33 = vpop.f32.mrf.mxu0  ;;  %v5685_v1 = vpop.f32.mrf.mxu1 }
 0x765   : > { %v5681_v26 = vadd.f32 %v5680_v33, %v10645_v27  ;;  %v5686_v9 = vadd.f32 %v5685_v1, %v10631_v45 }
 0x767   : > { %5689 = vst.msk [vmem:[%s346_s27 + $0x8] sm:$0xff] %vm2442_vm12, %v5681_v26 }
 0x768   : > { %5691 = vst.msk [vmem:[%s346_s27 + $0x18] sm:$0xff] %vm2442_vm12, %v5686_v9 }
 0x769   : > { %6209 = shalt.err (!%p6206_p3)
}
 0x76a   : > { %s6258_s16 = smov 128  }
 0x76b   : > { %6123 = dma.vmem_to_hbm [thread:$0]  (%p6347_p5), %s5714_s22, 512, %s5716_s14, %s5698_s13, %s6258_s16, %s6258_s16, %s6247_s26  }
 0x76c PF: > { %p6129_p4 = scmp.ge.s32.totalorder %s6244_s12, 2  ;;  %s5738_s27 = sand.u32 1, %s6232_s30  }
 0x76d   : > { %s5739_s17 = scalar_lea.sflag [#allocation4], %s5738_s27 }
 0x76e   : > { %p6126_p7 = pnand %p6129_p4, %p6351_p6 }
 0x770   : > { %p6127_p8 = pneg %p6126_p7 }
 0x772   : > { %6227 = dma.done.wait (%p6127_p8), %s5739_s17, 512  }
 0x773   : > { %6229 = vsyncadd (%p6127_p8), %s5739_s17, 4294966784  ;;  %p20_p9 = scmp.ge.s32.totalorder %s6334_s15, 4   ;;  %s11620_s30 = smov %s6236_s10 }
 0x774   : > { %s11621_s10 = smov %s6240_s11  ;;  %s11622_s11 = smov %s6345_s18 }
 0x775   : > { %s11623_s12 = smov %s6334_s15  ;;  %22 = sbr.rel (!%p20_p9) target bundleno = 3 (0x3), region = 108 }
 0x77a   :  { %5745 = vsyncpa [#allocation4], 1 }
 0x77b   :  { %5747 = vsyncpa [#allocation4 + $0x1], 1 }

</bundles_post_ra>
